<compile_context>
chip_gen: v7x
topology: tpu7x:2x2x1
jax: 0.10.0
libtpu: 0.0.40
codegen_flags: <defaults>
</compile_context>

<pallas_src>
import functools

import jax
import jax.numpy as jnp
from jax.experimental import pallas as pl
from jax.experimental.pallas import tpu as pltpu

LEAKY_SLOPE = 0.2
BN_EPS = 1e-5


def _round_up(x, m):
    return ((x + m - 1) // m) * m


# ----------------------------------------------------------------------------
# Fused (bf16 matmul + per-channel scale/shift + activation) Pallas kernel
# ----------------------------------------------------------------------------
def _fused_matmul_kernel(x_ref, w_ref, scale_ref, shift_ref, o_ref,
                         *, activation):
    k = pl.program_id(2)

    @pl.when(k == 0)
    def _():
        o_ref[...] = jnp.zeros_like(o_ref)

    # Native bf16 MXU pass, f32 accumulation directly into the resident
    # output block (out index_map is invariant along the K grid axis).
    o_ref[...] += jnp.dot(x_ref[...], w_ref[...],
                          preferred_element_type=jnp.float32)

    @pl.when(k == pl.num_programs(2) - 1)
    def _():
        y = o_ref[...] * scale_ref[...] + shift_ref[...]
        if activation == "leaky_relu":
            y = jnp.where(y >= 0.0, y, LEAKY_SLOPE * y)
        elif activation == "sigmoid":
            y = jax.nn.sigmoid(y)
        o_ref[...] = y.astype(o_ref.dtype)


def fused_matmul(x, w, scale, shift, activation):
    """out = act((x @ w) * scale + shift); x:(M,K) w:(K,N) scale/shift:(N,)."""
    M, K = x.shape
    K2, N = w.shape
    assert K == K2 and K % 128 == 0, (K, K2)

    # bf16 operands on the MXU (f32 accumulation in-kernel).
    xb = x.astype(jnp.bfloat16)
    wb = w.astype(jnp.bfloat16)

    # (16,128)-aligned bf16 blocks; lane-dense output.
    tm = min(256, _round_up(M, 16))
    Mp = _round_up(M, tm)
    Np = _round_up(N, 128)
    tn = min(256, Np)

    # Tiny-M layers: do the whole K reduction in one grid step (per-step
    # overhead would dominate). Big-M layers: stream K in <=2048 chunks.
    if Mp <= 256 and K <= 8192:
        tk = K
    else:
        tk = next(t for t in (2048, 1024, 512, 256, 128) if K % t == 0)
    n_k = K // tk

    if Mp != M:
        xb = jnp.pad(xb, ((0, Mp - M), (0, 0)))
    if Np != N:
        wb = jnp.pad(wb, ((0, 0), (0, Np - N)))
        scale = jnp.pad(scale, (0, Np - N))
        shift = jnp.pad(shift, (0, Np - N))
    sp = scale.astype(jnp.float32).reshape(1, Np)
    bp = shift.astype(jnp.float32).reshape(1, Np)

    grid = (Mp // tm, Np // tn, n_k)

    out = pl.pallas_call(
        functools.partial(_fused_matmul_kernel, activation=activation),
        out_shape=jax.ShapeDtypeStruct((Mp, Np), jnp.float32),
        grid_spec=pltpu.PrefetchScalarGridSpec(
            num_scalar_prefetch=0,
            grid=grid,
            in_specs=[
                pl.BlockSpec((tm, tk), lambda i, j, k: (i, k)),
                pl.BlockSpec((tk, tn), lambda i, j, k: (k, j)),
                pl.BlockSpec((1, tn), lambda i, j, k: (0, j)),
                pl.BlockSpec((1, tn), lambda i, j, k: (0, j)),
            ],
            out_specs=pl.BlockSpec((tm, tn), lambda i, j, k: (i, j)),
        ),
        compiler_params=pltpu.CompilerParams(
            dimension_semantics=("parallel", "parallel", "arbitrary")),
    )(xb, wb, sp, bp)

    if Mp != M or Np != N:
        out = out[:M, :N]
    return out


# ----------------------------------------------------------------------------
# Patch_Conv layer = NHWC im2col + fused Pallas matmul (no transposes)
# ----------------------------------------------------------------------------
def _im2col_nhwc(x, stride):
    """x:(N,H,W,C) -> (N*Ho*Wo, 16*C) with feature order (kh, kw, c)."""
    n, h, w, c = x.shape
    xp = jnp.pad(x, ((0, 0), (1, 1), (1, 1), (0, 0)))
    ho = (h + 2 - 4) // stride + 1
    wo = (w + 2 - 4) // stride + 1
    taps = []
    for kh in range(4):
        for kw in range(4):
            taps.append(jax.lax.slice(
                xp, (0, kh, kw, 0),
                (n, kh + (ho - 1) * stride + 1, kw + (wo - 1) * stride + 1, c),
                (1, stride, stride, 1)))
    cols = jnp.stack(taps, axis=3)                      # (N, Ho, Wo, 16, C)
    return cols.reshape(n * ho * wo, 16 * c), ho, wo


def patch_conv(x, w, bias, bn, stride, activation):
    """One Patch_Conv layer. x: NHWC. w:(C_out,C_in,4,4). Returns NHWC."""
    n, _, _, c = x.shape
    c_out = w.shape[0]

    # Pad input channels to a multiple of 8 so K = 16*C is a multiple of 128
    # (only layer 1 needs this); the matching weight rows are zero.
    cpad = _round_up(c, 8) - c
    if cpad:
        x = jnp.pad(x, ((0, 0), (0, 0), (0, 0), (0, cpad)))
        w = jnp.pad(w, ((0, 0), (0, cpad), (0, 0), (0, 0)))

    cols, ho, wo = _im2col_nhwc(x, stride)
    wm = jnp.transpose(w, (2, 3, 1, 0)).reshape(-1, c_out)   # (16*C, C_out)

    if bn is not None:
        gamma, beta, mean, var = bn
        scale = gamma / jnp.sqrt(var + BN_EPS)
        shift = beta - mean * scale
    else:
        scale = jnp.ones((c_out,), jnp.float32)
        shift = bias if bias is not None else jnp.zeros((c_out,), jnp.float32)

    out = fused_matmul(cols, wm, scale, shift, activation)  # (N*Ho*Wo, C_out)
    return out.reshape(n, ho, wo, c_out)


def patchgan_forward(x, p):
    """x: NCHW (PyTorch convention); internally NHWC; returns NCHW."""
    out = jnp.transpose(x, (0, 2, 3, 1))
    out = patch_conv(out, p["w1"], p["b1"], None, 2, "leaky_relu")
    out = patch_conv(out, p["w2"], None, p["bn2"], 2, "leaky_relu")
    out = patch_conv(out, p["w3"], None, p["bn3"], 2, "leaky_relu")
    out = patch_conv(out, p["w4"], None, p["bn4"], 1, "leaky_relu")
    # Last layer (C_out=1) still goes through the MXU path with N padded to
    # 128; it is a single tiny grid step so the waste is negligible.
    out = patch_conv(out, p["w5"], p["b5"], None, 1, "sigmoid")
    return jnp.transpose(out, (0, 3, 1, 2))


# ----------------------------------------------------------------------------
# Pure-JAX reference (matches the PyTorch module in eval() mode)
# ----------------------------------------------------------------------------
def _conv_ref(x, w, stride, bias=None):
    out = jax.lax.conv_general_dilated(
        x, w, (stride, stride), ((1, 1), (1, 1)),
        dimension_numbers=("NCHW", "OIHW", "NCHW"),
        precision=jax.lax.Precision.HIGHEST)
    if bias is not None:
        out = out + bias[None, :, None, None]
    return out


def patchgan_ref(x, p):
    def bn(y, q):
        g, b, m, v = q
        return ((y - m[None, :, None, None])
                / jnp.sqrt(v[None, :, None, None] + BN_EPS)
                * g[None, :, None, None] + b[None, :, None, None])

    def lrelu(y):
        return jnp.where(y >= 0.0, y, LEAKY_SLOPE * y)

    out = lrelu(_conv_ref(x, p["w1"], 2, p["b1"]))
    out = lrelu(bn(_conv_ref(out, p["w2"], 2), p["bn2"]))
    out = lrelu(bn(_conv_ref(out, p["w3"], 2), p["bn3"]))
    out = lrelu(bn(_conv_ref(out, p["w4"], 1), p["bn4"]))
    out = jax.nn.sigmoid(_conv_ref(out, p["w5"], 1, p["b5"]))
    return out


def make_params(key):
    ks = jax.random.split(key, 10)

    def conv_w(k, co, ci):
        bound = 1.0 / (ci * 16) ** 0.5
        return jax.random.uniform(k, (co, ci, 4, 4), jnp.float32, -bound, bound)

    def conv_b(k, co, ci):
        bound = 1.0 / (ci * 16) ** 0.5
        return jax.random.uniform(k, (co,), jnp.float32, -bound, bound)

    def bn_p(k, c):
        k1, k2, k3, k4 = jax.random.split(k, 4)
        return (jax.random.uniform(k1, (c,), jnp.float32, 0.5, 1.5),
                0.1 * jax.random.normal(k2, (c,), jnp.float32),
                0.1 * jax.random.normal(k3, (c,), jnp.float32),
                jax.random.uniform(k4, (c,), jnp.float32, 0.5, 1.5))

    return {
        "w1": conv_w(ks[0], 64, 3), "b1": conv_b(ks[1], 64, 3),
        "w2": conv_w(ks[2], 128, 64), "bn2": bn_p(ks[3], 128),
        "w3": conv_w(ks[4], 256, 128), "bn3": bn_p(ks[5], 256),
        "w4": conv_w(ks[6], 512, 256), "bn4": bn_p(ks[7], 512),
        "w5": conv_w(ks[8], 1, 512), "b5": conv_b(ks[9], 1, 512),
    }


if __name__ == "__main__":
    key = jax.random.PRNGKey(0)
    kp, kx = jax.random.split(key)
    params = make_params(kp)

    # 32x32 input -> 16 -> 8 -> 4 -> 3 -> 2 spatial; output (2, 1, 2, 2).
    x = jax.random.normal(kx, (2, 3, 32, 32), jnp.float32)

    fwd = jax.jit(patchgan_forward)
    out = jax.block_until_ready(fwd(x, params))
    ref = jax.block_until_ready(patchgan_ref(x, params))

    assert out.shape == (2, 1, 2, 2), out.shape
    # bf16 MXU inputs (f32 accumulation) vs f32-HIGHEST reference: loosened
    # tolerance; post-sigmoid outputs live in [0, 1].
    err = float(jnp.max(jnp.abs(out - ref)))
    assert jnp.allclose(out, ref, rtol=5e-2, atol=2.5e-2), ("max_abs_err", err)
    print("KERNEL_OK")
</pallas_src>

<mosaic_0001>
module attributes {stable_mosaic.version = 11 : i64} {
  func.func @_fused_matmul_kernel(%arg0: i32, %arg1: i32, %arg2: i32, %arg3: memref<256x128xbf16, #tpu.memory_space<vmem>>, %arg4: memref<128x128xbf16, #tpu.memory_space<vmem>>, %arg5: memref<1x128xf32, #tpu.memory_space<vmem>>, %arg6: memref<1x128xf32, #tpu.memory_space<vmem>>, %arg7: memref<256x128xf32, #tpu.memory_space<vmem>>) attributes {dimension_semantics = [#tpu.dimension_semantics<parallel>, #tpu.dimension_semantics<parallel>, #tpu.dimension_semantics<arbitrary>], iteration_bounds = array<i64: 2, 1, 1>, scalar_prefetch = 0 : i64, scratch_operands = 0 : i64, tpu.core_type = #tpu.core_type<tc>, window_params = [{transform_indices = @transform_0, window_bounds = array<i64: 256, 128>}, {transform_indices = @transform_1, window_bounds = array<i64: 128, 128>}, {transform_indices = @transform_2, window_bounds = array<i64: 1, 128>}, {transform_indices = @transform_3, window_bounds = array<i64: 1, 128>}, {transform_indices = @transform_4, window_bounds = array<i64: 256, 128>}]} {
    %c0_i32 = arith.constant 0 : i32
    %0 = arith.cmpi eq, %arg2, %c0_i32 : i32
    %1 = arith.extui %0 : i1 to i32
    %c0_i32_0 = arith.constant 0 : i32
    %2 = arith.cmpi ne, %1, %c0_i32_0 : i32
    scf.if %2 {
      %cst_10 = arith.constant 0.000000e+00 : f32
      %12 = vector.broadcast %cst_10 : f32 to vector<256x128xf32>
      %c0_11 = arith.constant 0 : index
      %c0_12 = arith.constant 0 : index
      %13 = vector.load %arg7[%c0_11, %c0_12] : memref<256x128xf32, #tpu.memory_space<vmem>>, vector<256x128xf32>
      tpu.vector_store %arg7[%c0_11, %c0_12], %12 {strides = array<i32>} : memref<256x128xf32, #tpu.memory_space<vmem>>, vector<256x128xf32>,
    } else {
    }
    %c0 = arith.constant 0 : index
    %c0_1 = arith.constant 0 : index
    %3 = vector.load %arg7[%c0, %c0_1] : memref<256x128xf32, #tpu.memory_space<vmem>>, vector<256x128xf32>
    %c0_2 = arith.constant 0 : index
    %c0_3 = arith.constant 0 : index
    %4 = vector.load %arg3[%c0_2, %c0_3] : memref<256x128xbf16, #tpu.memory_space<vmem>>, vector<256x128xbf16>
    %c0_4 = arith.constant 0 : index
    %c0_5 = arith.constant 0 : index
    %5 = vector.load %arg4[%c0_4, %c0_5] : memref<128x128xbf16, #tpu.memory_space<vmem>>, vector<128x128xbf16>
    %cst = arith.constant dense<0.000000e+00> : vector<256x128xf32>
    %6 = tpu.matmul %4, %5, %cst {dimension_numbers = #tpu.dot_dimension_numbers<[1], [0], [0], [1], [0, 0, 1, 1], [], []>} : vector<256x128xbf16>, vector<128x128xbf16>, vector<256x128xf32> -> vector<256x128xf32>
    %7 = arith.addf %3, %6 : vector<256x128xf32>
    %c0_6 = arith.constant 0 : index
    %c0_7 = arith.constant 0 : index
    %8 = vector.load %arg7[%c0_6, %c0_7] : memref<256x128xf32, #tpu.memory_space<vmem>>, vector<256x128xf32>
    tpu.vector_store %arg7[%c0_6, %c0_7], %7 {strides = array<i32>} : memref<256x128xf32, #tpu.memory_space<vmem>>, vector<256x128xf32>,
    %c0_i32_8 = arith.constant 0 : i32
    %9 = arith.cmpi eq, %arg2, %c0_i32_8 : i32
    %10 = arith.extui %9 : i1 to i32
    %c0_i32_9 = arith.constant 0 : i32
    %11 = arith.cmpi ne, %10, %c0_i32_9 : i32
    scf.if %11 {
      %c0_10 = arith.constant 0 : index
      %c0_11 = arith.constant 0 : index
      %12 = vector.load %arg7[%c0_10, %c0_11] : memref<256x128xf32, #tpu.memory_space<vmem>>, vector<256x128xf32>
      %c0_12 = arith.constant 0 : index
      %c0_13 = arith.constant 0 : index
      %13 = vector.load %arg5[%c0_12, %c0_13] : memref<1x128xf32, #tpu.memory_space<vmem>>, vector<1x128xf32>
      %14 = vector.broadcast %13 : vector<1x128xf32> to vector<256x128xf32>
      %15 = arith.mulf %12, %14 : vector<256x128xf32>
      %c0_14 = arith.constant 0 : index
      %c0_15 = arith.constant 0 : index
      %16 = vector.load %arg6[%c0_14, %c0_15] : memref<1x128xf32, #tpu.memory_space<vmem>>, vector<1x128xf32>
      %17 = vector.broadcast %16 : vector<1x128xf32> to vector<256x128xf32>
      %18 = arith.addf %15, %17 : vector<256x128xf32>
      %cst_16 = arith.constant 0.000000e+00 : f32
      %19 = vector.broadcast %cst_16 : f32 to vector<256x128xf32>
      %20 = arith.cmpf oge, %18, %19 : vector<256x128xf32>
      %cst_17 = arith.constant 2.000000e-01 : f32
      %21 = vector.broadcast %cst_17 : f32 to vector<256x128xf32>
      %22 = arith.mulf %21, %18 : vector<256x128xf32>
      %23 = arith.select %20, %18, %22 : vector<256x128xi1>, vector<256x128xf32>
      %c0_18 = arith.constant 0 : index
      %c0_19 = arith.constant 0 : index
      %24 = vector.load %arg7[%c0_18, %c0_19] : memref<256x128xf32, #tpu.memory_space<vmem>>, vector<256x128xf32>
      tpu.vector_store %arg7[%c0_18, %c0_19], %23 {strides = array<i32>} : memref<256x128xf32, #tpu.memory_space<vmem>>, vector<256x128xf32>,
    } else {
    }
    return
  }
  func.func @transform_0(%arg0: i32, %arg1: i32, %arg2: i32) -> (i32, i32) {
    %c0_i32 = arith.constant 0 : i32
    return %arg0, %arg2 : i32, i32
  }
  func.func @transform_1(%arg0: i32, %arg1: i32, %arg2: i32) -> (i32, i32) {
    %c0_i32 = arith.constant 0 : i32
    return %arg2, %arg1 : i32, i32
  }
  func.func @transform_2(%arg0: i32, %arg1: i32, %arg2: i32) -> (i32, i32) {
    %c0_i32 = arith.constant 0 : i32
    %c0_i32_0 = arith.constant 0 : i32
    return %c0_i32, %arg1 : i32, i32
  }
  func.func @transform_3(%arg0: i32, %arg1: i32, %arg2: i32) -> (i32, i32) {
    %c0_i32 = arith.constant 0 : i32
    %c0_i32_0 = arith.constant 0 : i32
    return %c0_i32, %arg1 : i32, i32
  }
  func.func @transform_4(%arg0: i32, %arg1: i32, %arg2: i32) -> (i32, i32) {
    %c0_i32 = arith.constant 0 : i32
    return %arg0, %arg1 : i32, i32
  }
}

module attributes {stable_mosaic.version = 11 : i64} {
  func.func @_fused_matmul_kernel(%arg0: i32, %arg1: i32, %arg2: i32, %arg3: memref<128x1024xbf16, #tpu.memory_space<vmem>>, %arg4: memref<1024x128xbf16, #tpu.memory_space<vmem>>, %arg5: memref<1x128xf32, #tpu.memory_space<vmem>>, %arg6: memref<1x128xf32, #tpu.memory_space<vmem>>, %arg7: memref<128x128xf32, #tpu.memory_space<vmem>>) attributes {dimension_semantics = [#tpu.dimension_semantics<parallel>, #tpu.dimension_semantics<parallel>, #tpu.dimension_semantics<arbitrary>], iteration_bounds = array<i64: 1, 1, 1>, scalar_prefetch = 0 : i64, scratch_operands = 0 : i64, tpu.core_type = #tpu.core_type<tc>, window_params = [{transform_indices = @transform_0, window_bounds = array<i64: 128, 1024>}, {transform_indices = @transform_1, window_bounds = array<i64: 1024, 128>}, {transform_indices = @transform_2, window_bounds = array<i64: 1, 128>}, {transform_indices = @transform_3, window_bounds = array<i64: 1, 128>}, {transform_indices = @transform_4, window_bounds = array<i64: 128, 128>}]} {
    %c0_i32 = arith.constant 0 : i32
    %0 = arith.cmpi eq, %arg2, %c0_i32 : i32
    %1 = arith.extui %0 : i1 to i32
    %c0_i32_0 = arith.constant 0 : i32
    %2 = arith.cmpi ne, %1, %c0_i32_0 : i32
    scf.if %2 {
      %cst_10 = arith.constant 0.000000e+00 : f32
      %12 = vector.broadcast %cst_10 : f32 to vector<128x128xf32>
      %c0_11 = arith.constant 0 : index
      %c0_12 = arith.constant 0 : index
      %13 = vector.load %arg7[%c0_11, %c0_12] : memref<128x128xf32, #tpu.memory_space<vmem>>, vector<128x128xf32>
      tpu.vector_store %arg7[%c0_11, %c0_12], %12 {strides = array<i32>} : memref<128x128xf32, #tpu.memory_space<vmem>>, vector<128x128xf32>,
    } else {
    }
    %c0 = arith.constant 0 : index
    %c0_1 = arith.constant 0 : index
    %3 = vector.load %arg7[%c0, %c0_1] : memref<128x128xf32, #tpu.memory_space<vmem>>, vector<128x128xf32>
    %c0_2 = arith.constant 0 : index
    %c0_3 = arith.constant 0 : index
    %4 = vector.load %arg3[%c0_2, %c0_3] : memref<128x1024xbf16, #tpu.memory_space<vmem>>, vector<128x1024xbf16>
    %c0_4 = arith.constant 0 : index
    %c0_5 = arith.constant 0 : index
    %5 = vector.load %arg4[%c0_4, %c0_5] : memref<1024x128xbf16, #tpu.memory_space<vmem>>, vector<1024x128xbf16>
    %cst = arith.constant dense<0.000000e+00> : vector<128x128xf32>
    %6 = tpu.matmul %4, %5, %cst {dimension_numbers = #tpu.dot_dimension_numbers<[1], [0], [0], [1], [0, 0, 1, 1], [], []>} : vector<128x1024xbf16>, vector<1024x128xbf16>, vector<128x128xf32> -> vector<128x128xf32>
    %7 = arith.addf %3, %6 : vector<128x128xf32>
    %c0_6 = arith.constant 0 : index
    %c0_7 = arith.constant 0 : index
    %8 = vector.load %arg7[%c0_6, %c0_7] : memref<128x128xf32, #tpu.memory_space<vmem>>, vector<128x128xf32>
    tpu.vector_store %arg7[%c0_6, %c0_7], %7 {strides = array<i32>} : memref<128x128xf32, #tpu.memory_space<vmem>>, vector<128x128xf32>,
    %c0_i32_8 = arith.constant 0 : i32
    %9 = arith.cmpi eq, %arg2, %c0_i32_8 : i32
    %10 = arith.extui %9 : i1 to i32
    %c0_i32_9 = arith.constant 0 : i32
    %11 = arith.cmpi ne, %10, %c0_i32_9 : i32
    scf.if %11 {
      %c0_10 = arith.constant 0 : index
      %c0_11 = arith.constant 0 : index
      %12 = vector.load %arg7[%c0_10, %c0_11] : memref<128x128xf32, #tpu.memory_space<vmem>>, vector<128x128xf32>
      %c0_12 = arith.constant 0 : index
      %c0_13 = arith.constant 0 : index
      %13 = vector.load %arg5[%c0_12, %c0_13] : memref<1x128xf32, #tpu.memory_space<vmem>>, vector<1x128xf32>
      %14 = vector.broadcast %13 : vector<1x128xf32> to vector<128x128xf32>
      %15 = arith.mulf %12, %14 : vector<128x128xf32>
      %c0_14 = arith.constant 0 : index
      %c0_15 = arith.constant 0 : index
      %16 = vector.load %arg6[%c0_14, %c0_15] : memref<1x128xf32, #tpu.memory_space<vmem>>, vector<1x128xf32>
      %17 = vector.broadcast %16 : vector<1x128xf32> to vector<128x128xf32>
      %18 = arith.addf %15, %17 : vector<128x128xf32>
      %cst_16 = arith.constant 0.000000e+00 : f32
      %19 = vector.broadcast %cst_16 : f32 to vector<128x128xf32>
      %20 = arith.cmpf oge, %18, %19 : vector<128x128xf32>
      %cst_17 = arith.constant 2.000000e-01 : f32
      %21 = vector.broadcast %cst_17 : f32 to vector<128x128xf32>
      %22 = arith.mulf %21, %18 : vector<128x128xf32>
      %23 = arith.select %20, %18, %22 : vector<128x128xi1>, vector<128x128xf32>
      %c0_18 = arith.constant 0 : index
      %c0_19 = arith.constant 0 : index
      %24 = vector.load %arg7[%c0_18, %c0_19] : memref<128x128xf32, #tpu.memory_space<vmem>>, vector<128x128xf32>
      tpu.vector_store %arg7[%c0_18, %c0_19], %23 {strides = array<i32>} : memref<128x128xf32, #tpu.memory_space<vmem>>, vector<128x128xf32>,
    } else {
    }
    return
  }
  func.func @transform_0(%arg0: i32, %arg1: i32, %arg2: i32) -> (i32, i32) {
    %c0_i32 = arith.constant 0 : i32
    return %arg0, %arg2 : i32, i32
  }
  func.func @transform_1(%arg0: i32, %arg1: i32, %arg2: i32) -> (i32, i32) {
    %c0_i32 = arith.constant 0 : i32
    return %arg2, %arg1 : i32, i32
  }
  func.func @transform_2(%arg0: i32, %arg1: i32, %arg2: i32) -> (i32, i32) {
    %c0_i32 = arith.constant 0 : i32
    %c0_i32_0 = arith.constant 0 : i32
    return %c0_i32, %arg1 : i32, i32
  }
  func.func @transform_3(%arg0: i32, %arg1: i32, %arg2: i32) -> (i32, i32) {
    %c0_i32 = arith.constant 0 : i32
    %c0_i32_0 = arith.constant 0 : i32
    return %c0_i32, %arg1 : i32, i32
  }
  func.func @transform_4(%arg0: i32, %arg1: i32, %arg2: i32) -> (i32, i32) {
    %c0_i32 = arith.constant 0 : i32
    return %arg0, %arg1 : i32, i32
  }
}

module attributes {stable_mosaic.version = 11 : i64} {
  func.func @_fused_matmul_kernel(%arg0: i32, %arg1: i32, %arg2: i32, %arg3: memref<32x2048xbf16, #tpu.memory_space<vmem>>, %arg4: memref<2048x256xbf16, #tpu.memory_space<vmem>>, %arg5: memref<1x256xf32, #tpu.memory_space<vmem>>, %arg6: memref<1x256xf32, #tpu.memory_space<vmem>>, %arg7: memref<32x256xf32, #tpu.memory_space<vmem>>) attributes {dimension_semantics = [#tpu.dimension_semantics<parallel>, #tpu.dimension_semantics<parallel>, #tpu.dimension_semantics<arbitrary>], iteration_bounds = array<i64: 1, 1, 1>, scalar_prefetch = 0 : i64, scratch_operands = 0 : i64, tpu.core_type = #tpu.core_type<tc>, window_params = [{transform_indices = @transform_0, window_bounds = array<i64: 32, 2048>}, {transform_indices = @transform_1, window_bounds = array<i64: 2048, 256>}, {transform_indices = @transform_2, window_bounds = array<i64: 1, 256>}, {transform_indices = @transform_3, window_bounds = array<i64: 1, 256>}, {transform_indices = @transform_4, window_bounds = array<i64: 32, 256>}]} {
    %c0_i32 = arith.constant 0 : i32
    %0 = arith.cmpi eq, %arg2, %c0_i32 : i32
    %1 = arith.extui %0 : i1 to i32
    %c0_i32_0 = arith.constant 0 : i32
    %2 = arith.cmpi ne, %1, %c0_i32_0 : i32
    scf.if %2 {
      %cst_10 = arith.constant 0.000000e+00 : f32
      %12 = vector.broadcast %cst_10 : f32 to vector<32x256xf32>
      %c0_11 = arith.constant 0 : index
      %c0_12 = arith.constant 0 : index
      %13 = vector.load %arg7[%c0_11, %c0_12] : memref<32x256xf32, #tpu.memory_space<vmem>>, vector<32x256xf32>
      tpu.vector_store %arg7[%c0_11, %c0_12], %12 {strides = array<i32>} : memref<32x256xf32, #tpu.memory_space<vmem>>, vector<32x256xf32>,
    } else {
    }
    %c0 = arith.constant 0 : index
    %c0_1 = arith.constant 0 : index
    %3 = vector.load %arg7[%c0, %c0_1] : memref<32x256xf32, #tpu.memory_space<vmem>>, vector<32x256xf32>
    %c0_2 = arith.constant 0 : index
    %c0_3 = arith.constant 0 : index
    %4 = vector.load %arg3[%c0_2, %c0_3] : memref<32x2048xbf16, #tpu.memory_space<vmem>>, vector<32x2048xbf16>
    %c0_4 = arith.constant 0 : index
    %c0_5 = arith.constant 0 : index
    %5 = vector.load %arg4[%c0_4, %c0_5] : memref<2048x256xbf16, #tpu.memory_space<vmem>>, vector<2048x256xbf16>
    %cst = arith.constant dense<0.000000e+00> : vector<32x256xf32>
    %6 = tpu.matmul %4, %5, %cst {dimension_numbers = #tpu.dot_dimension_numbers<[1], [0], [0], [1], [0, 0, 1, 1], [], []>} : vector<32x2048xbf16>, vector<2048x256xbf16>, vector<32x256xf32> -> vector<32x256xf32>
    %7 = arith.addf %3, %6 : vector<32x256xf32>
    %c0_6 = arith.constant 0 : index
    %c0_7 = arith.constant 0 : index
    %8 = vector.load %arg7[%c0_6, %c0_7] : memref<32x256xf32, #tpu.memory_space<vmem>>, vector<32x256xf32>
    tpu.vector_store %arg7[%c0_6, %c0_7], %7 {strides = array<i32>} : memref<32x256xf32, #tpu.memory_space<vmem>>, vector<32x256xf32>,
    %c0_i32_8 = arith.constant 0 : i32
    %9 = arith.cmpi eq, %arg2, %c0_i32_8 : i32
    %10 = arith.extui %9 : i1 to i32
    %c0_i32_9 = arith.constant 0 : i32
    %11 = arith.cmpi ne, %10, %c0_i32_9 : i32
    scf.if %11 {
      %c0_10 = arith.constant 0 : index
      %c0_11 = arith.constant 0 : index
      %12 = vector.load %arg7[%c0_10, %c0_11] : memref<32x256xf32, #tpu.memory_space<vmem>>, vector<32x256xf32>
      %c0_12 = arith.constant 0 : index
      %c0_13 = arith.constant 0 : index
      %13 = vector.load %arg5[%c0_12, %c0_13] : memref<1x256xf32, #tpu.memory_space<vmem>>, vector<1x256xf32>
      %14 = vector.broadcast %13 : vector<1x256xf32> to vector<32x256xf32>
      %15 = arith.mulf %12, %14 : vector<32x256xf32>
      %c0_14 = arith.constant 0 : index
      %c0_15 = arith.constant 0 : index
      %16 = vector.load %arg6[%c0_14, %c0_15] : memref<1x256xf32, #tpu.memory_space<vmem>>, vector<1x256xf32>
      %17 = vector.broadcast %16 : vector<1x256xf32> to vector<32x256xf32>
      %18 = arith.addf %15, %17 : vector<32x256xf32>
      %cst_16 = arith.constant 0.000000e+00 : f32
      %19 = vector.broadcast %cst_16 : f32 to vector<32x256xf32>
      %20 = arith.cmpf oge, %18, %19 : vector<32x256xf32>
      %cst_17 = arith.constant 2.000000e-01 : f32
      %21 = vector.broadcast %cst_17 : f32 to vector<32x256xf32>
      %22 = arith.mulf %21, %18 : vector<32x256xf32>
      %23 = arith.select %20, %18, %22 : vector<32x256xi1>, vector<32x256xf32>
      %c0_18 = arith.constant 0 : index
      %c0_19 = arith.constant 0 : index
      %24 = vector.load %arg7[%c0_18, %c0_19] : memref<32x256xf32, #tpu.memory_space<vmem>>, vector<32x256xf32>
      tpu.vector_store %arg7[%c0_18, %c0_19], %23 {strides = array<i32>} : memref<32x256xf32, #tpu.memory_space<vmem>>, vector<32x256xf32>,
    } else {
    }
    return
  }
  func.func @transform_0(%arg0: i32, %arg1: i32, %arg2: i32) -> (i32, i32) {
    %c0_i32 = arith.constant 0 : i32
    return %arg0, %arg2 : i32, i32
  }
  func.func @transform_1(%arg0: i32, %arg1: i32, %arg2: i32) -> (i32, i32) {
    %c0_i32 = arith.constant 0 : i32
    return %arg2, %arg1 : i32, i32
  }
  func.func @transform_2(%arg0: i32, %arg1: i32, %arg2: i32) -> (i32, i32) {
    %c0_i32 = arith.constant 0 : i32
    %c0_i32_0 = arith.constant 0 : i32
    return %c0_i32, %arg1 : i32, i32
  }
  func.func @transform_3(%arg0: i32, %arg1: i32, %arg2: i32) -> (i32, i32) {
    %c0_i32 = arith.constant 0 : i32
    %c0_i32_0 = arith.constant 0 : i32
    return %c0_i32, %arg1 : i32, i32
  }
  func.func @transform_4(%arg0: i32, %arg1: i32, %arg2: i32) -> (i32, i32) {
    %c0_i32 = arith.constant 0 : i32
    return %arg0, %arg1 : i32, i32
  }
}

module attributes {stable_mosaic.version = 11 : i64} {
  func.func @_fused_matmul_kernel(%arg0: i32, %arg1: i32, %arg2: i32, %arg3: memref<32x4096xbf16, #tpu.memory_space<vmem>>, %arg4: memref<4096x256xbf16, #tpu.memory_space<vmem>>, %arg5: memref<1x256xf32, #tpu.memory_space<vmem>>, %arg6: memref<1x256xf32, #tpu.memory_space<vmem>>, %arg7: memref<32x256xf32, #tpu.memory_space<vmem>>) attributes {dimension_semantics = [#tpu.dimension_semantics<parallel>, #tpu.dimension_semantics<parallel>, #tpu.dimension_semantics<arbitrary>], iteration_bounds = array<i64: 1, 2, 1>, scalar_prefetch = 0 : i64, scratch_operands = 0 : i64, tpu.core_type = #tpu.core_type<tc>, window_params = [{transform_indices = @transform_0, window_bounds = array<i64: 32, 4096>}, {transform_indices = @transform_1, window_bounds = array<i64: 4096, 256>}, {transform_indices = @transform_2, window_bounds = array<i64: 1, 256>}, {transform_indices = @transform_3, window_bounds = array<i64: 1, 256>}, {transform_indices = @transform_4, window_bounds = array<i64: 32, 256>}]} {
    %c0_i32 = arith.constant 0 : i32
    %0 = arith.cmpi eq, %arg2, %c0_i32 : i32
    %1 = arith.extui %0 : i1 to i32
    %c0_i32_0 = arith.constant 0 : i32
    %2 = arith.cmpi ne, %1, %c0_i32_0 : i32
    scf.if %2 {
      %cst_10 = arith.constant 0.000000e+00 : f32
      %12 = vector.broadcast %cst_10 : f32 to vector<32x256xf32>
      %c0_11 = arith.constant 0 : index
      %c0_12 = arith.constant 0 : index
      %13 = vector.load %arg7[%c0_11, %c0_12] : memref<32x256xf32, #tpu.memory_space<vmem>>, vector<32x256xf32>
      tpu.vector_store %arg7[%c0_11, %c0_12], %12 {strides = array<i32>} : memref<32x256xf32, #tpu.memory_space<vmem>>, vector<32x256xf32>,
    } else {
    }
    %c0 = arith.constant 0 : index
    %c0_1 = arith.constant 0 : index
    %3 = vector.load %arg7[%c0, %c0_1] : memref<32x256xf32, #tpu.memory_space<vmem>>, vector<32x256xf32>
    %c0_2 = arith.constant 0 : index
    %c0_3 = arith.constant 0 : index
    %4 = vector.load %arg3[%c0_2, %c0_3] : memref<32x4096xbf16, #tpu.memory_space<vmem>>, vector<32x4096xbf16>
    %c0_4 = arith.constant 0 : index
    %c0_5 = arith.constant 0 : index
    %5 = vector.load %arg4[%c0_4, %c0_5] : memref<4096x256xbf16, #tpu.memory_space<vmem>>, vector<4096x256xbf16>
    %cst = arith.constant dense<0.000000e+00> : vector<32x256xf32>
    %6 = tpu.matmul %4, %5, %cst {dimension_numbers = #tpu.dot_dimension_numbers<[1], [0], [0], [1], [0, 0, 1, 1], [], []>} : vector<32x4096xbf16>, vector<4096x256xbf16>, vector<32x256xf32> -> vector<32x256xf32>
    %7 = arith.addf %3, %6 : vector<32x256xf32>
    %c0_6 = arith.constant 0 : index
    %c0_7 = arith.constant 0 : index
    %8 = vector.load %arg7[%c0_6, %c0_7] : memref<32x256xf32, #tpu.memory_space<vmem>>, vector<32x256xf32>
    tpu.vector_store %arg7[%c0_6, %c0_7], %7 {strides = array<i32>} : memref<32x256xf32, #tpu.memory_space<vmem>>, vector<32x256xf32>,
    %c0_i32_8 = arith.constant 0 : i32
    %9 = arith.cmpi eq, %arg2, %c0_i32_8 : i32
    %10 = arith.extui %9 : i1 to i32
    %c0_i32_9 = arith.constant 0 : i32
    %11 = arith.cmpi ne, %10, %c0_i32_9 : i32
    scf.if %11 {
      %c0_10 = arith.constant 0 : index
      %c0_11 = arith.constant 0 : index
      %12 = vector.load %arg7[%c0_10, %c0_11] : memref<32x256xf32, #tpu.memory_space<vmem>>, vector<32x256xf32>
      %c0_12 = arith.constant 0 : index
      %c0_13 = arith.constant 0 : index
      %13 = vector.load %arg5[%c0_12, %c0_13] : memref<1x256xf32, #tpu.memory_space<vmem>>, vector<1x256xf32>
      %14 = vector.broadcast %13 : vector<1x256xf32> to vector<32x256xf32>
      %15 = arith.mulf %12, %14 : vector<32x256xf32>
      %c0_14 = arith.constant 0 : index
      %c0_15 = arith.constant 0 : index
      %16 = vector.load %arg6[%c0_14, %c0_15] : memref<1x256xf32, #tpu.memory_space<vmem>>, vector<1x256xf32>
      %17 = vector.broadcast %16 : vector<1x256xf32> to vector<32x256xf32>
      %18 = arith.addf %15, %17 : vector<32x256xf32>
      %cst_16 = arith.constant 0.000000e+00 : f32
      %19 = vector.broadcast %cst_16 : f32 to vector<32x256xf32>
      %20 = arith.cmpf oge, %18, %19 : vector<32x256xf32>
      %cst_17 = arith.constant 2.000000e-01 : f32
      %21 = vector.broadcast %cst_17 : f32 to vector<32x256xf32>
      %22 = arith.mulf %21, %18 : vector<32x256xf32>
      %23 = arith.select %20, %18, %22 : vector<32x256xi1>, vector<32x256xf32>
      %c0_18 = arith.constant 0 : index
      %c0_19 = arith.constant 0 : index
      %24 = vector.load %arg7[%c0_18, %c0_19] : memref<32x256xf32, #tpu.memory_space<vmem>>, vector<32x256xf32>
      tpu.vector_store %arg7[%c0_18, %c0_19], %23 {strides = array<i32>} : memref<32x256xf32, #tpu.memory_space<vmem>>, vector<32x256xf32>,
    } else {
    }
    return
  }
  func.func @transform_0(%arg0: i32, %arg1: i32, %arg2: i32) -> (i32, i32) {
    %c0_i32 = arith.constant 0 : i32
    return %arg0, %arg2 : i32, i32
  }
  func.func @transform_1(%arg0: i32, %arg1: i32, %arg2: i32) -> (i32, i32) {
    %c0_i32 = arith.constant 0 : i32
    return %arg2, %arg1 : i32, i32
  }
  func.func @transform_2(%arg0: i32, %arg1: i32, %arg2: i32) -> (i32, i32) {
    %c0_i32 = arith.constant 0 : i32
    %c0_i32_0 = arith.constant 0 : i32
    return %c0_i32, %arg1 : i32, i32
  }
  func.func @transform_3(%arg0: i32, %arg1: i32, %arg2: i32) -> (i32, i32) {
    %c0_i32 = arith.constant 0 : i32
    %c0_i32_0 = arith.constant 0 : i32
    return %c0_i32, %arg1 : i32, i32
  }
  func.func @transform_4(%arg0: i32, %arg1: i32, %arg2: i32) -> (i32, i32) {
    %c0_i32 = arith.constant 0 : i32
    return %arg0, %arg1 : i32, i32
  }
}

module attributes {stable_mosaic.version = 11 : i64} {
  func.func @_fused_matmul_kernel(%arg0: i32, %arg1: i32, %arg2: i32, %arg3: memref<16x8192xbf16, #tpu.memory_space<vmem>>, %arg4: memref<8192x128xbf16, #tpu.memory_space<vmem>>, %arg5: memref<1x128xf32, #tpu.memory_space<vmem>>, %arg6: memref<1x128xf32, #tpu.memory_space<vmem>>, %arg7: memref<16x128xf32, #tpu.memory_space<vmem>>) attributes {dimension_semantics = [#tpu.dimension_semantics<parallel>, #tpu.dimension_semantics<parallel>, #tpu.dimension_semantics<arbitrary>], iteration_bounds = array<i64: 1, 1, 1>, scalar_prefetch = 0 : i64, scratch_operands = 0 : i64, tpu.core_type = #tpu.core_type<tc>, window_params = [{transform_indices = @transform_0, window_bounds = array<i64: 16, 8192>}, {transform_indices = @transform_1, window_bounds = array<i64: 8192, 128>}, {transform_indices = @transform_2, window_bounds = array<i64: 1, 128>}, {transform_indices = @transform_3, window_bounds = array<i64: 1, 128>}, {transform_indices = @transform_4, window_bounds = array<i64: 16, 128>}]} {
    %c0_i32 = arith.constant 0 : i32
    %0 = arith.cmpi eq, %arg2, %c0_i32 : i32
    %1 = arith.extui %0 : i1 to i32
    %c0_i32_0 = arith.constant 0 : i32
    %2 = arith.cmpi ne, %1, %c0_i32_0 : i32
    scf.if %2 {
      %cst_10 = arith.constant 0.000000e+00 : f32
      %12 = vector.broadcast %cst_10 : f32 to vector<16x128xf32>
      %c0_11 = arith.constant 0 : index
      %c0_12 = arith.constant 0 : index
      %13 = vector.load %arg7[%c0_11, %c0_12] : memref<16x128xf32, #tpu.memory_space<vmem>>, vector<16x128xf32>
      tpu.vector_store %arg7[%c0_11, %c0_12], %12 {strides = array<i32>} : memref<16x128xf32, #tpu.memory_space<vmem>>, vector<16x128xf32>,
    } else {
    }
    %c0 = arith.constant 0 : index
    %c0_1 = arith.constant 0 : index
    %3 = vector.load %arg7[%c0, %c0_1] : memref<16x128xf32, #tpu.memory_space<vmem>>, vector<16x128xf32>
    %c0_2 = arith.constant 0 : index
    %c0_3 = arith.constant 0 : index
    %4 = vector.load %arg3[%c0_2, %c0_3] : memref<16x8192xbf16, #tpu.memory_space<vmem>>, vector<16x8192xbf16>
    %c0_4 = arith.constant 0 : index
    %c0_5 = arith.constant 0 : index
    %5 = vector.load %arg4[%c0_4, %c0_5] : memref<8192x128xbf16, #tpu.memory_space<vmem>>, vector<8192x128xbf16>
    %cst = arith.constant dense<0.000000e+00> : vector<16x128xf32>
    %6 = tpu.matmul %4, %5, %cst {dimension_numbers = #tpu.dot_dimension_numbers<[1], [0], [0], [1], [0, 0, 1, 1], [], []>} : vector<16x8192xbf16>, vector<8192x128xbf16>, vector<16x128xf32> -> vector<16x128xf32>
    %7 = arith.addf %3, %6 : vector<16x128xf32>
    %c0_6 = arith.constant 0 : index
    %c0_7 = arith.constant 0 : index
    %8 = vector.load %arg7[%c0_6, %c0_7] : memref<16x128xf32, #tpu.memory_space<vmem>>, vector<16x128xf32>
    tpu.vector_store %arg7[%c0_6, %c0_7], %7 {strides = array<i32>} : memref<16x128xf32, #tpu.memory_space<vmem>>, vector<16x128xf32>,
    %c0_i32_8 = arith.constant 0 : i32
    %9 = arith.cmpi eq, %arg2, %c0_i32_8 : i32
    %10 = arith.extui %9 : i1 to i32
    %c0_i32_9 = arith.constant 0 : i32
    %11 = arith.cmpi ne, %10, %c0_i32_9 : i32
    scf.if %11 {
      %c0_10 = arith.constant 0 : index
      %c0_11 = arith.constant 0 : index
      %12 = vector.load %arg7[%c0_10, %c0_11] : memref<16x128xf32, #tpu.memory_space<vmem>>, vector<16x128xf32>
      %c0_12 = arith.constant 0 : index
      %c0_13 = arith.constant 0 : index
      %13 = vector.load %arg5[%c0_12, %c0_13] : memref<1x128xf32, #tpu.memory_space<vmem>>, vector<1x128xf32>
      %14 = vector.broadcast %13 : vector<1x128xf32> to vector<16x128xf32>
      %15 = arith.mulf %12, %14 : vector<16x128xf32>
      %c0_14 = arith.constant 0 : index
      %c0_15 = arith.constant 0 : index
      %16 = vector.load %arg6[%c0_14, %c0_15] : memref<1x128xf32, #tpu.memory_space<vmem>>, vector<1x128xf32>
      %17 = vector.broadcast %16 : vector<1x128xf32> to vector<16x128xf32>
      %18 = arith.addf %15, %17 : vector<16x128xf32>
      %19 = arith.negf %18 : vector<16x128xf32>
      %20 = math.exp %19 : vector<16x128xf32>
      %cst_16 = arith.constant 1.000000e+00 : f32
      %21 = vector.broadcast %cst_16 : f32 to vector<16x128xf32>
      %22 = arith.addf %21, %20 : vector<16x128xf32>
      %23 = arith.divf %21, %22 : vector<16x128xf32>
      %c0_17 = arith.constant 0 : index
      %c0_18 = arith.constant 0 : index
      %24 = vector.load %arg7[%c0_17, %c0_18] : memref<16x128xf32, #tpu.memory_space<vmem>>, vector<16x128xf32>
      tpu.vector_store %arg7[%c0_17, %c0_18], %23 {strides = array<i32>} : memref<16x128xf32, #tpu.memory_space<vmem>>, vector<16x128xf32>,
    } else {
    }
    return
  }
  func.func @transform_0(%arg0: i32, %arg1: i32, %arg2: i32) -> (i32, i32) {
    %c0_i32 = arith.constant 0 : i32
    return %arg0, %arg2 : i32, i32
  }
  func.func @transform_1(%arg0: i32, %arg1: i32, %arg2: i32) -> (i32, i32) {
    %c0_i32 = arith.constant 0 : i32
    return %arg2, %arg1 : i32, i32
  }
  func.func @transform_2(%arg0: i32, %arg1: i32, %arg2: i32) -> (i32, i32) {
    %c0_i32 = arith.constant 0 : i32
    %c0_i32_0 = arith.constant 0 : i32
    return %c0_i32, %arg1 : i32, i32
  }
  func.func @transform_3(%arg0: i32, %arg1: i32, %arg2: i32) -> (i32, i32) {
    %c0_i32 = arith.constant 0 : i32
    %c0_i32_0 = arith.constant 0 : i32
    return %c0_i32, %arg1 : i32, i32
  }
  func.func @transform_4(%arg0: i32, %arg1: i32, %arg2: i32) -> (i32, i32) {
    %c0_i32 = arith.constant 0 : i32
    return %arg0, %arg1 : i32, i32
  }
}

</mosaic_0001>

<bundles_post_ra>
// kernel: patchgan_forward.5
= control target key start
LH: loop header
LB: loop body
LE: loop exit
PB: predicated region body
PF: predicated region fallthrough
CT: control target
= control target key end

     0   :  { %s1376_s15 = smov 0   ;;  %s1378_s16 = smov 0   ;;  %s1563_s0 = inlined_call_operand.vmem [shape: bf16[512,128], index: 0, kind: input, shape index: {}]   ;;  %s1564_s1 = inlined_call_operand.vmem [shape: bf16[128,128], index: 1, kind: input, shape index: {}]   ;;  %s1565_s2 = inlined_call_operand.vmem [shape: f32[1,128], index: 2, kind: input, shape index: {}]   ;;  %s1566_s3 = inlined_call_operand.vmem [shape: f32[1,128], index: 3, kind: input, shape index: {}]   ;;  %s1567_s4 = inlined_call_operand.vmem [shape: f32[512,128], index: 4, kind: output, shape index: {}]  }
   0x1   :  { %s1380_s17 = smov 0  }
   0x2 LB: > { %s33_s18 = sadd.s32 1, %s1345_s16  ;;  %p1157_p0 = scmp.ge.s32.totalorder %s1349_s17, 1  ;;  %s1349_s17 = sphi %s1380_s17, %s14_s17   ;;  %s1345_s16 = sphi %s1378_s16, %s1569_s16   ;;  %s1341_s15 = sphi %s1376_s15, %s1568_s15  }
   0x3   : > { %p35_p1 = scmp.ge.s32.totalorder %s33_s18, 2  ;;  %p221_p2 = scmp.lt.s32.totalorder %s1349_s17, 3 }
   0x5   : > { %s1571_s18 = smov (%p35_p1, %s33_s18), 0  ;;  %p222_p3 = pnand %p1157_p0, %p221_p2 }
   0x6   : > { %v1303_v0 = vld [vmem:[%s1564_s1] sm:$0xff] (!%p222_p3)   ;;  %s1158_s21 = sshll.u32 (!%p222_p3), %s1341_s15, 5  ;;  %v1304_v1 = vld [vmem:[%s1564_s1 + $0x8] sm:$0xff] (!%p222_p3)   ;;  %v1305_v2 = vld [vmem:[%s1564_s1 + $0x10] sm:$0xff] (!%p222_p3)  }
   0x7   : > { %225 = sbr.rel (%p222_p3) target bundleno = 296 (0x128), region = 36  ;;  %p268_p4 = scmp.lt.s32.totalorder (!%p222_p3), %s1158_s21, 63  ;;  %1214 = vmatprep.subr.bf16.mxu0 (!%p222_p3), %v1303_v0  ;;  %1262 = vmatprep.subr.bf16.mxu1 (!%p222_p3), %v1303_v0  ;;  %v1306_v3 = vld [vmem:[%s1564_s1 + $0x18] sm:$0xff] (!%p222_p3)   ;;  %v1307_v6 = vld [vmem:[%s1564_s1 + $0x20] sm:$0xff] (!%p222_p3)   ;;  %v1308_v7 = vld [vmem:[%s1564_s1 + $0x28] sm:$0xff] (!%p222_p3)  }
   0x8   : > { %1215 = vmatpush3.bf16.msra.mxu0 (!%p222_p3), %v1303_v0  ;;  %1270 = vmatpush3.bf16.msra.mxu1 (!%p222_p3), %v1303_v0  ;;  %v1309_v8 = vld [vmem:[%s1564_s1 + $0x30] sm:$0xff] (!%p222_p3)   ;;  %v1310_v9 = vld [vmem:[%s1564_s1 + $0x38] sm:$0xff] (!%p222_p3)   ;;  %v1445_v25 = vld [vmem:[%s1565_s2] ss:$0 sm:$0xff] (!%p222_p3) }
   0x9   : > { %1216 = vmatprep.subr.bf16.mxu0 (!%p222_p3), %v1304_v1  ;;  %1263 = vmatprep.subr.bf16.mxu1 (!%p222_p3), %v1304_v1  ;;  %v1450_v29 = vld [vmem:[%s1566_s3] ss:$0 sm:$0xff] (!%p222_p3) }
   0xc   : > { %1217 = vmatpush3.bf16.msra.mxu0 (!%p222_p3), %v1304_v1  ;;  %1271 = vmatpush3.bf16.msra.mxu1 (!%p222_p3), %v1304_v1 }
   0xd   : > { %1218 = vmatprep.subr.bf16.mxu0 (!%p222_p3), %v1305_v2  ;;  %1264 = vmatprep.subr.bf16.mxu1 (!%p222_p3), %v1305_v2 }
   0xe   : > { %s1573_s21 = smov (!%p268_p4, %s1158_s21), 63 }
   0xf   : > { %s1159_s26 = sshll.u32 %s1573_s21, 2  ;;  %s1161_s22 = sshll.u32 %s1573_s21, 3 }
  0x10   : > { %s1409_s29 = scalar_lea.vmem %s1563_s0, %s1159_s26  ;;  %1219 = vmatpush3.bf16.msra.mxu0 %v1305_v2  ;;  %1272 = vmatpush3.bf16.msra.mxu1 %v1305_v2  ;;  %s1468_s24 = scalar_lea.vmem %s1567_s4, %s1161_s22 }
  0x11   : > { %v1311_v4 = vld [vmem:[%s1409_s29] sm:$0xff]   ;;  %1220 = vmatprep.subr.bf16.mxu0 %v1306_v3  ;;  %1265 = vmatprep.subr.bf16.mxu1 %v1306_v3  ;;  %v1313_v10 = vld [vmem:[%s1409_s29 + $0x8] sm:$0xff]   ;;  %v1315_v12 = vld [vmem:[%s1409_s29 + $0x10] sm:$0xff]  }
  0x12   : > { %v1312_v5 = vld [vmem:[%s1409_s29 + $0x40] sm:$0xff]   ;;  %1230 = vmatprep.mubr.bf16.mxu0 %v1311_v4  ;;  %v1314_v11 = vld [vmem:[%s1409_s29 + $0x48] sm:$0xff]   ;;  %v1316_v13 = vld [vmem:[%s1409_s29 + $0x50] sm:$0xff]  }
  0x13   : > { %1246 = vmatprep.mubr.bf16.mxu1 %v1312_v5  ;;  %v1317_v14 = vld [vmem:[%s1409_s29 + $0x18] sm:$0xff]   ;;  %v1319_v16 = vld [vmem:[%s1409_s29 + $0x20] sm:$0xff]   ;;  %v1321_v18 = vld [vmem:[%s1409_s29 + $0x28] sm:$0xff]  }
  0x14   : > { %1221 = vmatpush3.bf16.msra.mxu0 %v1306_v3  ;;  %1273 = vmatpush3.bf16.msra.mxu1 %v1306_v3  ;;  %v1318_v15 = vld [vmem:[%s1409_s29 + $0x58] sm:$0xff]   ;;  %v1320_v17 = vld [vmem:[%s1409_s29 + $0x60] sm:$0xff]   ;;  %v1322_v19 = vld [vmem:[%s1409_s29 + $0x68] sm:$0xff]  }
  0x15   : > { %1222 = vmatprep.subr.bf16.mxu0 %v1307_v6  ;;  %1266 = vmatprep.subr.bf16.mxu1 %v1307_v6  ;;  %v1323_v20 = vld [vmem:[%s1409_s29 + $0x30] sm:$0xff]   ;;  %v1325_v22 = vld [vmem:[%s1409_s29 + $0x38] sm:$0xff]  }
  0x16   : > { %v1324_v21 = vld [vmem:[%s1409_s29 + $0x70] sm:$0xff]   ;;  %v1326_v23 = vld [vmem:[%s1409_s29 + $0x78] sm:$0xff]  }
  0x18   : > { %1223 = vmatpush3.bf16.msra.mxu0 %v1307_v6  ;;  %1274 = vmatpush3.bf16.msra.mxu1 %v1307_v6 }
  0x19   : > { %1224 = vmatprep.subr.bf16.mxu0 %v1308_v7  ;;  %1267 = vmatprep.subr.bf16.mxu1 %v1308_v7 }
  0x1c   : > { %1225 = vmatpush3.bf16.msra.mxu0 %v1308_v7  ;;  %1275 = vmatpush3.bf16.msra.mxu1 %v1308_v7 }
  0x1d   : > { %1226 = vmatprep.subr.bf16.mxu0 %v1309_v8  ;;  %1268 = vmatprep.subr.bf16.mxu1 %v1309_v8 }
  0x20   : > { %1227 = vmatpush3.bf16.msra.mxu0 %v1309_v8  ;;  %1276 = vmatpush3.bf16.msra.mxu1 %v1309_v8 }
  0x21   : > { %1228 = vmatprep.subr.bf16.mxu0 %v1310_v9  ;;  %1269 = vmatprep.subr.bf16.mxu1 %v1310_v9 }
  0x24   : > { %1229 = vmatpush3.bf16.msra.mxu0 %v1310_v9  ;;  %1277 = vmatpush3.bf16.msra.mxu1 %v1310_v9 }
  0x27   : > { %1231 = vmatmul.mubr.bf16.vlgmr.msra.gmra.mrb[0].mxu0 %v1313_v10  ;;  %1247 = vmatmul.mubr.bf16.vlgmr.msra.gmra.mrb[0].mxu1 %v1314_v11 }
  0x28   : > { %1234 = vmatprep.mubr.bf16.mxu0 %v1315_v12  ;;  %1250 = vmatprep.mubr.bf16.mxu1 %v1316_v13 }
  0x2f   : > { %1235 = vmatmul.mubr.bf16.gmra.mrb[4].mxu0 %v1317_v14  ;;  %1251 = vmatmul.mubr.bf16.gmra.mrb[4].mxu1 %v1318_v15 }
  0x30   : > { %1238 = vmatprep.mubr.bf16.mxu0 %v1319_v16  ;;  %1254 = vmatprep.mubr.bf16.mxu1 %v1320_v17 }
  0x37   : > { %1239 = vmatmul.mubr.bf16.gmra.mrb[8].mxu0 %v1321_v18  ;;  %1255 = vmatmul.mubr.bf16.gmra.mrb[8].mxu1 %v1322_v19 }
  0x38   : > { %1242 = vmatprep.mubr.bf16.mxu0 %v1323_v20  ;;  %1258 = vmatprep.mubr.bf16.mxu1 %v1324_v21 }
  0x3f   : > { %1243 = vmatmul.mubr.bf16.gmra.mrb[12].mxu0 %v1325_v22  ;;  %1259 = vmatmul.mubr.bf16.gmra.mrb[12].mxu1 %v1326_v23 }
  0xfa   : > { %v1232_v24 = vpop.f32.mrb[0].mxu0  ;;  %v1248_v26 = vpop.f32.mrb[0].mxu1 }
  0xfb   : > { %v595_v27 = vpop.f32.mrb[1].mxu0  ;;  %v659_v28 = vpop.f32.mrb[1].mxu1  ;;  %v830_v32 = vmul.f32 %v1232_v24, %v1445_v25  ;;  %v846_v33 = vmul.f32 %v1248_v26, %v1445_v25 }
  0xfc   : > { %v1233_v30 = vpop.f32.mrb[2].mxu0  ;;  %v1249_v31 = vpop.f32.mrb[2].mxu1  ;;  %v828_v36 = vmul.f32 %v1445_v25, %v595_v27  ;;  %v844_v37 = vmul.f32 %v1445_v25, %v659_v28 }
  0xfd   : > { %v598_v34 = vpop.f32.mrb[3].mxu0  ;;  %v662_v35 = vpop.f32.mrb[3].mxu1  ;;  %v869_v38 = vadd.f32 %v1450_v29, %v830_v32  ;;  %v885_v39 = vadd.f32 %v1450_v29, %v846_v33  ;;  %v831_v40 = vmul.f32 %v1233_v30, %v1445_v25  ;;  %v847_v41 = vmul.f32 %v1249_v31, %v1445_v25 }
  0xfe   : > { %v867_v42 = vadd.f32 %v1450_v29, %v828_v36  ;;  %v883_v43 = vadd.f32 %v1450_v29, %v844_v37  ;;  %v829_v44 = vmul.f32 %v1445_v25, %v598_v34  ;;  %v845_v45 = vmul.f32 %v1445_v25, %v662_v35 }
  0xff   : > { %vm901_vm0 = vcmp.ge.f32.partialorder %v869_v38, 0.0  ;;  %v933_v46 = vmul.f32 0.2, %v869_v38  ;;  %vm917_vm1 = vcmp.ge.f32.partialorder %v885_v39, 0.0  ;;  %v949_v47 = vmul.f32 0.2, %v885_v39 }
 0x100   : > { %vm899_vm2 = vcmp.ge.f32.partialorder %v867_v42, 0.0  ;;  %v931_v48 = vmul.f32 0.2, %v867_v42  ;;  %vm915_vm3 = vcmp.ge.f32.partialorder %v883_v43, 0.0  ;;  %v947_v49 = vmul.f32 0.2, %v883_v43 }
 0x101   : > { %v965_v50 = vsel %vm901_vm0, %v869_v38, %v933_v46  ;;  %v981_v51 = vsel %vm917_vm1, %v885_v39, %v949_v47  ;;  %v870_v52 = vadd.f32 %v1450_v29, %v831_v40  ;;  %v886_v53 = vadd.f32 %v1450_v29, %v847_v41 }
 0x102   : > { %v1236_v54 = vpop.f32.mrb[4].mxu0  ;;  %v1252_v55 = vpop.f32.mrb[4].mxu1  ;;  %997 = vst [vmem:[%s1468_s24 + $0x10] sm:$0xff] %v965_v50  ;;  %1013 = vst [vmem:[%s1468_s24 + $0x90] sm:$0xff] %v981_v51  ;;  %v963_v56 = vsel %vm899_vm2, %v867_v42, %v931_v48  ;;  %v979_v57 = vsel %vm915_vm3, %v883_v43, %v947_v49  ;;  %v868_v58 = vadd.f32 %v1450_v29, %v829_v44 }
 0x103   : > { %v884_v59 = vadd.f32 %v1450_v29, %v845_v45  ;;  %v611_v60 = vpop.f32.mrb[5].mxu0  ;;  %v675_v61 = vpop.f32.mrb[5].mxu1  ;;  %995 = vst [vmem:[%s1468_s24] sm:$0xff] %v963_v56  ;;  %1011 = vst [vmem:[%s1468_s24 + $0x80] sm:$0xff] %v979_v57  ;;  %vm902_vm4 = vcmp.ge.f32.partialorder %v870_v52, 0.0  ;;  %v934_v62 = vmul.f32 0.2, %v870_v52  ;;  %v834_v10 = vmul.f32 %v1236_v54, %v1445_v25 }
 0x104   : > { %vm918_vm5 = vcmp.ge.f32.partialorder %v886_v53, 0.0  ;;  %v950_v63 = vmul.f32 0.2, %v886_v53  ;;  %vm900_vm6 = vcmp.ge.f32.partialorder %v868_v58, 0.0  ;;  %v932_v0 = vmul.f32 0.2, %v868_v58 }
 0x105   : > { %vm916_vm7 = vcmp.ge.f32.partialorder %v884_v59, 0.0  ;;  %v948_v1 = vmul.f32 0.2, %v884_v59  ;;  %v966_v2 = vsel %vm902_vm4, %v870_v52, %v934_v62  ;;  %v1237_v4 = vpop.f32.mrb[6].mxu0  ;;  %v1253_v5 = vpop.f32.mrb[6].mxu1  ;;  %v850_v11 = vmul.f32 %v1252_v55, %v1445_v25 }
 0x106   : > { %v982_v3 = vsel %vm918_vm5, %v886_v53, %v950_v63  ;;  %998 = vst [vmem:[%s1468_s24 + $0x18] sm:$0xff] %v966_v2  ;;  %v964_v6 = vsel %vm900_vm6, %v868_v58, %v932_v0  ;;  %v614_v8 = vpop.f32.mrb[7].mxu0  ;;  %v678_v9 = vpop.f32.mrb[7].mxu1  ;;  %v832_v12 = vmul.f32 %v1445_v25, %v611_v60  ;;  %v848_v13 = vmul.f32 %v1445_v25, %v675_v61 }
 0x107   : > { %1014 = vst [vmem:[%s1468_s24 + $0x98] sm:$0xff] %v982_v3  ;;  %v980_v7 = vsel %vm916_vm7, %v884_v59, %v948_v1  ;;  %996 = vst [vmem:[%s1468_s24 + $0x8] sm:$0xff] %v964_v6  ;;  %v873_v16 = vadd.f32 %v1450_v29, %v834_v10  ;;  %v889_v17 = vadd.f32 %v1450_v29, %v850_v11 }
 0x108   : > { %1012 = vst [vmem:[%s1468_s24 + $0x88] sm:$0xff] %v980_v7  ;;  %v835_v18 = vmul.f32 %v1237_v4, %v1445_v25  ;;  %v851_v19 = vmul.f32 %v1253_v5, %v1445_v25  ;;  %v871_v22 = vadd.f32 %v1450_v29, %v832_v12  ;;  %v887_v23 = vadd.f32 %v1450_v29, %v848_v13 }
 0x109   : > { %v833_v24 = vmul.f32 %v1445_v25, %v614_v8  ;;  %v849_v26 = vmul.f32 %v1445_v25, %v678_v9  ;;  %vm905_vm8 = vcmp.ge.f32.partialorder %v873_v16, 0.0  ;;  %v937_v30 = vmul.f32 0.2, %v873_v16 }
 0x10a   : > { %v1240_v14 = vpop.f32.mrb[8].mxu0  ;;  %v1256_v15 = vpop.f32.mrb[8].mxu1  ;;  %vm921_vm9 = vcmp.ge.f32.partialorder %v889_v17, 0.0  ;;  %v953_v31 = vmul.f32 0.2, %v889_v17  ;;  %vm903_vm10 = vcmp.ge.f32.partialorder %v871_v22, 0.0  ;;  %v874_v36 = vadd.f32 %v1450_v29, %v835_v18 }
 0x10b   : > { %v627_v20 = vpop.f32.mrb[9].mxu0  ;;  %v691_v21 = vpop.f32.mrb[9].mxu1  ;;  %v935_v32 = vmul.f32 0.2, %v871_v22  ;;  %vm919_vm11 = vcmp.ge.f32.partialorder %v887_v23, 0.0  ;;  %v969_v34 = vsel %vm905_vm8, %v873_v16, %v937_v30  ;;  %v890_v37 = vadd.f32 %v1450_v29, %v851_v19 }
 0x10c   : > { %v1241_v27 = vpop.f32.mrb[10].mxu0  ;;  %v1257_v28 = vpop.f32.mrb[10].mxu1  ;;  %v951_v33 = vmul.f32 0.2, %v887_v23  ;;  %v985_v35 = vsel %vm921_vm9, %v889_v17, %v953_v31  ;;  %1001 = vst [vmem:[%s1468_s24 + $0x30] sm:$0xff] %v969_v34  ;;  %v872_v42 = vadd.f32 %v1450_v29, %v833_v24  ;;  %v888_v43 = vadd.f32 %v1450_v29, %v849_v26 }
 0x10d   : > { %v630_v38 = vpop.f32.mrb[11].mxu0  ;;  %v694_v39 = vpop.f32.mrb[11].mxu1  ;;  %1017 = vst [vmem:[%s1468_s24 + $0xb0] sm:$0xff] %v985_v35  ;;  %v967_v40 = vsel %vm903_vm10, %v871_v22, %v935_v32  ;;  %vm906_vm12 = vcmp.ge.f32.partialorder %v874_v36, 0.0  ;;  %v938_v44 = vmul.f32 0.2, %v874_v36  ;;  %v838_v56 = vmul.f32 %v1240_v14, %v1445_v25 }
 0x10e   : > { %v983_v41 = vsel %vm919_vm11, %v887_v23, %v951_v33  ;;  %999 = vst [vmem:[%s1468_s24 + $0x20] sm:$0xff] %v967_v40  ;;  %vm922_vm13 = vcmp.ge.f32.partialorder %v890_v37, 0.0  ;;  %v954_v45 = vmul.f32 0.2, %v890_v37  ;;  %vm904_vm14 = vcmp.ge.f32.partialorder %v872_v42, 0.0 }
 0x10f   : > { %1015 = vst [vmem:[%s1468_s24 + $0xa0] sm:$0xff] %v983_v41  ;;  %v936_v46 = vmul.f32 0.2, %v872_v42  ;;  %vm920_vm15 = vcmp.ge.f32.partialorder %v888_v43, 0.0  ;;  %v952_v47 = vmul.f32 0.2, %v888_v43  ;;  %v970_v48 = vsel %vm906_vm12, %v874_v36, %v938_v44 }
 0x110   : > { %v986_v49 = vsel %vm922_vm13, %v890_v37, %v954_v45  ;;  %1002 = vst [vmem:[%s1468_s24 + $0x38] sm:$0xff] %v970_v48  ;;  %v854_v57 = vmul.f32 %v1256_v15, %v1445_v25  ;;  %v836_v60 = vmul.f32 %v1445_v25, %v627_v20  ;;  %v852_v61 = vmul.f32 %v1445_v25, %v691_v21 }
 0x111   : > { %1018 = vst [vmem:[%s1468_s24 + $0xb8] sm:$0xff] %v986_v49  ;;  %v968_v52 = vsel %vm904_vm14, %v872_v42, %v936_v46  ;;  %v984_v53 = vsel %vm920_vm15, %v888_v43, %v952_v47  ;;  %v877_v0 = vadd.f32 %v1450_v29, %v838_v56  ;;  %v839_v2 = vmul.f32 %v1241_v27, %v1445_v25 }
 0x112   : > { %v1244_v50 = vpop.f32.mrb[12].mxu0  ;;  %v1260_v51 = vpop.f32.mrb[12].mxu1  ;;  %1000 = vst [vmem:[%s1468_s24 + $0x28] sm:$0xff] %v968_v52  ;;  %1016 = vst [vmem:[%s1468_s24 + $0xa8] sm:$0xff] %v984_v53  ;;  %v893_v1 = vadd.f32 %v1450_v29, %v854_v57  ;;  %v855_v3 = vmul.f32 %v1257_v28, %v1445_v25  ;;  %v875_v4 = vadd.f32 %v1450_v29, %v836_v60 }
 0x113   : > { %v643_v54 = vpop.f32.mrb[13].mxu0  ;;  %v707_v55 = vpop.f32.mrb[13].mxu1  ;;  %v891_v5 = vadd.f32 %v1450_v29, %v852_v61  ;;  %v837_v6 = vmul.f32 %v1445_v25, %v630_v38  ;;  %v853_v7 = vmul.f32 %v1445_v25, %v694_v39  ;;  %vm909_vm0 = vcmp.ge.f32.partialorder %v877_v0, 0.0 }
 0x114   : > { %v1245_v58 = vpop.f32.mrb[14].mxu0  ;;  %v1261_v59 = vpop.f32.mrb[14].mxu1  ;;  %v941_v8 = vmul.f32 0.2, %v877_v0  ;;  %vm925_vm1 = vcmp.ge.f32.partialorder %v893_v1, 0.0  ;;  %vm907_vm2 = vcmp.ge.f32.partialorder %v875_v4, 0.0  ;;  %v878_v14 = vadd.f32 %v1450_v29, %v839_v2 }
 0x115   : > { %v646_v62 = vpop.f32.mrb[15].mxu0  ;;  %v710_v63 = vpop.f32.mrb[15].mxu1  ;;  %v957_v9 = vmul.f32 0.2, %v893_v1  ;;  %v939_v10 = vmul.f32 0.2, %v875_v4  ;;  %v894_v15 = vadd.f32 %v1450_v29, %v855_v3  ;;  %v876_v18 = vadd.f32 %v1450_v29, %v837_v6 }
 0x116   : > { %vm923_vm3 = vcmp.ge.f32.partialorder %v891_v5, 0.0  ;;  %v955_v11 = vmul.f32 0.2, %v891_v5  ;;  %v973_v12 = vsel %vm909_vm0, %v877_v0, %v941_v8  ;;  %v892_v19 = vadd.f32 %v1450_v29, %v853_v7 }
 0x117   : > { %v989_v13 = vsel %vm925_vm1, %v893_v1, %v957_v9  ;;  %1005 = vst [vmem:[%s1468_s24 + $0x50] sm:$0xff] %v973_v12  ;;  %v971_v16 = vsel %vm907_vm2, %v875_v4, %v939_v10  ;;  %vm910_vm4 = vcmp.ge.f32.partialorder %v878_v14, 0.0  ;;  %v942_v20 = vmul.f32 0.2, %v878_v14 }
 0x118   : > { %1021 = vst [vmem:[%s1468_s24 + $0xd0] sm:$0xff] %v989_v13  ;;  %v987_v17 = vsel %vm923_vm3, %v891_v5, %v955_v11  ;;  %1003 = vst [vmem:[%s1468_s24 + $0x40] sm:$0xff] %v971_v16  ;;  %vm926_vm5 = vcmp.ge.f32.partialorder %v894_v15, 0.0  ;;  %v958_v21 = vmul.f32 0.2, %v894_v15  ;;  %vm908_vm6 = vcmp.ge.f32.partialorder %v876_v18, 0.0 }
 0x119   : > { %1019 = vst [vmem:[%s1468_s24 + $0xc0] sm:$0xff] %v987_v17  ;;  %v940_v22 = vmul.f32 0.2, %v876_v18  ;;  %vm924_vm7 = vcmp.ge.f32.partialorder %v892_v19, 0.0  ;;  %v956_v23 = vmul.f32 0.2, %v892_v19  ;;  %v974_v24 = vsel %vm910_vm4, %v878_v14, %v942_v20 }
 0x11a   : > { %v990_v26 = vsel %vm926_vm5, %v894_v15, %v958_v21  ;;  %1006 = vst [vmem:[%s1468_s24 + $0x58] sm:$0xff] %v974_v24  ;;  %v842_v30 = vmul.f32 %v1244_v50, %v1445_v25  ;;  %v858_v31 = vmul.f32 %v1260_v51, %v1445_v25  ;;  %v840_v32 = vmul.f32 %v1445_v25, %v643_v54 }
 0x11b   : > { %1022 = vst [vmem:[%s1468_s24 + $0xd8] sm:$0xff] %v990_v26  ;;  %v972_v27 = vsel %vm908_vm6, %v876_v18, %v940_v22  ;;  %v988_v28 = vsel %vm924_vm7, %v892_v19, %v956_v23  ;;  %v856_v33 = vmul.f32 %v1445_v25, %v707_v55  ;;  %v843_v36 = vmul.f32 %v1245_v58, %v1445_v25 }
 0x11c   : > { %1004 = vst [vmem:[%s1468_s24 + $0x48] sm:$0xff] %v972_v27  ;;  %1020 = vst [vmem:[%s1468_s24 + $0xc8] sm:$0xff] %v988_v28  ;;  %v881_v34 = vadd.f32 %v1450_v29, %v842_v30  ;;  %v897_v35 = vadd.f32 %v1450_v29, %v858_v31  ;;  %v859_v37 = vmul.f32 %v1261_v59, %v1445_v25 }
 0x11d   : > { %v879_v38 = vadd.f32 %v1450_v29, %v840_v32  ;;  %v895_v39 = vadd.f32 %v1450_v29, %v856_v33  ;;  %v841_v40 = vmul.f32 %v1445_v25, %v646_v62  ;;  %v857_v41 = vmul.f32 %v1445_v25, %v710_v63 }
 0x11e   : > { %vm913_vm8 = vcmp.ge.f32.partialorder %v881_v34, 0.0  ;;  %v945_v42 = vmul.f32 0.2, %v881_v34  ;;  %vm929_vm9 = vcmp.ge.f32.partialorder %v897_v35, 0.0  ;;  %v961_v43 = vmul.f32 0.2, %v897_v35 }
 0x11f   : > { %vm911_vm10 = vcmp.ge.f32.partialorder %v879_v38, 0.0  ;;  %v943_v44 = vmul.f32 0.2, %v879_v38  ;;  %vm927_vm11 = vcmp.ge.f32.partialorder %v895_v39, 0.0  ;;  %v959_v45 = vmul.f32 0.2, %v895_v39 }
 0x120   : > { %v977_v46 = vsel %vm913_vm8, %v881_v34, %v945_v42  ;;  %v993_v47 = vsel %vm929_vm9, %v897_v35, %v961_v43  ;;  %v882_v48 = vadd.f32 %v1450_v29, %v843_v36  ;;  %v898_v49 = vadd.f32 %v1450_v29, %v859_v37 }
 0x121   : > { %1009 = vst [vmem:[%s1468_s24 + $0x70] sm:$0xff] %v977_v46  ;;  %1025 = vst [vmem:[%s1468_s24 + $0xf0] sm:$0xff] %v993_v47  ;;  %v975_v50 = vsel %vm911_vm10, %v879_v38, %v943_v44  ;;  %v991_v25 = vsel %vm927_vm11, %v895_v39, %v959_v45  ;;  %v880_v51 = vadd.f32 %v1450_v29, %v841_v40 }
 0x122   : > { %v896_v52 = vadd.f32 %v1450_v29, %v857_v41  ;;  %1007 = vst [vmem:[%s1468_s24 + $0x60] sm:$0xff] %v975_v50  ;;  %1023 = vst [vmem:[%s1468_s24 + $0xe0] sm:$0xff] %v991_v25  ;;  %vm914_vm12 = vcmp.ge.f32.partialorder %v882_v48, 0.0  ;;  %v946_v53 = vmul.f32 0.2, %v882_v48  ;;  %vm930_vm13 = vcmp.ge.f32.partialorder %v898_v49, 0.0 }
 0x123   : > { %v962_v54 = vmul.f32 0.2, %v898_v49  ;;  %vm912_vm14 = vcmp.ge.f32.partialorder %v880_v51, 0.0  ;;  %v944_v55 = vmul.f32 0.2, %v880_v51 }
 0x124   : > { %vm928_vm15 = vcmp.ge.f32.partialorder %v896_v52, 0.0  ;;  %v960_v56 = vmul.f32 0.2, %v896_v52  ;;  %v978_v57 = vsel %vm914_vm12, %v882_v48, %v946_v53 }
 0x125   : > { %v994_v58 = vsel %vm930_vm13, %v898_v49, %v962_v54  ;;  %1010 = vst [vmem:[%s1468_s24 + $0x78] sm:$0xff] %v978_v57  ;;  %v976_v59 = vsel %vm912_vm14, %v880_v51, %v944_v55 }
 0x126   : > { %1026 = vst [vmem:[%s1468_s24 + $0xf8] sm:$0xff] %v994_v58  ;;  %v992_v60 = vsel %vm928_vm15, %v896_v52, %v960_v56  ;;  %1008 = vst [vmem:[%s1468_s24 + $0x68] sm:$0xff] %v976_v59 }
 0x127   : > { %1024 = vst [vmem:[%s1468_s24 + $0xe8] sm:$0xff] %v992_v60 }
 0x128 PF: > { %s14_s17 = sadd.s32 1, %s1349_s17   ;;  %s1568_s15 = smov %s1345_s16 }
 0x129   : > { %p11_p5 = scmp.ge.s32.totalorder %s14_s17, 4   ;;  %s1569_s16 = smov %s1571_s18 }
 0x12b   :  { %13 = sbr.rel (!%p11_p5) target bundleno = 2 (0x2), region = 83 }

// kernel: patchgan_forward.6
= control target key start
LH: loop header
LB: loop body
LE: loop exit
PB: predicated region body
PF: predicated region fallthrough
CT: control target
= control target key end

     0   :  { %s2501_s1 = inlined_call_operand.vmem [shape: bf16[1024,128], index: 1, kind: input, shape index: {}]   ;;  %s2502_s0 = inlined_call_operand.vmem [shape: bf16[128,1024], index: 0, kind: input, shape index: {}]   ;;  %s2503_s2 = inlined_call_operand.vmem [shape: f32[1,128], index: 2, kind: input, shape index: {}]   ;;  %s2504_s3 = inlined_call_operand.vmem [shape: f32[1,128], index: 3, kind: input, shape index: {}]   ;;  %s2505_s4 = inlined_call_operand.vmem [shape: f32[128,128], index: 4, kind: output, shape index: {}]  }
   0x1   :  { %v1890_v0 = vld [vmem:[%s2501_s1 + $0x40] sm:$0xff]   ;;  %v1894_v4 = vld [vmem:[%s2501_s1 + $0x48] sm:$0xff]   ;;  %v1898_v8 = vld [vmem:[%s2501_s1 + $0x50] sm:$0xff]  }
   0x2   :  { %v1891_v1 = vld [vmem:[%s2501_s1 + $0xc0] sm:$0xff]   ;;  %1633 = vmatprep.subr.bf16.mxu0 %v1890_v0  ;;  %v1895_v5 = vld [vmem:[%s2501_s1 + $0xc8] sm:$0xff]   ;;  %v1899_v9 = vld [vmem:[%s2501_s1 + $0xd0] sm:$0xff]  }
   0x3   :  { %v1892_v2 = vld [vmem:[%s2501_s1] sm:$0xff]   ;;  %1697 = vmatprep.subr.bf16.mxu1 %v1891_v1  ;;  %v1896_v6 = vld [vmem:[%s2501_s1 + $0x8] sm:$0xff]   ;;  %v1900_v10 = vld [vmem:[%s2501_s1 + $0x10] sm:$0xff]  }
   0x4   :  { %v1893_v3 = vld [vmem:[%s2501_s1 + $0x80] sm:$0xff]   ;;  %1634 = vmatpush3.bf16.msra.mxu0 %v1892_v2  ;;  %v1897_v7 = vld [vmem:[%s2501_s1 + $0x88] sm:$0xff]   ;;  %v1901_v11 = vld [vmem:[%s2501_s1 + $0x90] sm:$0xff]  }
   0x5   :  { %1698 = vmatpush3.bf16.msra.mxu1 %v1893_v3  ;;  %1635 = vmatprep.subr.bf16.mxu0 %v1894_v4  ;;  %v1902_v12 = vld [vmem:[%s2501_s1 + $0x58] sm:$0xff]   ;;  %v1906_v16 = vld [vmem:[%s2501_s1 + $0x60] sm:$0xff]   ;;  %v1910_v20 = vld [vmem:[%s2501_s1 + $0x68] sm:$0xff]  }
   0x6   :  { %1699 = vmatprep.subr.bf16.mxu1 %v1895_v5  ;;  %v1903_v13 = vld [vmem:[%s2501_s1 + $0xd8] sm:$0xff]   ;;  %v1907_v17 = vld [vmem:[%s2501_s1 + $0xe0] sm:$0xff]   ;;  %v1911_v21 = vld [vmem:[%s2501_s1 + $0xe8] sm:$0xff]  }
   0x7   :  { %v1904_v14 = vld [vmem:[%s2501_s1 + $0x18] sm:$0xff]   ;;  %v1908_v18 = vld [vmem:[%s2501_s1 + $0x20] sm:$0xff]   ;;  %v1912_v22 = vld [vmem:[%s2501_s1 + $0x28] sm:$0xff]  }
   0x8   :  { %1636 = vmatpush3.bf16.msra.mxu0 %v1896_v6  ;;  %v1905_v15 = vld [vmem:[%s2501_s1 + $0x98] sm:$0xff]   ;;  %v1909_v19 = vld [vmem:[%s2501_s1 + $0xa0] sm:$0xff]   ;;  %v1913_v23 = vld [vmem:[%s2501_s1 + $0xa8] sm:$0xff]  }
   0x9   :  { %1700 = vmatpush3.bf16.msra.mxu1 %v1897_v7  ;;  %1637 = vmatprep.subr.bf16.mxu0 %v1898_v8  ;;  %v1914_v24 = vld [vmem:[%s2501_s1 + $0x70] sm:$0xff]   ;;  %v1918_v28 = vld [vmem:[%s2501_s1 + $0x78] sm:$0xff]   ;;  %v54_v32 = vld [vmem:[%s2502_s0] sm:$0xff] }
   0xa   :  { %1701 = vmatprep.subr.bf16.mxu1 %v1899_v9  ;;  %v1915_v25 = vld [vmem:[%s2501_s1 + $0xf0] sm:$0xff]   ;;  %v1919_v29 = vld [vmem:[%s2501_s1 + $0xf8] sm:$0xff]   ;;  %v58_v33 = vld [vmem:[%s2502_s0 + $0x20] sm:$0xff] }
   0xb   :  { %v1916_v26 = vld [vmem:[%s2501_s1 + $0x30] sm:$0xff]   ;;  %v1920_v30 = vld [vmem:[%s2501_s1 + $0x38] sm:$0xff]   ;;  %v55_v34 = vld [vmem:[%s2502_s0 + $0x8] sm:$0xff]  ;;  %v1503_v35 = vcombine.low %v54_v32, %v58_v33  ;;  %v1504_v36 = vcombine.high %v54_v32, %v58_v33 }
   0xc   :  { %1638 = vmatpush3.bf16.msra.mxu0 %v1900_v10  ;;  %v1917_v27 = vld [vmem:[%s2501_s1 + $0xb0] sm:$0xff]   ;;  %v1921_v31 = vld [vmem:[%s2501_s1 + $0xb8] sm:$0xff]   ;;  %v59_v37 = vld [vmem:[%s2502_s0 + $0x28] sm:$0xff] }
   0xd   :  { %1702 = vmatpush3.bf16.msra.mxu1 %v1901_v11  ;;  %1639 = vmatprep.subr.bf16.mxu0 %v1902_v12  ;;  %v1505_v38 = vcombine.low %v55_v34, %v59_v37  ;;  %v1506_v39 = vcombine.high %v55_v34, %v59_v37  ;;  %v1922_v40 = vld [vmem:[%s2501_s1 + $0x140] sm:$0xff]   ;;  %v63_v47 = vld [vmem:[%s2502_s0 + $0x48] sm:$0xff]  ;;  %v1930_v62 = vld [vmem:[%s2501_s1 + $0x150] sm:$0xff]  }
   0xe   :  { %1703 = vmatprep.subr.bf16.mxu1 %v1903_v13  ;;  %982 = vmatprep.mubr.bf16.mxu0 %v1504_v36  ;;  %v1923_v41 = vld [vmem:[%s2501_s1 + $0x100] sm:$0xff]   ;;  %v67_v48 = vld [vmem:[%s2502_s0 + $0x68] sm:$0xff]  ;;  %v1931_v63 = vld [vmem:[%s2501_s1 + $0x110] sm:$0xff]  }
   0xf   :  { %1079 = vmatprep.mubr.bf16.mxu1 %v1506_v39  ;;  %v1924_v42 = vld [vmem:[%s2501_s1 + $0x1c0] sm:$0xff]   ;;  %v1514_v49 = vcombine.high %v63_v47, %v67_v48  ;;  %v1926_v50 = vld [vmem:[%s2501_s1 + $0x148] sm:$0xff]   ;;  %v1513_v53 = vcombine.low %v63_v47, %v67_v48  ;;  %v1932_v0 = vld [vmem:[%s2501_s1 + $0x1d0] sm:$0xff]  }
  0x10   :  { %1640 = vmatpush3.bf16.msra.mxu0 %v1904_v14  ;;  %v1925_v43 = vld [vmem:[%s2501_s1 + $0x180] sm:$0xff]   ;;  %v1927_v52 = vld [vmem:[%s2501_s1 + $0x108] sm:$0xff]   ;;  %v1933_v1 = vld [vmem:[%s2501_s1 + $0x190] sm:$0xff]  }
  0x11   :  { %1704 = vmatpush3.bf16.msra.mxu1 %v1905_v15  ;;  %1641 = vmatprep.subr.bf16.mxu0 %v1906_v16  ;;  %v62_v44 = vld [vmem:[%s2502_s0 + $0x40] sm:$0xff]  ;;  %v1928_v54 = vld [vmem:[%s2501_s1 + $0x1c8] sm:$0xff]   ;;  %v1934_v10 = vld [vmem:[%s2501_s1 + $0x158] sm:$0xff]  }
  0x12   :  { %1705 = vmatprep.subr.bf16.mxu1 %v1907_v17  ;;  %v66_v45 = vld [vmem:[%s2502_s0 + $0x60] sm:$0xff]  ;;  %v1929_v55 = vld [vmem:[%s2501_s1 + $0x188] sm:$0xff]   ;;  %v1935_v11 = vld [vmem:[%s2501_s1 + $0x118] sm:$0xff]  }
  0x13   :  { %v1512_v46 = vcombine.high %v62_v44, %v66_v45  ;;  %v1511_v51 = vcombine.low %v62_v44, %v66_v45  ;;  %v70_v56 = vld [vmem:[%s2502_s0 + $0x80] sm:$0xff]  ;;  %v71_v58 = vld [vmem:[%s2502_s0 + $0x88] sm:$0xff]  ;;  %v1936_v12 = vld [vmem:[%s2501_s1 + $0x1d8] sm:$0xff]  }
  0x14   :  { %1642 = vmatpush3.bf16.msra.mxu0 %v1908_v18  ;;  %v74_v57 = vld [vmem:[%s2502_s0 + $0xa0] sm:$0xff]  ;;  %v75_v59 = vld [vmem:[%s2502_s0 + $0xa8] sm:$0xff]  ;;  %v1937_v13 = vld [vmem:[%s2501_s1 + $0x198] sm:$0xff]  }
  0x15   :  { %1706 = vmatpush3.bf16.msra.mxu1 %v1909_v19  ;;  %1643 = vmatprep.subr.bf16.mxu0 %v1910_v20  ;;  %v1520_v60 = vcombine.high %v70_v56, %v74_v57  ;;  %v1522_v61 = vcombine.high %v71_v58, %v75_v59  ;;  %v1519_v2 = vcombine.low %v70_v56, %v74_v57  ;;  %v78_v3 = vld [vmem:[%s2502_s0 + $0xc0] sm:$0xff]  ;;  %v79_v5 = vld [vmem:[%s2502_s0 + $0xc8] sm:$0xff]  ;;  %v1947_v39 = vld [vmem:[%s2501_s1 + $0x130] sm:$0xff]  }
  0x16   :  { %1707 = vmatprep.subr.bf16.mxu1 %v1911_v21  ;;  %v82_v4 = vld [vmem:[%s2502_s0 + $0xe0] sm:$0xff]  ;;  %v1521_v6 = vcombine.low %v71_v58, %v75_v59  ;;  %v83_v8 = vld [vmem:[%s2502_s0 + $0xe8] sm:$0xff]  ;;  %v1951_v48 = vld [vmem:[%s2501_s1 + $0x138] sm:$0xff]  }
  0x17   :  { %v1528_v7 = vcombine.high %v78_v3, %v82_v4  ;;  %v1530_v9 = vcombine.high %v79_v5, %v83_v8  ;;  %v86_v14 = vld [vmem:[%s2502_s0 + $0x100] sm:$0xff]  ;;  %v87_v16 = vld [vmem:[%s2502_s0 + $0x108] sm:$0xff]  ;;  %v1527_v19 = vcombine.low %v78_v3, %v82_v4  ;;  %v1529_v21 = vcombine.low %v79_v5, %v83_v8  ;;  %v65_v8 = vld [vmem:[%s2502_s0 + $0x58] sm:$0xff] }
  0x18   :  { %1644 = vmatpush3.bf16.msra.mxu0 %v1912_v22  ;;  %v90_v15 = vld [vmem:[%s2502_s0 + $0x120] sm:$0xff]  ;;  %v91_v17 = vld [vmem:[%s2502_s0 + $0x128] sm:$0xff] }
  0x19   :  { %1708 = vmatpush3.bf16.msra.mxu1 %v1913_v23  ;;  %1645 = vmatprep.subr.bf16.mxu0 %v1914_v24  ;;  %v1938_v18 = vld [vmem:[%s2501_s1 + $0x160] sm:$0xff]   ;;  %v1536_v22 = vcombine.high %v86_v14, %v90_v15  ;;  %v1538_v24 = vcombine.high %v87_v16, %v91_v17  ;;  %v1944_v32 = vld [vmem:[%s2501_s1 + $0x1e8] sm:$0xff]   ;;  %v1535_v34 = vcombine.low %v86_v14, %v90_v15  ;;  %v72_v14 = vld [vmem:[%s2502_s0 + $0x90] sm:$0xff] }
  0x1a   :  { %1709 = vmatprep.subr.bf16.mxu1 %v1915_v25  ;;  %v1939_v20 = vld [vmem:[%s2501_s1 + $0x120] sm:$0xff]   ;;  %v1945_v33 = vld [vmem:[%s2501_s1 + $0x1a8] sm:$0xff]   ;;  %v76_v15 = vld [vmem:[%s2502_s0 + $0xb0] sm:$0xff] }
  0x1b   :  { %v1940_v23 = vld [vmem:[%s2501_s1 + $0x1e0] sm:$0xff]   ;;  %v103_v44 = vld [vmem:[%s2502_s0 + $0x188] sm:$0xff] }
  0x1c   :  { %1646 = vmatpush3.bf16.msra.mxu0 %v1916_v26  ;;  %v1941_v25 = vld [vmem:[%s2501_s1 + $0x1a0] sm:$0xff]   ;;  %v107_v45 = vld [vmem:[%s2502_s0 + $0x1a8] sm:$0xff] }
  0x1d   :  { %1710 = vmatpush3.bf16.msra.mxu1 %v1917_v27  ;;  %1647 = vmatprep.subr.bf16.mxu0 %v1918_v28  ;;  %v94_v26 = vld [vmem:[%s2502_s0 + $0x140] sm:$0xff]  ;;  %v1942_v28 = vld [vmem:[%s2501_s1 + $0x168] sm:$0xff]   ;;  %v1553_v59 = vcombine.low %v103_v44, %v107_v45 }
  0x1e   :  { %1711 = vmatprep.subr.bf16.mxu1 %v1919_v29  ;;  %v98_v27 = vld [vmem:[%s2502_s0 + $0x160] sm:$0xff]  ;;  %v95_v29 = vld [vmem:[%s2502_s0 + $0x148] sm:$0xff] }
  0x1f   :  { %v1544_v36 = vcombine.high %v94_v26, %v98_v27  ;;  %v1543_v47 = vcombine.low %v94_v26, %v98_v27  ;;  %v111_v56 = vld [vmem:[%s2502_s0 + $0x1c8] sm:$0xff]  ;;  %v1523_v26 = vcombine.low %v72_v14, %v76_v15 }
  0x20   :  { %1648 = vmatpush3.bf16.msra.mxu0 %v1920_v30  ;;  %v99_v30 = vld [vmem:[%s2502_s0 + $0x168] sm:$0xff] }
  0x21   :  { %1712 = vmatpush3.bf16.msra.mxu1 %v1921_v31  ;;  %1761 = vmatprep.subr.bf16.mxu0 %v1922_v40  ;;  %v1943_v31 = vld [vmem:[%s2501_s1 + $0x128] sm:$0xff]   ;;  %v1546_v37 = vcombine.high %v95_v29, %v99_v30  ;;  %v1948_v40 = vld [vmem:[%s2501_s1 + $0x1f0] sm:$0xff]  }
  0x22   :  { %1825 = vmatprep.subr.bf16.mxu1 %v1924_v42  ;;  %v106_v42 = vld [vmem:[%s2502_s0 + $0x1a0] sm:$0xff]  ;;  %v115_v57 = vld [vmem:[%s2502_s0 + $0x1e8] sm:$0xff] }
  0x23   :  { %983 = vmatmul.mubr.bf16.vlgmr.msra.gmra.mrb[0].mxu0 %v1503_v35  ;;  %v1537_v35 = vcombine.low %v87_v16, %v91_v17  ;;  %v1561_v3 = vcombine.low %v111_v56, %v115_v57  ;;  %v73_v16 = vld [vmem:[%s2502_s0 + $0x98] sm:$0xff] }
  0x24   :  { %1080 = vmatmul.mubr.bf16.vlgmr.msra.gmra.mrb[0].mxu1 %v1505_v38  ;;  %1762 = vmatpush3.bf16.msra.mxu0 %v1923_v41  ;;  %v1946_v38 = vld [vmem:[%s2501_s1 + $0x170] sm:$0xff]   ;;  %v102_v41 = vld [vmem:[%s2502_s0 + $0x180] sm:$0xff]  ;;  %v77_v17 = vld [vmem:[%s2502_s0 + $0xb8] sm:$0xff] }
  0x25   :  { %1826 = vmatpush3.bf16.msra.mxu1 %v1925_v43  ;;  %990 = vmatprep.mubr.bf16.mxu0 %v1512_v46  ;;  %v1949_v43 = vld [vmem:[%s2501_s1 + $0x1b0] sm:$0xff]   ;;  %v1950_v46 = vld [vmem:[%s2501_s1 + $0x178] sm:$0xff]   ;;  %v1551_v58 = vcombine.low %v102_v41, %v106_v42  ;;  %v1525_v27 = vcombine.low %v73_v16, %v77_v17 }
  0x26   :  { %1087 = vmatprep.mubr.bf16.mxu1 %v1514_v49  ;;  %1763 = vmatprep.subr.bf16.mxu0 %v1926_v50  ;;  %v1545_v49 = vcombine.low %v95_v29, %v99_v30  ;;  %v1552_v50 = vcombine.high %v102_v41, %v106_v42  ;;  %v88_v30 = vld [vmem:[%s2502_s0 + $0x110] sm:$0xff]  ;;  %v101_v41 = vld [vmem:[%s2502_s0 + $0x178] sm:$0xff] }
  0x27   :  { %1827 = vmatprep.subr.bf16.mxu1 %v1928_v54  ;;  %v110_v54 = vld [vmem:[%s2502_s0 + $0x1c0] sm:$0xff] }
  0x28   :  { %1764 = vmatpush3.bf16.msra.mxu0 %v1927_v52  ;;  %v1554_v52 = vcombine.high %v103_v44, %v107_v45 }
  0x29   :  { %1828 = vmatpush3.bf16.msra.mxu1 %v1929_v55  ;;  %1765 = vmatprep.subr.bf16.mxu0 %v1930_v62  ;;  %v114_v55 = vld [vmem:[%s2502_s0 + $0x1e0] sm:$0xff]  ;;  %v56_v62 = vld [vmem:[%s2502_s0 + $0x10] sm:$0xff] }
  0x2a   :  { %1829 = vmatprep.subr.bf16.mxu1 %v1932_v0  ;;  %v57_v0 = vld [vmem:[%s2502_s0 + $0x18] sm:$0xff] }
  0x2b   :  { %991 = vmatmul.mubr.bf16.gmra.mrb[4].mxu0 %v1511_v51  ;;  %v1952_v51 = vld [vmem:[%s2501_s1 + $0x1f8] sm:$0xff]  }
  0x2c   :  { %1088 = vmatmul.mubr.bf16.gmra.mrb[4].mxu1 %v1513_v53  ;;  %998 = vmatprep.mubr.bf16.mxu0 %v1520_v60  ;;  %v1953_v53 = vld [vmem:[%s2501_s1 + $0x1b8] sm:$0xff]   ;;  %v1560_v60 = vcombine.high %v110_v54, %v114_v55 }
  0x2d   :  { %1095 = vmatprep.mubr.bf16.mxu1 %v1522_v61  ;;  %1766 = vmatpush3.bf16.msra.mxu0 %v1931_v63  ;;  %v1562_v61 = vcombine.high %v111_v56, %v115_v57  ;;  %v60_v63 = vld [vmem:[%s2502_s0 + $0x30] sm:$0xff]  ;;  %v113_v56 = vld [vmem:[%s2502_s0 + $0x1d8] sm:$0xff] }
  0x2e   :  { %1830 = vmatpush3.bf16.msra.mxu1 %v1933_v1  ;;  %1767 = vmatprep.subr.bf16.mxu0 %v1934_v10  ;;  %v61_v1 = vld [vmem:[%s2502_s0 + $0x38] sm:$0xff]  ;;  %v1508_v4 = vcombine.high %v56_v62, %v60_v63  ;;  %v1507_v10 = vcombine.low %v56_v62, %v60_v63 }
  0x2f   :  { %1831 = vmatprep.subr.bf16.mxu1 %v1936_v12  ;;  %v1510_v5 = vcombine.high %v57_v0, %v61_v1  ;;  %v117_v57 = vld [vmem:[%s2502_s0 + $0x1f8] sm:$0xff] }
  0x30   :  { %v1565_v63 = vcombine.low %v113_v56, %v117_v57 }
  0x31   :  { %1768 = vmatpush3.bf16.msra.mxu0 %v1935_v11  ;;  %v1509_v11 = vcombine.low %v57_v0, %v61_v1 }
  0x32   :  { %1832 = vmatpush3.bf16.msra.mxu1 %v1937_v13  ;;  %1769 = vmatprep.subr.bf16.mxu0 %v1938_v18 }
  0x33   :  { %999 = vmatmul.mubr.bf16.gmra.mrb[8].mxu0 %v1519_v2  ;;  %1833 = vmatprep.subr.bf16.mxu1 %v1940_v23  ;;  %v1559_v2 = vcombine.low %v110_v54, %v114_v55  ;;  %v84_v23 = vld [vmem:[%s2502_s0 + $0xf0] sm:$0xff] }
  0x34   :  { %1096 = vmatmul.mubr.bf16.gmra.mrb[8].mxu1 %v1521_v6  ;;  %1006 = vmatprep.mubr.bf16.mxu0 %v1528_v7  ;;  %v64_v6 = vld [vmem:[%s2502_s0 + $0x50] sm:$0xff] }
  0x35   :  { %1103 = vmatprep.mubr.bf16.mxu1 %v1530_v9  ;;  %1770 = vmatpush3.bf16.msra.mxu0 %v1939_v20  ;;  %v68_v7 = vld [vmem:[%s2502_s0 + $0x70] sm:$0xff]  ;;  %v69_v9 = vld [vmem:[%s2502_s0 + $0x78] sm:$0xff]  ;;  %v1524_v20 = vcombine.high %v72_v14, %v76_v15 }
  0x36   :  { %1834 = vmatpush3.bf16.msra.mxu1 %v1941_v25  ;;  %1771 = vmatprep.subr.bf16.mxu0 %v1942_v28  ;;  %v1516_v12 = vcombine.high %v64_v6, %v68_v7  ;;  %v1518_v13 = vcombine.high %v65_v8, %v69_v9  ;;  %v1515_v18 = vcombine.low %v64_v6, %v68_v7  ;;  %v85_v25 = vld [vmem:[%s2502_s0 + $0xf8] sm:$0xff]  ;;  %v112_v54 = vld [vmem:[%s2502_s0 + $0x1d0] sm:$0xff] }
  0x37   :  { %1835 = vmatprep.subr.bf16.mxu1 %v1944_v32  ;;  %v89_v32 = vld [vmem:[%s2502_s0 + $0x118] sm:$0xff]  ;;  %v116_v55 = vld [vmem:[%s2502_s0 + $0x1f0] sm:$0xff] }
  0x38   :  { %v1563_v62 = vcombine.low %v112_v54, %v116_v55 }
  0x39   :  { %1772 = vmatpush3.bf16.msra.mxu0 %v1943_v31  ;;  %v92_v31 = vld [vmem:[%s2502_s0 + $0x130] sm:$0xff] }
  0x3a   :  { %1836 = vmatpush3.bf16.msra.mxu1 %v1945_v33  ;;  %1773 = vmatprep.subr.bf16.mxu0 %v1946_v38  ;;  %v93_v33 = vld [vmem:[%s2502_s0 + $0x138] sm:$0xff]  ;;  %v96_v38 = vld [vmem:[%s2502_s0 + $0x150] sm:$0xff]  ;;  %v1539_v42 = vcombine.low %v88_v30, %v92_v31 }
  0x3b   :  { %1007 = vmatmul.mubr.bf16.gmra.mrb[12].mxu0 %v1527_v19  ;;  %1837 = vmatprep.subr.bf16.mxu1 %v1948_v40  ;;  %v1517_v19 = vcombine.low %v65_v8, %v69_v9  ;;  %v97_v40 = vld [vmem:[%s2502_s0 + $0x158] sm:$0xff] }
  0x3c   :  { %1104 = vmatmul.mubr.bf16.gmra.mrb[12].mxu1 %v1529_v21  ;;  %1014 = vmatprep.mubr.bf16.mxu0 %v1536_v22  ;;  %v1526_v21 = vcombine.high %v73_v16, %v77_v17  ;;  %v80_v22 = vld [vmem:[%s2502_s0 + $0xd0] sm:$0xff]  ;;  %v1550_v45 = vcombine.high %v97_v40, %v101_v41 }
  0x3d   :  { %1111 = vmatprep.mubr.bf16.mxu1 %v1538_v24  ;;  %1774 = vmatpush3.bf16.msra.mxu0 %v1947_v39  ;;  %v81_v24 = vld [vmem:[%s2502_s0 + $0xd8] sm:$0xff]  ;;  %v1532_v28 = vcombine.high %v80_v22, %v84_v23  ;;  %v100_v39 = vld [vmem:[%s2502_s0 + $0x170] sm:$0xff] }
  0x3e   :  { %1838 = vmatpush3.bf16.msra.mxu1 %v1949_v43  ;;  %1775 = vmatprep.subr.bf16.mxu0 %v1950_v46  ;;  %v1534_v29 = vcombine.high %v81_v24, %v85_v25  ;;  %v1541_v43 = vcombine.low %v89_v32, %v93_v33  ;;  %v1548_v44 = vcombine.high %v96_v38, %v100_v39  ;;  %v104_v46 = vld [vmem:[%s2502_s0 + $0x190] sm:$0xff] }
  0x3f   :  { %1839 = vmatprep.subr.bf16.mxu1 %v1952_v51  ;;  %v1549_v51 = vcombine.low %v97_v40, %v101_v41 }
  0x41   :  { %1776 = vmatpush3.bf16.msra.mxu0 %v1951_v48  ;;  %v105_v48 = vld [vmem:[%s2502_s0 + $0x198] sm:$0xff] }
  0x42   :  { %1840 = vmatpush3.bf16.msra.mxu1 %v1953_v53 }
  0x43   :  { %1015 = vmatmul.mubr.bf16.gmra.mrb[16].mxu0 %v1535_v34  ;;  %v1531_v34 = vcombine.low %v80_v22, %v84_v23 }
  0x44   :  { %1112 = vmatmul.mubr.bf16.gmra.mrb[16].mxu1 %v1537_v35  ;;  %1022 = vmatprep.mubr.bf16.mxu0 %v1544_v36  ;;  %v1533_v35 = vcombine.low %v81_v24, %v85_v25  ;;  %v1540_v36 = vcombine.high %v88_v30, %v92_v31 }
  0x45   :  { %1119 = vmatprep.mubr.bf16.mxu1 %v1546_v37  ;;  %v1542_v37 = vcombine.high %v89_v32, %v93_v33 }
  0x4b   :  { %1023 = vmatmul.mubr.bf16.gmra.mrb[20].mxu0 %v1543_v47  ;;  %v108_v47 = vld [vmem:[%s2502_s0 + $0x1b0] sm:$0xff] }
  0x4c   :  { %1120 = vmatmul.mubr.bf16.gmra.mrb[20].mxu1 %v1545_v49  ;;  %1030 = vmatprep.mubr.bf16.mxu0 %v1552_v50  ;;  %v109_v49 = vld [vmem:[%s2502_s0 + $0x1b8] sm:$0xff]  ;;  %v1547_v50 = vcombine.low %v96_v38, %v100_v39 }
  0x4d   :  { %1127 = vmatprep.mubr.bf16.mxu1 %v1554_v52  ;;  %v1556_v52 = vcombine.high %v104_v46, %v108_v47  ;;  %v1558_v53 = vcombine.high %v105_v48, %v109_v49 }
  0x53   :  { %1031 = vmatmul.mubr.bf16.gmra.mrb[24].mxu0 %v1551_v58  ;;  %v1555_v58 = vcombine.low %v104_v46, %v108_v47 }
  0x54   :  { %1128 = vmatmul.mubr.bf16.gmra.mrb[24].mxu1 %v1553_v59  ;;  %1038 = vmatprep.mubr.bf16.mxu0 %v1560_v60  ;;  %v1557_v59 = vcombine.low %v105_v48, %v109_v49  ;;  %v1564_v60 = vcombine.high %v112_v54, %v116_v55 }
  0x55   :  { %1135 = vmatprep.mubr.bf16.mxu1 %v1562_v61  ;;  %v1566_v61 = vcombine.high %v113_v56, %v117_v57 }
  0x5b   :  { %1039 = vmatmul.mubr.bf16.gmra.mrb[28].mxu0 %v1559_v2 }
  0x5c   :  { %1136 = vmatmul.mubr.bf16.gmra.mrb[28].mxu1 %v1561_v3  ;;  %1176 = vmatprep.mubr.bf16.mxu0 %v1508_v4 }
  0x5d   :  { %1273 = vmatprep.mubr.bf16.mxu1 %v1510_v5 }
  0x63   :  { %1177 = vmatmul.mubr.bf16.vlgmr.msra.gmra.mrb[32].mxu0 %v1507_v10 }
  0x64   :  { %1274 = vmatmul.mubr.bf16.vlgmr.msra.gmra.mrb[32].mxu1 %v1509_v11  ;;  %1184 = vmatprep.mubr.bf16.mxu0 %v1516_v12 }
  0x65   :  { %1281 = vmatprep.mubr.bf16.mxu1 %v1518_v13 }
  0x6b   :  { %1185 = vmatmul.mubr.bf16.gmra.mrb[36].mxu0 %v1515_v18 }
  0x6c   :  { %1282 = vmatmul.mubr.bf16.gmra.mrb[36].mxu1 %v1517_v19  ;;  %1192 = vmatprep.mubr.bf16.mxu0 %v1524_v20 }
  0x6d   :  { %1289 = vmatprep.mubr.bf16.mxu1 %v1526_v21 }
  0x73   :  { %1193 = vmatmul.mubr.bf16.gmra.mrb[40].mxu0 %v1523_v26 }
  0x74   :  { %1290 = vmatmul.mubr.bf16.gmra.mrb[40].mxu1 %v1525_v27  ;;  %1200 = vmatprep.mubr.bf16.mxu0 %v1532_v28 }
  0x75   :  { %1297 = vmatprep.mubr.bf16.mxu1 %v1534_v29 }
  0x7b   :  { %1201 = vmatmul.mubr.bf16.gmra.mrb[44].mxu0 %v1531_v34 }
  0x7c   :  { %1298 = vmatmul.mubr.bf16.gmra.mrb[44].mxu1 %v1533_v35  ;;  %1208 = vmatprep.mubr.bf16.mxu0 %v1540_v36 }
  0x7d   :  { %1305 = vmatprep.mubr.bf16.mxu1 %v1542_v37 }
  0x83   :  { %1209 = vmatmul.mubr.bf16.gmra.mrb[48].mxu0 %v1539_v42 }
  0x84   :  { %1306 = vmatmul.mubr.bf16.gmra.mrb[48].mxu1 %v1541_v43  ;;  %1216 = vmatprep.mubr.bf16.mxu0 %v1548_v44 }
  0x85   :  { %1313 = vmatprep.mubr.bf16.mxu1 %v1550_v45 }
  0x8b   :  { %1217 = vmatmul.mubr.bf16.gmra.mrb[52].mxu0 %v1547_v50 }
  0x8c   :  { %1314 = vmatmul.mubr.bf16.gmra.mrb[52].mxu1 %v1549_v51  ;;  %1224 = vmatprep.mubr.bf16.mxu0 %v1556_v52 }
  0x8d   :  { %1321 = vmatprep.mubr.bf16.mxu1 %v1558_v53 }
  0x93   :  { %1225 = vmatmul.mubr.bf16.gmra.mrb[56].mxu0 %v1555_v58 }
  0x94   :  { %1322 = vmatmul.mubr.bf16.gmra.mrb[56].mxu1 %v1557_v59  ;;  %1232 = vmatprep.mubr.bf16.mxu0 %v1564_v60 }
  0x95   :  { %1329 = vmatprep.mubr.bf16.mxu1 %v1566_v61 }
  0x9b   :  { %1233 = vmatmul.mubr.bf16.gmra.mrb[60].mxu0 %v1563_v62 }
  0x9c   :  { %1330 = vmatmul.mubr.bf16.gmra.mrb[60].mxu1 %v1565_v63 }
  0xf6   :  { %v1649_v0 = vpop.f32.mrb[0].mxu0 }
  0xf7   :  { %v1713_v1 = vpop.f32.mrb[0].mxu1  ;;  %v1650_v2 = vpop.f32.mrb[1].mxu0 }
  0xf8   :  { %v1651_v3 = vadd.f32 %v1650_v2, %v1649_v0  ;;  %v1714_v4 = vpop.f32.mrb[1].mxu1  ;;  %v1652_v5 = vpop.f32.mrb[2].mxu0 }
  0xf9   :  { %v1715_v6 = vadd.f32 %v1714_v4, %v1713_v1  ;;  %v1716_v7 = vpop.f32.mrb[2].mxu1  ;;  %v1653_v8 = vpop.f32.mrb[3].mxu0 }
  0xfa   :  { %v1654_v9 = vadd.f32 %v1653_v8, %v1652_v5  ;;  %v1717_v10 = vpop.f32.mrb[3].mxu1 }
  0xfb   :  { %v2363_v11 = vadd.f32 %v1715_v6, %v1651_v3  ;;  %v1718_v12 = vadd.f32 %v1717_v10, %v1716_v7 }
  0xfd   :  { %v2365_v13 = vadd.f32 %v1718_v12, %v1654_v9 }
  0xfe   :  { %v1655_v14 = vpop.f32.mrb[4].mxu0 }
  0xff   :  { %v1719_v15 = vpop.f32.mrb[4].mxu1  ;;  %v1656_v16 = vpop.f32.mrb[5].mxu0 }
 0x100   :  { %v1657_v17 = vadd.f32 %v1656_v16, %v1655_v14  ;;  %v1720_v18 = vpop.f32.mrb[5].mxu1  ;;  %v1658_v19 = vpop.f32.mrb[6].mxu0 }
 0x101   :  { %v1721_v20 = vadd.f32 %v1720_v18, %v1719_v15  ;;  %v1722_v21 = vpop.f32.mrb[6].mxu1  ;;  %v1659_v22 = vpop.f32.mrb[7].mxu0 }
 0x102   :  { %v1660_v23 = vadd.f32 %v1659_v22, %v1658_v19  ;;  %v1723_v24 = vpop.f32.mrb[7].mxu1 }
 0x103   :  { %v2367_v25 = vadd.f32 %v1721_v20, %v1657_v17  ;;  %v1724_v26 = vadd.f32 %v1723_v24, %v1722_v21 }
 0x105   :  { %v2369_v27 = vadd.f32 %v1724_v26, %v1660_v23 }
 0x106   :  { %v1661_v28 = vpop.f32.mrb[8].mxu0 }
 0x107   :  { %v1725_v29 = vpop.f32.mrb[8].mxu1  ;;  %v1662_v30 = vpop.f32.mrb[9].mxu0 }
 0x108   :  { %v1663_v31 = vadd.f32 %v1662_v30, %v1661_v28  ;;  %v1726_v32 = vpop.f32.mrb[9].mxu1  ;;  %v1664_v33 = vpop.f32.mrb[10].mxu0 }
 0x109   :  { %v1727_v34 = vadd.f32 %v1726_v32, %v1725_v29  ;;  %v1728_v35 = vpop.f32.mrb[10].mxu1  ;;  %v1665_v36 = vpop.f32.mrb[11].mxu0 }
 0x10a   :  { %v1666_v37 = vadd.f32 %v1665_v36, %v1664_v33  ;;  %v1729_v38 = vpop.f32.mrb[11].mxu1 }
 0x10b   :  { %v2371_v39 = vadd.f32 %v1727_v34, %v1663_v31  ;;  %v1730_v40 = vadd.f32 %v1729_v38, %v1728_v35 }
 0x10d   :  { %v2373_v41 = vadd.f32 %v1730_v40, %v1666_v37 }
 0x10e   :  { %v1667_v42 = vpop.f32.mrb[12].mxu0 }
 0x10f   :  { %v1731_v43 = vpop.f32.mrb[12].mxu1  ;;  %v1668_v44 = vpop.f32.mrb[13].mxu0 }
 0x110   :  { %v1669_v45 = vadd.f32 %v1668_v44, %v1667_v42  ;;  %v1732_v46 = vpop.f32.mrb[13].mxu1  ;;  %v1670_v47 = vpop.f32.mrb[14].mxu0 }
 0x111   :  { %v1733_v48 = vadd.f32 %v1732_v46, %v1731_v43  ;;  %v1734_v49 = vpop.f32.mrb[14].mxu1  ;;  %v1671_v50 = vpop.f32.mrb[15].mxu0 }
 0x112   :  { %v1672_v51 = vadd.f32 %v1671_v50, %v1670_v47  ;;  %v1735_v52 = vpop.f32.mrb[15].mxu1 }
 0x113   :  { %v2375_v53 = vadd.f32 %v1733_v48, %v1669_v45  ;;  %v1736_v54 = vadd.f32 %v1735_v52, %v1734_v49 }
 0x115   :  { %v2377_v55 = vadd.f32 %v1736_v54, %v1672_v51 }
 0x116   :  { %v1673_v56 = vpop.f32.mrb[16].mxu0 }
 0x117   :  { %v1737_v57 = vpop.f32.mrb[16].mxu1  ;;  %v1674_v58 = vpop.f32.mrb[17].mxu0 }
 0x118   :  { %v1675_v59 = vadd.f32 %v1674_v58, %v1673_v56  ;;  %v1738_v60 = vpop.f32.mrb[17].mxu1  ;;  %v1676_v61 = vpop.f32.mrb[18].mxu0 }
 0x119   :  { %v1739_v62 = vadd.f32 %v1738_v60, %v1737_v57  ;;  %v1740_v63 = vpop.f32.mrb[18].mxu1  ;;  %v1677_v0 = vpop.f32.mrb[19].mxu0 }
 0x11a   :  { %v1678_v1 = vadd.f32 %v1677_v0, %v1676_v61  ;;  %v1741_v2 = vpop.f32.mrb[19].mxu1 }
 0x11b   :  { %v2379_v3 = vadd.f32 %v1739_v62, %v1675_v59  ;;  %v1742_v4 = vadd.f32 %v1741_v2, %v1740_v63 }
 0x11d   :  { %v2381_v5 = vadd.f32 %v1742_v4, %v1678_v1 }
 0x11e   :  { %v1679_v6 = vpop.f32.mrb[20].mxu0 }
 0x11f   :  { %v1743_v7 = vpop.f32.mrb[20].mxu1  ;;  %v1680_v8 = vpop.f32.mrb[21].mxu0 }
 0x120   :  { %v1681_v9 = vadd.f32 %v1680_v8, %v1679_v6  ;;  %v1744_v10 = vpop.f32.mrb[21].mxu1  ;;  %v1682_v12 = vpop.f32.mrb[22].mxu0 }
 0x121   :  { %v1745_v14 = vadd.f32 %v1744_v10, %v1743_v7  ;;  %v1746_v15 = vpop.f32.mrb[22].mxu1  ;;  %v1683_v16 = vpop.f32.mrb[23].mxu0 }
 0x122   :  { %v1684_v17 = vadd.f32 %v1683_v16, %v1682_v12  ;;  %v1747_v18 = vpop.f32.mrb[23].mxu1 }
 0x123   :  { %v2383_v19 = vadd.f32 %v1745_v14, %v1681_v9  ;;  %v1748_v20 = vadd.f32 %v1747_v18, %v1746_v15  ;;  %v2400_v9 = vld [vmem:[%s2503_s2] ss:$0 sm:$0xff] }
 0x124   :  { %v2405_v14 = vld [vmem:[%s2504_s3] ss:$0 sm:$0xff] }
 0x125   :  { %v2385_v21 = vadd.f32 %v1748_v20, %v1684_v17 }
 0x126   :  { %v1685_v22 = vpop.f32.mrb[24].mxu0 }
 0x127   :  { %v1749_v23 = vpop.f32.mrb[24].mxu1  ;;  %v1686_v24 = vpop.f32.mrb[25].mxu0 }
 0x128   :  { %v1687_v26 = vadd.f32 %v1686_v24, %v1685_v22  ;;  %v1750_v28 = vpop.f32.mrb[25].mxu1  ;;  %v1688_v29 = vpop.f32.mrb[26].mxu0 }
 0x129   :  { %v1751_v30 = vadd.f32 %v1750_v28, %v1749_v23  ;;  %v1752_v31 = vpop.f32.mrb[26].mxu1  ;;  %v1689_v32 = vpop.f32.mrb[27].mxu0 }
 0x12a   :  { %v1690_v33 = vadd.f32 %v1689_v32, %v1688_v29  ;;  %v1753_v34 = vpop.f32.mrb[27].mxu1 }
 0x12b   :  { %v2387_v35 = vadd.f32 %v1751_v30, %v1687_v26  ;;  %v1754_v36 = vadd.f32 %v1753_v34, %v1752_v31 }
 0x12d   :  { %v2389_v37 = vadd.f32 %v1754_v36, %v1690_v33 }
 0x12e   :  { %v1691_v38 = vpop.f32.mrb[28].mxu0 }
 0x12f   :  { %v1755_v40 = vpop.f32.mrb[28].mxu1  ;;  %v1692_v42 = vpop.f32.mrb[29].mxu0 }
 0x130   :  { %v1693_v43 = vadd.f32 %v1692_v42, %v1691_v38  ;;  %v1756_v44 = vpop.f32.mrb[29].mxu1  ;;  %v1694_v45 = vpop.f32.mrb[30].mxu0 }
 0x131   :  { %v1757_v46 = vadd.f32 %v1756_v44, %v1755_v40  ;;  %v1758_v47 = vpop.f32.mrb[30].mxu1  ;;  %v1695_v48 = vpop.f32.mrb[31].mxu0 }
 0x132   :  { %v1696_v49 = vadd.f32 %v1695_v48, %v1694_v45  ;;  %v1759_v50 = vpop.f32.mrb[31].mxu1 }
 0x133   :  { %v2391_v51 = vadd.f32 %v1757_v46, %v1693_v43  ;;  %v1760_v52 = vadd.f32 %v1759_v50, %v1758_v47 }
 0x135   :  { %v2393_v54 = vadd.f32 %v1760_v52, %v1696_v49 }
 0x136   :  { %v1777_v56 = vpop.f32.mrb[32].mxu0 }
 0x137   :  { %v1841_v57 = vpop.f32.mrb[32].mxu1  ;;  %v1778_v58 = vpop.f32.mrb[33].mxu0 }
 0x138   :  { %v1779_v59 = vadd.f32 %v1778_v58, %v1777_v56  ;;  %v1842_v60 = vpop.f32.mrb[33].mxu1  ;;  %v1780_v61 = vpop.f32.mrb[34].mxu0 }
 0x139   :  { %v1843_v62 = vadd.f32 %v1842_v60, %v1841_v57  ;;  %v1844_v63 = vpop.f32.mrb[34].mxu1  ;;  %v1781_v0 = vpop.f32.mrb[35].mxu0 }
 0x13a   :  { %v1179_v1 = vadd.f32 %v1779_v59, %v2363_v11  ;;  %v1782_v2 = vadd.f32 %v1781_v0, %v1780_v61  ;;  %v1845_v4 = vpop.f32.mrb[35].mxu1 }
 0x13b   :  { %v1846_v6 = vadd.f32 %v1845_v4, %v1844_v63 }
 0x13c   :  { %v1276_v7 = vadd.f32 %v1843_v62, %v1179_v1  ;;  %v1182_v8 = vadd.f32 %v1782_v2, %v2365_v13 }
 0x13e   :  { %v1279_v10 = vadd.f32 %v1846_v6, %v1182_v8  ;;  %v1783_v12 = vpop.f32.mrb[36].mxu0  ;;  %v1396_v16 = vmul.f32 %v2400_v9, %v1276_v7 }
 0x13f   :  { %v1847_v15 = vpop.f32.mrb[36].mxu1  ;;  %v1784_v11 = vpop.f32.mrb[37].mxu0 }
 0x140   :  { %v1785_v17 = vadd.f32 %v1784_v11, %v1783_v12  ;;  %v1848_v18 = vpop.f32.mrb[37].mxu1  ;;  %v1786_v20 = vpop.f32.mrb[38].mxu0  ;;  %v1419_v24 = vadd.f32 %v2405_v14, %v1396_v16  ;;  %v1397_v26 = vmul.f32 %v2400_v9, %v1279_v10 }
 0x141   :  { %v1849_v13 = vadd.f32 %v1848_v18, %v1847_v15  ;;  %v1850_v22 = vpop.f32.mrb[38].mxu1  ;;  %v1787_v23 = vpop.f32.mrb[39].mxu0 }
 0x142   :  { %v1187_v28 = vadd.f32 %v1785_v17, %v2367_v25  ;;  %v1788_v29 = vadd.f32 %v1787_v23, %v1786_v20  ;;  %v1851_v30 = vpop.f32.mrb[39].mxu1  ;;  %vm1435_vm0 = vcmp.ge.f32.partialorder %v1419_v24, 0.0  ;;  %v1451_v32 = vmul.f32 0.2, %v1419_v24 }
 0x143   :  { %v1852_v31 = vadd.f32 %v1851_v30, %v1850_v22  ;;  %v1420_v33 = vadd.f32 %v2405_v14, %v1397_v26 }
 0x144   :  { %v1284_v34 = vadd.f32 %v1849_v13, %v1187_v28  ;;  %v1190_v36 = vadd.f32 %v1788_v29, %v2369_v27  ;;  %v1467_v38 = vsel %vm1435_vm0, %v1419_v24, %v1451_v32 }
 0x145   :  { %vm1436_vm1 = vcmp.ge.f32.partialorder %v1420_v33, 0.0  ;;  %v1452_v40 = vmul.f32 0.2, %v1420_v33  ;;  %1483 = vst [vmem:[%s2505_s4] sm:$0xff] %v1467_v38 }
 0x146   :  { %v1789_v42 = vpop.f32.mrb[40].mxu0  ;;  %v1287_v43 = vadd.f32 %v1852_v31, %v1190_v36  ;;  %v1398_v46 = vmul.f32 %v2400_v9, %v1284_v34 }
 0x147   :  { %v1853_v25 = vpop.f32.mrb[40].mxu1  ;;  %v1790_v44 = vpop.f32.mrb[41].mxu0  ;;  %v1468_v45 = vsel %vm1436_vm1, %v1420_v33, %v1452_v40 }
 0x148   :  { %v1791_v47 = vadd.f32 %v1790_v44, %v1789_v42  ;;  %v1854_v48 = vpop.f32.mrb[41].mxu1  ;;  %v1792_v49 = vpop.f32.mrb[42].mxu0  ;;  %1484 = vst [vmem:[%s2505_s4 + $0x8] sm:$0xff] %v1468_v45  ;;  %v1421_v56 = vadd.f32 %v2405_v14, %v1398_v46  ;;  %v1399_v60 = vmul.f32 %v2400_v9, %v1287_v43 }
 0x149   :  { %v1855_v27 = vadd.f32 %v1854_v48, %v1853_v25  ;;  %v1856_v50 = vpop.f32.mrb[42].mxu1  ;;  %v1793_v52 = vpop.f32.mrb[43].mxu0 }
 0x14a   :  { %v1195_v57 = vadd.f32 %v1791_v47, %v2371_v39  ;;  %v1794_v58 = vadd.f32 %v1793_v52, %v1792_v49  ;;  %v1857_v59 = vpop.f32.mrb[43].mxu1  ;;  %vm1437_vm2 = vcmp.ge.f32.partialorder %v1421_v56, 0.0  ;;  %v1453_v62 = vmul.f32 0.2, %v1421_v56 }
 0x14b   :  { %v1858_v61 = vadd.f32 %v1857_v59, %v1856_v50  ;;  %v1422_v1 = vadd.f32 %v2405_v14, %v1399_v60 }
 0x14c   :  { %v1292_v63 = vadd.f32 %v1855_v27, %v1195_v57  ;;  %v1198_v0 = vadd.f32 %v1794_v58, %v2373_v41  ;;  %v1469_v2 = vsel %vm1437_vm2, %v1421_v56, %v1453_v62 }
 0x14d   :  { %1485 = vst [vmem:[%s2505_s4 + $0x10] sm:$0xff] %v1469_v2  ;;  %vm1438_vm3 = vcmp.ge.f32.partialorder %v1422_v1, 0.0  ;;  %v1454_v39 = vmul.f32 0.2, %v1422_v1 }
 0x14e   :  { %v1295_v4 = vadd.f32 %v1858_v61, %v1198_v0  ;;  %v1795_v6 = vpop.f32.mrb[44].mxu0  ;;  %v1400_v10 = vmul.f32 %v2400_v9, %v1292_v63 }
 0x14f   :  { %v1859_v7 = vpop.f32.mrb[44].mxu1  ;;  %v1796_v8 = vpop.f32.mrb[45].mxu0  ;;  %v1470_v16 = vsel %vm1438_vm3, %v1422_v1, %v1454_v39 }
 0x150   :  { %v1797_v12 = vadd.f32 %v1796_v8, %v1795_v6  ;;  %v1860_v15 = vpop.f32.mrb[45].mxu1  ;;  %v1798_v11 = vpop.f32.mrb[46].mxu0  ;;  %1486 = vst [vmem:[%s2505_s4 + $0x18] sm:$0xff] %v1470_v16  ;;  %v1423_v20 = vadd.f32 %v2405_v14, %v1400_v10  ;;  %v1401_v13 = vmul.f32 %v2400_v9, %v1295_v4 }
 0x151   :  { %v1861_v41 = vadd.f32 %v1860_v15, %v1859_v7  ;;  %v1862_v17 = vpop.f32.mrb[46].mxu1  ;;  %v1799_v18 = vpop.f32.mrb[47].mxu0 }
 0x152   :  { %v1203_v22 = vadd.f32 %v1797_v12, %v2375_v53  ;;  %v1800_v23 = vadd.f32 %v1799_v18, %v1798_v11  ;;  %v1863_v24 = vpop.f32.mrb[47].mxu1  ;;  %vm1439_vm4 = vcmp.ge.f32.partialorder %v1423_v20, 0.0  ;;  %v1455_v28 = vmul.f32 0.2, %v1423_v20 }
 0x153   :  { %v1864_v26 = vadd.f32 %v1863_v24, %v1862_v17  ;;  %v1424_v29 = vadd.f32 %v2405_v14, %v1401_v13 }
 0x154   :  { %v1300_v30 = vadd.f32 %v1861_v41, %v1203_v22  ;;  %v1206_v31 = vadd.f32 %v1800_v23, %v2377_v55  ;;  %v1471_v32 = vsel %vm1439_vm4, %v1423_v20, %v1455_v28 }
 0x155   :  { %vm1440_vm5 = vcmp.ge.f32.partialorder %v1424_v29, 0.0  ;;  %v1456_v33 = vmul.f32 0.2, %v1424_v29  ;;  %1487 = vst [vmem:[%s2505_s4 + $0x20] sm:$0xff] %v1471_v32 }
 0x156   :  { %v1801_v34 = vpop.f32.mrb[48].mxu0  ;;  %v1303_v36 = vadd.f32 %v1864_v26, %v1206_v31  ;;  %v1402_v42 = vmul.f32 %v2400_v9, %v1300_v30 }
 0x157   :  { %v1865_v53 = vpop.f32.mrb[48].mxu1  ;;  %v1802_v38 = vpop.f32.mrb[49].mxu0  ;;  %v1472_v40 = vsel %vm1440_vm5, %v1424_v29, %v1456_v33 }
 0x158   :  { %v1803_v43 = vadd.f32 %v1802_v38, %v1801_v34  ;;  %v1866_v25 = vpop.f32.mrb[49].mxu1  ;;  %v1804_v44 = vpop.f32.mrb[50].mxu0  ;;  %1488 = vst [vmem:[%s2505_s4 + $0x28] sm:$0xff] %v1472_v40  ;;  %v1425_v47 = vadd.f32 %v2405_v14, %v1402_v42  ;;  %v1403_v50 = vmul.f32 %v2400_v9, %v1303_v36 }
 0x159   :  { %v1867_v55 = vadd.f32 %v1866_v25, %v1865_v53  ;;  %v1868_v45 = vpop.f32.mrb[50].mxu1  ;;  %v1805_v46 = vpop.f32.mrb[51].mxu0 }
 0x15a   :  { %v1211_v48 = vadd.f32 %v1803_v43, %v2379_v3  ;;  %v1806_v49 = vadd.f32 %v1805_v46, %v1804_v44  ;;  %v1869_v27 = vpop.f32.mrb[51].mxu1  ;;  %vm1441_vm6 = vcmp.ge.f32.partialorder %v1425_v47, 0.0  ;;  %v1457_v56 = vmul.f32 0.2, %v1425_v47 }
 0x15b   :  { %v1870_v52 = vadd.f32 %v1869_v27, %v1868_v45  ;;  %v1426_v59 = vadd.f32 %v2405_v14, %v1403_v50 }
 0x15c   :  { %v1308_v57 = vadd.f32 %v1867_v55, %v1211_v48  ;;  %v1214_v58 = vadd.f32 %v1806_v49, %v2381_v5  ;;  %v1473_v60 = vsel %vm1441_vm6, %v1425_v47, %v1457_v56 }
 0x15d   :  { %1489 = vst [vmem:[%s2505_s4 + $0x30] sm:$0xff] %v1473_v60  ;;  %vm1442_vm7 = vcmp.ge.f32.partialorder %v1426_v59, 0.0  ;;  %v1458_v3 = vmul.f32 0.2, %v1426_v59 }
 0x15e   :  { %v1311_v61 = vadd.f32 %v1870_v52, %v1214_v58  ;;  %v1807_v62 = vpop.f32.mrb[52].mxu0  ;;  %v1404_v1 = vmul.f32 %v2400_v9, %v1308_v57 }
 0x15f   :  { %v1871_v63 = vpop.f32.mrb[52].mxu1  ;;  %v1808_v0 = vpop.f32.mrb[53].mxu0  ;;  %v1474_v39 = vsel %vm1442_vm7, %v1426_v59, %v1458_v3 }
 0x160   :  { %v1809_v2 = vadd.f32 %v1808_v0, %v1807_v62  ;;  %v1872_v4 = vpop.f32.mrb[53].mxu1  ;;  %v1810_v6 = vpop.f32.mrb[54].mxu0  ;;  %1490 = vst [vmem:[%s2505_s4 + $0x38] sm:$0xff] %v1474_v39  ;;  %v1427_v10 = vadd.f32 %v2405_v14, %v1404_v1  ;;  %v1405_v12 = vmul.f32 %v2400_v9, %v1311_v61 }
 0x161   :  { %v1873_v5 = vadd.f32 %v1872_v4, %v1871_v63  ;;  %v1874_v7 = vpop.f32.mrb[54].mxu1  ;;  %v1811_v8 = vpop.f32.mrb[55].mxu0 }
 0x162   :  { %v1219_v15 = vadd.f32 %v1809_v2, %v2383_v19  ;;  %v1812_v11 = vadd.f32 %v1811_v8, %v1810_v6  ;;  %v1875_v16 = vpop.f32.mrb[55].mxu1  ;;  %vm1443_vm8 = vcmp.ge.f32.partialorder %v1427_v10, 0.0  ;;  %v1459_v17 = vmul.f32 0.2, %v1427_v10 }
 0x163   :  { %v1876_v41 = vadd.f32 %v1875_v16, %v1874_v7  ;;  %v1428_v18 = vadd.f32 %v2405_v14, %v1405_v12 }
 0x164   :  { %v1316_v20 = vadd.f32 %v1873_v5, %v1219_v15  ;;  %v1222_v13 = vadd.f32 %v1812_v11, %v2385_v21  ;;  %v1475_v22 = vsel %vm1443_vm8, %v1427_v10, %v1459_v17 }
 0x165   :  { %vm1444_vm9 = vcmp.ge.f32.partialorder %v1428_v18, 0.0  ;;  %v1460_v23 = vmul.f32 0.2, %v1428_v18  ;;  %1491 = vst [vmem:[%s2505_s4 + $0x40] sm:$0xff] %v1475_v22 }
 0x166   :  { %v1813_v24 = vpop.f32.mrb[56].mxu0  ;;  %v1319_v26 = vadd.f32 %v1876_v41, %v1222_v13  ;;  %v1406_v30 = vmul.f32 %v2400_v9, %v1316_v20 }
 0x167   :  { %v1877_v19 = vpop.f32.mrb[56].mxu1  ;;  %v1814_v28 = vpop.f32.mrb[57].mxu0  ;;  %v1476_v29 = vsel %vm1444_vm9, %v1428_v18, %v1460_v23 }
 0x168   :  { %v1815_v31 = vadd.f32 %v1814_v28, %v1813_v24  ;;  %v1878_v32 = vpop.f32.mrb[57].mxu1  ;;  %v1816_v33 = vpop.f32.mrb[58].mxu0  ;;  %1492 = vst [vmem:[%s2505_s4 + $0x48] sm:$0xff] %v1476_v29  ;;  %v1429_v53 = vadd.f32 %v2405_v14, %v1406_v30  ;;  %v1407_v43 = vmul.f32 %v2400_v9, %v1319_v26 }
 0x169   :  { %v1879_v21 = vadd.f32 %v1878_v32, %v1877_v19  ;;  %v1880_v34 = vpop.f32.mrb[58].mxu1  ;;  %v1817_v36 = vpop.f32.mrb[59].mxu0 }
 0x16a   :  { %v1227_v38 = vadd.f32 %v1815_v31, %v2387_v35  ;;  %v1818_v40 = vadd.f32 %v1817_v36, %v1816_v33  ;;  %v1881_v42 = vpop.f32.mrb[59].mxu1  ;;  %vm1445_vm10 = vcmp.ge.f32.partialorder %v1429_v53, 0.0  ;;  %v1461_v44 = vmul.f32 0.2, %v1429_v53 }
 0x16b   :  { %v1882_v25 = vadd.f32 %v1881_v42, %v1880_v34  ;;  %v1430_v46 = vadd.f32 %v2405_v14, %v1407_v43 }
 0x16c   :  { %v1324_v55 = vadd.f32 %v1879_v21, %v1227_v38  ;;  %v1230_v45 = vadd.f32 %v1818_v40, %v2389_v37  ;;  %v1477_v47 = vsel %vm1445_vm10, %v1429_v53, %v1461_v44 }
 0x16d   :  { %1493 = vst [vmem:[%s2505_s4 + $0x50] sm:$0xff] %v1477_v47  ;;  %vm1446_vm11 = vcmp.ge.f32.partialorder %v1430_v46, 0.0  ;;  %v1462_v35 = vmul.f32 0.2, %v1430_v46 }
 0x16e   :  { %v1327_v48 = vadd.f32 %v1882_v25, %v1230_v45  ;;  %v1819_v49 = vpop.f32.mrb[60].mxu0  ;;  %v1408_v52 = vmul.f32 %v2400_v9, %v1324_v55 }
 0x16f   :  { %v1883_v27 = vpop.f32.mrb[60].mxu1  ;;  %v1820_v50 = vpop.f32.mrb[61].mxu0  ;;  %v1478_v59 = vsel %vm1446_vm11, %v1430_v46, %v1462_v35 }
 0x170   :  { %v1821_v56 = vadd.f32 %v1820_v50, %v1819_v49  ;;  %v1884_v57 = vpop.f32.mrb[61].mxu1  ;;  %v1822_v58 = vpop.f32.mrb[62].mxu0  ;;  %1494 = vst [vmem:[%s2505_s4 + $0x58] sm:$0xff] %v1478_v59  ;;  %v1431_v62 = vadd.f32 %v2405_v14, %v1408_v52  ;;  %v1409_v3 = vmul.f32 %v2400_v9, %v1327_v48 }
 0x171   :  { %v1885_v37 = vadd.f32 %v1884_v57, %v1883_v27  ;;  %v1886_v60 = vpop.f32.mrb[62].mxu1  ;;  %v1823_v61 = vpop.f32.mrb[63].mxu0 }
 0x172   :  { %v1235_v63 = vadd.f32 %v1821_v56, %v2391_v51  ;;  %v1824_v0 = vadd.f32 %v1823_v61, %v1822_v58  ;;  %v1887_v1 = vpop.f32.mrb[63].mxu1  ;;  %vm1447_vm12 = vcmp.ge.f32.partialorder %v1431_v62, 0.0  ;;  %v1463_v4 = vmul.f32 0.2, %v1431_v62 }
 0x173   :  { %v1888_v2 = vadd.f32 %v1887_v1, %v1886_v60  ;;  %v1432_v6 = vadd.f32 %v2405_v14, %v1409_v3 }
 0x174   :  { %v1332_v39 = vadd.f32 %v1885_v37, %v1235_v63  ;;  %v1238_v5 = vadd.f32 %v1824_v0, %v2393_v54  ;;  %v1479_v7 = vsel %vm1447_vm12, %v1431_v62, %v1463_v4 }
 0x175   :  { %vm1448_vm13 = vcmp.ge.f32.partialorder %v1432_v6, 0.0  ;;  %v1464_v8 = vmul.f32 0.2, %v1432_v6  ;;  %1495 = vst [vmem:[%s2505_s4 + $0x60] sm:$0xff] %v1479_v7 }
 0x176   :  { %v1335_v10 = vadd.f32 %v1888_v2, %v1238_v5  ;;  %v1410_v51 = vmul.f32 %v2400_v9, %v1332_v39 }
 0x177   :  { %v1480_v12 = vsel %vm1448_vm13, %v1432_v6, %v1464_v8 }
 0x178   :  { %1496 = vst [vmem:[%s2505_s4 + $0x68] sm:$0xff] %v1480_v12  ;;  %v1433_v15 = vadd.f32 %v2405_v14, %v1410_v51  ;;  %v1411_v11 = vmul.f32 %v2400_v9, %v1335_v10 }
 0x17a   :  { %vm1449_vm14 = vcmp.ge.f32.partialorder %v1433_v15, 0.0  ;;  %v1465_v54 = vmul.f32 0.2, %v1433_v15  ;;  %v1434_v16 = vadd.f32 %v2405_v14, %v1411_v11 }
 0x17c   :  { %v1481_v41 = vsel %vm1449_vm14, %v1433_v15, %v1465_v54  ;;  %vm1450_vm15 = vcmp.ge.f32.partialorder %v1434_v16, 0.0  ;;  %v1466_v17 = vmul.f32 0.2, %v1434_v16 }
 0x17d   :  { %1497 = vst [vmem:[%s2505_s4 + $0x70] sm:$0xff] %v1481_v41 }
 0x17e   :  { %v1482_v18 = vsel %vm1450_vm15, %v1434_v16, %v1466_v17 }
 0x17f   :  { %1498 = vst [vmem:[%s2505_s4 + $0x78] sm:$0xff] %v1482_v18 }

// kernel: patchgan_forward.7
= control target key start
LH: loop header
LB: loop body
LE: loop exit
PB: predicated region body
PF: predicated region fallthrough
CT: control target
= control target key end

     0   :  { %s3988_s1 = inlined_call_operand.vmem [shape: bf16[2048,256], index: 1, kind: input, shape index: {}]   ;;  %s3989_s0 = inlined_call_operand.vmem [shape: bf16[32,2048], index: 0, kind: input, shape index: {}]   ;;  %s3990_s2 = inlined_call_operand.vmem [shape: f32[1,256], index: 2, kind: input, shape index: {}]   ;;  %s3991_s3 = inlined_call_operand.vmem [shape: f32[1,256], index: 3, kind: input, shape index: {}]   ;;  %s3992_s4 = inlined_call_operand.vmem [shape: f32[32,256], index: 4, kind: output, shape index: {}]  }
   0x1   :  { %v2637_v0 = vld [vmem:[%s3988_s1 + $0x4] ss:$8 sps:$4 sm:$0xff]   ;;  %v2641_v2 = vld [vmem:[%s3988_s1] ss:$8 sps:$4 sm:$0xff]   ;;  %v2643_v4 = vld [vmem:[%s3988_s1 + $0x14] ss:$8 sps:$4 sm:$0xff]  }
   0x2   :  { %v2639_v1 = vld [vmem:[%s3988_s1 + $0x404] ss:$8 sps:$4 sm:$0xff]   ;;  %1765 = vmatprep.subr.bf16.mxu1 %v2637_v0  ;;  %v2642_v3 = vld [vmem:[%s3988_s1 + $0x400] ss:$8 sps:$4 sm:$0xff]   ;;  %v2645_v5 = vld [vmem:[%s3988_s1 + $0x414] ss:$8 sps:$4 sm:$0xff]  }
   0x3   :  { %1977 = vmatprep.subr.bf16.mxu0 %v2639_v1  ;;  %1766 = vmatpush1.bf16.msra.mxu1 %v2641_v2  ;;  %v2647_v6 = vld [vmem:[%s3988_s1 + $0x10] ss:$8 sps:$4 sm:$0xff]   ;;  %v2649_v8 = vld [vmem:[%s3988_s1 + $0x24] ss:$8 sps:$4 sm:$0xff]   ;;  %v2653_v10 = vld [vmem:[%s3988_s1 + $0x20] ss:$8 sps:$4 sm:$0xff]  }
   0x4   :  { %1978 = vmatpush1.bf16.msra.mxu0 %v2642_v3  ;;  %1767 = vmatprep.subr.bf16.mxu1 %v2643_v4  ;;  %v2648_v7 = vld [vmem:[%s3988_s1 + $0x410] ss:$8 sps:$4 sm:$0xff]   ;;  %v2651_v9 = vld [vmem:[%s3988_s1 + $0x424] ss:$8 sps:$4 sm:$0xff]   ;;  %v2654_v11 = vld [vmem:[%s3988_s1 + $0x420] ss:$8 sps:$4 sm:$0xff]  }
   0x5   :  { %1979 = vmatprep.subr.bf16.mxu0 %v2645_v5  ;;  %v2655_v12 = vld [vmem:[%s3988_s1 + $0x34] ss:$8 sps:$4 sm:$0xff]   ;;  %v2659_v14 = vld [vmem:[%s3988_s1 + $0x30] ss:$8 sps:$4 sm:$0xff]   ;;  %v2661_v16 = vld [vmem:[%s3988_s1 + $0x44] ss:$8 sps:$4 sm:$0xff]  }
   0x6   :  { %v2657_v13 = vld [vmem:[%s3988_s1 + $0x434] ss:$8 sps:$4 sm:$0xff]   ;;  %v2660_v15 = vld [vmem:[%s3988_s1 + $0x430] ss:$8 sps:$4 sm:$0xff]   ;;  %v2663_v17 = vld [vmem:[%s3988_s1 + $0x444] ss:$8 sps:$4 sm:$0xff]  }
   0x7   :  { %1768 = vmatpush1.bf16.msra.mxu1 %v2647_v6  ;;  %v2665_v18 = vld [vmem:[%s3988_s1 + $0x40] ss:$8 sps:$4 sm:$0xff]   ;;  %v2667_v20 = vld [vmem:[%s3988_s1 + $0x54] ss:$8 sps:$4 sm:$0xff]   ;;  %v2671_v22 = vld [vmem:[%s3988_s1 + $0x50] ss:$8 sps:$4 sm:$0xff]  }
   0x8   :  { %1980 = vmatpush1.bf16.msra.mxu0 %v2648_v7  ;;  %1769 = vmatprep.subr.bf16.mxu1 %v2649_v8  ;;  %v2666_v19 = vld [vmem:[%s3988_s1 + $0x440] ss:$8 sps:$4 sm:$0xff]   ;;  %v2669_v21 = vld [vmem:[%s3988_s1 + $0x454] ss:$8 sps:$4 sm:$0xff]   ;;  %v2672_v23 = vld [vmem:[%s3988_s1 + $0x450] ss:$8 sps:$4 sm:$0xff]  }
   0x9   :  { %1981 = vmatprep.subr.bf16.mxu0 %v2651_v9  ;;  %v2673_v24 = vld [vmem:[%s3988_s1 + $0x64] ss:$8 sps:$4 sm:$0xff]   ;;  %v2677_v26 = vld [vmem:[%s3988_s1 + $0x60] ss:$8 sps:$4 sm:$0xff]   ;;  %v2679_v28 = vld [vmem:[%s3988_s1 + $0x74] ss:$8 sps:$4 sm:$0xff]  }
   0xa   :  { %v2675_v25 = vld [vmem:[%s3988_s1 + $0x464] ss:$8 sps:$4 sm:$0xff]   ;;  %v2678_v27 = vld [vmem:[%s3988_s1 + $0x460] ss:$8 sps:$4 sm:$0xff]   ;;  %v2681_v29 = vld [vmem:[%s3988_s1 + $0x474] ss:$8 sps:$4 sm:$0xff]  }
   0xb   :  { %1770 = vmatpush1.bf16.msra.mxu1 %v2653_v10  ;;  %v2683_v30 = vld [vmem:[%s3988_s1 + $0x70] ss:$8 sps:$4 sm:$0xff]   ;;  %v2685_v32 = vld [vmem:[%s3988_s1 + $0x84] ss:$8 sps:$4 sm:$0xff]   ;;  %v2689_v34 = vld [vmem:[%s3988_s1 + $0x80] ss:$8 sps:$4 sm:$0xff]  }
   0xc   :  { %1982 = vmatpush1.bf16.msra.mxu0 %v2654_v11  ;;  %1771 = vmatprep.subr.bf16.mxu1 %v2655_v12  ;;  %v2684_v31 = vld [vmem:[%s3988_s1 + $0x470] ss:$8 sps:$4 sm:$0xff]   ;;  %v2687_v33 = vld [vmem:[%s3988_s1 + $0x484] ss:$8 sps:$4 sm:$0xff]   ;;  %v2690_v35 = vld [vmem:[%s3988_s1 + $0x480] ss:$8 sps:$4 sm:$0xff]  }
   0xd   :  { %1983 = vmatprep.subr.bf16.mxu0 %v2657_v13  ;;  %v2691_v36 = vld [vmem:[%s3988_s1 + $0x94] ss:$8 sps:$4 sm:$0xff]   ;;  %v2695_v38 = vld [vmem:[%s3988_s1 + $0x90] ss:$8 sps:$4 sm:$0xff]   ;;  %v2697_v40 = vld [vmem:[%s3988_s1 + $0xa4] ss:$8 sps:$4 sm:$0xff]  }
   0xe   :  { %v2693_v37 = vld [vmem:[%s3988_s1 + $0x494] ss:$8 sps:$4 sm:$0xff]   ;;  %v2696_v39 = vld [vmem:[%s3988_s1 + $0x490] ss:$8 sps:$4 sm:$0xff]   ;;  %v2699_v41 = vld [vmem:[%s3988_s1 + $0x4a4] ss:$8 sps:$4 sm:$0xff]  }
   0xf   :  { %1772 = vmatpush1.bf16.msra.mxu1 %v2659_v14  ;;  %v2701_v42 = vld [vmem:[%s3988_s1 + $0xa0] ss:$8 sps:$4 sm:$0xff]   ;;  %v2703_v44 = vld [vmem:[%s3988_s1 + $0xb4] ss:$8 sps:$4 sm:$0xff]   ;;  %v2707_v46 = vld [vmem:[%s3988_s1 + $0xb0] ss:$8 sps:$4 sm:$0xff]  }
  0x10   :  { %1984 = vmatpush1.bf16.msra.mxu0 %v2660_v15  ;;  %1773 = vmatprep.subr.bf16.mxu1 %v2661_v16  ;;  %v2702_v43 = vld [vmem:[%s3988_s1 + $0x4a0] ss:$8 sps:$4 sm:$0xff]   ;;  %v2705_v45 = vld [vmem:[%s3988_s1 + $0x4b4] ss:$8 sps:$4 sm:$0xff]   ;;  %v2708_v47 = vld [vmem:[%s3988_s1 + $0x4b0] ss:$8 sps:$4 sm:$0xff]  }
  0x11   :  { %1985 = vmatprep.subr.bf16.mxu0 %v2663_v17  ;;  %v37_v48 = vld [vmem:[%s3989_s0] sm:$0xff]  ;;  %v2715_v58 = vld [vmem:[%s3988_s1 + $0xd4] ss:$8 sps:$4 sm:$0xff]   ;;  %v2719_v60 = vld [vmem:[%s3988_s1 + $0xd0] ss:$8 sps:$4 sm:$0xff]  }
  0x12   :  { %v45_v49 = vld [vmem:[%s3989_s0 + $0x40] sm:$0xff]  ;;  %v2717_v59 = vld [vmem:[%s3988_s1 + $0x4d4] ss:$8 sps:$4 sm:$0xff]   ;;  %v2720_v61 = vld [vmem:[%s3988_s1 + $0x4d0] ss:$8 sps:$4 sm:$0xff]  }
  0x13   :  { %1774 = vmatpush1.bf16.msra.mxu1 %v2665_v18  ;;  %v2709_v50 = vld [vmem:[%s3988_s1 + $0xc4] ss:$8 sps:$4 sm:$0xff]   ;;  %v2293_v52 = vcombine.high %v37_v48, %v45_v49  ;;  %v2713_v56 = vld [vmem:[%s3988_s1 + $0xc0] ss:$8 sps:$4 sm:$0xff]   ;;  %v2727_v2 = vld [vmem:[%s3988_s1 + $0xf4] ss:$8 sps:$4 sm:$0xff]   ;;  %v2292_v8 = vcombine.low %v37_v48, %v45_v49 }
  0x14   :  { %1986 = vmatpush1.bf16.msra.mxu0 %v2666_v19  ;;  %1775 = vmatprep.subr.bf16.mxu1 %v2667_v20  ;;  %v2711_v51 = vld [vmem:[%s3988_s1 + $0x4c4] ss:$8 sps:$4 sm:$0xff]   ;;  %v2714_v57 = vld [vmem:[%s3988_s1 + $0x4c0] ss:$8 sps:$4 sm:$0xff]   ;;  %v2729_v3 = vld [vmem:[%s3988_s1 + $0x4f4] ss:$8 sps:$4 sm:$0xff]  }
  0x15   :  { %1987 = vmatprep.subr.bf16.mxu0 %v2669_v21  ;;  %v41_v53 = vld [vmem:[%s3989_s0 + $0x20] sm:$0xff]  ;;  %1797 = vmatprep.mubr.bf16.mxu1 %v2293_v52  ;;  %v2731_v4 = vld [vmem:[%s3988_s1 + $0xf0] ss:$8 sps:$4 sm:$0xff]   ;;  %v2741_v12 = vld [vmem:[%s3988_s1 + $0x114] ss:$8 sps:$4 sm:$0xff]  }
  0x16   :  { %v49_v54 = vld [vmem:[%s3989_s0 + $0x60] sm:$0xff]  ;;  %v2732_v5 = vld [vmem:[%s3988_s1 + $0x4f0] ss:$8 sps:$4 sm:$0xff]   ;;  %v2744_v13 = vld [vmem:[%s3988_s1 + $0x514] ss:$8 sps:$4 sm:$0xff]  }
  0x17   :  { %1776 = vmatpush1.bf16.msra.mxu1 %v2671_v22  ;;  %v2301_v55 = vcombine.high %v41_v53, %v49_v54  ;;  %v2721_v62 = vld [vmem:[%s3988_s1 + $0xe4] ss:$8 sps:$4 sm:$0xff]   ;;  %v2725_v0 = vld [vmem:[%s3988_s1 + $0xe0] ss:$8 sps:$4 sm:$0xff]   ;;  %v2300_v10 = vcombine.low %v41_v53, %v49_v54  ;;  %v2739_v14 = vld [vmem:[%s3988_s1 + $0x110] ss:$8 sps:$4 sm:$0xff]  }
  0x18   :  { %1988 = vmatpush1.bf16.msra.mxu0 %v2672_v23  ;;  %1777 = vmatprep.subr.bf16.mxu1 %v2673_v24  ;;  %v2723_v63 = vld [vmem:[%s3988_s1 + $0x4e4] ss:$8 sps:$4 sm:$0xff]   ;;  %v2726_v1 = vld [vmem:[%s3988_s1 + $0x4e0] ss:$8 sps:$4 sm:$0xff]   ;;  %v2742_v15 = vld [vmem:[%s3988_s1 + $0x510] ss:$8 sps:$4 sm:$0xff]  }
  0x19   :  { %1989 = vmatprep.subr.bf16.mxu0 %v2675_v25  ;;  %2009 = vmatprep.mubr.bf16.mxu0 %v2301_v55  ;;  %v2735_v6 = vld [vmem:[%s3988_s1 + $0x104] ss:$8 sps:$4 sm:$0xff]   ;;  %v2733_v9 = vld [vmem:[%s3988_s1 + $0x100] ss:$8 sps:$4 sm:$0xff]   ;;  %v2753_v20 = vld [vmem:[%s3988_s1 + $0x134] ss:$8 sps:$4 sm:$0xff]  }
  0x1a   :  { %v2738_v7 = vld [vmem:[%s3988_s1 + $0x504] ss:$8 sps:$4 sm:$0xff]   ;;  %v2736_v11 = vld [vmem:[%s3988_s1 + $0x500] ss:$8 sps:$4 sm:$0xff]   ;;  %v2756_v21 = vld [vmem:[%s3988_s1 + $0x534] ss:$8 sps:$4 sm:$0xff]  }
  0x1b   :  { %1778 = vmatpush1.bf16.msra.mxu1 %v2677_v26  ;;  %v2747_v16 = vld [vmem:[%s3988_s1 + $0x124] ss:$8 sps:$4 sm:$0xff]   ;;  %v2745_v18 = vld [vmem:[%s3988_s1 + $0x120] ss:$8 sps:$4 sm:$0xff]   ;;  %v2751_v22 = vld [vmem:[%s3988_s1 + $0x130] ss:$8 sps:$4 sm:$0xff]  }
  0x1c   :  { %1990 = vmatpush1.bf16.msra.mxu0 %v2678_v27  ;;  %1779 = vmatprep.subr.bf16.mxu1 %v2679_v28  ;;  %v2750_v17 = vld [vmem:[%s3988_s1 + $0x524] ss:$8 sps:$4 sm:$0xff]   ;;  %v2748_v19 = vld [vmem:[%s3988_s1 + $0x520] ss:$8 sps:$4 sm:$0xff]   ;;  %v2754_v23 = vld [vmem:[%s3988_s1 + $0x530] ss:$8 sps:$4 sm:$0xff]  }
  0x1d   :  { %1991 = vmatprep.subr.bf16.mxu0 %v2681_v29  ;;  %v2759_v24 = vld [vmem:[%s3988_s1 + $0x144] ss:$8 sps:$4 sm:$0xff]   ;;  %v2757_v26 = vld [vmem:[%s3988_s1 + $0x140] ss:$8 sps:$4 sm:$0xff]   ;;  %v2765_v28 = vld [vmem:[%s3988_s1 + $0x154] ss:$8 sps:$4 sm:$0xff]  }
  0x1e   :  { %v2762_v25 = vld [vmem:[%s3988_s1 + $0x544] ss:$8 sps:$4 sm:$0xff]   ;;  %v2760_v27 = vld [vmem:[%s3988_s1 + $0x540] ss:$8 sps:$4 sm:$0xff]   ;;  %v2768_v29 = vld [vmem:[%s3988_s1 + $0x554] ss:$8 sps:$4 sm:$0xff]  }
  0x1f   :  { %1780 = vmatpush1.bf16.msra.mxu1 %v2683_v30  ;;  %v53_v30 = vld [vmem:[%s3989_s0 + $0x80] sm:$0xff]  ;;  %v3367_v49 = vld [vmem:[%s3989_s0 + $0x28] sm:$0xff]  ;;  %v2778_v52 = vld [vmem:[%s3988_s1 + $0x570] ss:$8 sps:$4 sm:$0xff]  }
  0x20   :  { %1992 = vmatpush1.bf16.msra.mxu0 %v2684_v31  ;;  %1781 = vmatprep.subr.bf16.mxu1 %v2685_v32  ;;  %v61_v31 = vld [vmem:[%s3989_s0 + $0xc0] sm:$0xff]  ;;  %v2763_v32 = vld [vmem:[%s3988_s1 + $0x150] ss:$8 sps:$4 sm:$0xff]  }
  0x21   :  { %1993 = vmatprep.subr.bf16.mxu0 %v2687_v33  ;;  %v2309_v33 = vcombine.high %v53_v30, %v61_v31  ;;  %v2783_v54 = vld [vmem:[%s3988_s1 + $0x184] ss:$8 sps:$4 sm:$0xff]  }
  0x22   :  { %v2786_v55 = vld [vmem:[%s3988_s1 + $0x584] ss:$8 sps:$4 sm:$0xff]  }
  0x23   :  { %1782 = vmatpush1.bf16.msra.mxu1 %v2689_v34  ;;  %v2766_v34 = vld [vmem:[%s3988_s1 + $0x550] ss:$8 sps:$4 sm:$0xff]  }
  0x24   :  { %1994 = vmatpush1.bf16.msra.mxu0 %v2690_v35  ;;  %1783 = vmatprep.subr.bf16.mxu1 %v2691_v36  ;;  %v57_v35 = vld [vmem:[%s3989_s0 + $0xa0] sm:$0xff] }
  0x25   :  { %1995 = vmatprep.subr.bf16.mxu0 %v2693_v37  ;;  %v65_v36 = vld [vmem:[%s3989_s0 + $0xe0] sm:$0xff]  ;;  %v2308_v37 = vcombine.low %v53_v30, %v61_v31  ;;  %v2837_v30 = vld [vmem:[%s3988_s1 + $0x214] ss:$8 sps:$4 sm:$0xff]  }
  0x26   :  { %v2840_v31 = vld [vmem:[%s3988_s1 + $0x614] ss:$8 sps:$4 sm:$0xff]  }
  0x27   :  { %1784 = vmatpush1.bf16.msra.mxu1 %v2695_v38  ;;  %v2771_v38 = vld [vmem:[%s3988_s1 + $0x164] ss:$8 sps:$4 sm:$0xff]  }
  0x28   :  { %1996 = vmatpush1.bf16.msra.mxu0 %v2696_v39  ;;  %1785 = vmatprep.subr.bf16.mxu1 %v2697_v40  ;;  %v2317_v39 = vcombine.high %v57_v35, %v65_v36  ;;  %v2316_v40 = vcombine.low %v57_v35, %v65_v36  ;;  %v2835_v36 = vld [vmem:[%s3988_s1 + $0x210] ss:$8 sps:$4 sm:$0xff]  }
  0x29   :  { %1997 = vmatprep.subr.bf16.mxu0 %v2699_v41  ;;  %v2774_v41 = vld [vmem:[%s3988_s1 + $0x564] ss:$8 sps:$4 sm:$0xff]  }
  0x2b   :  { %1786 = vmatpush1.bf16.msra.mxu1 %v2701_v42  ;;  %v2769_v42 = vld [vmem:[%s3988_s1 + $0x160] ss:$8 sps:$4 sm:$0xff]  }
  0x2c   :  { %1998 = vmatpush1.bf16.msra.mxu0 %v2702_v43  ;;  %1787 = vmatprep.subr.bf16.mxu1 %v2703_v44  ;;  %v2772_v43 = vld [vmem:[%s3988_s1 + $0x560] ss:$8 sps:$4 sm:$0xff]  }
  0x2d   :  { %1999 = vmatprep.subr.bf16.mxu0 %v2705_v45  ;;  %v3349_v44 = vld [vmem:[%s3989_s0 + $0x8] sm:$0xff] }
  0x2e   :  { %v3354_v45 = vld [vmem:[%s3989_s0 + $0x48] sm:$0xff] }
  0x2f   :  { %1788 = vmatpush1.bf16.msra.mxu1 %v2707_v46  ;;  %v2777_v46 = vld [vmem:[%s3988_s1 + $0x174] ss:$8 sps:$4 sm:$0xff]   ;;  %v2295_v48 = vcombine.high %v3349_v44, %v3354_v45 }
  0x30   :  { %2000 = vmatpush1.bf16.msra.mxu0 %v2708_v47  ;;  %1789 = vmatprep.subr.bf16.mxu1 %v2709_v50  ;;  %v2780_v47 = vld [vmem:[%s3988_s1 + $0x574] ss:$8 sps:$4 sm:$0xff]   ;;  %v3372_v50 = vld [vmem:[%s3989_s0 + $0x68] sm:$0xff] }
  0x31   :  { %2001 = vmatprep.subr.bf16.mxu0 %v2711_v51  ;;  %v2775_v51 = vld [vmem:[%s3988_s1 + $0x170] ss:$8 sps:$4 sm:$0xff]   ;;  %v2303_v53 = vcombine.high %v3367_v49, %v3372_v50 }
  0x33   :  { %1790 = vmatpush1.bf16.msra.mxu1 %v2713_v56  ;;  %v2781_v56 = vld [vmem:[%s3988_s1 + $0x180] ss:$8 sps:$4 sm:$0xff]  }
  0x34   :  { %2002 = vmatpush1.bf16.msra.mxu0 %v2714_v57  ;;  %1791 = vmatprep.subr.bf16.mxu1 %v2715_v58  ;;  %v2784_v57 = vld [vmem:[%s3988_s1 + $0x580] ss:$8 sps:$4 sm:$0xff]   ;;  %v2789_v58 = vld [vmem:[%s3988_s1 + $0x194] ss:$8 sps:$4 sm:$0xff]  }
  0x35   :  { %2003 = vmatprep.subr.bf16.mxu0 %v2717_v59  ;;  %v2792_v59 = vld [vmem:[%s3988_s1 + $0x594] ss:$8 sps:$4 sm:$0xff]  }
  0x37   :  { %1792 = vmatpush1.bf16.msra.mxu1 %v2719_v60  ;;  %v2787_v60 = vld [vmem:[%s3988_s1 + $0x190] ss:$8 sps:$4 sm:$0xff]  }
  0x38   :  { %2004 = vmatpush1.bf16.msra.mxu0 %v2720_v61  ;;  %1793 = vmatprep.subr.bf16.mxu1 %v2721_v62  ;;  %v2790_v61 = vld [vmem:[%s3988_s1 + $0x590] ss:$8 sps:$4 sm:$0xff]   ;;  %v2795_v62 = vld [vmem:[%s3988_s1 + $0x1a4] ss:$8 sps:$4 sm:$0xff]  }
  0x39   :  { %2005 = vmatprep.subr.bf16.mxu0 %v2723_v63  ;;  %v2798_v63 = vld [vmem:[%s3988_s1 + $0x5a4] ss:$8 sps:$4 sm:$0xff]  }
  0x3b   :  { %1794 = vmatpush1.bf16.msra.mxu1 %v2725_v0  ;;  %v2793_v0 = vld [vmem:[%s3988_s1 + $0x1a0] ss:$8 sps:$4 sm:$0xff]  }
  0x3c   :  { %2006 = vmatpush1.bf16.msra.mxu0 %v2726_v1  ;;  %1795 = vmatprep.subr.bf16.mxu1 %v2727_v2  ;;  %v2796_v1 = vld [vmem:[%s3988_s1 + $0x5a0] ss:$8 sps:$4 sm:$0xff]   ;;  %v2801_v2 = vld [vmem:[%s3988_s1 + $0x1b4] ss:$8 sps:$4 sm:$0xff]  }
  0x3d   :  { %2007 = vmatprep.subr.bf16.mxu0 %v2729_v3  ;;  %v2804_v3 = vld [vmem:[%s3988_s1 + $0x5b4] ss:$8 sps:$4 sm:$0xff]  }
  0x3f   :  { %1796 = vmatpush1.bf16.msra.mxu1 %v2731_v4  ;;  %v2799_v4 = vld [vmem:[%s3988_s1 + $0x1b0] ss:$8 sps:$4 sm:$0xff]  }
  0x40   :  { %2008 = vmatpush1.bf16.msra.mxu0 %v2732_v5  ;;  %1818 = vmatprep.subr.bf16.mxu1 %v2735_v6  ;;  %v2802_v5 = vld [vmem:[%s3988_s1 + $0x5b0] ss:$8 sps:$4 sm:$0xff]   ;;  %v2807_v6 = vld [vmem:[%s3988_s1 + $0x1c4] ss:$8 sps:$4 sm:$0xff]  }
  0x41   :  { %2030 = vmatprep.subr.bf16.mxu0 %v2738_v7  ;;  %v2810_v7 = vld [vmem:[%s3988_s1 + $0x5c4] ss:$8 sps:$4 sm:$0xff]  }
  0x42   :  { %1798 = vmatmul.mubr.bf16.vlgmr.msra.gmra.mrb[0].mxu1 %v2292_v8  ;;  %v2805_v8 = vld [vmem:[%s3988_s1 + $0x1c0] ss:$8 sps:$4 sm:$0xff]  }
  0x43   :  { %2010 = vmatmul.mubr.bf16.vlgmr.msra.gmra.mrb[0].mxu0 %v2300_v10  ;;  %1819 = vmatpush1.bf16.msra.mxu1 %v2733_v9  ;;  %v2808_v9 = vld [vmem:[%s3988_s1 + $0x5c0] ss:$8 sps:$4 sm:$0xff]   ;;  %v2813_v10 = vld [vmem:[%s3988_s1 + $0x1d4] ss:$8 sps:$4 sm:$0xff]  }
  0x44   :  { %2031 = vmatpush1.bf16.msra.mxu0 %v2736_v11  ;;  %1820 = vmatprep.subr.bf16.mxu1 %v2741_v12  ;;  %v2816_v11 = vld [vmem:[%s3988_s1 + $0x5d4] ss:$8 sps:$4 sm:$0xff]   ;;  %v2811_v12 = vld [vmem:[%s3988_s1 + $0x1d0] ss:$8 sps:$4 sm:$0xff]  }
  0x45   :  { %2032 = vmatprep.subr.bf16.mxu0 %v2744_v13  ;;  %1807 = vmatprep.mubr.bf16.mxu1 %v2309_v33  ;;  %v2814_v13 = vld [vmem:[%s3988_s1 + $0x5d0] ss:$8 sps:$4 sm:$0xff]   ;;  %v66_v33 = vld [vmem:[%s3989_s0 + $0xe8] sm:$0xff] }
  0x46   :  { %2019 = vmatprep.mubr.bf16.mxu0 %v2317_v39  ;;  %v2846_v39 = vld [vmem:[%s3988_s1 + $0x624] ss:$8 sps:$4 sm:$0xff]  }
  0x47   :  { %1821 = vmatpush1.bf16.msra.mxu1 %v2739_v14  ;;  %v2819_v14 = vld [vmem:[%s3988_s1 + $0x1e4] ss:$8 sps:$4 sm:$0xff]  }
  0x48   :  { %2033 = vmatpush1.bf16.msra.mxu0 %v2742_v15  ;;  %1822 = vmatprep.subr.bf16.mxu1 %v2747_v16  ;;  %v2822_v15 = vld [vmem:[%s3988_s1 + $0x5e4] ss:$8 sps:$4 sm:$0xff]   ;;  %v2817_v16 = vld [vmem:[%s3988_s1 + $0x1e0] ss:$8 sps:$4 sm:$0xff]  }
  0x49   :  { %2034 = vmatprep.subr.bf16.mxu0 %v2750_v17  ;;  %v2820_v17 = vld [vmem:[%s3988_s1 + $0x5e0] ss:$8 sps:$4 sm:$0xff]  }
  0x4a   :  { %1808 = vmatmul.mubr.bf16.gmra.mrb[4].mxu1 %v2308_v37  ;;  %v2838_v37 = vld [vmem:[%s3988_s1 + $0x610] ss:$8 sps:$4 sm:$0xff]  }
  0x4b   :  { %1823 = vmatpush1.bf16.msra.mxu1 %v2745_v18  ;;  %2020 = vmatmul.mubr.bf16.gmra.mrb[4].mxu0 %v2316_v40  ;;  %v2825_v18 = vld [vmem:[%s3988_s1 + $0x1f4] ss:$8 sps:$4 sm:$0xff]   ;;  %v2841_v40 = vld [vmem:[%s3988_s1 + $0x220] ss:$8 sps:$4 sm:$0xff]  }
  0x4c   :  { %2035 = vmatpush1.bf16.msra.mxu0 %v2748_v19  ;;  %1824 = vmatprep.subr.bf16.mxu1 %v2753_v20  ;;  %v2828_v19 = vld [vmem:[%s3988_s1 + $0x5f4] ss:$8 sps:$4 sm:$0xff]   ;;  %v2823_v20 = vld [vmem:[%s3988_s1 + $0x1f0] ss:$8 sps:$4 sm:$0xff]  }
  0x4d   :  { %2036 = vmatprep.subr.bf16.mxu0 %v2756_v21  ;;  %1850 = vmatprep.mubr.bf16.mxu1 %v2295_v48  ;;  %v2826_v21 = vld [vmem:[%s3988_s1 + $0x5f0] ss:$8 sps:$4 sm:$0xff]   ;;  %v2849_v48 = vld [vmem:[%s3988_s1 + $0x234] ss:$8 sps:$4 sm:$0xff]  }
  0x4e   :  { %2062 = vmatprep.mubr.bf16.mxu0 %v2303_v53  ;;  %v2850_v53 = vld [vmem:[%s3988_s1 + $0x630] ss:$8 sps:$4 sm:$0xff]  }
  0x4f   :  { %1825 = vmatpush1.bf16.msra.mxu1 %v2751_v22  ;;  %v2831_v22 = vld [vmem:[%s3988_s1 + $0x204] ss:$8 sps:$4 sm:$0xff]  }
  0x50   :  { %2037 = vmatpush1.bf16.msra.mxu0 %v2754_v23  ;;  %1826 = vmatprep.subr.bf16.mxu1 %v2759_v24  ;;  %v2834_v23 = vld [vmem:[%s3988_s1 + $0x604] ss:$8 sps:$4 sm:$0xff]   ;;  %v2829_v24 = vld [vmem:[%s3988_s1 + $0x200] ss:$8 sps:$4 sm:$0xff]  }
  0x51   :  { %2038 = vmatprep.subr.bf16.mxu0 %v2762_v25  ;;  %v2832_v25 = vld [vmem:[%s3988_s1 + $0x600] ss:$8 sps:$4 sm:$0xff]  }
  0x53   :  { %1827 = vmatpush1.bf16.msra.mxu1 %v2757_v26  ;;  %v54_v26 = vld [vmem:[%s3989_s0 + $0x88] sm:$0xff] }
  0x54   :  { %2039 = vmatpush1.bf16.msra.mxu0 %v2760_v27  ;;  %1828 = vmatprep.subr.bf16.mxu1 %v2765_v28  ;;  %v2294_v27 = vcombine.low %v3349_v44, %v3354_v45  ;;  %v2302_v28 = vcombine.low %v3367_v49, %v3372_v50  ;;  %v3538_v45 = vld [vmem:[%s3989_s0 + $0x50] sm:$0xff] }
  0x55   :  { %2040 = vmatprep.subr.bf16.mxu0 %v2768_v29  ;;  %v62_v29 = vld [vmem:[%s3989_s0 + $0xc8] sm:$0xff]  ;;  %v2852_v49 = vld [vmem:[%s3988_s1 + $0x634] ss:$8 sps:$4 sm:$0xff]  }
  0x57   :  { %1829 = vmatpush1.bf16.msra.mxu1 %v2763_v32  ;;  %v58_v32 = vld [vmem:[%s3989_s0 + $0xa8] sm:$0xff] }
  0x58   :  { %2041 = vmatpush1.bf16.msra.mxu0 %v2766_v34  ;;  %1830 = vmatprep.subr.bf16.mxu1 %v2771_v38  ;;  %v2311_v34 = vcombine.high %v54_v26, %v62_v29  ;;  %v2319_v35 = vcombine.high %v58_v32, %v66_v33  ;;  %v2843_v38 = vld [vmem:[%s3988_s1 + $0x224] ss:$8 sps:$4 sm:$0xff]   ;;  %v2318_v44 = vcombine.low %v58_v32, %v66_v33  ;;  %v2913_v32 = vld [vmem:[%s3988_s1 + $0x2e0] ss:$8 sps:$4 sm:$0xff]  }
  0x59   :  { %2042 = vmatprep.subr.bf16.mxu0 %v2774_v41  ;;  %v2844_v41 = vld [vmem:[%s3988_s1 + $0x620] ss:$8 sps:$4 sm:$0xff]  }
  0x5a   :  { %v2916_v33 = vld [vmem:[%s3988_s1 + $0x6e0] ss:$8 sps:$4 sm:$0xff]  }
  0x5b   :  { %1831 = vmatpush1.bf16.msra.mxu1 %v2769_v42  ;;  %v3533_v42 = vld [vmem:[%s3989_s0 + $0x10] sm:$0xff] }
  0x5c   :  { %2043 = vmatpush1.bf16.msra.mxu0 %v2772_v43  ;;  %1832 = vmatprep.subr.bf16.mxu1 %v2777_v46  ;;  %v2310_v43 = vcombine.low %v54_v26, %v62_v29  ;;  %v3543_v46 = vld [vmem:[%s3989_s0 + $0x30] sm:$0xff]  ;;  %v2297_v50 = vcombine.high %v3533_v42, %v3538_v45 }
  0x5d   :  { %2044 = vmatprep.subr.bf16.mxu0 %v2780_v47  ;;  %v3548_v47 = vld [vmem:[%s3989_s0 + $0x70] sm:$0xff] }
  0x5e   :  { %v2909_v26 = vld [vmem:[%s3988_s1 + $0x2d4] ss:$8 sps:$4 sm:$0xff]   ;;  %v2910_v29 = vld [vmem:[%s3988_s1 + $0x6d0] ss:$8 sps:$4 sm:$0xff]  }
  0x5f   :  { %1833 = vmatpush1.bf16.msra.mxu1 %v2775_v51  ;;  %v2305_v51 = vcombine.high %v3543_v46, %v3548_v47 }
  0x60   :  { %2045 = vmatpush1.bf16.msra.mxu0 %v2778_v52  ;;  %1834 = vmatprep.subr.bf16.mxu1 %v2783_v54  ;;  %v2847_v52 = vld [vmem:[%s3988_s1 + $0x230] ss:$8 sps:$4 sm:$0xff]   ;;  %v2855_v54 = vld [vmem:[%s3988_s1 + $0x244] ss:$8 sps:$4 sm:$0xff]  }
  0x61   :  { %2046 = vmatprep.subr.bf16.mxu0 %v2786_v55  ;;  %v2858_v55 = vld [vmem:[%s3988_s1 + $0x644] ss:$8 sps:$4 sm:$0xff]  }
  0x63   :  { %1835 = vmatpush1.bf16.msra.mxu1 %v2781_v56  ;;  %v2853_v56 = vld [vmem:[%s3988_s1 + $0x240] ss:$8 sps:$4 sm:$0xff]  }
  0x64   :  { %2047 = vmatpush1.bf16.msra.mxu0 %v2784_v57  ;;  %1836 = vmatprep.subr.bf16.mxu1 %v2789_v58  ;;  %v2856_v57 = vld [vmem:[%s3988_s1 + $0x640] ss:$8 sps:$4 sm:$0xff]   ;;  %v2861_v58 = vld [vmem:[%s3988_s1 + $0x254] ss:$8 sps:$4 sm:$0xff]  }
  0x65   :  { %2048 = vmatprep.subr.bf16.mxu0 %v2792_v59  ;;  %v2864_v59 = vld [vmem:[%s3988_s1 + $0x654] ss:$8 sps:$4 sm:$0xff]  }
  0x67   :  { %1837 = vmatpush1.bf16.msra.mxu1 %v2787_v60  ;;  %v2859_v60 = vld [vmem:[%s3988_s1 + $0x250] ss:$8 sps:$4 sm:$0xff]  }
  0x68   :  { %2049 = vmatpush1.bf16.msra.mxu0 %v2790_v61  ;;  %1838 = vmatprep.subr.bf16.mxu1 %v2795_v62  ;;  %v2862_v61 = vld [vmem:[%s3988_s1 + $0x650] ss:$8 sps:$4 sm:$0xff]   ;;  %v2867_v62 = vld [vmem:[%s3988_s1 + $0x264] ss:$8 sps:$4 sm:$0xff]  }
  0x69   :  { %2050 = vmatprep.subr.bf16.mxu0 %v2798_v63  ;;  %v2870_v63 = vld [vmem:[%s3988_s1 + $0x664] ss:$8 sps:$4 sm:$0xff]  }
  0x6b   :  { %1839 = vmatpush1.bf16.msra.mxu1 %v2793_v0  ;;  %v2865_v0 = vld [vmem:[%s3988_s1 + $0x260] ss:$8 sps:$4 sm:$0xff]  }
  0x6c   :  { %2051 = vmatpush1.bf16.msra.mxu0 %v2796_v1  ;;  %1840 = vmatprep.subr.bf16.mxu1 %v2801_v2  ;;  %v2868_v1 = vld [vmem:[%s3988_s1 + $0x660] ss:$8 sps:$4 sm:$0xff]   ;;  %v2873_v2 = vld [vmem:[%s3988_s1 + $0x274] ss:$8 sps:$4 sm:$0xff]  }
  0x6d   :  { %2052 = vmatprep.subr.bf16.mxu0 %v2804_v3  ;;  %v2876_v3 = vld [vmem:[%s3988_s1 + $0x674] ss:$8 sps:$4 sm:$0xff]  }
  0x6f   :  { %1841 = vmatpush1.bf16.msra.mxu1 %v2799_v4  ;;  %v2871_v4 = vld [vmem:[%s3988_s1 + $0x270] ss:$8 sps:$4 sm:$0xff]  }
  0x70   :  { %2053 = vmatpush1.bf16.msra.mxu0 %v2802_v5  ;;  %1842 = vmatprep.subr.bf16.mxu1 %v2807_v6  ;;  %v2874_v5 = vld [vmem:[%s3988_s1 + $0x670] ss:$8 sps:$4 sm:$0xff]   ;;  %v2879_v6 = vld [vmem:[%s3988_s1 + $0x284] ss:$8 sps:$4 sm:$0xff]  }
  0x71   :  { %2054 = vmatprep.subr.bf16.mxu0 %v2810_v7  ;;  %v2882_v7 = vld [vmem:[%s3988_s1 + $0x684] ss:$8 sps:$4 sm:$0xff]  }
  0x73   :  { %1843 = vmatpush1.bf16.msra.mxu1 %v2805_v8  ;;  %v2877_v8 = vld [vmem:[%s3988_s1 + $0x280] ss:$8 sps:$4 sm:$0xff]  }
  0x74   :  { %2055 = vmatpush1.bf16.msra.mxu0 %v2808_v9  ;;  %1844 = vmatprep.subr.bf16.mxu1 %v2813_v10  ;;  %v2880_v9 = vld [vmem:[%s3988_s1 + $0x680] ss:$8 sps:$4 sm:$0xff]   ;;  %v2885_v10 = vld [vmem:[%s3988_s1 + $0x294] ss:$8 sps:$4 sm:$0xff]  }
  0x75   :  { %2056 = vmatprep.subr.bf16.mxu0 %v2816_v11  ;;  %v2888_v11 = vld [vmem:[%s3988_s1 + $0x694] ss:$8 sps:$4 sm:$0xff]  }
  0x77   :  { %1845 = vmatpush1.bf16.msra.mxu1 %v2811_v12  ;;  %v2883_v12 = vld [vmem:[%s3988_s1 + $0x290] ss:$8 sps:$4 sm:$0xff]  }
  0x78   :  { %2057 = vmatpush1.bf16.msra.mxu0 %v2814_v13  ;;  %1846 = vmatprep.subr.bf16.mxu1 %v2819_v14  ;;  %v2886_v13 = vld [vmem:[%s3988_s1 + $0x690] ss:$8 sps:$4 sm:$0xff]   ;;  %v2891_v14 = vld [vmem:[%s3988_s1 + $0x2a4] ss:$8 sps:$4 sm:$0xff]  }
  0x79   :  { %2058 = vmatprep.subr.bf16.mxu0 %v2822_v15  ;;  %v2894_v15 = vld [vmem:[%s3988_s1 + $0x6a4] ss:$8 sps:$4 sm:$0xff]  }
  0x7b   :  { %1847 = vmatpush1.bf16.msra.mxu1 %v2817_v16  ;;  %v2889_v16 = vld [vmem:[%s3988_s1 + $0x2a0] ss:$8 sps:$4 sm:$0xff]  }
  0x7c   :  { %2059 = vmatpush1.bf16.msra.mxu0 %v2820_v17  ;;  %1848 = vmatprep.subr.bf16.mxu1 %v2825_v18  ;;  %v2892_v17 = vld [vmem:[%s3988_s1 + $0x6a0] ss:$8 sps:$4 sm:$0xff]   ;;  %v2897_v18 = vld [vmem:[%s3988_s1 + $0x2b4] ss:$8 sps:$4 sm:$0xff]  }
  0x7d   :  { %2060 = vmatprep.subr.bf16.mxu0 %v2828_v19  ;;  %v2900_v19 = vld [vmem:[%s3988_s1 + $0x6b4] ss:$8 sps:$4 sm:$0xff]  }
  0x7f   :  { %1849 = vmatpush1.bf16.msra.mxu1 %v2823_v20  ;;  %v2895_v20 = vld [vmem:[%s3988_s1 + $0x2b0] ss:$8 sps:$4 sm:$0xff]  }
  0x80   :  { %2061 = vmatpush1.bf16.msra.mxu0 %v2826_v21  ;;  %1871 = vmatprep.subr.bf16.mxu1 %v2831_v22  ;;  %v2898_v21 = vld [vmem:[%s3988_s1 + $0x6b0] ss:$8 sps:$4 sm:$0xff]   ;;  %v2903_v22 = vld [vmem:[%s3988_s1 + $0x2c4] ss:$8 sps:$4 sm:$0xff]  }
  0x81   :  { %2083 = vmatprep.subr.bf16.mxu0 %v2834_v23  ;;  %v2906_v23 = vld [vmem:[%s3988_s1 + $0x6c4] ss:$8 sps:$4 sm:$0xff]  }
  0x82   :  { %1851 = vmatmul.mubr.bf16.vlgmr.msra.gmra.mrb[0].mxu1 %v2294_v27  ;;  %v2912_v27 = vld [vmem:[%s3988_s1 + $0x6d4] ss:$8 sps:$4 sm:$0xff]  }
  0x83   :  { %2063 = vmatmul.mubr.bf16.vlgmr.msra.gmra.mrb[0].mxu0 %v2302_v28  ;;  %1872 = vmatpush1.bf16.msra.mxu1 %v2829_v24  ;;  %v2901_v24 = vld [vmem:[%s3988_s1 + $0x2c0] ss:$8 sps:$4 sm:$0xff]   ;;  %v2907_v28 = vld [vmem:[%s3988_s1 + $0x2d0] ss:$8 sps:$4 sm:$0xff]  }
  0x84   :  { %2084 = vmatpush1.bf16.msra.mxu0 %v2832_v25  ;;  %1873 = vmatprep.subr.bf16.mxu1 %v2837_v30  ;;  %v2904_v25 = vld [vmem:[%s3988_s1 + $0x6c0] ss:$8 sps:$4 sm:$0xff]   ;;  %v2915_v30 = vld [vmem:[%s3988_s1 + $0x2e4] ss:$8 sps:$4 sm:$0xff]  }
  0x85   :  { %2085 = vmatprep.subr.bf16.mxu0 %v2840_v31  ;;  %1860 = vmatprep.mubr.bf16.mxu1 %v2311_v34  ;;  %v2918_v31 = vld [vmem:[%s3988_s1 + $0x6e4] ss:$8 sps:$4 sm:$0xff]   ;;  %v2921_v34 = vld [vmem:[%s3988_s1 + $0x2f4] ss:$8 sps:$4 sm:$0xff]  }
  0x86   :  { %2072 = vmatprep.mubr.bf16.mxu0 %v2319_v35  ;;  %v2924_v35 = vld [vmem:[%s3988_s1 + $0x6f4] ss:$8 sps:$4 sm:$0xff]  }
  0x87   :  { %1874 = vmatpush1.bf16.msra.mxu1 %v2835_v36  ;;  %v2919_v36 = vld [vmem:[%s3988_s1 + $0x2f0] ss:$8 sps:$4 sm:$0xff]  }
  0x88   :  { %2086 = vmatpush1.bf16.msra.mxu0 %v2838_v37  ;;  %1875 = vmatprep.subr.bf16.mxu1 %v2843_v38  ;;  %v2922_v37 = vld [vmem:[%s3988_s1 + $0x6f0] ss:$8 sps:$4 sm:$0xff]   ;;  %v2927_v38 = vld [vmem:[%s3988_s1 + $0x304] ss:$8 sps:$4 sm:$0xff]  }
  0x89   :  { %2087 = vmatprep.subr.bf16.mxu0 %v2846_v39  ;;  %v2930_v39 = vld [vmem:[%s3988_s1 + $0x704] ss:$8 sps:$4 sm:$0xff]  }
  0x8a   :  { %1861 = vmatmul.mubr.bf16.gmra.mrb[4].mxu1 %v2310_v43  ;;  %v2304_v43 = vcombine.low %v3543_v46, %v3548_v47  ;;  %v2933_v46 = vld [vmem:[%s3988_s1 + $0x314] ss:$8 sps:$4 sm:$0xff]  }
  0x8b   :  { %2073 = vmatmul.mubr.bf16.gmra.mrb[4].mxu0 %v2318_v44  ;;  %1876 = vmatpush1.bf16.msra.mxu1 %v2841_v40  ;;  %v55_v40 = vld [vmem:[%s3989_s0 + $0x90] sm:$0xff] }
  0x8c   :  { %2088 = vmatpush1.bf16.msra.mxu0 %v2844_v41  ;;  %1877 = vmatprep.subr.bf16.mxu1 %v2849_v48  ;;  %v2296_v41 = vcombine.low %v3533_v42, %v3538_v45  ;;  %v63_v44 = vld [vmem:[%s3989_s0 + $0xd0] sm:$0xff]  ;;  %v2925_v42 = vld [vmem:[%s3988_s1 + $0x300] ss:$8 sps:$4 sm:$0xff]  }
  0x8d   :  { %2089 = vmatprep.subr.bf16.mxu0 %v2852_v49  ;;  %1903 = vmatprep.mubr.bf16.mxu1 %v2297_v50  ;;  %v59_v48 = vld [vmem:[%s3989_s0 + $0xb0] sm:$0xff]  ;;  %v2928_v45 = vld [vmem:[%s3988_s1 + $0x700] ss:$8 sps:$4 sm:$0xff]   ;;  %v2313_v50 = vcombine.high %v55_v40, %v63_v44 }
  0x8e   :  { %2115 = vmatprep.mubr.bf16.mxu0 %v2305_v51  ;;  %v67_v49 = vld [vmem:[%s3989_s0 + $0xf0] sm:$0xff] }
  0x8f   :  { %1878 = vmatpush1.bf16.msra.mxu1 %v2847_v52  ;;  %v2936_v47 = vld [vmem:[%s3988_s1 + $0x714] ss:$8 sps:$4 sm:$0xff]   ;;  %v2321_v51 = vcombine.high %v59_v48, %v67_v49  ;;  %v2931_v52 = vld [vmem:[%s3988_s1 + $0x310] ss:$8 sps:$4 sm:$0xff]  }
  0x90   :  { %2090 = vmatpush1.bf16.msra.mxu0 %v2850_v53  ;;  %1879 = vmatprep.subr.bf16.mxu1 %v2855_v54  ;;  %v2934_v53 = vld [vmem:[%s3988_s1 + $0x710] ss:$8 sps:$4 sm:$0xff]   ;;  %v2939_v54 = vld [vmem:[%s3988_s1 + $0x324] ss:$8 sps:$4 sm:$0xff]  }
  0x91   :  { %2091 = vmatprep.subr.bf16.mxu0 %v2858_v55  ;;  %v2942_v55 = vld [vmem:[%s3988_s1 + $0x724] ss:$8 sps:$4 sm:$0xff]  }
  0x93   :  { %1880 = vmatpush1.bf16.msra.mxu1 %v2853_v56  ;;  %v3759_v56 = vld [vmem:[%s3989_s0 + $0x18] sm:$0xff] }
  0x94   :  { %2092 = vmatpush1.bf16.msra.mxu0 %v2856_v57  ;;  %1881 = vmatprep.subr.bf16.mxu1 %v2861_v58  ;;  %v2312_v57 = vcombine.low %v55_v40, %v63_v44  ;;  %v2320_v58 = vcombine.low %v59_v48, %v67_v49  ;;  %v2997_v40 = vld [vmem:[%s3988_s1 + $0x3c0] ss:$8 sps:$4 sm:$0xff]   ;;  %v3008_v44 = vld [vmem:[%s3988_s1 + $0x7d4] ss:$8 sps:$4 sm:$0xff]   ;;  %v3003_v48 = vld [vmem:[%s3988_s1 + $0x3d0] ss:$8 sps:$4 sm:$0xff]  }
  0x95   :  { %2093 = vmatprep.subr.bf16.mxu0 %v2864_v59  ;;  %v3764_v59 = vld [vmem:[%s3989_s0 + $0x58] sm:$0xff] }
  0x96   :  { %v3006_v49 = vld [vmem:[%s3988_s1 + $0x7d0] ss:$8 sps:$4 sm:$0xff]  }
  0x97   :  { %1882 = vmatpush1.bf16.msra.mxu1 %v2859_v60  ;;  %v3769_v60 = vld [vmem:[%s3989_s0 + $0x38] sm:$0xff] }
  0x98   :  { %2094 = vmatpush1.bf16.msra.mxu0 %v2862_v61  ;;  %1883 = vmatprep.subr.bf16.mxu1 %v2867_v62  ;;  %v3774_v61 = vld [vmem:[%s3989_s0 + $0x78] sm:$0xff]  ;;  %v2937_v62 = vld [vmem:[%s3988_s1 + $0x320] ss:$8 sps:$4 sm:$0xff]  }
  0x99   :  { %2095 = vmatprep.subr.bf16.mxu0 %v2870_v63  ;;  %v2940_v63 = vld [vmem:[%s3988_s1 + $0x720] ss:$8 sps:$4 sm:$0xff]  }
  0x9b   :  { %1884 = vmatpush1.bf16.msra.mxu1 %v2865_v0  ;;  %v2945_v0 = vld [vmem:[%s3988_s1 + $0x334] ss:$8 sps:$4 sm:$0xff]  }
  0x9c   :  { %2096 = vmatpush1.bf16.msra.mxu0 %v2868_v1  ;;  %1885 = vmatprep.subr.bf16.mxu1 %v2873_v2  ;;  %v2948_v1 = vld [vmem:[%s3988_s1 + $0x734] ss:$8 sps:$4 sm:$0xff]   ;;  %v2299_v2 = vcombine.high %v3759_v56, %v3764_v59 }
  0x9d   :  { %2097 = vmatprep.subr.bf16.mxu0 %v2876_v3  ;;  %v2307_v3 = vcombine.high %v3769_v60, %v3774_v61 }
  0x9f   :  { %1886 = vmatpush1.bf16.msra.mxu1 %v2871_v4  ;;  %v2943_v4 = vld [vmem:[%s3988_s1 + $0x330] ss:$8 sps:$4 sm:$0xff]  }
  0xa0   :  { %2098 = vmatpush1.bf16.msra.mxu0 %v2874_v5  ;;  %1887 = vmatprep.subr.bf16.mxu1 %v2879_v6  ;;  %v2946_v5 = vld [vmem:[%s3988_s1 + $0x730] ss:$8 sps:$4 sm:$0xff]   ;;  %v2951_v6 = vld [vmem:[%s3988_s1 + $0x344] ss:$8 sps:$4 sm:$0xff]  }
  0xa1   :  { %2099 = vmatprep.subr.bf16.mxu0 %v2882_v7  ;;  %v2954_v7 = vld [vmem:[%s3988_s1 + $0x744] ss:$8 sps:$4 sm:$0xff]  }
  0xa3   :  { %1888 = vmatpush1.bf16.msra.mxu1 %v2877_v8  ;;  %v2949_v8 = vld [vmem:[%s3988_s1 + $0x340] ss:$8 sps:$4 sm:$0xff]  }
  0xa4   :  { %2100 = vmatpush1.bf16.msra.mxu0 %v2880_v9  ;;  %1889 = vmatprep.subr.bf16.mxu1 %v2885_v10  ;;  %v2952_v9 = vld [vmem:[%s3988_s1 + $0x740] ss:$8 sps:$4 sm:$0xff]   ;;  %v2957_v10 = vld [vmem:[%s3988_s1 + $0x354] ss:$8 sps:$4 sm:$0xff]  }
  0xa5   :  { %2101 = vmatprep.subr.bf16.mxu0 %v2888_v11  ;;  %v2960_v11 = vld [vmem:[%s3988_s1 + $0x754] ss:$8 sps:$4 sm:$0xff]  }
  0xa7   :  { %1890 = vmatpush1.bf16.msra.mxu1 %v2883_v12  ;;  %v2955_v12 = vld [vmem:[%s3988_s1 + $0x350] ss:$8 sps:$4 sm:$0xff]  }
  0xa8   :  { %2102 = vmatpush1.bf16.msra.mxu0 %v2886_v13  ;;  %1891 = vmatprep.subr.bf16.mxu1 %v2891_v14  ;;  %v2958_v13 = vld [vmem:[%s3988_s1 + $0x750] ss:$8 sps:$4 sm:$0xff]   ;;  %v2963_v14 = vld [vmem:[%s3988_s1 + $0x364] ss:$8 sps:$4 sm:$0xff]  }
  0xa9   :  { %2103 = vmatprep.subr.bf16.mxu0 %v2894_v15  ;;  %v2966_v15 = vld [vmem:[%s3988_s1 + $0x764] ss:$8 sps:$4 sm:$0xff]  }
  0xab   :  { %1892 = vmatpush1.bf16.msra.mxu1 %v2889_v16  ;;  %v2961_v16 = vld [vmem:[%s3988_s1 + $0x360] ss:$8 sps:$4 sm:$0xff]  }
  0xac   :  { %2104 = vmatpush1.bf16.msra.mxu0 %v2892_v17  ;;  %1893 = vmatprep.subr.bf16.mxu1 %v2897_v18  ;;  %v2964_v17 = vld [vmem:[%s3988_s1 + $0x760] ss:$8 sps:$4 sm:$0xff]   ;;  %v2969_v18 = vld [vmem:[%s3988_s1 + $0x374] ss:$8 sps:$4 sm:$0xff]  }
  0xad   :  { %2105 = vmatprep.subr.bf16.mxu0 %v2900_v19  ;;  %v2972_v19 = vld [vmem:[%s3988_s1 + $0x774] ss:$8 sps:$4 sm:$0xff]  }
  0xaf   :  { %1894 = vmatpush1.bf16.msra.mxu1 %v2895_v20  ;;  %v2967_v20 = vld [vmem:[%s3988_s1 + $0x370] ss:$8 sps:$4 sm:$0xff]  }
  0xb0   :  { %2106 = vmatpush1.bf16.msra.mxu0 %v2898_v21  ;;  %1895 = vmatprep.subr.bf16.mxu1 %v2903_v22  ;;  %v2970_v21 = vld [vmem:[%s3988_s1 + $0x770] ss:$8 sps:$4 sm:$0xff]   ;;  %v2975_v22 = vld [vmem:[%s3988_s1 + $0x384] ss:$8 sps:$4 sm:$0xff]  }
  0xb1   :  { %2107 = vmatprep.subr.bf16.mxu0 %v2906_v23  ;;  %v2978_v23 = vld [vmem:[%s3988_s1 + $0x784] ss:$8 sps:$4 sm:$0xff]  }
  0xb3   :  { %1896 = vmatpush1.bf16.msra.mxu1 %v2901_v24  ;;  %v2973_v24 = vld [vmem:[%s3988_s1 + $0x380] ss:$8 sps:$4 sm:$0xff]  }
  0xb4   :  { %2108 = vmatpush1.bf16.msra.mxu0 %v2904_v25  ;;  %1897 = vmatprep.subr.bf16.mxu1 %v2909_v26  ;;  %v2976_v25 = vld [vmem:[%s3988_s1 + $0x780] ss:$8 sps:$4 sm:$0xff]   ;;  %v2981_v26 = vld [vmem:[%s3988_s1 + $0x394] ss:$8 sps:$4 sm:$0xff]  }
  0xb5   :  { %2109 = vmatprep.subr.bf16.mxu0 %v2912_v27  ;;  %v2984_v27 = vld [vmem:[%s3988_s1 + $0x794] ss:$8 sps:$4 sm:$0xff]  }
  0xb7   :  { %1898 = vmatpush1.bf16.msra.mxu1 %v2907_v28  ;;  %v2979_v28 = vld [vmem:[%s3988_s1 + $0x390] ss:$8 sps:$4 sm:$0xff]  }
  0xb8   :  { %2110 = vmatpush1.bf16.msra.mxu0 %v2910_v29  ;;  %1899 = vmatprep.subr.bf16.mxu1 %v2915_v30  ;;  %v2982_v29 = vld [vmem:[%s3988_s1 + $0x790] ss:$8 sps:$4 sm:$0xff]   ;;  %v2987_v30 = vld [vmem:[%s3988_s1 + $0x3a4] ss:$8 sps:$4 sm:$0xff]  }
  0xb9   :  { %2111 = vmatprep.subr.bf16.mxu0 %v2918_v31  ;;  %v2990_v31 = vld [vmem:[%s3988_s1 + $0x7a4] ss:$8 sps:$4 sm:$0xff]  }
  0xbb   :  { %1900 = vmatpush1.bf16.msra.mxu1 %v2913_v32  ;;  %v2985_v32 = vld [vmem:[%s3988_s1 + $0x3a0] ss:$8 sps:$4 sm:$0xff]  }
  0xbc   :  { %2112 = vmatpush1.bf16.msra.mxu0 %v2916_v33  ;;  %1901 = vmatprep.subr.bf16.mxu1 %v2921_v34  ;;  %v2988_v33 = vld [vmem:[%s3988_s1 + $0x7a0] ss:$8 sps:$4 sm:$0xff]   ;;  %v2993_v34 = vld [vmem:[%s3988_s1 + $0x3b4] ss:$8 sps:$4 sm:$0xff]  }
  0xbd   :  { %2113 = vmatprep.subr.bf16.mxu0 %v2924_v35  ;;  %v2996_v35 = vld [vmem:[%s3988_s1 + $0x7b4] ss:$8 sps:$4 sm:$0xff]  }
  0xbf   :  { %1902 = vmatpush1.bf16.msra.mxu1 %v2919_v36  ;;  %v2991_v36 = vld [vmem:[%s3988_s1 + $0x3b0] ss:$8 sps:$4 sm:$0xff]  }
  0xc0   :  { %2114 = vmatpush1.bf16.msra.mxu0 %v2922_v37  ;;  %1924 = vmatprep.subr.bf16.mxu1 %v2927_v38  ;;  %v2994_v37 = vld [vmem:[%s3988_s1 + $0x7b0] ss:$8 sps:$4 sm:$0xff]   ;;  %v2999_v38 = vld [vmem:[%s3988_s1 + $0x3c4] ss:$8 sps:$4 sm:$0xff]  }
  0xc1   :  { %2136 = vmatprep.subr.bf16.mxu0 %v2930_v39  ;;  %v3002_v39 = vld [vmem:[%s3988_s1 + $0x7c4] ss:$8 sps:$4 sm:$0xff]  }
  0xc2   :  { %1904 = vmatmul.mubr.bf16.vlgmr.msra.gmra.mrb[0].mxu1 %v2296_v41  ;;  %v3000_v41 = vld [vmem:[%s3988_s1 + $0x7c0] ss:$8 sps:$4 sm:$0xff]  }
  0xc3   :  { %2116 = vmatmul.mubr.bf16.vlgmr.msra.gmra.mrb[0].mxu0 %v2304_v43  ;;  %1925 = vmatpush1.bf16.msra.mxu1 %v2925_v42  ;;  %v3005_v43 = vld [vmem:[%s3988_s1 + $0x3d4] ss:$8 sps:$4 sm:$0xff]   ;;  %v3011_v42 = vld [vmem:[%s3988_s1 + $0x3e4] ss:$8 sps:$4 sm:$0xff]  }
  0xc4   :  { %2137 = vmatpush1.bf16.msra.mxu0 %v2928_v45  ;;  %1926 = vmatprep.subr.bf16.mxu1 %v2933_v46  ;;  %v3014_v45 = vld [vmem:[%s3988_s1 + $0x7e4] ss:$8 sps:$4 sm:$0xff]   ;;  %v3009_v46 = vld [vmem:[%s3988_s1 + $0x3e0] ss:$8 sps:$4 sm:$0xff]  }
  0xc5   :  { %2138 = vmatprep.subr.bf16.mxu0 %v2936_v47  ;;  %1913 = vmatprep.mubr.bf16.mxu1 %v2313_v50  ;;  %v3012_v47 = vld [vmem:[%s3988_s1 + $0x7e0] ss:$8 sps:$4 sm:$0xff]   ;;  %v3017_v50 = vld [vmem:[%s3988_s1 + $0x3f4] ss:$8 sps:$4 sm:$0xff]  }
  0xc6   :  { %2125 = vmatprep.mubr.bf16.mxu0 %v2321_v51  ;;  %v3020_v51 = vld [vmem:[%s3988_s1 + $0x7f4] ss:$8 sps:$4 sm:$0xff]  }
  0xc7   :  { %1927 = vmatpush1.bf16.msra.mxu1 %v2931_v52  ;;  %v3015_v52 = vld [vmem:[%s3988_s1 + $0x3f0] ss:$8 sps:$4 sm:$0xff]  }
  0xc8   :  { %2139 = vmatpush1.bf16.msra.mxu0 %v2934_v53  ;;  %1928 = vmatprep.subr.bf16.mxu1 %v2939_v54  ;;  %v3018_v53 = vld [vmem:[%s3988_s1 + $0x7f0] ss:$8 sps:$4 sm:$0xff]  }
  0xc9   :  { %2140 = vmatprep.subr.bf16.mxu0 %v2942_v55  ;;  %v56_v54 = vld [vmem:[%s3989_s0 + $0x98] sm:$0xff] }
  0xca   :  { %1914 = vmatmul.mubr.bf16.gmra.mrb[4].mxu1 %v2312_v57  ;;  %v64_v55 = vld [vmem:[%s3989_s0 + $0xd8] sm:$0xff] }
  0xcb   :  { %2126 = vmatmul.mubr.bf16.gmra.mrb[4].mxu0 %v2320_v58  ;;  %1929 = vmatpush1.bf16.msra.mxu1 %v2937_v62  ;;  %v60_v57 = vld [vmem:[%s3989_s0 + $0xb8] sm:$0xff]  ;;  %v2298_v62 = vcombine.low %v3759_v56, %v3764_v59  ;;  %v2216_v56 = vld [vmem:[%s3990_s2] sm:$0x3] }
  0xcc   :  { %2141 = vmatpush1.bf16.msra.mxu0 %v2940_v63  ;;  %1930 = vmatprep.subr.bf16.mxu1 %v2945_v0  ;;  %v68_v58 = vld [vmem:[%s3989_s0 + $0xf8] sm:$0xff]  ;;  %v2306_v63 = vcombine.low %v3769_v60, %v3774_v61  ;;  %v2315_v0 = vcombine.high %v56_v54, %v64_v55 }
  0xcd   :  { %2142 = vmatprep.subr.bf16.mxu0 %v2948_v1  ;;  %1956 = vmatprep.mubr.bf16.mxu1 %v2299_v2  ;;  %v2323_v1 = vcombine.high %v60_v57, %v68_v58  ;;  %v2314_v2 = vcombine.low %v56_v54, %v64_v55 }
  0xce   :  { %2168 = vmatprep.mubr.bf16.mxu0 %v2307_v3  ;;  %v2322_v3 = vcombine.low %v60_v57, %v68_v58 }
  0xcf   :  { %1931 = vmatpush1.bf16.msra.mxu1 %v2943_v4  ;;  %v2218_v4 = vlaneseq }
  0xd0   :  { %2143 = vmatpush1.bf16.msra.mxu0 %v2946_v5  ;;  %1932 = vmatprep.subr.bf16.mxu1 %v2951_v6 }
  0xd1   :  { %2144 = vmatprep.subr.bf16.mxu0 %v2954_v7  ;;  %v2219_v5 = vshrl.u32 %v2218_v4, 7  ;;  %v2236_v7 = vld [vmem:[%s3991_s3] sm:$0x3] }
  0xd3   :  { %1933 = vmatpush1.bf16.msra.mxu1 %v2949_v8  ;;  %v2220_v6 = vsub.s32 0, %v2219_v5  ;;  %v2224_v59 = vsub.s32 1, %v2219_v5 }
  0xd4   :  { %2145 = vmatpush1.bf16.msra.mxu0 %v2952_v9  ;;  %1934 = vmatprep.subr.bf16.mxu1 %v2957_v10 }
  0xd5   :  { %2146 = vmatprep.subr.bf16.mxu0 %v2960_v11  ;;  %v2221_v9 = vrot.slane %v2216_v56, %v2220_v6 }
  0xd7   :  { %1935 = vmatpush1.bf16.msra.mxu1 %v2955_v12 }
  0xd8   :  { %2147 = vmatpush1.bf16.msra.mxu0 %v2958_v13  ;;  %1936 = vmatprep.subr.bf16.mxu1 %v2963_v14  ;;  %v2225_v13 = vrot.slane %v2216_v56, %v2224_v59 }
  0xd9   :  { %2148 = vmatprep.subr.bf16.mxu0 %v2966_v15 }
  0xdb   :  { %1937 = vmatpush1.bf16.msra.mxu1 %v2961_v16  ;;  %v2241_v16 = vrot.slane %v2236_v7, %v2220_v6 }
  0xdc   :  { %2149 = vmatpush1.bf16.msra.mxu0 %v2964_v17  ;;  %1938 = vmatprep.subr.bf16.mxu1 %v2969_v18 }
  0xdd   :  { %2150 = vmatprep.subr.bf16.mxu0 %v2972_v19 }
  0xdf   :  { %1939 = vmatpush1.bf16.msra.mxu1 %v2967_v20  ;;  %v2245_v20 = vrot.slane %v2236_v7, %v2224_v59 }
  0xe0   :  { %2151 = vmatpush1.bf16.msra.mxu0 %v2970_v21  ;;  %1940 = vmatprep.subr.bf16.mxu1 %v2975_v22 }
  0xe1   :  { %2152 = vmatprep.subr.bf16.mxu0 %v2978_v23 }
  0xe3   :  { %1941 = vmatpush1.bf16.msra.mxu1 %v2973_v24 }
  0xe4   :  { %2153 = vmatpush1.bf16.msra.mxu0 %v2976_v25  ;;  %1942 = vmatprep.subr.bf16.mxu1 %v2981_v26 }
  0xe5   :  { %2154 = vmatprep.subr.bf16.mxu0 %v2984_v27 }
  0xe7   :  { %1943 = vmatpush1.bf16.msra.mxu1 %v2979_v28 }
  0xe8   :  { %2155 = vmatpush1.bf16.msra.mxu0 %v2982_v29  ;;  %1944 = vmatprep.subr.bf16.mxu1 %v2987_v30 }
  0xe9   :  { %2156 = vmatprep.subr.bf16.mxu0 %v2990_v31 }
  0xeb   :  { %1945 = vmatpush1.bf16.msra.mxu1 %v2985_v32 }
  0xec   :  { %2157 = vmatpush1.bf16.msra.mxu0 %v2988_v33  ;;  %1946 = vmatprep.subr.bf16.mxu1 %v2993_v34 }
  0xed   :  { %2158 = vmatprep.subr.bf16.mxu0 %v2996_v35 }
  0xef   :  { %1947 = vmatpush1.bf16.msra.mxu1 %v2991_v36 }
  0xf0   :  { %2159 = vmatpush1.bf16.msra.mxu0 %v2994_v37  ;;  %1948 = vmatprep.subr.bf16.mxu1 %v2999_v38 }
  0xf1   :  { %2160 = vmatprep.subr.bf16.mxu0 %v3002_v39 }
  0xf3   :  { %1949 = vmatpush1.bf16.msra.mxu1 %v2997_v40 }
  0xf4   :  { %2161 = vmatpush1.bf16.msra.mxu0 %v3000_v41  ;;  %1950 = vmatprep.subr.bf16.mxu1 %v3005_v43 }
  0xf5   :  { %2162 = vmatprep.subr.bf16.mxu0 %v3008_v44 }
  0xf7   :  { %1951 = vmatpush1.bf16.msra.mxu1 %v3003_v48 }
  0xf8   :  { %2163 = vmatpush1.bf16.msra.mxu0 %v3006_v49  ;;  %1952 = vmatprep.subr.bf16.mxu1 %v3011_v42 }
  0xf9   :  { %2164 = vmatprep.subr.bf16.mxu0 %v3014_v45 }
  0xfb   :  { %1953 = vmatpush1.bf16.msra.mxu1 %v3009_v46 }
  0xfc   :  { %2165 = vmatpush1.bf16.msra.mxu0 %v3012_v47  ;;  %1954 = vmatprep.subr.bf16.mxu1 %v3017_v50 }
  0xfd   :  { %2166 = vmatprep.subr.bf16.mxu0 %v3020_v51 }
  0xff   :  { %1955 = vmatpush1.bf16.msra.mxu1 %v3015_v52 }
 0x100   :  { %2167 = vmatpush1.bf16.msra.mxu0 %v3018_v53 }
 0x102   :  { %1957 = vmatmul.mubr.bf16.vlgmr.msra.gmra.mrb[0].mxu1 %v2298_v62 }
 0x103   :  { %2169 = vmatmul.mubr.bf16.vlgmr.msra.gmra.mrb[0].mxu0 %v2306_v63  ;;  %1966 = vmatprep.mubr.bf16.mxu1 %v2315_v0 }
 0x104   :  { %2178 = vmatprep.mubr.bf16.mxu0 %v2323_v1 }
 0x10a   :  { %1967 = vmatmul.mubr.bf16.gmra.mrb[4].mxu1 %v2314_v2 }
 0x10b   :  { %2179 = vmatmul.mubr.bf16.gmra.mrb[4].mxu0 %v2322_v3 }
 0x1d5   :  { %v1958_v60 = vpop.f32.mrb[0].mxu1 }
 0x1d6   :  { %v2170_v61 = vpop.f32.mrb[0].mxu0  ;;  %v1960_v10 = vpop.f32.mrb[1].mxu1 }
 0x1d7   :  { %v2580_v8 = vadd.f32 %v2170_v61, %v1958_v60  ;;  %v2172_v11 = vpop.f32.mrb[1].mxu0  ;;  %v1962_v14 = vpop.f32.mrb[2].mxu1 }
 0x1d8   :  { %v2581_v12 = vadd.f32 %v2172_v11, %v1960_v10  ;;  %v2174_v15 = vpop.f32.mrb[2].mxu0  ;;  %v1964_v18 = vpop.f32.mrb[3].mxu1 }
 0x1d9   :  { %v2582_v17 = vadd.f32 %v2174_v15, %v1962_v14  ;;  %v2176_v19 = vpop.f32.mrb[3].mxu0  ;;  %v2228_v22 = vmul.f32 %v2580_v8, %v2221_v9 }
 0x1da   :  { %v2583_v21 = vadd.f32 %v2176_v19, %v1964_v18  ;;  %v2229_v23 = vmul.f32 %v2581_v12, %v2225_v13 }
 0x1db   :  { %v2248_v24 = vadd.f32 %v2241_v16, %v2228_v22  ;;  %v2230_v25 = vmul.f32 %v2582_v17, %v2221_v9 }
 0x1dc   :  { %v2249_v26 = vadd.f32 %v2245_v20, %v2229_v23  ;;  %v2231_v27 = vmul.f32 %v2583_v21, %v2225_v13 }
 0x1dd   :  { %v1968_v28 = vpop.f32.mrb[4].mxu1  ;;  %vm2256_vm0 = vcmp.ge.f32.partialorder %v2248_v24, 0.0  ;;  %v2264_v30 = vmul.f32 0.2, %v2248_v24  ;;  %v2250_v31 = vadd.f32 %v2241_v16, %v2230_v25 }
 0x1de   :  { %v2180_v29 = vpop.f32.mrb[4].mxu0  ;;  %v1970_v33 = vpop.f32.mrb[5].mxu1  ;;  %vm2257_vm1 = vcmp.ge.f32.partialorder %v2249_v26, 0.0  ;;  %v2265_v35 = vmul.f32 0.2, %v2249_v26  ;;  %v2251_v36 = vadd.f32 %v2245_v20, %v2231_v27 }
 0x1df   :  { %v2584_v32 = vadd.f32 %v2180_v29, %v1968_v28  ;;  %v2182_v34 = vpop.f32.mrb[5].mxu0  ;;  %v1972_v38 = vpop.f32.mrb[6].mxu1  ;;  %v2272_v40 = vsel %vm2256_vm0, %v2248_v24, %v2264_v30  ;;  %vm2258_vm2 = vcmp.ge.f32.partialorder %v2250_v31, 0.0  ;;  %v2266_v41 = vmul.f32 0.2, %v2250_v31 }
 0x1e0   :  { %v2585_v37 = vadd.f32 %v2182_v34, %v1970_v33  ;;  %v2184_v39 = vpop.f32.mrb[6].mxu0  ;;  %v1974_v43 = vpop.f32.mrb[7].mxu1  ;;  %2280 = vst [vmem:[%s3992_s4] sm:$0xff] %v2272_v40  ;;  %v2273_v48 = vsel %vm2257_vm1, %v2249_v26, %v2265_v35  ;;  %vm2259_vm3 = vcmp.ge.f32.partialorder %v2251_v36, 0.0  ;;  %v2267_v49 = vmul.f32 0.2, %v2251_v36 }
 0x1e1   :  { %v2186_v44 = vpop.f32.mrb[7].mxu0  ;;  %2281 = vst [vmem:[%s3992_s4 + $0x8] sm:$0xff] %v2273_v48  ;;  %v2274_v42 = vsel %vm2258_vm2, %v2250_v31, %v2266_v41  ;;  %v2232_v45 = vmul.f32 %v2584_v32, %v2221_v9  ;;  %v2586_v46 = vadd.f32 %v2184_v39, %v1972_v38 }
 0x1e2   :  { %v2587_v47 = vadd.f32 %v2186_v44, %v1974_v43  ;;  %2282 = vst [vmem:[%s3992_s4 + $0x10] sm:$0xff] %v2274_v42  ;;  %v2275_v50 = vsel %vm2259_vm3, %v2251_v36, %v2267_v49  ;;  %v2233_v51 = vmul.f32 %v2585_v37, %v2225_v13 }
 0x1e3   :  { %2283 = vst [vmem:[%s3992_s4 + $0x18] sm:$0xff] %v2275_v50  ;;  %v2252_v52 = vadd.f32 %v2241_v16, %v2232_v45  ;;  %v2234_v55 = vmul.f32 %v2586_v46, %v2221_v9 }
 0x1e4   :  { %v2253_v53 = vadd.f32 %v2245_v20, %v2233_v51  ;;  %v2235_v57 = vmul.f32 %v2587_v47, %v2225_v13 }
 0x1e5   :  { %vm2260_vm4 = vcmp.ge.f32.partialorder %v2252_v52, 0.0  ;;  %v2268_v54 = vmul.f32 0.2, %v2252_v52  ;;  %v2254_v63 = vadd.f32 %v2241_v16, %v2234_v55 }
 0x1e6   :  { %vm2261_vm5 = vcmp.ge.f32.partialorder %v2253_v53, 0.0  ;;  %v2269_v58 = vmul.f32 0.2, %v2253_v53  ;;  %v2255_v0 = vadd.f32 %v2245_v20, %v2235_v57 }
 0x1e7   :  { %v2276_v62 = vsel %vm2260_vm4, %v2252_v52, %v2268_v54  ;;  %vm2262_vm6 = vcmp.ge.f32.partialorder %v2254_v63, 0.0  ;;  %v2270_v2 = vmul.f32 0.2, %v2254_v63 }
 0x1e8   :  { %2284 = vst [vmem:[%s3992_s4 + $0x20] sm:$0xff] %v2276_v62  ;;  %v2277_v1 = vsel %vm2261_vm5, %v2253_v53, %v2269_v58  ;;  %vm2263_vm7 = vcmp.ge.f32.partialorder %v2255_v0, 0.0  ;;  %v2271_v3 = vmul.f32 0.2, %v2255_v0 }
 0x1e9   :  { %2285 = vst [vmem:[%s3992_s4 + $0x28] sm:$0xff] %v2277_v1  ;;  %v2278_v4 = vsel %vm2262_vm6, %v2254_v63, %v2270_v2 }
 0x1ea   :  { %v2279_v5 = vsel %vm2263_vm7, %v2255_v0, %v2271_v3  ;;  %2286 = vst [vmem:[%s3992_s4 + $0x30] sm:$0xff] %v2278_v4 }
 0x1eb   :  { %2287 = vst [vmem:[%s3992_s4 + $0x38] sm:$0xff] %v2279_v5 }

// kernel: patchgan_forward.8
= control target key start
LH: loop header
LB: loop body
LE: loop exit
PB: predicated region body
PF: predicated region fallthrough
CT: control target
= control target key end

     0   :  { %s10646_s15 = smov 0   ;;  %s10648_s16 = smov 0   ;;  %s12615_s0 = inlined_call_operand.vmem [shape: bf16[32,4096], index: 0, kind: input, shape index: {}]   ;;  %s12616_s1 = inlined_call_operand.vmem [shape: bf16[4096,512], index: 1, kind: input, shape index: {}]   ;;  %s12617_s2 = inlined_call_operand.vmem [shape: f32[1,512], index: 2, kind: input, shape index: {}]   ;;  %s12618_s3 = inlined_call_operand.vmem [shape: f32[1,512], index: 3, kind: input, shape index: {}]   ;;  %s12619_s4 = inlined_call_operand.vmem [shape: f32[32,512], index: 4, kind: output, shape index: {}]  }
   0x1   :  { %s10650_s17 = smov 0   ;;  %s10652_s18 = smov 0  }
   0x2   :  { %s10654_s19 = smov 0  }
   0x3 LB: > { %s29_s20 = sadd.s32 1, %s10615_s18  ;;  %s9056_s21 = sadd.s32 4294967295, %s10619_s19   ;;  %s10619_s19 = sphi %s10654_s19, %s14_s19   ;;  %s10615_s18 = sphi %s10652_s18, %s12624_s18   ;;  %s10611_s17 = sphi %s10650_s17, %s12623_s17   ;;  %s10607_s16 = sphi %s10648_s16, %s12622_s16   ;;  %s10603_s15 = sphi %s10646_s15, %s12621_s15  }
   0x4   : > { %p31_p0 = scmp.ge.s32.totalorder %s29_s20, 2  ;;  %p77_p1 = scmp.ne.s32.totalorder %s10607_s16, %s10603_s15 }
   0x5   : > { %p78_p2 = scmp.eq.s32.totalorder %s10619_s19, 0  ;;  %p161_p4 = scmp.eq.s32.totalorder %s9056_s21, 1 }
   0x6   : > { %s12626_s20 = smov (%p31_p0, %s29_s20), 0  ;;  %s70_s23 = sadd.s32 1, %s10607_s16 }
   0x7   : > { %p79_p3 = por %p78_p2, %p77_p1  ;;  %s66_s22 = ssub.s32 %s10615_s18, %s12626_s20 }
   0x8   : > { %p68_p5 = scmp.eq.s32.totalorder %s66_s22, 0  ;;  %p10681_p6 = por %p161_p4, %p77_p1 }
   0x9   : > { %p9060_p7 = scmp.ge.s32.totalorder %s10619_s19, 2 }
   0xa   : > { %s10686_s25 = scalar_select %p68_p5, %s10607_s16, %s70_s23  }
   0xb   : > { %198 = sbr.rel (%p9060_p7) target bundleno = 278 (0x116), region = 20 }
  0x12   : > { %201 = sbr.rel (!%p79_p3) target bundleno = 278 (0x116), region = 24  ;;  %s203_s26 = sand.u32 (%p79_p3), 1, %s10607_s16  }
  0x13   : > { %s9650_s27 = sshll.u32 (%p79_p3), %s10615_s18, 3  ;;  %s9061_s28 = sshll.u32 (%p79_p3), %s203_s26, 12 }
  0x14   : > { %s10694_s5 = scalar_lea.vmem (%p79_p3), %s12616_s1, %s9650_s27  ;;  %s10699_s6 = scalar_lea.vmem (%p79_p3), [#allocation2], %s9061_s28 }
  0x15   : > { %v1264_v0 = vld [vmem:[%s10694_s5] sm:$0xff] (%p79_p3)  ;;  %v1266_v1 = vld [vmem:[%s10694_s5 + $0x10] sm:$0xff] (%p79_p3) }
  0x16   : > { %v1268_v2 = vld [vmem:[%s10694_s5 + $0x20] sm:$0xff] (%p79_p3)  ;;  %1265 = vst [vmem:[%s10699_s6] sm:$0xff] (%p79_p3), %v1264_v0  ;;  %1267 = vst [vmem:[%s10699_s6 + $0x8] sm:$0xff] (%p79_p3), %v1266_v1  ;;  %v1270_v3 = vld [vmem:[%s10694_s5 + $0x30] sm:$0xff] (%p79_p3) }
  0x17   : > { %1269 = vst [vmem:[%s10699_s6 + $0x10] sm:$0xff] (%p79_p3), %v1268_v2  ;;  %v1272_v4 = vld [vmem:[%s10694_s5 + $0x40] sm:$0xff] (%p79_p3)  ;;  %v1274_v5 = vld [vmem:[%s10694_s5 + $0x50] sm:$0xff] (%p79_p3)  ;;  %1271 = vst [vmem:[%s10699_s6 + $0x18] sm:$0xff] (%p79_p3), %v1270_v3 }
  0x18   : > { %1273 = vst [vmem:[%s10699_s6 + $0x20] sm:$0xff] (%p79_p3), %v1272_v4  ;;  %1275 = vst [vmem:[%s10699_s6 + $0x28] sm:$0xff] (%p79_p3), %v1274_v5  ;;  %v1276_v6 = vld [vmem:[%s10694_s5 + $0x60] sm:$0xff] (%p79_p3)  ;;  %v1278_v7 = vld [vmem:[%s10694_s5 + $0x70] sm:$0xff] (%p79_p3) }
  0x19   : > { %v1280_v8 = vld [vmem:[%s10694_s5 + $0x80] sm:$0xff]  ;;  %1277 = vst [vmem:[%s10699_s6 + $0x30] sm:$0xff] %v1276_v6  ;;  %1279 = vst [vmem:[%s10699_s6 + $0x38] sm:$0xff] %v1278_v7  ;;  %v1282_v9 = vld [vmem:[%s10694_s5 + $0x90] sm:$0xff] }
  0x1a   : > { %1281 = vst [vmem:[%s10699_s6 + $0x40] sm:$0xff] %v1280_v8  ;;  %v1284_v10 = vld [vmem:[%s10694_s5 + $0xa0] sm:$0xff]  ;;  %v1286_v11 = vld [vmem:[%s10694_s5 + $0xb0] sm:$0xff]  ;;  %1283 = vst [vmem:[%s10699_s6 + $0x48] sm:$0xff] %v1282_v9 }
  0x1b   : > { %1285 = vst [vmem:[%s10699_s6 + $0x50] sm:$0xff] %v1284_v10  ;;  %1287 = vst [vmem:[%s10699_s6 + $0x58] sm:$0xff] %v1286_v11  ;;  %v1288_v12 = vld [vmem:[%s10694_s5 + $0xc0] sm:$0xff]  ;;  %v1290_v13 = vld [vmem:[%s10694_s5 + $0xd0] sm:$0xff] }
  0x1c   : > { %v1292_v14 = vld [vmem:[%s10694_s5 + $0xe0] sm:$0xff]  ;;  %1289 = vst [vmem:[%s10699_s6 + $0x60] sm:$0xff] %v1288_v12  ;;  %1291 = vst [vmem:[%s10699_s6 + $0x68] sm:$0xff] %v1290_v13  ;;  %v1294_v15 = vld [vmem:[%s10694_s5 + $0xf0] sm:$0xff] }
  0x1d   : > { %1293 = vst [vmem:[%s10699_s6 + $0x70] sm:$0xff] %v1292_v14  ;;  %v1296_v16 = vld [vmem:[%s10694_s5 + $0x100] sm:$0xff]  ;;  %v1298_v17 = vld [vmem:[%s10694_s5 + $0x110] sm:$0xff]  ;;  %1295 = vst [vmem:[%s10699_s6 + $0x78] sm:$0xff] %v1294_v15 }
  0x1e   : > { %1297 = vst [vmem:[%s10699_s6 + $0x80] sm:$0xff] %v1296_v16  ;;  %1299 = vst [vmem:[%s10699_s6 + $0x88] sm:$0xff] %v1298_v17  ;;  %v1300_v18 = vld [vmem:[%s10694_s5 + $0x120] sm:$0xff]  ;;  %v1302_v19 = vld [vmem:[%s10694_s5 + $0x130] sm:$0xff] }
  0x1f   : > { %v1304_v20 = vld [vmem:[%s10694_s5 + $0x140] sm:$0xff]  ;;  %1301 = vst [vmem:[%s10699_s6 + $0x90] sm:$0xff] %v1300_v18  ;;  %1303 = vst [vmem:[%s10699_s6 + $0x98] sm:$0xff] %v1302_v19  ;;  %v1306_v21 = vld [vmem:[%s10694_s5 + $0x150] sm:$0xff] }
  0x20   : > { %1305 = vst [vmem:[%s10699_s6 + $0xa0] sm:$0xff] %v1304_v20  ;;  %v1308_v22 = vld [vmem:[%s10694_s5 + $0x160] sm:$0xff]  ;;  %v1310_v23 = vld [vmem:[%s10694_s5 + $0x170] sm:$0xff]  ;;  %1307 = vst [vmem:[%s10699_s6 + $0xa8] sm:$0xff] %v1306_v21 }
  0x21   : > { %1309 = vst [vmem:[%s10699_s6 + $0xb0] sm:$0xff] %v1308_v22  ;;  %1311 = vst [vmem:[%s10699_s6 + $0xb8] sm:$0xff] %v1310_v23  ;;  %v1312_v24 = vld [vmem:[%s10694_s5 + $0x180] sm:$0xff]  ;;  %v1314_v25 = vld [vmem:[%s10694_s5 + $0x190] sm:$0xff] }
  0x22   : > { %v1316_v26 = vld [vmem:[%s10694_s5 + $0x1a0] sm:$0xff]  ;;  %1313 = vst [vmem:[%s10699_s6 + $0xc0] sm:$0xff] %v1312_v24  ;;  %1315 = vst [vmem:[%s10699_s6 + $0xc8] sm:$0xff] %v1314_v25  ;;  %v1318_v27 = vld [vmem:[%s10694_s5 + $0x1b0] sm:$0xff] }
  0x23   : > { %1317 = vst [vmem:[%s10699_s6 + $0xd0] sm:$0xff] %v1316_v26  ;;  %v1320_v28 = vld [vmem:[%s10694_s5 + $0x1c0] sm:$0xff]  ;;  %v1322_v29 = vld [vmem:[%s10694_s5 + $0x1d0] sm:$0xff]  ;;  %1319 = vst [vmem:[%s10699_s6 + $0xd8] sm:$0xff] %v1318_v27 }
  0x24   : > { %1321 = vst [vmem:[%s10699_s6 + $0xe0] sm:$0xff] %v1320_v28  ;;  %1323 = vst [vmem:[%s10699_s6 + $0xe8] sm:$0xff] %v1322_v29  ;;  %v1324_v30 = vld [vmem:[%s10694_s5 + $0x1e0] sm:$0xff]  ;;  %v1326_v31 = vld [vmem:[%s10694_s5 + $0x1f0] sm:$0xff] }
  0x25   : > { %v1328_v32 = vld [vmem:[%s10694_s5 + $0x200] sm:$0xff]  ;;  %1325 = vst [vmem:[%s10699_s6 + $0xf0] sm:$0xff] %v1324_v30  ;;  %1327 = vst [vmem:[%s10699_s6 + $0xf8] sm:$0xff] %v1326_v31  ;;  %v1330_v33 = vld [vmem:[%s10694_s5 + $0x210] sm:$0xff] }
  0x26   : > { %1329 = vst [vmem:[%s10699_s6 + $0x100] sm:$0xff] %v1328_v32  ;;  %v1332_v34 = vld [vmem:[%s10694_s5 + $0x220] sm:$0xff]  ;;  %v1334_v35 = vld [vmem:[%s10694_s5 + $0x230] sm:$0xff]  ;;  %1331 = vst [vmem:[%s10699_s6 + $0x108] sm:$0xff] %v1330_v33 }
  0x27   : > { %1333 = vst [vmem:[%s10699_s6 + $0x110] sm:$0xff] %v1332_v34  ;;  %1335 = vst [vmem:[%s10699_s6 + $0x118] sm:$0xff] %v1334_v35  ;;  %v1336_v36 = vld [vmem:[%s10694_s5 + $0x240] sm:$0xff]  ;;  %v1338_v37 = vld [vmem:[%s10694_s5 + $0x250] sm:$0xff] }
  0x28   : > { %v1340_v38 = vld [vmem:[%s10694_s5 + $0x260] sm:$0xff]  ;;  %1337 = vst [vmem:[%s10699_s6 + $0x120] sm:$0xff] %v1336_v36  ;;  %1339 = vst [vmem:[%s10699_s6 + $0x128] sm:$0xff] %v1338_v37  ;;  %v1342_v39 = vld [vmem:[%s10694_s5 + $0x270] sm:$0xff] }
  0x29   : > { %1341 = vst [vmem:[%s10699_s6 + $0x130] sm:$0xff] %v1340_v38  ;;  %v1344_v40 = vld [vmem:[%s10694_s5 + $0x280] sm:$0xff]  ;;  %v1346_v41 = vld [vmem:[%s10694_s5 + $0x290] sm:$0xff]  ;;  %1343 = vst [vmem:[%s10699_s6 + $0x138] sm:$0xff] %v1342_v39 }
  0x2a   : > { %1345 = vst [vmem:[%s10699_s6 + $0x140] sm:$0xff] %v1344_v40  ;;  %1347 = vst [vmem:[%s10699_s6 + $0x148] sm:$0xff] %v1346_v41  ;;  %v1348_v42 = vld [vmem:[%s10694_s5 + $0x2a0] sm:$0xff]  ;;  %v1350_v43 = vld [vmem:[%s10694_s5 + $0x2b0] sm:$0xff] }
  0x2b   : > { %v1352_v44 = vld [vmem:[%s10694_s5 + $0x2c0] sm:$0xff]  ;;  %1349 = vst [vmem:[%s10699_s6 + $0x150] sm:$0xff] %v1348_v42  ;;  %1351 = vst [vmem:[%s10699_s6 + $0x158] sm:$0xff] %v1350_v43  ;;  %v1354_v45 = vld [vmem:[%s10694_s5 + $0x2d0] sm:$0xff] }
  0x2c   : > { %1353 = vst [vmem:[%s10699_s6 + $0x160] sm:$0xff] %v1352_v44  ;;  %v1356_v46 = vld [vmem:[%s10694_s5 + $0x2e0] sm:$0xff]  ;;  %v1358_v47 = vld [vmem:[%s10694_s5 + $0x2f0] sm:$0xff]  ;;  %1355 = vst [vmem:[%s10699_s6 + $0x168] sm:$0xff] %v1354_v45 }
  0x2d   : > { %1357 = vst [vmem:[%s10699_s6 + $0x170] sm:$0xff] %v1356_v46  ;;  %1359 = vst [vmem:[%s10699_s6 + $0x178] sm:$0xff] %v1358_v47  ;;  %v1360_v48 = vld [vmem:[%s10694_s5 + $0x300] sm:$0xff]  ;;  %v1362_v49 = vld [vmem:[%s10694_s5 + $0x310] sm:$0xff] }
  0x2e   : > { %v1364_v50 = vld [vmem:[%s10694_s5 + $0x320] sm:$0xff]  ;;  %1361 = vst [vmem:[%s10699_s6 + $0x180] sm:$0xff] %v1360_v48  ;;  %1363 = vst [vmem:[%s10699_s6 + $0x188] sm:$0xff] %v1362_v49  ;;  %v1366_v51 = vld [vmem:[%s10694_s5 + $0x330] sm:$0xff] }
  0x2f   : > { %1365 = vst [vmem:[%s10699_s6 + $0x190] sm:$0xff] %v1364_v50  ;;  %v1368_v52 = vld [vmem:[%s10694_s5 + $0x340] sm:$0xff]  ;;  %v1370_v53 = vld [vmem:[%s10694_s5 + $0x350] sm:$0xff]  ;;  %1367 = vst [vmem:[%s10699_s6 + $0x198] sm:$0xff] %v1366_v51 }
  0x30   : > { %1369 = vst [vmem:[%s10699_s6 + $0x1a0] sm:$0xff] %v1368_v52  ;;  %1371 = vst [vmem:[%s10699_s6 + $0x1a8] sm:$0xff] %v1370_v53  ;;  %v1372_v54 = vld [vmem:[%s10694_s5 + $0x360] sm:$0xff]  ;;  %v1374_v55 = vld [vmem:[%s10694_s5 + $0x370] sm:$0xff] }
  0x31   : > { %v1376_v56 = vld [vmem:[%s10694_s5 + $0x380] sm:$0xff]  ;;  %1373 = vst [vmem:[%s10699_s6 + $0x1b0] sm:$0xff] %v1372_v54  ;;  %1375 = vst [vmem:[%s10699_s6 + $0x1b8] sm:$0xff] %v1374_v55  ;;  %v1378_v57 = vld [vmem:[%s10694_s5 + $0x390] sm:$0xff] }
  0x32   : > { %1377 = vst [vmem:[%s10699_s6 + $0x1c0] sm:$0xff] %v1376_v56  ;;  %v1380_v58 = vld [vmem:[%s10694_s5 + $0x3a0] sm:$0xff]  ;;  %v1382_v59 = vld [vmem:[%s10694_s5 + $0x3b0] sm:$0xff]  ;;  %1379 = vst [vmem:[%s10699_s6 + $0x1c8] sm:$0xff] %v1378_v57 }
  0x33   : > { %1381 = vst [vmem:[%s10699_s6 + $0x1d0] sm:$0xff] %v1380_v58  ;;  %1383 = vst [vmem:[%s10699_s6 + $0x1d8] sm:$0xff] %v1382_v59  ;;  %v1384_v60 = vld [vmem:[%s10694_s5 + $0x3c0] sm:$0xff]  ;;  %v1386_v61 = vld [vmem:[%s10694_s5 + $0x3d0] sm:$0xff] }
  0x34   : > { %v1388_v62 = vld [vmem:[%s10694_s5 + $0x3e0] sm:$0xff]  ;;  %1385 = vst [vmem:[%s10699_s6 + $0x1e0] sm:$0xff] %v1384_v60  ;;  %1387 = vst [vmem:[%s10699_s6 + $0x1e8] sm:$0xff] %v1386_v61  ;;  %v1390_v63 = vld [vmem:[%s10694_s5 + $0x3f0] sm:$0xff] }
  0x35   : > { %1389 = vst [vmem:[%s10699_s6 + $0x1f0] sm:$0xff] %v1388_v62  ;;  %v1392_v0 = vld [vmem:[%s10694_s5 + $0x400] sm:$0xff]  ;;  %v1394_v1 = vld [vmem:[%s10694_s5 + $0x410] sm:$0xff]  ;;  %1391 = vst [vmem:[%s10699_s6 + $0x1f8] sm:$0xff] %v1390_v63 }
  0x36   : > { %1393 = vst [vmem:[%s10699_s6 + $0x200] sm:$0xff] %v1392_v0  ;;  %1395 = vst [vmem:[%s10699_s6 + $0x208] sm:$0xff] %v1394_v1  ;;  %v1396_v2 = vld [vmem:[%s10694_s5 + $0x420] sm:$0xff]  ;;  %v1398_v3 = vld [vmem:[%s10694_s5 + $0x430] sm:$0xff] }
  0x37   : > { %v1400_v4 = vld [vmem:[%s10694_s5 + $0x440] sm:$0xff]  ;;  %1397 = vst [vmem:[%s10699_s6 + $0x210] sm:$0xff] %v1396_v2  ;;  %1399 = vst [vmem:[%s10699_s6 + $0x218] sm:$0xff] %v1398_v3  ;;  %v1402_v5 = vld [vmem:[%s10694_s5 + $0x450] sm:$0xff] }
  0x38   : > { %1401 = vst [vmem:[%s10699_s6 + $0x220] sm:$0xff] %v1400_v4  ;;  %v1404_v6 = vld [vmem:[%s10694_s5 + $0x460] sm:$0xff]  ;;  %v1406_v7 = vld [vmem:[%s10694_s5 + $0x470] sm:$0xff]  ;;  %1403 = vst [vmem:[%s10699_s6 + $0x228] sm:$0xff] %v1402_v5 }
  0x39   : > { %1405 = vst [vmem:[%s10699_s6 + $0x230] sm:$0xff] %v1404_v6  ;;  %1407 = vst [vmem:[%s10699_s6 + $0x238] sm:$0xff] %v1406_v7  ;;  %v1408_v8 = vld [vmem:[%s10694_s5 + $0x480] sm:$0xff]  ;;  %v1410_v9 = vld [vmem:[%s10694_s5 + $0x490] sm:$0xff] }
  0x3a   : > { %v1412_v10 = vld [vmem:[%s10694_s5 + $0x4a0] sm:$0xff]  ;;  %1409 = vst [vmem:[%s10699_s6 + $0x240] sm:$0xff] %v1408_v8  ;;  %1411 = vst [vmem:[%s10699_s6 + $0x248] sm:$0xff] %v1410_v9  ;;  %v1414_v11 = vld [vmem:[%s10694_s5 + $0x4b0] sm:$0xff] }
  0x3b   : > { %1413 = vst [vmem:[%s10699_s6 + $0x250] sm:$0xff] %v1412_v10  ;;  %v1416_v12 = vld [vmem:[%s10694_s5 + $0x4c0] sm:$0xff]  ;;  %v1418_v13 = vld [vmem:[%s10694_s5 + $0x4d0] sm:$0xff]  ;;  %1415 = vst [vmem:[%s10699_s6 + $0x258] sm:$0xff] %v1414_v11 }
  0x3c   : > { %1417 = vst [vmem:[%s10699_s6 + $0x260] sm:$0xff] %v1416_v12  ;;  %1419 = vst [vmem:[%s10699_s6 + $0x268] sm:$0xff] %v1418_v13  ;;  %v1420_v14 = vld [vmem:[%s10694_s5 + $0x4e0] sm:$0xff]  ;;  %v1422_v15 = vld [vmem:[%s10694_s5 + $0x4f0] sm:$0xff] }
  0x3d   : > { %v1424_v16 = vld [vmem:[%s10694_s5 + $0x500] sm:$0xff]  ;;  %1421 = vst [vmem:[%s10699_s6 + $0x270] sm:$0xff] %v1420_v14  ;;  %1423 = vst [vmem:[%s10699_s6 + $0x278] sm:$0xff] %v1422_v15  ;;  %v1426_v17 = vld [vmem:[%s10694_s5 + $0x510] sm:$0xff] }
  0x3e   : > { %1425 = vst [vmem:[%s10699_s6 + $0x280] sm:$0xff] %v1424_v16  ;;  %v1428_v18 = vld [vmem:[%s10694_s5 + $0x520] sm:$0xff]  ;;  %v1430_v19 = vld [vmem:[%s10694_s5 + $0x530] sm:$0xff]  ;;  %1427 = vst [vmem:[%s10699_s6 + $0x288] sm:$0xff] %v1426_v17 }
  0x3f   : > { %1429 = vst [vmem:[%s10699_s6 + $0x290] sm:$0xff] %v1428_v18  ;;  %1431 = vst [vmem:[%s10699_s6 + $0x298] sm:$0xff] %v1430_v19  ;;  %v1432_v20 = vld [vmem:[%s10694_s5 + $0x540] sm:$0xff]  ;;  %v1434_v21 = vld [vmem:[%s10694_s5 + $0x550] sm:$0xff] }
  0x40   : > { %v1436_v22 = vld [vmem:[%s10694_s5 + $0x560] sm:$0xff]  ;;  %1433 = vst [vmem:[%s10699_s6 + $0x2a0] sm:$0xff] %v1432_v20  ;;  %1435 = vst [vmem:[%s10699_s6 + $0x2a8] sm:$0xff] %v1434_v21  ;;  %v1438_v23 = vld [vmem:[%s10694_s5 + $0x570] sm:$0xff] }
  0x41   : > { %1437 = vst [vmem:[%s10699_s6 + $0x2b0] sm:$0xff] %v1436_v22  ;;  %v1440_v24 = vld [vmem:[%s10694_s5 + $0x580] sm:$0xff]  ;;  %v1442_v25 = vld [vmem:[%s10694_s5 + $0x590] sm:$0xff]  ;;  %1439 = vst [vmem:[%s10699_s6 + $0x2b8] sm:$0xff] %v1438_v23 }
  0x42   : > { %1441 = vst [vmem:[%s10699_s6 + $0x2c0] sm:$0xff] %v1440_v24  ;;  %1443 = vst [vmem:[%s10699_s6 + $0x2c8] sm:$0xff] %v1442_v25  ;;  %v1444_v26 = vld [vmem:[%s10694_s5 + $0x5a0] sm:$0xff]  ;;  %v1446_v27 = vld [vmem:[%s10694_s5 + $0x5b0] sm:$0xff] }
  0x43   : > { %v1448_v28 = vld [vmem:[%s10694_s5 + $0x5c0] sm:$0xff]  ;;  %1445 = vst [vmem:[%s10699_s6 + $0x2d0] sm:$0xff] %v1444_v26  ;;  %1447 = vst [vmem:[%s10699_s6 + $0x2d8] sm:$0xff] %v1446_v27  ;;  %v1450_v29 = vld [vmem:[%s10694_s5 + $0x5d0] sm:$0xff] }
  0x44   : > { %1449 = vst [vmem:[%s10699_s6 + $0x2e0] sm:$0xff] %v1448_v28  ;;  %v1452_v30 = vld [vmem:[%s10694_s5 + $0x5e0] sm:$0xff]  ;;  %v1454_v31 = vld [vmem:[%s10694_s5 + $0x5f0] sm:$0xff]  ;;  %1451 = vst [vmem:[%s10699_s6 + $0x2e8] sm:$0xff] %v1450_v29 }
  0x45   : > { %1453 = vst [vmem:[%s10699_s6 + $0x2f0] sm:$0xff] %v1452_v30  ;;  %1455 = vst [vmem:[%s10699_s6 + $0x2f8] sm:$0xff] %v1454_v31  ;;  %v1456_v32 = vld [vmem:[%s10694_s5 + $0x600] sm:$0xff]  ;;  %v1458_v33 = vld [vmem:[%s10694_s5 + $0x610] sm:$0xff] }
  0x46   : > { %v1460_v34 = vld [vmem:[%s10694_s5 + $0x620] sm:$0xff]  ;;  %1457 = vst [vmem:[%s10699_s6 + $0x300] sm:$0xff] %v1456_v32  ;;  %1459 = vst [vmem:[%s10699_s6 + $0x308] sm:$0xff] %v1458_v33  ;;  %v1462_v35 = vld [vmem:[%s10694_s5 + $0x630] sm:$0xff] }
  0x47   : > { %1461 = vst [vmem:[%s10699_s6 + $0x310] sm:$0xff] %v1460_v34  ;;  %v1464_v36 = vld [vmem:[%s10694_s5 + $0x640] sm:$0xff]  ;;  %v1466_v37 = vld [vmem:[%s10694_s5 + $0x650] sm:$0xff]  ;;  %1463 = vst [vmem:[%s10699_s6 + $0x318] sm:$0xff] %v1462_v35 }
  0x48   : > { %1465 = vst [vmem:[%s10699_s6 + $0x320] sm:$0xff] %v1464_v36  ;;  %1467 = vst [vmem:[%s10699_s6 + $0x328] sm:$0xff] %v1466_v37  ;;  %v1468_v38 = vld [vmem:[%s10694_s5 + $0x660] sm:$0xff]  ;;  %v1470_v39 = vld [vmem:[%s10694_s5 + $0x670] sm:$0xff] }
  0x49   : > { %v1472_v40 = vld [vmem:[%s10694_s5 + $0x680] sm:$0xff]  ;;  %1469 = vst [vmem:[%s10699_s6 + $0x330] sm:$0xff] %v1468_v38  ;;  %1471 = vst [vmem:[%s10699_s6 + $0x338] sm:$0xff] %v1470_v39  ;;  %v1474_v41 = vld [vmem:[%s10694_s5 + $0x690] sm:$0xff] }
  0x4a   : > { %1473 = vst [vmem:[%s10699_s6 + $0x340] sm:$0xff] %v1472_v40  ;;  %v1476_v42 = vld [vmem:[%s10694_s5 + $0x6a0] sm:$0xff]  ;;  %v1478_v43 = vld [vmem:[%s10694_s5 + $0x6b0] sm:$0xff]  ;;  %1475 = vst [vmem:[%s10699_s6 + $0x348] sm:$0xff] %v1474_v41 }
  0x4b   : > { %1477 = vst [vmem:[%s10699_s6 + $0x350] sm:$0xff] %v1476_v42  ;;  %1479 = vst [vmem:[%s10699_s6 + $0x358] sm:$0xff] %v1478_v43  ;;  %v1480_v44 = vld [vmem:[%s10694_s5 + $0x6c0] sm:$0xff]  ;;  %v1482_v45 = vld [vmem:[%s10694_s5 + $0x6d0] sm:$0xff] }
  0x4c   : > { %v1484_v46 = vld [vmem:[%s10694_s5 + $0x6e0] sm:$0xff]  ;;  %1481 = vst [vmem:[%s10699_s6 + $0x360] sm:$0xff] %v1480_v44  ;;  %1483 = vst [vmem:[%s10699_s6 + $0x368] sm:$0xff] %v1482_v45  ;;  %v1486_v47 = vld [vmem:[%s10694_s5 + $0x6f0] sm:$0xff] }
  0x4d   : > { %1485 = vst [vmem:[%s10699_s6 + $0x370] sm:$0xff] %v1484_v46  ;;  %v1488_v48 = vld [vmem:[%s10694_s5 + $0x700] sm:$0xff]  ;;  %v1490_v49 = vld [vmem:[%s10694_s5 + $0x710] sm:$0xff]  ;;  %1487 = vst [vmem:[%s10699_s6 + $0x378] sm:$0xff] %v1486_v47 }
  0x4e   : > { %1489 = vst [vmem:[%s10699_s6 + $0x380] sm:$0xff] %v1488_v48  ;;  %1491 = vst [vmem:[%s10699_s6 + $0x388] sm:$0xff] %v1490_v49  ;;  %v1492_v50 = vld [vmem:[%s10694_s5 + $0x720] sm:$0xff]  ;;  %v1494_v51 = vld [vmem:[%s10694_s5 + $0x730] sm:$0xff] }
  0x4f   : > { %v1496_v52 = vld [vmem:[%s10694_s5 + $0x740] sm:$0xff]  ;;  %1493 = vst [vmem:[%s10699_s6 + $0x390] sm:$0xff] %v1492_v50  ;;  %1495 = vst [vmem:[%s10699_s6 + $0x398] sm:$0xff] %v1494_v51  ;;  %v1498_v53 = vld [vmem:[%s10694_s5 + $0x750] sm:$0xff] }
  0x50   : > { %1497 = vst [vmem:[%s10699_s6 + $0x3a0] sm:$0xff] %v1496_v52  ;;  %v1500_v54 = vld [vmem:[%s10694_s5 + $0x760] sm:$0xff]  ;;  %v1502_v55 = vld [vmem:[%s10694_s5 + $0x770] sm:$0xff]  ;;  %1499 = vst [vmem:[%s10699_s6 + $0x3a8] sm:$0xff] %v1498_v53 }
  0x51   : > { %1501 = vst [vmem:[%s10699_s6 + $0x3b0] sm:$0xff] %v1500_v54  ;;  %1503 = vst [vmem:[%s10699_s6 + $0x3b8] sm:$0xff] %v1502_v55  ;;  %v1504_v56 = vld [vmem:[%s10694_s5 + $0x780] sm:$0xff]  ;;  %v1506_v57 = vld [vmem:[%s10694_s5 + $0x790] sm:$0xff] }
  0x52   : > { %v1508_v58 = vld [vmem:[%s10694_s5 + $0x7a0] sm:$0xff]  ;;  %1505 = vst [vmem:[%s10699_s6 + $0x3c0] sm:$0xff] %v1504_v56  ;;  %1507 = vst [vmem:[%s10699_s6 + $0x3c8] sm:$0xff] %v1506_v57  ;;  %v1510_v59 = vld [vmem:[%s10694_s5 + $0x7b0] sm:$0xff] }
  0x53   : > { %1509 = vst [vmem:[%s10699_s6 + $0x3d0] sm:$0xff] %v1508_v58  ;;  %v1512_v60 = vld [vmem:[%s10694_s5 + $0x7c0] sm:$0xff]  ;;  %v1514_v61 = vld [vmem:[%s10694_s5 + $0x7d0] sm:$0xff]  ;;  %1511 = vst [vmem:[%s10699_s6 + $0x3d8] sm:$0xff] %v1510_v59 }
  0x54   : > { %1513 = vst [vmem:[%s10699_s6 + $0x3e0] sm:$0xff] %v1512_v60  ;;  %1515 = vst [vmem:[%s10699_s6 + $0x3e8] sm:$0xff] %v1514_v61  ;;  %v1516_v62 = vld [vmem:[%s10694_s5 + $0x7e0] sm:$0xff]  ;;  %v1518_v63 = vld [vmem:[%s10694_s5 + $0x7f0] sm:$0xff] }
  0x55   : > { %v1520_v0 = vld [vmem:[%s10694_s5 + $0x800] sm:$0xff]  ;;  %1517 = vst [vmem:[%s10699_s6 + $0x3f0] sm:$0xff] %v1516_v62  ;;  %1519 = vst [vmem:[%s10699_s6 + $0x3f8] sm:$0xff] %v1518_v63  ;;  %v1522_v1 = vld [vmem:[%s10694_s5 + $0x810] sm:$0xff] }
  0x56   : > { %1521 = vst [vmem:[%s10699_s6 + $0x400] sm:$0xff] %v1520_v0  ;;  %v1524_v2 = vld [vmem:[%s10694_s5 + $0x820] sm:$0xff]  ;;  %v1526_v3 = vld [vmem:[%s10694_s5 + $0x830] sm:$0xff]  ;;  %1523 = vst [vmem:[%s10699_s6 + $0x408] sm:$0xff] %v1522_v1 }
  0x57   : > { %1525 = vst [vmem:[%s10699_s6 + $0x410] sm:$0xff] %v1524_v2  ;;  %1527 = vst [vmem:[%s10699_s6 + $0x418] sm:$0xff] %v1526_v3  ;;  %v1528_v4 = vld [vmem:[%s10694_s5 + $0x840] sm:$0xff]  ;;  %v1530_v5 = vld [vmem:[%s10694_s5 + $0x850] sm:$0xff] }
  0x58   : > { %v1532_v6 = vld [vmem:[%s10694_s5 + $0x860] sm:$0xff]  ;;  %1529 = vst [vmem:[%s10699_s6 + $0x420] sm:$0xff] %v1528_v4  ;;  %1531 = vst [vmem:[%s10699_s6 + $0x428] sm:$0xff] %v1530_v5  ;;  %v1534_v7 = vld [vmem:[%s10694_s5 + $0x870] sm:$0xff] }
  0x59   : > { %1533 = vst [vmem:[%s10699_s6 + $0x430] sm:$0xff] %v1532_v6  ;;  %v1536_v8 = vld [vmem:[%s10694_s5 + $0x880] sm:$0xff]  ;;  %v1538_v9 = vld [vmem:[%s10694_s5 + $0x890] sm:$0xff]  ;;  %1535 = vst [vmem:[%s10699_s6 + $0x438] sm:$0xff] %v1534_v7 }
  0x5a   : > { %1537 = vst [vmem:[%s10699_s6 + $0x440] sm:$0xff] %v1536_v8  ;;  %1539 = vst [vmem:[%s10699_s6 + $0x448] sm:$0xff] %v1538_v9  ;;  %v1540_v10 = vld [vmem:[%s10694_s5 + $0x8a0] sm:$0xff]  ;;  %v1542_v11 = vld [vmem:[%s10694_s5 + $0x8b0] sm:$0xff] }
  0x5b   : > { %v1544_v12 = vld [vmem:[%s10694_s5 + $0x8c0] sm:$0xff]  ;;  %1541 = vst [vmem:[%s10699_s6 + $0x450] sm:$0xff] %v1540_v10  ;;  %1543 = vst [vmem:[%s10699_s6 + $0x458] sm:$0xff] %v1542_v11  ;;  %v1546_v13 = vld [vmem:[%s10694_s5 + $0x8d0] sm:$0xff] }
  0x5c   : > { %1545 = vst [vmem:[%s10699_s6 + $0x460] sm:$0xff] %v1544_v12  ;;  %v1548_v14 = vld [vmem:[%s10694_s5 + $0x8e0] sm:$0xff]  ;;  %v1550_v15 = vld [vmem:[%s10694_s5 + $0x8f0] sm:$0xff]  ;;  %1547 = vst [vmem:[%s10699_s6 + $0x468] sm:$0xff] %v1546_v13 }
  0x5d   : > { %1549 = vst [vmem:[%s10699_s6 + $0x470] sm:$0xff] %v1548_v14  ;;  %1551 = vst [vmem:[%s10699_s6 + $0x478] sm:$0xff] %v1550_v15  ;;  %v1552_v16 = vld [vmem:[%s10694_s5 + $0x900] sm:$0xff]  ;;  %v1554_v17 = vld [vmem:[%s10694_s5 + $0x910] sm:$0xff] }
  0x5e   : > { %v1556_v18 = vld [vmem:[%s10694_s5 + $0x920] sm:$0xff]  ;;  %1553 = vst [vmem:[%s10699_s6 + $0x480] sm:$0xff] %v1552_v16  ;;  %1555 = vst [vmem:[%s10699_s6 + $0x488] sm:$0xff] %v1554_v17  ;;  %v1558_v19 = vld [vmem:[%s10694_s5 + $0x930] sm:$0xff] }
  0x5f   : > { %1557 = vst [vmem:[%s10699_s6 + $0x490] sm:$0xff] %v1556_v18  ;;  %v1560_v20 = vld [vmem:[%s10694_s5 + $0x940] sm:$0xff]  ;;  %v1562_v21 = vld [vmem:[%s10694_s5 + $0x950] sm:$0xff]  ;;  %1559 = vst [vmem:[%s10699_s6 + $0x498] sm:$0xff] %v1558_v19 }
  0x60   : > { %1561 = vst [vmem:[%s10699_s6 + $0x4a0] sm:$0xff] %v1560_v20  ;;  %1563 = vst [vmem:[%s10699_s6 + $0x4a8] sm:$0xff] %v1562_v21  ;;  %v1564_v22 = vld [vmem:[%s10694_s5 + $0x960] sm:$0xff]  ;;  %v1566_v23 = vld [vmem:[%s10694_s5 + $0x970] sm:$0xff] }
  0x61   : > { %v1568_v24 = vld [vmem:[%s10694_s5 + $0x980] sm:$0xff]  ;;  %1565 = vst [vmem:[%s10699_s6 + $0x4b0] sm:$0xff] %v1564_v22  ;;  %1567 = vst [vmem:[%s10699_s6 + $0x4b8] sm:$0xff] %v1566_v23  ;;  %v1570_v25 = vld [vmem:[%s10694_s5 + $0x990] sm:$0xff] }
  0x62   : > { %1569 = vst [vmem:[%s10699_s6 + $0x4c0] sm:$0xff] %v1568_v24  ;;  %v1572_v26 = vld [vmem:[%s10694_s5 + $0x9a0] sm:$0xff]  ;;  %v1574_v27 = vld [vmem:[%s10694_s5 + $0x9b0] sm:$0xff]  ;;  %1571 = vst [vmem:[%s10699_s6 + $0x4c8] sm:$0xff] %v1570_v25 }
  0x63   : > { %1573 = vst [vmem:[%s10699_s6 + $0x4d0] sm:$0xff] %v1572_v26  ;;  %1575 = vst [vmem:[%s10699_s6 + $0x4d8] sm:$0xff] %v1574_v27  ;;  %v1576_v28 = vld [vmem:[%s10694_s5 + $0x9c0] sm:$0xff]  ;;  %v1578_v29 = vld [vmem:[%s10694_s5 + $0x9d0] sm:$0xff] }
  0x64   : > { %v1580_v30 = vld [vmem:[%s10694_s5 + $0x9e0] sm:$0xff]  ;;  %1577 = vst [vmem:[%s10699_s6 + $0x4e0] sm:$0xff] %v1576_v28  ;;  %1579 = vst [vmem:[%s10699_s6 + $0x4e8] sm:$0xff] %v1578_v29  ;;  %v1582_v31 = vld [vmem:[%s10694_s5 + $0x9f0] sm:$0xff] }
  0x65   : > { %1581 = vst [vmem:[%s10699_s6 + $0x4f0] sm:$0xff] %v1580_v30  ;;  %v1584_v32 = vld [vmem:[%s10694_s5 + $0xa00] sm:$0xff]  ;;  %v1586_v33 = vld [vmem:[%s10694_s5 + $0xa10] sm:$0xff]  ;;  %1583 = vst [vmem:[%s10699_s6 + $0x4f8] sm:$0xff] %v1582_v31 }
  0x66   : > { %1585 = vst [vmem:[%s10699_s6 + $0x500] sm:$0xff] %v1584_v32  ;;  %1587 = vst [vmem:[%s10699_s6 + $0x508] sm:$0xff] %v1586_v33  ;;  %v1588_v34 = vld [vmem:[%s10694_s5 + $0xa20] sm:$0xff]  ;;  %v1590_v35 = vld [vmem:[%s10694_s5 + $0xa30] sm:$0xff] }
  0x67   : > { %v1592_v36 = vld [vmem:[%s10694_s5 + $0xa40] sm:$0xff]  ;;  %1589 = vst [vmem:[%s10699_s6 + $0x510] sm:$0xff] %v1588_v34  ;;  %1591 = vst [vmem:[%s10699_s6 + $0x518] sm:$0xff] %v1590_v35  ;;  %v1594_v37 = vld [vmem:[%s10694_s5 + $0xa50] sm:$0xff] }
  0x68   : > { %1593 = vst [vmem:[%s10699_s6 + $0x520] sm:$0xff] %v1592_v36  ;;  %v1596_v38 = vld [vmem:[%s10694_s5 + $0xa60] sm:$0xff]  ;;  %v1598_v39 = vld [vmem:[%s10694_s5 + $0xa70] sm:$0xff]  ;;  %1595 = vst [vmem:[%s10699_s6 + $0x528] sm:$0xff] %v1594_v37 }
  0x69   : > { %1597 = vst [vmem:[%s10699_s6 + $0x530] sm:$0xff] %v1596_v38  ;;  %1599 = vst [vmem:[%s10699_s6 + $0x538] sm:$0xff] %v1598_v39  ;;  %v1600_v40 = vld [vmem:[%s10694_s5 + $0xa80] sm:$0xff]  ;;  %v1602_v41 = vld [vmem:[%s10694_s5 + $0xa90] sm:$0xff] }
  0x6a   : > { %v1604_v42 = vld [vmem:[%s10694_s5 + $0xaa0] sm:$0xff]  ;;  %1601 = vst [vmem:[%s10699_s6 + $0x540] sm:$0xff] %v1600_v40  ;;  %1603 = vst [vmem:[%s10699_s6 + $0x548] sm:$0xff] %v1602_v41  ;;  %v1606_v43 = vld [vmem:[%s10694_s5 + $0xab0] sm:$0xff] }
  0x6b   : > { %1605 = vst [vmem:[%s10699_s6 + $0x550] sm:$0xff] %v1604_v42  ;;  %v1608_v44 = vld [vmem:[%s10694_s5 + $0xac0] sm:$0xff]  ;;  %v1610_v45 = vld [vmem:[%s10694_s5 + $0xad0] sm:$0xff]  ;;  %1607 = vst [vmem:[%s10699_s6 + $0x558] sm:$0xff] %v1606_v43 }
  0x6c   : > { %1609 = vst [vmem:[%s10699_s6 + $0x560] sm:$0xff] %v1608_v44  ;;  %1611 = vst [vmem:[%s10699_s6 + $0x568] sm:$0xff] %v1610_v45  ;;  %v1612_v46 = vld [vmem:[%s10694_s5 + $0xae0] sm:$0xff]  ;;  %v1614_v47 = vld [vmem:[%s10694_s5 + $0xaf0] sm:$0xff] }
  0x6d   : > { %v1616_v48 = vld [vmem:[%s10694_s5 + $0xb00] sm:$0xff]  ;;  %1613 = vst [vmem:[%s10699_s6 + $0x570] sm:$0xff] %v1612_v46  ;;  %1615 = vst [vmem:[%s10699_s6 + $0x578] sm:$0xff] %v1614_v47  ;;  %v1618_v49 = vld [vmem:[%s10694_s5 + $0xb10] sm:$0xff] }
  0x6e   : > { %1617 = vst [vmem:[%s10699_s6 + $0x580] sm:$0xff] %v1616_v48  ;;  %v1620_v50 = vld [vmem:[%s10694_s5 + $0xb20] sm:$0xff]  ;;  %v1622_v51 = vld [vmem:[%s10694_s5 + $0xb30] sm:$0xff]  ;;  %1619 = vst [vmem:[%s10699_s6 + $0x588] sm:$0xff] %v1618_v49 }
  0x6f   : > { %1621 = vst [vmem:[%s10699_s6 + $0x590] sm:$0xff] %v1620_v50  ;;  %1623 = vst [vmem:[%s10699_s6 + $0x598] sm:$0xff] %v1622_v51  ;;  %v1624_v52 = vld [vmem:[%s10694_s5 + $0xb40] sm:$0xff]  ;;  %v1626_v53 = vld [vmem:[%s10694_s5 + $0xb50] sm:$0xff] }
  0x70   : > { %v1628_v54 = vld [vmem:[%s10694_s5 + $0xb60] sm:$0xff]  ;;  %1625 = vst [vmem:[%s10699_s6 + $0x5a0] sm:$0xff] %v1624_v52  ;;  %1627 = vst [vmem:[%s10699_s6 + $0x5a8] sm:$0xff] %v1626_v53  ;;  %v1630_v55 = vld [vmem:[%s10694_s5 + $0xb70] sm:$0xff] }
  0x71   : > { %1629 = vst [vmem:[%s10699_s6 + $0x5b0] sm:$0xff] %v1628_v54  ;;  %v1632_v56 = vld [vmem:[%s10694_s5 + $0xb80] sm:$0xff]  ;;  %v1634_v57 = vld [vmem:[%s10694_s5 + $0xb90] sm:$0xff]  ;;  %1631 = vst [vmem:[%s10699_s6 + $0x5b8] sm:$0xff] %v1630_v55 }
  0x72   : > { %1633 = vst [vmem:[%s10699_s6 + $0x5c0] sm:$0xff] %v1632_v56  ;;  %1635 = vst [vmem:[%s10699_s6 + $0x5c8] sm:$0xff] %v1634_v57  ;;  %v1636_v58 = vld [vmem:[%s10694_s5 + $0xba0] sm:$0xff]  ;;  %v1638_v59 = vld [vmem:[%s10694_s5 + $0xbb0] sm:$0xff] }
  0x73   : > { %v1640_v60 = vld [vmem:[%s10694_s5 + $0xbc0] sm:$0xff]  ;;  %1637 = vst [vmem:[%s10699_s6 + $0x5d0] sm:$0xff] %v1636_v58  ;;  %1639 = vst [vmem:[%s10699_s6 + $0x5d8] sm:$0xff] %v1638_v59  ;;  %v1642_v61 = vld [vmem:[%s10694_s5 + $0xbd0] sm:$0xff] }
  0x74   : > { %1641 = vst [vmem:[%s10699_s6 + $0x5e0] sm:$0xff] %v1640_v60  ;;  %v1644_v62 = vld [vmem:[%s10694_s5 + $0xbe0] sm:$0xff]  ;;  %v1646_v63 = vld [vmem:[%s10694_s5 + $0xbf0] sm:$0xff]  ;;  %1643 = vst [vmem:[%s10699_s6 + $0x5e8] sm:$0xff] %v1642_v61 }
  0x75   : > { %1645 = vst [vmem:[%s10699_s6 + $0x5f0] sm:$0xff] %v1644_v62  ;;  %1647 = vst [vmem:[%s10699_s6 + $0x5f8] sm:$0xff] %v1646_v63  ;;  %v1648_v0 = vld [vmem:[%s10694_s5 + $0xc00] sm:$0xff]  ;;  %v1650_v1 = vld [vmem:[%s10694_s5 + $0xc10] sm:$0xff] }
  0x76   : > { %v1652_v2 = vld [vmem:[%s10694_s5 + $0xc20] sm:$0xff]  ;;  %1649 = vst [vmem:[%s10699_s6 + $0x600] sm:$0xff] %v1648_v0  ;;  %1651 = vst [vmem:[%s10699_s6 + $0x608] sm:$0xff] %v1650_v1  ;;  %v1654_v3 = vld [vmem:[%s10694_s5 + $0xc30] sm:$0xff] }
  0x77   : > { %1653 = vst [vmem:[%s10699_s6 + $0x610] sm:$0xff] %v1652_v2  ;;  %v1656_v4 = vld [vmem:[%s10694_s5 + $0xc40] sm:$0xff]  ;;  %v1658_v5 = vld [vmem:[%s10694_s5 + $0xc50] sm:$0xff]  ;;  %1655 = vst [vmem:[%s10699_s6 + $0x618] sm:$0xff] %v1654_v3 }
  0x78   : > { %1657 = vst [vmem:[%s10699_s6 + $0x620] sm:$0xff] %v1656_v4  ;;  %1659 = vst [vmem:[%s10699_s6 + $0x628] sm:$0xff] %v1658_v5  ;;  %v1660_v6 = vld [vmem:[%s10694_s5 + $0xc60] sm:$0xff]  ;;  %v1662_v7 = vld [vmem:[%s10694_s5 + $0xc70] sm:$0xff] }
  0x79   : > { %v1664_v8 = vld [vmem:[%s10694_s5 + $0xc80] sm:$0xff]  ;;  %1661 = vst [vmem:[%s10699_s6 + $0x630] sm:$0xff] %v1660_v6  ;;  %1663 = vst [vmem:[%s10699_s6 + $0x638] sm:$0xff] %v1662_v7  ;;  %v1666_v9 = vld [vmem:[%s10694_s5 + $0xc90] sm:$0xff] }
  0x7a   : > { %1665 = vst [vmem:[%s10699_s6 + $0x640] sm:$0xff] %v1664_v8  ;;  %v1668_v10 = vld [vmem:[%s10694_s5 + $0xca0] sm:$0xff]  ;;  %v1670_v11 = vld [vmem:[%s10694_s5 + $0xcb0] sm:$0xff]  ;;  %1667 = vst [vmem:[%s10699_s6 + $0x648] sm:$0xff] %v1666_v9 }
  0x7b   : > { %1669 = vst [vmem:[%s10699_s6 + $0x650] sm:$0xff] %v1668_v10  ;;  %1671 = vst [vmem:[%s10699_s6 + $0x658] sm:$0xff] %v1670_v11  ;;  %v1672_v12 = vld [vmem:[%s10694_s5 + $0xcc0] sm:$0xff]  ;;  %v1674_v13 = vld [vmem:[%s10694_s5 + $0xcd0] sm:$0xff] }
  0x7c   : > { %v1676_v14 = vld [vmem:[%s10694_s5 + $0xce0] sm:$0xff]  ;;  %1673 = vst [vmem:[%s10699_s6 + $0x660] sm:$0xff] %v1672_v12  ;;  %1675 = vst [vmem:[%s10699_s6 + $0x668] sm:$0xff] %v1674_v13  ;;  %v1678_v15 = vld [vmem:[%s10694_s5 + $0xcf0] sm:$0xff] }
  0x7d   : > { %1677 = vst [vmem:[%s10699_s6 + $0x670] sm:$0xff] %v1676_v14  ;;  %v1680_v16 = vld [vmem:[%s10694_s5 + $0xd00] sm:$0xff]  ;;  %v1682_v17 = vld [vmem:[%s10694_s5 + $0xd10] sm:$0xff]  ;;  %1679 = vst [vmem:[%s10699_s6 + $0x678] sm:$0xff] %v1678_v15 }
  0x7e   : > { %1681 = vst [vmem:[%s10699_s6 + $0x680] sm:$0xff] %v1680_v16  ;;  %1683 = vst [vmem:[%s10699_s6 + $0x688] sm:$0xff] %v1682_v17  ;;  %v1684_v18 = vld [vmem:[%s10694_s5 + $0xd20] sm:$0xff]  ;;  %v1686_v19 = vld [vmem:[%s10694_s5 + $0xd30] sm:$0xff] }
  0x7f   : > { %v1688_v20 = vld [vmem:[%s10694_s5 + $0xd40] sm:$0xff]  ;;  %1685 = vst [vmem:[%s10699_s6 + $0x690] sm:$0xff] %v1684_v18  ;;  %1687 = vst [vmem:[%s10699_s6 + $0x698] sm:$0xff] %v1686_v19  ;;  %v1690_v21 = vld [vmem:[%s10694_s5 + $0xd50] sm:$0xff] }
  0x80   : > { %1689 = vst [vmem:[%s10699_s6 + $0x6a0] sm:$0xff] %v1688_v20  ;;  %v1692_v22 = vld [vmem:[%s10694_s5 + $0xd60] sm:$0xff]  ;;  %v1694_v23 = vld [vmem:[%s10694_s5 + $0xd70] sm:$0xff]  ;;  %1691 = vst [vmem:[%s10699_s6 + $0x6a8] sm:$0xff] %v1690_v21 }
  0x81   : > { %1693 = vst [vmem:[%s10699_s6 + $0x6b0] sm:$0xff] %v1692_v22  ;;  %1695 = vst [vmem:[%s10699_s6 + $0x6b8] sm:$0xff] %v1694_v23  ;;  %v1696_v24 = vld [vmem:[%s10694_s5 + $0xd80] sm:$0xff]  ;;  %v1698_v25 = vld [vmem:[%s10694_s5 + $0xd90] sm:$0xff] }
  0x82   : > { %v1700_v26 = vld [vmem:[%s10694_s5 + $0xda0] sm:$0xff]  ;;  %1697 = vst [vmem:[%s10699_s6 + $0x6c0] sm:$0xff] %v1696_v24  ;;  %1699 = vst [vmem:[%s10699_s6 + $0x6c8] sm:$0xff] %v1698_v25  ;;  %v1702_v27 = vld [vmem:[%s10694_s5 + $0xdb0] sm:$0xff] }
  0x83   : > { %1701 = vst [vmem:[%s10699_s6 + $0x6d0] sm:$0xff] %v1700_v26  ;;  %v1704_v28 = vld [vmem:[%s10694_s5 + $0xdc0] sm:$0xff]  ;;  %v1706_v29 = vld [vmem:[%s10694_s5 + $0xdd0] sm:$0xff]  ;;  %1703 = vst [vmem:[%s10699_s6 + $0x6d8] sm:$0xff] %v1702_v27 }
  0x84   : > { %1705 = vst [vmem:[%s10699_s6 + $0x6e0] sm:$0xff] %v1704_v28  ;;  %1707 = vst [vmem:[%s10699_s6 + $0x6e8] sm:$0xff] %v1706_v29  ;;  %v1708_v30 = vld [vmem:[%s10694_s5 + $0xde0] sm:$0xff]  ;;  %v1710_v31 = vld [vmem:[%s10694_s5 + $0xdf0] sm:$0xff] }
  0x85   : > { %v1712_v32 = vld [vmem:[%s10694_s5 + $0xe00] sm:$0xff]  ;;  %1709 = vst [vmem:[%s10699_s6 + $0x6f0] sm:$0xff] %v1708_v30  ;;  %1711 = vst [vmem:[%s10699_s6 + $0x6f8] sm:$0xff] %v1710_v31  ;;  %v1714_v33 = vld [vmem:[%s10694_s5 + $0xe10] sm:$0xff] }
  0x86   : > { %1713 = vst [vmem:[%s10699_s6 + $0x700] sm:$0xff] %v1712_v32  ;;  %v1716_v34 = vld [vmem:[%s10694_s5 + $0xe20] sm:$0xff]  ;;  %v1718_v35 = vld [vmem:[%s10694_s5 + $0xe30] sm:$0xff]  ;;  %1715 = vst [vmem:[%s10699_s6 + $0x708] sm:$0xff] %v1714_v33 }
  0x87   : > { %1717 = vst [vmem:[%s10699_s6 + $0x710] sm:$0xff] %v1716_v34  ;;  %1719 = vst [vmem:[%s10699_s6 + $0x718] sm:$0xff] %v1718_v35  ;;  %v1720_v36 = vld [vmem:[%s10694_s5 + $0xe40] sm:$0xff]  ;;  %v1722_v37 = vld [vmem:[%s10694_s5 + $0xe50] sm:$0xff] }
  0x88   : > { %v1724_v38 = vld [vmem:[%s10694_s5 + $0xe60] sm:$0xff]  ;;  %1721 = vst [vmem:[%s10699_s6 + $0x720] sm:$0xff] %v1720_v36  ;;  %1723 = vst [vmem:[%s10699_s6 + $0x728] sm:$0xff] %v1722_v37  ;;  %v1726_v39 = vld [vmem:[%s10694_s5 + $0xe70] sm:$0xff] }
  0x89   : > { %1725 = vst [vmem:[%s10699_s6 + $0x730] sm:$0xff] %v1724_v38  ;;  %v1728_v40 = vld [vmem:[%s10694_s5 + $0xe80] sm:$0xff]  ;;  %v1730_v41 = vld [vmem:[%s10694_s5 + $0xe90] sm:$0xff]  ;;  %1727 = vst [vmem:[%s10699_s6 + $0x738] sm:$0xff] %v1726_v39 }
  0x8a   : > { %1729 = vst [vmem:[%s10699_s6 + $0x740] sm:$0xff] %v1728_v40  ;;  %1731 = vst [vmem:[%s10699_s6 + $0x748] sm:$0xff] %v1730_v41  ;;  %v1732_v42 = vld [vmem:[%s10694_s5 + $0xea0] sm:$0xff]  ;;  %v1734_v43 = vld [vmem:[%s10694_s5 + $0xeb0] sm:$0xff] }
  0x8b   : > { %v1736_v44 = vld [vmem:[%s10694_s5 + $0xec0] sm:$0xff]  ;;  %1733 = vst [vmem:[%s10699_s6 + $0x750] sm:$0xff] %v1732_v42  ;;  %1735 = vst [vmem:[%s10699_s6 + $0x758] sm:$0xff] %v1734_v43  ;;  %v1738_v45 = vld [vmem:[%s10694_s5 + $0xed0] sm:$0xff] }
  0x8c   : > { %1737 = vst [vmem:[%s10699_s6 + $0x760] sm:$0xff] %v1736_v44  ;;  %v1740_v46 = vld [vmem:[%s10694_s5 + $0xee0] sm:$0xff]  ;;  %v1742_v47 = vld [vmem:[%s10694_s5 + $0xef0] sm:$0xff]  ;;  %1739 = vst [vmem:[%s10699_s6 + $0x768] sm:$0xff] %v1738_v45 }
  0x8d   : > { %1741 = vst [vmem:[%s10699_s6 + $0x770] sm:$0xff] %v1740_v46  ;;  %1743 = vst [vmem:[%s10699_s6 + $0x778] sm:$0xff] %v1742_v47  ;;  %v1744_v48 = vld [vmem:[%s10694_s5 + $0xf00] sm:$0xff]  ;;  %v1746_v49 = vld [vmem:[%s10694_s5 + $0xf10] sm:$0xff] }
  0x8e   : > { %v1748_v50 = vld [vmem:[%s10694_s5 + $0xf20] sm:$0xff]  ;;  %1745 = vst [vmem:[%s10699_s6 + $0x780] sm:$0xff] %v1744_v48  ;;  %1747 = vst [vmem:[%s10699_s6 + $0x788] sm:$0xff] %v1746_v49  ;;  %v1750_v51 = vld [vmem:[%s10694_s5 + $0xf30] sm:$0xff] }
  0x8f   : > { %1749 = vst [vmem:[%s10699_s6 + $0x790] sm:$0xff] %v1748_v50  ;;  %v1752_v52 = vld [vmem:[%s10694_s5 + $0xf40] sm:$0xff]  ;;  %v1754_v53 = vld [vmem:[%s10694_s5 + $0xf50] sm:$0xff]  ;;  %1751 = vst [vmem:[%s10699_s6 + $0x798] sm:$0xff] %v1750_v51 }
  0x90   : > { %1753 = vst [vmem:[%s10699_s6 + $0x7a0] sm:$0xff] %v1752_v52  ;;  %1755 = vst [vmem:[%s10699_s6 + $0x7a8] sm:$0xff] %v1754_v53  ;;  %v1756_v54 = vld [vmem:[%s10694_s5 + $0xf60] sm:$0xff]  ;;  %v1758_v55 = vld [vmem:[%s10694_s5 + $0xf70] sm:$0xff] }
  0x91   : > { %v1760_v56 = vld [vmem:[%s10694_s5 + $0xf80] sm:$0xff]  ;;  %1757 = vst [vmem:[%s10699_s6 + $0x7b0] sm:$0xff] %v1756_v54  ;;  %1759 = vst [vmem:[%s10699_s6 + $0x7b8] sm:$0xff] %v1758_v55  ;;  %v1762_v57 = vld [vmem:[%s10694_s5 + $0xf90] sm:$0xff] }
  0x92   : > { %1761 = vst [vmem:[%s10699_s6 + $0x7c0] sm:$0xff] %v1760_v56  ;;  %v1764_v58 = vld [vmem:[%s10694_s5 + $0xfa0] sm:$0xff]  ;;  %v1766_v59 = vld [vmem:[%s10694_s5 + $0xfb0] sm:$0xff]  ;;  %1763 = vst [vmem:[%s10699_s6 + $0x7c8] sm:$0xff] %v1762_v57 }
  0x93   : > { %1765 = vst [vmem:[%s10699_s6 + $0x7d0] sm:$0xff] %v1764_v58  ;;  %1767 = vst [vmem:[%s10699_s6 + $0x7d8] sm:$0xff] %v1766_v59  ;;  %v1768_v60 = vld [vmem:[%s10694_s5 + $0xfc0] sm:$0xff]  ;;  %v1770_v61 = vld [vmem:[%s10694_s5 + $0xfd0] sm:$0xff] }
  0x94   : > { %v1772_v62 = vld [vmem:[%s10694_s5 + $0xfe0] sm:$0xff]  ;;  %1769 = vst [vmem:[%s10699_s6 + $0x7e0] sm:$0xff] %v1768_v60  ;;  %1771 = vst [vmem:[%s10699_s6 + $0x7e8] sm:$0xff] %v1770_v61  ;;  %v1774_v63 = vld [vmem:[%s10694_s5 + $0xff0] sm:$0xff] }
  0x95   : > { %1773 = vst [vmem:[%s10699_s6 + $0x7f0] sm:$0xff] %v1772_v62  ;;  %v1776_v0 = vld [vmem:[%s10694_s5 + $0x1000] sm:$0xff]  ;;  %v1778_v1 = vld [vmem:[%s10694_s5 + $0x1010] sm:$0xff]  ;;  %1775 = vst [vmem:[%s10699_s6 + $0x7f8] sm:$0xff] %v1774_v63 }
  0x96   : > { %1777 = vst [vmem:[%s10699_s6 + $0x800] sm:$0xff] %v1776_v0  ;;  %1779 = vst [vmem:[%s10699_s6 + $0x808] sm:$0xff] %v1778_v1  ;;  %v1780_v2 = vld [vmem:[%s10694_s5 + $0x1020] sm:$0xff]  ;;  %v1782_v3 = vld [vmem:[%s10694_s5 + $0x1030] sm:$0xff] }
  0x97   : > { %v1784_v4 = vld [vmem:[%s10694_s5 + $0x1040] sm:$0xff]  ;;  %1781 = vst [vmem:[%s10699_s6 + $0x810] sm:$0xff] %v1780_v2  ;;  %1783 = vst [vmem:[%s10699_s6 + $0x818] sm:$0xff] %v1782_v3  ;;  %v1786_v5 = vld [vmem:[%s10694_s5 + $0x1050] sm:$0xff] }
  0x98   : > { %1785 = vst [vmem:[%s10699_s6 + $0x820] sm:$0xff] %v1784_v4  ;;  %v1788_v6 = vld [vmem:[%s10694_s5 + $0x1060] sm:$0xff]  ;;  %v1790_v7 = vld [vmem:[%s10694_s5 + $0x1070] sm:$0xff]  ;;  %1787 = vst [vmem:[%s10699_s6 + $0x828] sm:$0xff] %v1786_v5 }
  0x99   : > { %1789 = vst [vmem:[%s10699_s6 + $0x830] sm:$0xff] %v1788_v6  ;;  %1791 = vst [vmem:[%s10699_s6 + $0x838] sm:$0xff] %v1790_v7  ;;  %v1792_v8 = vld [vmem:[%s10694_s5 + $0x1080] sm:$0xff]  ;;  %v1794_v9 = vld [vmem:[%s10694_s5 + $0x1090] sm:$0xff] }
  0x9a   : > { %v1796_v10 = vld [vmem:[%s10694_s5 + $0x10a0] sm:$0xff]  ;;  %1793 = vst [vmem:[%s10699_s6 + $0x840] sm:$0xff] %v1792_v8  ;;  %1795 = vst [vmem:[%s10699_s6 + $0x848] sm:$0xff] %v1794_v9  ;;  %v1798_v11 = vld [vmem:[%s10694_s5 + $0x10b0] sm:$0xff] }
  0x9b   : > { %1797 = vst [vmem:[%s10699_s6 + $0x850] sm:$0xff] %v1796_v10  ;;  %v1800_v12 = vld [vmem:[%s10694_s5 + $0x10c0] sm:$0xff]  ;;  %v1802_v13 = vld [vmem:[%s10694_s5 + $0x10d0] sm:$0xff]  ;;  %1799 = vst [vmem:[%s10699_s6 + $0x858] sm:$0xff] %v1798_v11 }
  0x9c   : > { %1801 = vst [vmem:[%s10699_s6 + $0x860] sm:$0xff] %v1800_v12  ;;  %1803 = vst [vmem:[%s10699_s6 + $0x868] sm:$0xff] %v1802_v13  ;;  %v1804_v14 = vld [vmem:[%s10694_s5 + $0x10e0] sm:$0xff]  ;;  %v1806_v15 = vld [vmem:[%s10694_s5 + $0x10f0] sm:$0xff] }
  0x9d   : > { %v1808_v16 = vld [vmem:[%s10694_s5 + $0x1100] sm:$0xff]  ;;  %1805 = vst [vmem:[%s10699_s6 + $0x870] sm:$0xff] %v1804_v14  ;;  %1807 = vst [vmem:[%s10699_s6 + $0x878] sm:$0xff] %v1806_v15  ;;  %v1810_v17 = vld [vmem:[%s10694_s5 + $0x1110] sm:$0xff] }
  0x9e   : > { %1809 = vst [vmem:[%s10699_s6 + $0x880] sm:$0xff] %v1808_v16  ;;  %v1812_v18 = vld [vmem:[%s10694_s5 + $0x1120] sm:$0xff]  ;;  %v1814_v19 = vld [vmem:[%s10694_s5 + $0x1130] sm:$0xff]  ;;  %1811 = vst [vmem:[%s10699_s6 + $0x888] sm:$0xff] %v1810_v17 }
  0x9f   : > { %1813 = vst [vmem:[%s10699_s6 + $0x890] sm:$0xff] %v1812_v18  ;;  %1815 = vst [vmem:[%s10699_s6 + $0x898] sm:$0xff] %v1814_v19  ;;  %v1816_v20 = vld [vmem:[%s10694_s5 + $0x1140] sm:$0xff]  ;;  %v1818_v21 = vld [vmem:[%s10694_s5 + $0x1150] sm:$0xff] }
  0xa0   : > { %v1820_v22 = vld [vmem:[%s10694_s5 + $0x1160] sm:$0xff]  ;;  %1817 = vst [vmem:[%s10699_s6 + $0x8a0] sm:$0xff] %v1816_v20  ;;  %1819 = vst [vmem:[%s10699_s6 + $0x8a8] sm:$0xff] %v1818_v21  ;;  %v1822_v23 = vld [vmem:[%s10694_s5 + $0x1170] sm:$0xff] }
  0xa1   : > { %1821 = vst [vmem:[%s10699_s6 + $0x8b0] sm:$0xff] %v1820_v22  ;;  %v1824_v24 = vld [vmem:[%s10694_s5 + $0x1180] sm:$0xff]  ;;  %v1826_v25 = vld [vmem:[%s10694_s5 + $0x1190] sm:$0xff]  ;;  %1823 = vst [vmem:[%s10699_s6 + $0x8b8] sm:$0xff] %v1822_v23 }
  0xa2   : > { %1825 = vst [vmem:[%s10699_s6 + $0x8c0] sm:$0xff] %v1824_v24  ;;  %1827 = vst [vmem:[%s10699_s6 + $0x8c8] sm:$0xff] %v1826_v25  ;;  %v1828_v26 = vld [vmem:[%s10694_s5 + $0x11a0] sm:$0xff]  ;;  %v1830_v27 = vld [vmem:[%s10694_s5 + $0x11b0] sm:$0xff] }
  0xa3   : > { %v1832_v28 = vld [vmem:[%s10694_s5 + $0x11c0] sm:$0xff]  ;;  %1829 = vst [vmem:[%s10699_s6 + $0x8d0] sm:$0xff] %v1828_v26  ;;  %1831 = vst [vmem:[%s10699_s6 + $0x8d8] sm:$0xff] %v1830_v27  ;;  %v1834_v29 = vld [vmem:[%s10694_s5 + $0x11d0] sm:$0xff] }
  0xa4   : > { %1833 = vst [vmem:[%s10699_s6 + $0x8e0] sm:$0xff] %v1832_v28  ;;  %v1836_v30 = vld [vmem:[%s10694_s5 + $0x11e0] sm:$0xff]  ;;  %v1838_v31 = vld [vmem:[%s10694_s5 + $0x11f0] sm:$0xff]  ;;  %1835 = vst [vmem:[%s10699_s6 + $0x8e8] sm:$0xff] %v1834_v29 }
  0xa5   : > { %1837 = vst [vmem:[%s10699_s6 + $0x8f0] sm:$0xff] %v1836_v30  ;;  %1839 = vst [vmem:[%s10699_s6 + $0x8f8] sm:$0xff] %v1838_v31  ;;  %v1840_v32 = vld [vmem:[%s10694_s5 + $0x1200] sm:$0xff]  ;;  %v1842_v33 = vld [vmem:[%s10694_s5 + $0x1210] sm:$0xff] }
  0xa6   : > { %v1844_v34 = vld [vmem:[%s10694_s5 + $0x1220] sm:$0xff]  ;;  %1841 = vst [vmem:[%s10699_s6 + $0x900] sm:$0xff] %v1840_v32  ;;  %1843 = vst [vmem:[%s10699_s6 + $0x908] sm:$0xff] %v1842_v33  ;;  %v1846_v35 = vld [vmem:[%s10694_s5 + $0x1230] sm:$0xff] }
  0xa7   : > { %1845 = vst [vmem:[%s10699_s6 + $0x910] sm:$0xff] %v1844_v34  ;;  %v1848_v36 = vld [vmem:[%s10694_s5 + $0x1240] sm:$0xff]  ;;  %v1850_v37 = vld [vmem:[%s10694_s5 + $0x1250] sm:$0xff]  ;;  %1847 = vst [vmem:[%s10699_s6 + $0x918] sm:$0xff] %v1846_v35 }
  0xa8   : > { %1849 = vst [vmem:[%s10699_s6 + $0x920] sm:$0xff] %v1848_v36  ;;  %1851 = vst [vmem:[%s10699_s6 + $0x928] sm:$0xff] %v1850_v37  ;;  %v1852_v38 = vld [vmem:[%s10694_s5 + $0x1260] sm:$0xff]  ;;  %v1854_v39 = vld [vmem:[%s10694_s5 + $0x1270] sm:$0xff] }
  0xa9   : > { %v1856_v40 = vld [vmem:[%s10694_s5 + $0x1280] sm:$0xff]  ;;  %1853 = vst [vmem:[%s10699_s6 + $0x930] sm:$0xff] %v1852_v38  ;;  %1855 = vst [vmem:[%s10699_s6 + $0x938] sm:$0xff] %v1854_v39  ;;  %v1858_v41 = vld [vmem:[%s10694_s5 + $0x1290] sm:$0xff] }
  0xaa   : > { %1857 = vst [vmem:[%s10699_s6 + $0x940] sm:$0xff] %v1856_v40  ;;  %v1860_v42 = vld [vmem:[%s10694_s5 + $0x12a0] sm:$0xff]  ;;  %v1862_v43 = vld [vmem:[%s10694_s5 + $0x12b0] sm:$0xff]  ;;  %1859 = vst [vmem:[%s10699_s6 + $0x948] sm:$0xff] %v1858_v41 }
  0xab   : > { %1861 = vst [vmem:[%s10699_s6 + $0x950] sm:$0xff] %v1860_v42  ;;  %1863 = vst [vmem:[%s10699_s6 + $0x958] sm:$0xff] %v1862_v43  ;;  %v1864_v44 = vld [vmem:[%s10694_s5 + $0x12c0] sm:$0xff]  ;;  %v1866_v45 = vld [vmem:[%s10694_s5 + $0x12d0] sm:$0xff] }
  0xac   : > { %v1868_v46 = vld [vmem:[%s10694_s5 + $0x12e0] sm:$0xff]  ;;  %1865 = vst [vmem:[%s10699_s6 + $0x960] sm:$0xff] %v1864_v44  ;;  %1867 = vst [vmem:[%s10699_s6 + $0x968] sm:$0xff] %v1866_v45  ;;  %v1870_v47 = vld [vmem:[%s10694_s5 + $0x12f0] sm:$0xff] }
  0xad   : > { %1869 = vst [vmem:[%s10699_s6 + $0x970] sm:$0xff] %v1868_v46  ;;  %v1872_v48 = vld [vmem:[%s10694_s5 + $0x1300] sm:$0xff]  ;;  %v1874_v49 = vld [vmem:[%s10694_s5 + $0x1310] sm:$0xff]  ;;  %1871 = vst [vmem:[%s10699_s6 + $0x978] sm:$0xff] %v1870_v47 }
  0xae   : > { %1873 = vst [vmem:[%s10699_s6 + $0x980] sm:$0xff] %v1872_v48  ;;  %1875 = vst [vmem:[%s10699_s6 + $0x988] sm:$0xff] %v1874_v49  ;;  %v1876_v50 = vld [vmem:[%s10694_s5 + $0x1320] sm:$0xff]  ;;  %v1878_v51 = vld [vmem:[%s10694_s5 + $0x1330] sm:$0xff] }
  0xaf   : > { %v1880_v52 = vld [vmem:[%s10694_s5 + $0x1340] sm:$0xff]  ;;  %1877 = vst [vmem:[%s10699_s6 + $0x990] sm:$0xff] %v1876_v50  ;;  %1879 = vst [vmem:[%s10699_s6 + $0x998] sm:$0xff] %v1878_v51  ;;  %v1882_v53 = vld [vmem:[%s10694_s5 + $0x1350] sm:$0xff] }
  0xb0   : > { %1881 = vst [vmem:[%s10699_s6 + $0x9a0] sm:$0xff] %v1880_v52  ;;  %v1884_v54 = vld [vmem:[%s10694_s5 + $0x1360] sm:$0xff]  ;;  %v1886_v55 = vld [vmem:[%s10694_s5 + $0x1370] sm:$0xff]  ;;  %1883 = vst [vmem:[%s10699_s6 + $0x9a8] sm:$0xff] %v1882_v53 }
  0xb1   : > { %1885 = vst [vmem:[%s10699_s6 + $0x9b0] sm:$0xff] %v1884_v54  ;;  %1887 = vst [vmem:[%s10699_s6 + $0x9b8] sm:$0xff] %v1886_v55  ;;  %v1888_v56 = vld [vmem:[%s10694_s5 + $0x1380] sm:$0xff]  ;;  %v1890_v57 = vld [vmem:[%s10694_s5 + $0x1390] sm:$0xff] }
  0xb2   : > { %v1892_v58 = vld [vmem:[%s10694_s5 + $0x13a0] sm:$0xff]  ;;  %1889 = vst [vmem:[%s10699_s6 + $0x9c0] sm:$0xff] %v1888_v56  ;;  %1891 = vst [vmem:[%s10699_s6 + $0x9c8] sm:$0xff] %v1890_v57  ;;  %v1894_v59 = vld [vmem:[%s10694_s5 + $0x13b0] sm:$0xff] }
  0xb3   : > { %1893 = vst [vmem:[%s10699_s6 + $0x9d0] sm:$0xff] %v1892_v58  ;;  %v1896_v60 = vld [vmem:[%s10694_s5 + $0x13c0] sm:$0xff]  ;;  %v1898_v61 = vld [vmem:[%s10694_s5 + $0x13d0] sm:$0xff]  ;;  %1895 = vst [vmem:[%s10699_s6 + $0x9d8] sm:$0xff] %v1894_v59 }
  0xb4   : > { %1897 = vst [vmem:[%s10699_s6 + $0x9e0] sm:$0xff] %v1896_v60  ;;  %1899 = vst [vmem:[%s10699_s6 + $0x9e8] sm:$0xff] %v1898_v61  ;;  %v1900_v62 = vld [vmem:[%s10694_s5 + $0x13e0] sm:$0xff]  ;;  %v1902_v63 = vld [vmem:[%s10694_s5 + $0x13f0] sm:$0xff] }
  0xb5   : > { %v1904_v0 = vld [vmem:[%s10694_s5 + $0x1400] sm:$0xff]  ;;  %1901 = vst [vmem:[%s10699_s6 + $0x9f0] sm:$0xff] %v1900_v62  ;;  %1903 = vst [vmem:[%s10699_s6 + $0x9f8] sm:$0xff] %v1902_v63  ;;  %v1906_v1 = vld [vmem:[%s10694_s5 + $0x1410] sm:$0xff] }
  0xb6   : > { %1905 = vst [vmem:[%s10699_s6 + $0xa00] sm:$0xff] %v1904_v0  ;;  %v1908_v2 = vld [vmem:[%s10694_s5 + $0x1420] sm:$0xff]  ;;  %v1910_v3 = vld [vmem:[%s10694_s5 + $0x1430] sm:$0xff]  ;;  %1907 = vst [vmem:[%s10699_s6 + $0xa08] sm:$0xff] %v1906_v1 }
  0xb7   : > { %1909 = vst [vmem:[%s10699_s6 + $0xa10] sm:$0xff] %v1908_v2  ;;  %1911 = vst [vmem:[%s10699_s6 + $0xa18] sm:$0xff] %v1910_v3  ;;  %v1912_v4 = vld [vmem:[%s10694_s5 + $0x1440] sm:$0xff]  ;;  %v1914_v5 = vld [vmem:[%s10694_s5 + $0x1450] sm:$0xff] }
  0xb8   : > { %v1916_v6 = vld [vmem:[%s10694_s5 + $0x1460] sm:$0xff]  ;;  %1913 = vst [vmem:[%s10699_s6 + $0xa20] sm:$0xff] %v1912_v4  ;;  %1915 = vst [vmem:[%s10699_s6 + $0xa28] sm:$0xff] %v1914_v5  ;;  %v1918_v7 = vld [vmem:[%s10694_s5 + $0x1470] sm:$0xff] }
  0xb9   : > { %1917 = vst [vmem:[%s10699_s6 + $0xa30] sm:$0xff] %v1916_v6  ;;  %v1920_v8 = vld [vmem:[%s10694_s5 + $0x1480] sm:$0xff]  ;;  %v1922_v9 = vld [vmem:[%s10694_s5 + $0x1490] sm:$0xff]  ;;  %1919 = vst [vmem:[%s10699_s6 + $0xa38] sm:$0xff] %v1918_v7 }
  0xba   : > { %1921 = vst [vmem:[%s10699_s6 + $0xa40] sm:$0xff] %v1920_v8  ;;  %1923 = vst [vmem:[%s10699_s6 + $0xa48] sm:$0xff] %v1922_v9  ;;  %v1924_v10 = vld [vmem:[%s10694_s5 + $0x14a0] sm:$0xff]  ;;  %v1926_v11 = vld [vmem:[%s10694_s5 + $0x14b0] sm:$0xff] }
  0xbb   : > { %v1928_v12 = vld [vmem:[%s10694_s5 + $0x14c0] sm:$0xff]  ;;  %1925 = vst [vmem:[%s10699_s6 + $0xa50] sm:$0xff] %v1924_v10  ;;  %1927 = vst [vmem:[%s10699_s6 + $0xa58] sm:$0xff] %v1926_v11  ;;  %v1930_v13 = vld [vmem:[%s10694_s5 + $0x14d0] sm:$0xff] }
  0xbc   : > { %1929 = vst [vmem:[%s10699_s6 + $0xa60] sm:$0xff] %v1928_v12  ;;  %v1932_v14 = vld [vmem:[%s10694_s5 + $0x14e0] sm:$0xff]  ;;  %v1934_v15 = vld [vmem:[%s10694_s5 + $0x14f0] sm:$0xff]  ;;  %1931 = vst [vmem:[%s10699_s6 + $0xa68] sm:$0xff] %v1930_v13 }
  0xbd   : > { %1933 = vst [vmem:[%s10699_s6 + $0xa70] sm:$0xff] %v1932_v14  ;;  %1935 = vst [vmem:[%s10699_s6 + $0xa78] sm:$0xff] %v1934_v15  ;;  %v1936_v16 = vld [vmem:[%s10694_s5 + $0x1500] sm:$0xff]  ;;  %v1938_v17 = vld [vmem:[%s10694_s5 + $0x1510] sm:$0xff] }
  0xbe   : > { %v1940_v18 = vld [vmem:[%s10694_s5 + $0x1520] sm:$0xff]  ;;  %1937 = vst [vmem:[%s10699_s6 + $0xa80] sm:$0xff] %v1936_v16  ;;  %1939 = vst [vmem:[%s10699_s6 + $0xa88] sm:$0xff] %v1938_v17  ;;  %v1942_v19 = vld [vmem:[%s10694_s5 + $0x1530] sm:$0xff] }
  0xbf   : > { %1941 = vst [vmem:[%s10699_s6 + $0xa90] sm:$0xff] %v1940_v18  ;;  %v1944_v20 = vld [vmem:[%s10694_s5 + $0x1540] sm:$0xff]  ;;  %v1946_v21 = vld [vmem:[%s10694_s5 + $0x1550] sm:$0xff]  ;;  %1943 = vst [vmem:[%s10699_s6 + $0xa98] sm:$0xff] %v1942_v19 }
  0xc0   : > { %1945 = vst [vmem:[%s10699_s6 + $0xaa0] sm:$0xff] %v1944_v20  ;;  %1947 = vst [vmem:[%s10699_s6 + $0xaa8] sm:$0xff] %v1946_v21  ;;  %v1948_v22 = vld [vmem:[%s10694_s5 + $0x1560] sm:$0xff]  ;;  %v1950_v23 = vld [vmem:[%s10694_s5 + $0x1570] sm:$0xff] }
  0xc1   : > { %v1952_v24 = vld [vmem:[%s10694_s5 + $0x1580] sm:$0xff]  ;;  %1949 = vst [vmem:[%s10699_s6 + $0xab0] sm:$0xff] %v1948_v22  ;;  %1951 = vst [vmem:[%s10699_s6 + $0xab8] sm:$0xff] %v1950_v23  ;;  %v1954_v25 = vld [vmem:[%s10694_s5 + $0x1590] sm:$0xff] }
  0xc2   : > { %1953 = vst [vmem:[%s10699_s6 + $0xac0] sm:$0xff] %v1952_v24  ;;  %v1956_v26 = vld [vmem:[%s10694_s5 + $0x15a0] sm:$0xff]  ;;  %v1958_v27 = vld [vmem:[%s10694_s5 + $0x15b0] sm:$0xff]  ;;  %1955 = vst [vmem:[%s10699_s6 + $0xac8] sm:$0xff] %v1954_v25 }
  0xc3   : > { %1957 = vst [vmem:[%s10699_s6 + $0xad0] sm:$0xff] %v1956_v26  ;;  %1959 = vst [vmem:[%s10699_s6 + $0xad8] sm:$0xff] %v1958_v27  ;;  %v1960_v28 = vld [vmem:[%s10694_s5 + $0x15c0] sm:$0xff]  ;;  %v1962_v29 = vld [vmem:[%s10694_s5 + $0x15d0] sm:$0xff] }
  0xc4   : > { %v1964_v30 = vld [vmem:[%s10694_s5 + $0x15e0] sm:$0xff]  ;;  %1961 = vst [vmem:[%s10699_s6 + $0xae0] sm:$0xff] %v1960_v28  ;;  %1963 = vst [vmem:[%s10699_s6 + $0xae8] sm:$0xff] %v1962_v29  ;;  %v1966_v31 = vld [vmem:[%s10694_s5 + $0x15f0] sm:$0xff] }
  0xc5   : > { %1965 = vst [vmem:[%s10699_s6 + $0xaf0] sm:$0xff] %v1964_v30  ;;  %v1968_v32 = vld [vmem:[%s10694_s5 + $0x1600] sm:$0xff]  ;;  %v1970_v33 = vld [vmem:[%s10694_s5 + $0x1610] sm:$0xff]  ;;  %1967 = vst [vmem:[%s10699_s6 + $0xaf8] sm:$0xff] %v1966_v31 }
  0xc6   : > { %1969 = vst [vmem:[%s10699_s6 + $0xb00] sm:$0xff] %v1968_v32  ;;  %1971 = vst [vmem:[%s10699_s6 + $0xb08] sm:$0xff] %v1970_v33  ;;  %v1972_v34 = vld [vmem:[%s10694_s5 + $0x1620] sm:$0xff]  ;;  %v1974_v35 = vld [vmem:[%s10694_s5 + $0x1630] sm:$0xff] }
  0xc7   : > { %v1976_v36 = vld [vmem:[%s10694_s5 + $0x1640] sm:$0xff]  ;;  %1973 = vst [vmem:[%s10699_s6 + $0xb10] sm:$0xff] %v1972_v34  ;;  %1975 = vst [vmem:[%s10699_s6 + $0xb18] sm:$0xff] %v1974_v35  ;;  %v1978_v37 = vld [vmem:[%s10694_s5 + $0x1650] sm:$0xff] }
  0xc8   : > { %1977 = vst [vmem:[%s10699_s6 + $0xb20] sm:$0xff] %v1976_v36  ;;  %v1980_v38 = vld [vmem:[%s10694_s5 + $0x1660] sm:$0xff]  ;;  %v1982_v39 = vld [vmem:[%s10694_s5 + $0x1670] sm:$0xff]  ;;  %1979 = vst [vmem:[%s10699_s6 + $0xb28] sm:$0xff] %v1978_v37 }
  0xc9   : > { %1981 = vst [vmem:[%s10699_s6 + $0xb30] sm:$0xff] %v1980_v38  ;;  %1983 = vst [vmem:[%s10699_s6 + $0xb38] sm:$0xff] %v1982_v39  ;;  %v1984_v40 = vld [vmem:[%s10694_s5 + $0x1680] sm:$0xff]  ;;  %v1986_v41 = vld [vmem:[%s10694_s5 + $0x1690] sm:$0xff] }
  0xca   : > { %v1988_v42 = vld [vmem:[%s10694_s5 + $0x16a0] sm:$0xff]  ;;  %1985 = vst [vmem:[%s10699_s6 + $0xb40] sm:$0xff] %v1984_v40  ;;  %1987 = vst [vmem:[%s10699_s6 + $0xb48] sm:$0xff] %v1986_v41  ;;  %v1990_v43 = vld [vmem:[%s10694_s5 + $0x16b0] sm:$0xff] }
  0xcb   : > { %1989 = vst [vmem:[%s10699_s6 + $0xb50] sm:$0xff] %v1988_v42  ;;  %v1992_v44 = vld [vmem:[%s10694_s5 + $0x16c0] sm:$0xff]  ;;  %v1994_v45 = vld [vmem:[%s10694_s5 + $0x16d0] sm:$0xff]  ;;  %1991 = vst [vmem:[%s10699_s6 + $0xb58] sm:$0xff] %v1990_v43 }
  0xcc   : > { %1993 = vst [vmem:[%s10699_s6 + $0xb60] sm:$0xff] %v1992_v44  ;;  %1995 = vst [vmem:[%s10699_s6 + $0xb68] sm:$0xff] %v1994_v45  ;;  %v1996_v46 = vld [vmem:[%s10694_s5 + $0x16e0] sm:$0xff]  ;;  %v1998_v47 = vld [vmem:[%s10694_s5 + $0x16f0] sm:$0xff] }
  0xcd   : > { %v2000_v48 = vld [vmem:[%s10694_s5 + $0x1700] sm:$0xff]  ;;  %1997 = vst [vmem:[%s10699_s6 + $0xb70] sm:$0xff] %v1996_v46  ;;  %1999 = vst [vmem:[%s10699_s6 + $0xb78] sm:$0xff] %v1998_v47  ;;  %v2002_v49 = vld [vmem:[%s10694_s5 + $0x1710] sm:$0xff] }
  0xce   : > { %2001 = vst [vmem:[%s10699_s6 + $0xb80] sm:$0xff] %v2000_v48  ;;  %v2004_v50 = vld [vmem:[%s10694_s5 + $0x1720] sm:$0xff]  ;;  %v2006_v51 = vld [vmem:[%s10694_s5 + $0x1730] sm:$0xff]  ;;  %2003 = vst [vmem:[%s10699_s6 + $0xb88] sm:$0xff] %v2002_v49 }
  0xcf   : > { %2005 = vst [vmem:[%s10699_s6 + $0xb90] sm:$0xff] %v2004_v50  ;;  %2007 = vst [vmem:[%s10699_s6 + $0xb98] sm:$0xff] %v2006_v51  ;;  %v2008_v52 = vld [vmem:[%s10694_s5 + $0x1740] sm:$0xff]  ;;  %v2010_v53 = vld [vmem:[%s10694_s5 + $0x1750] sm:$0xff] }
  0xd0   : > { %v2012_v54 = vld [vmem:[%s10694_s5 + $0x1760] sm:$0xff]  ;;  %2009 = vst [vmem:[%s10699_s6 + $0xba0] sm:$0xff] %v2008_v52  ;;  %2011 = vst [vmem:[%s10699_s6 + $0xba8] sm:$0xff] %v2010_v53  ;;  %v2014_v55 = vld [vmem:[%s10694_s5 + $0x1770] sm:$0xff] }
  0xd1   : > { %2013 = vst [vmem:[%s10699_s6 + $0xbb0] sm:$0xff] %v2012_v54  ;;  %v2016_v56 = vld [vmem:[%s10694_s5 + $0x1780] sm:$0xff]  ;;  %v2018_v57 = vld [vmem:[%s10694_s5 + $0x1790] sm:$0xff]  ;;  %2015 = vst [vmem:[%s10699_s6 + $0xbb8] sm:$0xff] %v2014_v55 }
  0xd2   : > { %2017 = vst [vmem:[%s10699_s6 + $0xbc0] sm:$0xff] %v2016_v56  ;;  %2019 = vst [vmem:[%s10699_s6 + $0xbc8] sm:$0xff] %v2018_v57  ;;  %v2020_v58 = vld [vmem:[%s10694_s5 + $0x17a0] sm:$0xff]  ;;  %v2022_v59 = vld [vmem:[%s10694_s5 + $0x17b0] sm:$0xff] }
  0xd3   : > { %v2024_v60 = vld [vmem:[%s10694_s5 + $0x17c0] sm:$0xff]  ;;  %2021 = vst [vmem:[%s10699_s6 + $0xbd0] sm:$0xff] %v2020_v58  ;;  %2023 = vst [vmem:[%s10699_s6 + $0xbd8] sm:$0xff] %v2022_v59  ;;  %v2026_v61 = vld [vmem:[%s10694_s5 + $0x17d0] sm:$0xff] }
  0xd4   : > { %2025 = vst [vmem:[%s10699_s6 + $0xbe0] sm:$0xff] %v2024_v60  ;;  %v2028_v62 = vld [vmem:[%s10694_s5 + $0x17e0] sm:$0xff]  ;;  %v2030_v63 = vld [vmem:[%s10694_s5 + $0x17f0] sm:$0xff]  ;;  %2027 = vst [vmem:[%s10699_s6 + $0xbe8] sm:$0xff] %v2026_v61 }
  0xd5   : > { %2029 = vst [vmem:[%s10699_s6 + $0xbf0] sm:$0xff] %v2028_v62  ;;  %2031 = vst [vmem:[%s10699_s6 + $0xbf8] sm:$0xff] %v2030_v63  ;;  %v2032_v0 = vld [vmem:[%s10694_s5 + $0x1800] sm:$0xff]  ;;  %v2034_v1 = vld [vmem:[%s10694_s5 + $0x1810] sm:$0xff] }
  0xd6   : > { %v2036_v2 = vld [vmem:[%s10694_s5 + $0x1820] sm:$0xff]  ;;  %2033 = vst [vmem:[%s10699_s6 + $0xc00] sm:$0xff] %v2032_v0  ;;  %2035 = vst [vmem:[%s10699_s6 + $0xc08] sm:$0xff] %v2034_v1  ;;  %v2038_v3 = vld [vmem:[%s10694_s5 + $0x1830] sm:$0xff] }
  0xd7   : > { %2037 = vst [vmem:[%s10699_s6 + $0xc10] sm:$0xff] %v2036_v2  ;;  %v2040_v4 = vld [vmem:[%s10694_s5 + $0x1840] sm:$0xff]  ;;  %v2042_v5 = vld [vmem:[%s10694_s5 + $0x1850] sm:$0xff]  ;;  %2039 = vst [vmem:[%s10699_s6 + $0xc18] sm:$0xff] %v2038_v3 }
  0xd8   : > { %2041 = vst [vmem:[%s10699_s6 + $0xc20] sm:$0xff] %v2040_v4  ;;  %2043 = vst [vmem:[%s10699_s6 + $0xc28] sm:$0xff] %v2042_v5  ;;  %v2044_v6 = vld [vmem:[%s10694_s5 + $0x1860] sm:$0xff]  ;;  %v2046_v7 = vld [vmem:[%s10694_s5 + $0x1870] sm:$0xff] }
  0xd9   : > { %v2048_v8 = vld [vmem:[%s10694_s5 + $0x1880] sm:$0xff]  ;;  %2045 = vst [vmem:[%s10699_s6 + $0xc30] sm:$0xff] %v2044_v6  ;;  %2047 = vst [vmem:[%s10699_s6 + $0xc38] sm:$0xff] %v2046_v7  ;;  %v2050_v9 = vld [vmem:[%s10694_s5 + $0x1890] sm:$0xff] }
  0xda   : > { %2049 = vst [vmem:[%s10699_s6 + $0xc40] sm:$0xff] %v2048_v8  ;;  %v2052_v10 = vld [vmem:[%s10694_s5 + $0x18a0] sm:$0xff]  ;;  %v2054_v11 = vld [vmem:[%s10694_s5 + $0x18b0] sm:$0xff]  ;;  %2051 = vst [vmem:[%s10699_s6 + $0xc48] sm:$0xff] %v2050_v9 }
  0xdb   : > { %2053 = vst [vmem:[%s10699_s6 + $0xc50] sm:$0xff] %v2052_v10  ;;  %2055 = vst [vmem:[%s10699_s6 + $0xc58] sm:$0xff] %v2054_v11  ;;  %v2056_v12 = vld [vmem:[%s10694_s5 + $0x18c0] sm:$0xff]  ;;  %v2058_v13 = vld [vmem:[%s10694_s5 + $0x18d0] sm:$0xff] }
  0xdc   : > { %v2060_v14 = vld [vmem:[%s10694_s5 + $0x18e0] sm:$0xff]  ;;  %2057 = vst [vmem:[%s10699_s6 + $0xc60] sm:$0xff] %v2056_v12  ;;  %2059 = vst [vmem:[%s10699_s6 + $0xc68] sm:$0xff] %v2058_v13  ;;  %v2062_v15 = vld [vmem:[%s10694_s5 + $0x18f0] sm:$0xff] }
  0xdd   : > { %2061 = vst [vmem:[%s10699_s6 + $0xc70] sm:$0xff] %v2060_v14  ;;  %v2064_v16 = vld [vmem:[%s10694_s5 + $0x1900] sm:$0xff]  ;;  %v2066_v17 = vld [vmem:[%s10694_s5 + $0x1910] sm:$0xff]  ;;  %2063 = vst [vmem:[%s10699_s6 + $0xc78] sm:$0xff] %v2062_v15 }
  0xde   : > { %2065 = vst [vmem:[%s10699_s6 + $0xc80] sm:$0xff] %v2064_v16  ;;  %2067 = vst [vmem:[%s10699_s6 + $0xc88] sm:$0xff] %v2066_v17  ;;  %v2068_v18 = vld [vmem:[%s10694_s5 + $0x1920] sm:$0xff]  ;;  %v2070_v19 = vld [vmem:[%s10694_s5 + $0x1930] sm:$0xff] }
  0xdf   : > { %v2072_v20 = vld [vmem:[%s10694_s5 + $0x1940] sm:$0xff]  ;;  %2069 = vst [vmem:[%s10699_s6 + $0xc90] sm:$0xff] %v2068_v18  ;;  %2071 = vst [vmem:[%s10699_s6 + $0xc98] sm:$0xff] %v2070_v19  ;;  %v2074_v21 = vld [vmem:[%s10694_s5 + $0x1950] sm:$0xff] }
  0xe0   : > { %2073 = vst [vmem:[%s10699_s6 + $0xca0] sm:$0xff] %v2072_v20  ;;  %v2076_v22 = vld [vmem:[%s10694_s5 + $0x1960] sm:$0xff]  ;;  %v2078_v23 = vld [vmem:[%s10694_s5 + $0x1970] sm:$0xff]  ;;  %2075 = vst [vmem:[%s10699_s6 + $0xca8] sm:$0xff] %v2074_v21 }
  0xe1   : > { %2077 = vst [vmem:[%s10699_s6 + $0xcb0] sm:$0xff] %v2076_v22  ;;  %2079 = vst [vmem:[%s10699_s6 + $0xcb8] sm:$0xff] %v2078_v23  ;;  %v2080_v24 = vld [vmem:[%s10694_s5 + $0x1980] sm:$0xff]  ;;  %v2082_v25 = vld [vmem:[%s10694_s5 + $0x1990] sm:$0xff] }
  0xe2   : > { %v2084_v26 = vld [vmem:[%s10694_s5 + $0x19a0] sm:$0xff]  ;;  %2081 = vst [vmem:[%s10699_s6 + $0xcc0] sm:$0xff] %v2080_v24  ;;  %2083 = vst [vmem:[%s10699_s6 + $0xcc8] sm:$0xff] %v2082_v25  ;;  %v2086_v27 = vld [vmem:[%s10694_s5 + $0x19b0] sm:$0xff] }
  0xe3   : > { %2085 = vst [vmem:[%s10699_s6 + $0xcd0] sm:$0xff] %v2084_v26  ;;  %v2088_v28 = vld [vmem:[%s10694_s5 + $0x19c0] sm:$0xff]  ;;  %v2090_v29 = vld [vmem:[%s10694_s5 + $0x19d0] sm:$0xff]  ;;  %2087 = vst [vmem:[%s10699_s6 + $0xcd8] sm:$0xff] %v2086_v27 }
  0xe4   : > { %2089 = vst [vmem:[%s10699_s6 + $0xce0] sm:$0xff] %v2088_v28  ;;  %2091 = vst [vmem:[%s10699_s6 + $0xce8] sm:$0xff] %v2090_v29  ;;  %v2092_v30 = vld [vmem:[%s10694_s5 + $0x19e0] sm:$0xff]  ;;  %v2094_v31 = vld [vmem:[%s10694_s5 + $0x19f0] sm:$0xff] }
  0xe5   : > { %v2096_v32 = vld [vmem:[%s10694_s5 + $0x1a00] sm:$0xff]  ;;  %2093 = vst [vmem:[%s10699_s6 + $0xcf0] sm:$0xff] %v2092_v30  ;;  %2095 = vst [vmem:[%s10699_s6 + $0xcf8] sm:$0xff] %v2094_v31  ;;  %v2098_v33 = vld [vmem:[%s10694_s5 + $0x1a10] sm:$0xff] }
  0xe6   : > { %2097 = vst [vmem:[%s10699_s6 + $0xd00] sm:$0xff] %v2096_v32  ;;  %v2100_v34 = vld [vmem:[%s10694_s5 + $0x1a20] sm:$0xff]  ;;  %v2102_v35 = vld [vmem:[%s10694_s5 + $0x1a30] sm:$0xff]  ;;  %2099 = vst [vmem:[%s10699_s6 + $0xd08] sm:$0xff] %v2098_v33 }
  0xe7   : > { %2101 = vst [vmem:[%s10699_s6 + $0xd10] sm:$0xff] %v2100_v34  ;;  %2103 = vst [vmem:[%s10699_s6 + $0xd18] sm:$0xff] %v2102_v35  ;;  %v2104_v36 = vld [vmem:[%s10694_s5 + $0x1a40] sm:$0xff]  ;;  %v2106_v37 = vld [vmem:[%s10694_s5 + $0x1a50] sm:$0xff] }
  0xe8   : > { %v2108_v38 = vld [vmem:[%s10694_s5 + $0x1a60] sm:$0xff]  ;;  %2105 = vst [vmem:[%s10699_s6 + $0xd20] sm:$0xff] %v2104_v36  ;;  %2107 = vst [vmem:[%s10699_s6 + $0xd28] sm:$0xff] %v2106_v37  ;;  %v2110_v39 = vld [vmem:[%s10694_s5 + $0x1a70] sm:$0xff] }
  0xe9   : > { %2109 = vst [vmem:[%s10699_s6 + $0xd30] sm:$0xff] %v2108_v38  ;;  %v2112_v40 = vld [vmem:[%s10694_s5 + $0x1a80] sm:$0xff]  ;;  %v2114_v41 = vld [vmem:[%s10694_s5 + $0x1a90] sm:$0xff]  ;;  %2111 = vst [vmem:[%s10699_s6 + $0xd38] sm:$0xff] %v2110_v39 }
  0xea   : > { %2113 = vst [vmem:[%s10699_s6 + $0xd40] sm:$0xff] %v2112_v40  ;;  %2115 = vst [vmem:[%s10699_s6 + $0xd48] sm:$0xff] %v2114_v41  ;;  %v2116_v42 = vld [vmem:[%s10694_s5 + $0x1aa0] sm:$0xff]  ;;  %v2118_v43 = vld [vmem:[%s10694_s5 + $0x1ab0] sm:$0xff] }
  0xeb   : > { %v2120_v44 = vld [vmem:[%s10694_s5 + $0x1ac0] sm:$0xff]  ;;  %2117 = vst [vmem:[%s10699_s6 + $0xd50] sm:$0xff] %v2116_v42  ;;  %2119 = vst [vmem:[%s10699_s6 + $0xd58] sm:$0xff] %v2118_v43  ;;  %v2122_v45 = vld [vmem:[%s10694_s5 + $0x1ad0] sm:$0xff] }
  0xec   : > { %2121 = vst [vmem:[%s10699_s6 + $0xd60] sm:$0xff] %v2120_v44  ;;  %v2124_v46 = vld [vmem:[%s10694_s5 + $0x1ae0] sm:$0xff]  ;;  %v2126_v47 = vld [vmem:[%s10694_s5 + $0x1af0] sm:$0xff]  ;;  %2123 = vst [vmem:[%s10699_s6 + $0xd68] sm:$0xff] %v2122_v45 }
  0xed   : > { %2125 = vst [vmem:[%s10699_s6 + $0xd70] sm:$0xff] %v2124_v46  ;;  %2127 = vst [vmem:[%s10699_s6 + $0xd78] sm:$0xff] %v2126_v47  ;;  %v2128_v48 = vld [vmem:[%s10694_s5 + $0x1b00] sm:$0xff]  ;;  %v2130_v49 = vld [vmem:[%s10694_s5 + $0x1b10] sm:$0xff] }
  0xee   : > { %v2132_v50 = vld [vmem:[%s10694_s5 + $0x1b20] sm:$0xff]  ;;  %2129 = vst [vmem:[%s10699_s6 + $0xd80] sm:$0xff] %v2128_v48  ;;  %2131 = vst [vmem:[%s10699_s6 + $0xd88] sm:$0xff] %v2130_v49  ;;  %v2134_v51 = vld [vmem:[%s10694_s5 + $0x1b30] sm:$0xff] }
  0xef   : > { %2133 = vst [vmem:[%s10699_s6 + $0xd90] sm:$0xff] %v2132_v50  ;;  %v2136_v52 = vld [vmem:[%s10694_s5 + $0x1b40] sm:$0xff]  ;;  %v2138_v53 = vld [vmem:[%s10694_s5 + $0x1b50] sm:$0xff]  ;;  %2135 = vst [vmem:[%s10699_s6 + $0xd98] sm:$0xff] %v2134_v51 }
  0xf0   : > { %2137 = vst [vmem:[%s10699_s6 + $0xda0] sm:$0xff] %v2136_v52  ;;  %2139 = vst [vmem:[%s10699_s6 + $0xda8] sm:$0xff] %v2138_v53  ;;  %v2140_v54 = vld [vmem:[%s10694_s5 + $0x1b60] sm:$0xff]  ;;  %v2142_v55 = vld [vmem:[%s10694_s5 + $0x1b70] sm:$0xff] }
  0xf1   : > { %v2144_v56 = vld [vmem:[%s10694_s5 + $0x1b80] sm:$0xff]  ;;  %2141 = vst [vmem:[%s10699_s6 + $0xdb0] sm:$0xff] %v2140_v54  ;;  %2143 = vst [vmem:[%s10699_s6 + $0xdb8] sm:$0xff] %v2142_v55  ;;  %v2146_v57 = vld [vmem:[%s10694_s5 + $0x1b90] sm:$0xff] }
  0xf2   : > { %2145 = vst [vmem:[%s10699_s6 + $0xdc0] sm:$0xff] %v2144_v56  ;;  %v2148_v58 = vld [vmem:[%s10694_s5 + $0x1ba0] sm:$0xff]  ;;  %v2150_v59 = vld [vmem:[%s10694_s5 + $0x1bb0] sm:$0xff]  ;;  %2147 = vst [vmem:[%s10699_s6 + $0xdc8] sm:$0xff] %v2146_v57 }
  0xf3   : > { %2149 = vst [vmem:[%s10699_s6 + $0xdd0] sm:$0xff] %v2148_v58  ;;  %2151 = vst [vmem:[%s10699_s6 + $0xdd8] sm:$0xff] %v2150_v59  ;;  %v2152_v60 = vld [vmem:[%s10694_s5 + $0x1bc0] sm:$0xff]  ;;  %v2154_v61 = vld [vmem:[%s10694_s5 + $0x1bd0] sm:$0xff] }
  0xf4   : > { %v2156_v62 = vld [vmem:[%s10694_s5 + $0x1be0] sm:$0xff]  ;;  %2153 = vst [vmem:[%s10699_s6 + $0xde0] sm:$0xff] %v2152_v60  ;;  %2155 = vst [vmem:[%s10699_s6 + $0xde8] sm:$0xff] %v2154_v61  ;;  %v2158_v63 = vld [vmem:[%s10694_s5 + $0x1bf0] sm:$0xff] }
  0xf5   : > { %2157 = vst [vmem:[%s10699_s6 + $0xdf0] sm:$0xff] %v2156_v62  ;;  %v2160_v0 = vld [vmem:[%s10694_s5 + $0x1c00] sm:$0xff]  ;;  %v2162_v1 = vld [vmem:[%s10694_s5 + $0x1c10] sm:$0xff]  ;;  %2159 = vst [vmem:[%s10699_s6 + $0xdf8] sm:$0xff] %v2158_v63 }
  0xf6   : > { %2161 = vst [vmem:[%s10699_s6 + $0xe00] sm:$0xff] %v2160_v0  ;;  %2163 = vst [vmem:[%s10699_s6 + $0xe08] sm:$0xff] %v2162_v1  ;;  %v2164_v2 = vld [vmem:[%s10694_s5 + $0x1c20] sm:$0xff]  ;;  %v2166_v3 = vld [vmem:[%s10694_s5 + $0x1c30] sm:$0xff] }
  0xf7   : > { %v2168_v4 = vld [vmem:[%s10694_s5 + $0x1c40] sm:$0xff]  ;;  %2165 = vst [vmem:[%s10699_s6 + $0xe10] sm:$0xff] %v2164_v2  ;;  %2167 = vst [vmem:[%s10699_s6 + $0xe18] sm:$0xff] %v2166_v3  ;;  %v2170_v5 = vld [vmem:[%s10694_s5 + $0x1c50] sm:$0xff] }
  0xf8   : > { %2169 = vst [vmem:[%s10699_s6 + $0xe20] sm:$0xff] %v2168_v4  ;;  %v2172_v6 = vld [vmem:[%s10694_s5 + $0x1c60] sm:$0xff]  ;;  %v2174_v7 = vld [vmem:[%s10694_s5 + $0x1c70] sm:$0xff]  ;;  %2171 = vst [vmem:[%s10699_s6 + $0xe28] sm:$0xff] %v2170_v5 }
  0xf9   : > { %2173 = vst [vmem:[%s10699_s6 + $0xe30] sm:$0xff] %v2172_v6  ;;  %2175 = vst [vmem:[%s10699_s6 + $0xe38] sm:$0xff] %v2174_v7  ;;  %v2176_v8 = vld [vmem:[%s10694_s5 + $0x1c80] sm:$0xff]  ;;  %v2178_v9 = vld [vmem:[%s10694_s5 + $0x1c90] sm:$0xff] }
  0xfa   : > { %v2180_v10 = vld [vmem:[%s10694_s5 + $0x1ca0] sm:$0xff]  ;;  %2177 = vst [vmem:[%s10699_s6 + $0xe40] sm:$0xff] %v2176_v8  ;;  %2179 = vst [vmem:[%s10699_s6 + $0xe48] sm:$0xff] %v2178_v9  ;;  %v2182_v11 = vld [vmem:[%s10694_s5 + $0x1cb0] sm:$0xff] }
  0xfb   : > { %2181 = vst [vmem:[%s10699_s6 + $0xe50] sm:$0xff] %v2180_v10  ;;  %v2184_v12 = vld [vmem:[%s10694_s5 + $0x1cc0] sm:$0xff]  ;;  %v2186_v13 = vld [vmem:[%s10694_s5 + $0x1cd0] sm:$0xff]  ;;  %2183 = vst [vmem:[%s10699_s6 + $0xe58] sm:$0xff] %v2182_v11 }
  0xfc   : > { %2185 = vst [vmem:[%s10699_s6 + $0xe60] sm:$0xff] %v2184_v12  ;;  %2187 = vst [vmem:[%s10699_s6 + $0xe68] sm:$0xff] %v2186_v13  ;;  %v2188_v14 = vld [vmem:[%s10694_s5 + $0x1ce0] sm:$0xff]  ;;  %v2190_v15 = vld [vmem:[%s10694_s5 + $0x1cf0] sm:$0xff] }
  0xfd   : > { %v2192_v16 = vld [vmem:[%s10694_s5 + $0x1d00] sm:$0xff]  ;;  %2189 = vst [vmem:[%s10699_s6 + $0xe70] sm:$0xff] %v2188_v14  ;;  %2191 = vst [vmem:[%s10699_s6 + $0xe78] sm:$0xff] %v2190_v15  ;;  %v2194_v17 = vld [vmem:[%s10694_s5 + $0x1d10] sm:$0xff] }
  0xfe   : > { %2193 = vst [vmem:[%s10699_s6 + $0xe80] sm:$0xff] %v2192_v16  ;;  %v2196_v18 = vld [vmem:[%s10694_s5 + $0x1d20] sm:$0xff]  ;;  %v2198_v19 = vld [vmem:[%s10694_s5 + $0x1d30] sm:$0xff]  ;;  %2195 = vst [vmem:[%s10699_s6 + $0xe88] sm:$0xff] %v2194_v17 }
  0xff   : > { %2197 = vst [vmem:[%s10699_s6 + $0xe90] sm:$0xff] %v2196_v18  ;;  %2199 = vst [vmem:[%s10699_s6 + $0xe98] sm:$0xff] %v2198_v19  ;;  %v2200_v20 = vld [vmem:[%s10694_s5 + $0x1d40] sm:$0xff]  ;;  %v2202_v21 = vld [vmem:[%s10694_s5 + $0x1d50] sm:$0xff] }
 0x100   : > { %v2204_v22 = vld [vmem:[%s10694_s5 + $0x1d60] sm:$0xff]  ;;  %2201 = vst [vmem:[%s10699_s6 + $0xea0] sm:$0xff] %v2200_v20  ;;  %2203 = vst [vmem:[%s10699_s6 + $0xea8] sm:$0xff] %v2202_v21  ;;  %v2206_v23 = vld [vmem:[%s10694_s5 + $0x1d70] sm:$0xff] }
 0x101   : > { %2205 = vst [vmem:[%s10699_s6 + $0xeb0] sm:$0xff] %v2204_v22  ;;  %v2208_v24 = vld [vmem:[%s10694_s5 + $0x1d80] sm:$0xff]  ;;  %v2210_v25 = vld [vmem:[%s10694_s5 + $0x1d90] sm:$0xff]  ;;  %2207 = vst [vmem:[%s10699_s6 + $0xeb8] sm:$0xff] %v2206_v23 }
 0x102   : > { %2209 = vst [vmem:[%s10699_s6 + $0xec0] sm:$0xff] %v2208_v24  ;;  %2211 = vst [vmem:[%s10699_s6 + $0xec8] sm:$0xff] %v2210_v25  ;;  %v2212_v26 = vld [vmem:[%s10694_s5 + $0x1da0] sm:$0xff]  ;;  %v2214_v27 = vld [vmem:[%s10694_s5 + $0x1db0] sm:$0xff] }
 0x103   : > { %v2216_v28 = vld [vmem:[%s10694_s5 + $0x1dc0] sm:$0xff]  ;;  %2213 = vst [vmem:[%s10699_s6 + $0xed0] sm:$0xff] %v2212_v26  ;;  %2215 = vst [vmem:[%s10699_s6 + $0xed8] sm:$0xff] %v2214_v27  ;;  %v2218_v29 = vld [vmem:[%s10694_s5 + $0x1dd0] sm:$0xff] }
 0x104   : > { %2217 = vst [vmem:[%s10699_s6 + $0xee0] sm:$0xff] %v2216_v28  ;;  %v2220_v30 = vld [vmem:[%s10694_s5 + $0x1de0] sm:$0xff]  ;;  %v2222_v31 = vld [vmem:[%s10694_s5 + $0x1df0] sm:$0xff]  ;;  %2219 = vst [vmem:[%s10699_s6 + $0xee8] sm:$0xff] %v2218_v29 }
 0x105   : > { %2221 = vst [vmem:[%s10699_s6 + $0xef0] sm:$0xff] %v2220_v30  ;;  %2223 = vst [vmem:[%s10699_s6 + $0xef8] sm:$0xff] %v2222_v31  ;;  %v2224_v32 = vld [vmem:[%s10694_s5 + $0x1e00] sm:$0xff]  ;;  %v2226_v33 = vld [vmem:[%s10694_s5 + $0x1e10] sm:$0xff] }
 0x106   : > { %v2228_v34 = vld [vmem:[%s10694_s5 + $0x1e20] sm:$0xff]  ;;  %2225 = vst [vmem:[%s10699_s6 + $0xf00] sm:$0xff] %v2224_v32  ;;  %2227 = vst [vmem:[%s10699_s6 + $0xf08] sm:$0xff] %v2226_v33  ;;  %v2230_v35 = vld [vmem:[%s10694_s5 + $0x1e30] sm:$0xff] }
 0x107   : > { %2229 = vst [vmem:[%s10699_s6 + $0xf10] sm:$0xff] %v2228_v34  ;;  %v2232_v36 = vld [vmem:[%s10694_s5 + $0x1e40] sm:$0xff]  ;;  %v2234_v37 = vld [vmem:[%s10694_s5 + $0x1e50] sm:$0xff]  ;;  %2231 = vst [vmem:[%s10699_s6 + $0xf18] sm:$0xff] %v2230_v35 }
 0x108   : > { %2233 = vst [vmem:[%s10699_s6 + $0xf20] sm:$0xff] %v2232_v36  ;;  %2235 = vst [vmem:[%s10699_s6 + $0xf28] sm:$0xff] %v2234_v37  ;;  %v2236_v38 = vld [vmem:[%s10694_s5 + $0x1e60] sm:$0xff]  ;;  %v2238_v39 = vld [vmem:[%s10694_s5 + $0x1e70] sm:$0xff] }
 0x109   : > { %v2240_v40 = vld [vmem:[%s10694_s5 + $0x1e80] sm:$0xff]  ;;  %2237 = vst [vmem:[%s10699_s6 + $0xf30] sm:$0xff] %v2236_v38  ;;  %2239 = vst [vmem:[%s10699_s6 + $0xf38] sm:$0xff] %v2238_v39  ;;  %v2242_v41 = vld [vmem:[%s10694_s5 + $0x1e90] sm:$0xff] }
 0x10a   : > { %2241 = vst [vmem:[%s10699_s6 + $0xf40] sm:$0xff] %v2240_v40  ;;  %v2244_v42 = vld [vmem:[%s10694_s5 + $0x1ea0] sm:$0xff]  ;;  %v2246_v43 = vld [vmem:[%s10694_s5 + $0x1eb0] sm:$0xff]  ;;  %2243 = vst [vmem:[%s10699_s6 + $0xf48] sm:$0xff] %v2242_v41 }
 0x10b   : > { %2245 = vst [vmem:[%s10699_s6 + $0xf50] sm:$0xff] %v2244_v42  ;;  %2247 = vst [vmem:[%s10699_s6 + $0xf58] sm:$0xff] %v2246_v43  ;;  %v2248_v44 = vld [vmem:[%s10694_s5 + $0x1ec0] sm:$0xff]  ;;  %v2250_v45 = vld [vmem:[%s10694_s5 + $0x1ed0] sm:$0xff] }
 0x10c   : > { %v2252_v46 = vld [vmem:[%s10694_s5 + $0x1ee0] sm:$0xff]  ;;  %2249 = vst [vmem:[%s10699_s6 + $0xf60] sm:$0xff] %v2248_v44  ;;  %2251 = vst [vmem:[%s10699_s6 + $0xf68] sm:$0xff] %v2250_v45  ;;  %v2254_v47 = vld [vmem:[%s10694_s5 + $0x1ef0] sm:$0xff] }
 0x10d   : > { %2253 = vst [vmem:[%s10699_s6 + $0xf70] sm:$0xff] %v2252_v46  ;;  %v2256_v48 = vld [vmem:[%s10694_s5 + $0x1f00] sm:$0xff]  ;;  %v2258_v49 = vld [vmem:[%s10694_s5 + $0x1f10] sm:$0xff]  ;;  %2255 = vst [vmem:[%s10699_s6 + $0xf78] sm:$0xff] %v2254_v47 }
 0x10e   : > { %2257 = vst [vmem:[%s10699_s6 + $0xf80] sm:$0xff] %v2256_v48  ;;  %2259 = vst [vmem:[%s10699_s6 + $0xf88] sm:$0xff] %v2258_v49  ;;  %v2260_v50 = vld [vmem:[%s10694_s5 + $0x1f20] sm:$0xff]  ;;  %v2262_v51 = vld [vmem:[%s10694_s5 + $0x1f30] sm:$0xff] }
 0x10f   : > { %v2264_v52 = vld [vmem:[%s10694_s5 + $0x1f40] sm:$0xff]  ;;  %2261 = vst [vmem:[%s10699_s6 + $0xf90] sm:$0xff] %v2260_v50  ;;  %2263 = vst [vmem:[%s10699_s6 + $0xf98] sm:$0xff] %v2262_v51  ;;  %v2266_v53 = vld [vmem:[%s10694_s5 + $0x1f50] sm:$0xff] }
 0x110   : > { %2265 = vst [vmem:[%s10699_s6 + $0xfa0] sm:$0xff] %v2264_v52  ;;  %v2268_v54 = vld [vmem:[%s10694_s5 + $0x1f60] sm:$0xff]  ;;  %v2270_v55 = vld [vmem:[%s10694_s5 + $0x1f70] sm:$0xff]  ;;  %2267 = vst [vmem:[%s10699_s6 + $0xfa8] sm:$0xff] %v2266_v53 }
 0x111   : > { %2269 = vst [vmem:[%s10699_s6 + $0xfb0] sm:$0xff] %v2268_v54  ;;  %2271 = vst [vmem:[%s10699_s6 + $0xfb8] sm:$0xff] %v2270_v55  ;;  %v2272_v56 = vld [vmem:[%s10694_s5 + $0x1f80] sm:$0xff]  ;;  %v2274_v57 = vld [vmem:[%s10694_s5 + $0x1f90] sm:$0xff] }
 0x112   : > { %v2276_v58 = vld [vmem:[%s10694_s5 + $0x1fa0] sm:$0xff]  ;;  %2273 = vst [vmem:[%s10699_s6 + $0xfc0] sm:$0xff] %v2272_v56  ;;  %2275 = vst [vmem:[%s10699_s6 + $0xfc8] sm:$0xff] %v2274_v57  ;;  %v2278_v59 = vld [vmem:[%s10694_s5 + $0x1fb0] sm:$0xff] }
 0x113   : > { %2277 = vst [vmem:[%s10699_s6 + $0xfd0] sm:$0xff] %v2276_v58  ;;  %v2280_v60 = vld [vmem:[%s10694_s5 + $0x1fc0] sm:$0xff]  ;;  %v2282_v61 = vld [vmem:[%s10694_s5 + $0x1fd0] sm:$0xff]  ;;  %2279 = vst [vmem:[%s10699_s6 + $0xfd8] sm:$0xff] %v2278_v59 }
 0x114   : > { %2281 = vst [vmem:[%s10699_s6 + $0xfe0] sm:$0xff] %v2280_v60  ;;  %2283 = vst [vmem:[%s10699_s6 + $0xfe8] sm:$0xff] %v2282_v61  ;;  %v2284_v62 = vld [vmem:[%s10694_s5 + $0x1fe0] sm:$0xff]  ;;  %v2286_v63 = vld [vmem:[%s10694_s5 + $0x1ff0] sm:$0xff] }
 0x115   : > { %2285 = vst [vmem:[%s10699_s6 + $0xff0] sm:$0xff] %v2284_v62  ;;  %2287 = vst [vmem:[%s10699_s6 + $0xff8] sm:$0xff] %v2286_v63 }
 0x116 PF: > { %p9064_p8 = scmp.ge.s32.totalorder %s10619_s19, 1  ;;  %p4392_p9 = scmp.lt.s32.totalorder %s10619_s19, 3 }
 0x118   : > { %p4393_p10 = pnand %p9064_p8, %p4392_p9 }
 0x119   : > { %s4399_s7 = sand.u32 (!%p4393_p10), 1, %s10603_s15   ;;  %v11728_v0 = vld [vmem:[%s12615_s0] sm:$0xff] (!%p4393_p10) }
 0x11a   : > { %4396 = sbr.rel (%p4393_p10) target bundleno = 1040 (0x410), region = 84  ;;  %v11733_v1 = vld [vmem:[%s12615_s0 + $0x80] sm:$0xff] (!%p4393_p10)  ;;  %s9065_s14 = sshll.u32 (!%p4393_p10), %s4399_s7, 12 }
 0x11b   : > { %v11738_v2 = vld [vmem:[%s12615_s0 + $0x40] sm:$0xff] (!%p4393_p10)  ;;  %v9069_v3 = vcombine.low (!%p4393_p10), %v11728_v0, %v11733_v1  ;;  %v9070_v4 = vcombine.high (!%p4393_p10), %v11728_v0, %v11733_v1  ;;  %s11755_s23 = scalar_lea.vmem (!%p4393_p10), [#allocation2], %s9065_s14  ;;  %s9066_s21 = sshll.u32 (!%p4393_p10), %s4399_s7, 6 }
 0x11c   : > { %v11749_v5 = vld [vmem:[%s12615_s0 + $0xc0] sm:$0xff] (!%p4393_p10)  ;;  %v9819_v12 = vld [vmem:[%s11755_s23 + $0x14] ss:$8 sps:$4 sm:$0xff] (!%p4393_p10)   ;;  %v9823_v14 = vld [vmem:[%s11755_s23 + $0x10] ss:$8 sps:$4 sm:$0xff] (!%p4393_p10)   ;;  %s12576_s15 = scalar_lea.vmem (!%p4393_p10), [#allocation3], %s9066_s21 }
 0x11d   : > { %v9085_v6 = vcombine.low (!%p4393_p10), %v11738_v2, %v11749_v5  ;;  %v9086_v7 = vcombine.high (!%p4393_p10), %v11738_v2, %v11749_v5  ;;  %v9813_v8 = vld [vmem:[%s11755_s23 + $0x4] ss:$8 sps:$4 sm:$0xff] (!%p4393_p10)   ;;  %7975 = vmatprep.mubr.bf16.mxu1 (!%p4393_p10), %v9070_v4  ;;  %v9817_v10 = vld [vmem:[%s11755_s23] ss:$8 sps:$4 sm:$0xff] (!%p4393_p10)   ;;  %v9821_v13 = vld [vmem:[%s11755_s23 + $0x814] ss:$8 sps:$4 sm:$0xff] (!%p4393_p10)  }
 0x11e   : > { %v9815_v9 = vld [vmem:[%s11755_s23 + $0x804] ss:$8 sps:$4 sm:$0xff] (!%p4393_p10)   ;;  %7943 = vmatprep.subr.bf16.mxu1 (!%p4393_p10), %v9813_v8  ;;  %v9818_v11 = vld [vmem:[%s11755_s23 + $0x800] ss:$8 sps:$4 sm:$0xff] (!%p4393_p10)   ;;  %v9824_v15 = vld [vmem:[%s11755_s23 + $0x810] ss:$8 sps:$4 sm:$0xff] (!%p4393_p10)  }
 0x11f   : > { %8399 = vmatprep.mubr.bf16.mxu0 (!%p4393_p10), %v9086_v7  ;;  %8367 = vmatprep.subr.bf16.mxu0 (!%p4393_p10), %v9815_v9  ;;  %v9825_v16 = vld [vmem:[%s11755_s23 + $0x24] ss:$8 sps:$4 sm:$0xff] (!%p4393_p10)   ;;  %v9829_v18 = vld [vmem:[%s11755_s23 + $0x20] ss:$8 sps:$4 sm:$0xff] (!%p4393_p10)   ;;  %v9831_v20 = vld [vmem:[%s11755_s23 + $0x34] ss:$8 sps:$4 sm:$0xff] (!%p4393_p10)  }
 0x120   : > { %7944 = vmatpush1.bf16.msra.mxu1 (!%p4393_p10), %v9817_v10  ;;  %8368 = vmatpush1.bf16.msra.mxu0 (!%p4393_p10), %v9818_v11  ;;  %v9827_v17 = vld [vmem:[%s11755_s23 + $0x824] ss:$8 sps:$4 sm:$0xff] (!%p4393_p10)   ;;  %v9830_v19 = vld [vmem:[%s11755_s23 + $0x820] ss:$8 sps:$4 sm:$0xff] (!%p4393_p10)   ;;  %v9833_v21 = vld [vmem:[%s11755_s23 + $0x834] ss:$8 sps:$4 sm:$0xff] (!%p4393_p10)  }
 0x121   : > { %7945 = vmatprep.subr.bf16.mxu1 %v9819_v12  ;;  %8369 = vmatprep.subr.bf16.mxu0 %v9821_v13  ;;  %v9835_v22 = vld [vmem:[%s11755_s23 + $0x30] ss:$8 sps:$4 sm:$0xff]   ;;  %v9837_v24 = vld [vmem:[%s11755_s23 + $0x44] ss:$8 sps:$4 sm:$0xff]   ;;  %v9841_v26 = vld [vmem:[%s11755_s23 + $0x40] ss:$8 sps:$4 sm:$0xff]  }
 0x122   : > { %v9836_v23 = vld [vmem:[%s11755_s23 + $0x830] ss:$8 sps:$4 sm:$0xff]   ;;  %v9839_v25 = vld [vmem:[%s11755_s23 + $0x844] ss:$8 sps:$4 sm:$0xff]   ;;  %v9842_v27 = vld [vmem:[%s11755_s23 + $0x840] ss:$8 sps:$4 sm:$0xff]  }
 0x123   : > { %v9843_v28 = vld [vmem:[%s11755_s23 + $0x54] ss:$8 sps:$4 sm:$0xff]   ;;  %v9847_v30 = vld [vmem:[%s11755_s23 + $0x50] ss:$8 sps:$4 sm:$0xff]   ;;  %v9849_v32 = vld [vmem:[%s11755_s23 + $0x64] ss:$8 sps:$4 sm:$0xff]  }
 0x124   : > { %7946 = vmatpush1.bf16.msra.mxu1 %v9823_v14  ;;  %8370 = vmatpush1.bf16.msra.mxu0 %v9824_v15  ;;  %v9845_v29 = vld [vmem:[%s11755_s23 + $0x854] ss:$8 sps:$4 sm:$0xff]   ;;  %v9848_v31 = vld [vmem:[%s11755_s23 + $0x850] ss:$8 sps:$4 sm:$0xff]   ;;  %v9851_v33 = vld [vmem:[%s11755_s23 + $0x864] ss:$8 sps:$4 sm:$0xff]  }
 0x125   : > { %7947 = vmatprep.subr.bf16.mxu1 %v9825_v16  ;;  %8371 = vmatprep.subr.bf16.mxu0 %v9827_v17  ;;  %v9853_v34 = vld [vmem:[%s11755_s23 + $0x60] ss:$8 sps:$4 sm:$0xff]   ;;  %v9855_v36 = vld [vmem:[%s11755_s23 + $0x74] ss:$8 sps:$4 sm:$0xff]   ;;  %v9859_v38 = vld [vmem:[%s11755_s23 + $0x70] ss:$8 sps:$4 sm:$0xff]  }
 0x126   : > { %v9854_v35 = vld [vmem:[%s11755_s23 + $0x860] ss:$8 sps:$4 sm:$0xff]   ;;  %v9857_v37 = vld [vmem:[%s11755_s23 + $0x874] ss:$8 sps:$4 sm:$0xff]   ;;  %v9860_v39 = vld [vmem:[%s11755_s23 + $0x870] ss:$8 sps:$4 sm:$0xff]  }
 0x127   : > { %v9861_v40 = vld [vmem:[%s11755_s23 + $0x84] ss:$8 sps:$4 sm:$0xff]   ;;  %v9865_v42 = vld [vmem:[%s11755_s23 + $0x80] ss:$8 sps:$4 sm:$0xff]   ;;  %v9867_v44 = vld [vmem:[%s11755_s23 + $0x94] ss:$8 sps:$4 sm:$0xff]  }
 0x128   : > { %7948 = vmatpush1.bf16.msra.mxu1 %v9829_v18  ;;  %8372 = vmatpush1.bf16.msra.mxu0 %v9830_v19  ;;  %v9863_v41 = vld [vmem:[%s11755_s23 + $0x884] ss:$8 sps:$4 sm:$0xff]   ;;  %v9866_v43 = vld [vmem:[%s11755_s23 + $0x880] ss:$8 sps:$4 sm:$0xff]   ;;  %v9869_v45 = vld [vmem:[%s11755_s23 + $0x894] ss:$8 sps:$4 sm:$0xff]  }
 0x129   : > { %7949 = vmatprep.subr.bf16.mxu1 %v9831_v20  ;;  %8373 = vmatprep.subr.bf16.mxu0 %v9833_v21  ;;  %v9871_v46 = vld [vmem:[%s11755_s23 + $0x90] ss:$8 sps:$4 sm:$0xff]   ;;  %v9873_v48 = vld [vmem:[%s11755_s23 + $0xa4] ss:$8 sps:$4 sm:$0xff]   ;;  %v9877_v50 = vld [vmem:[%s11755_s23 + $0xa0] ss:$8 sps:$4 sm:$0xff]  }
 0x12a   : > { %v9872_v47 = vld [vmem:[%s11755_s23 + $0x890] ss:$8 sps:$4 sm:$0xff]   ;;  %v9875_v49 = vld [vmem:[%s11755_s23 + $0x8a4] ss:$8 sps:$4 sm:$0xff]   ;;  %v9878_v51 = vld [vmem:[%s11755_s23 + $0x8a0] ss:$8 sps:$4 sm:$0xff]  }
 0x12b   : > { %v9879_v52 = vld [vmem:[%s11755_s23 + $0xb4] ss:$8 sps:$4 sm:$0xff]   ;;  %v9883_v54 = vld [vmem:[%s11755_s23 + $0xb0] ss:$8 sps:$4 sm:$0xff]   ;;  %v9885_v56 = vld [vmem:[%s11755_s23 + $0xc4] ss:$8 sps:$4 sm:$0xff]  }
 0x12c   : > { %7950 = vmatpush1.bf16.msra.mxu1 %v9835_v22  ;;  %8374 = vmatpush1.bf16.msra.mxu0 %v9836_v23  ;;  %v9881_v53 = vld [vmem:[%s11755_s23 + $0x8b4] ss:$8 sps:$4 sm:$0xff]   ;;  %v9884_v55 = vld [vmem:[%s11755_s23 + $0x8b0] ss:$8 sps:$4 sm:$0xff]   ;;  %v9887_v57 = vld [vmem:[%s11755_s23 + $0x8c4] ss:$8 sps:$4 sm:$0xff]  }
 0x12d   : > { %7951 = vmatprep.subr.bf16.mxu1 %v9837_v24  ;;  %8375 = vmatprep.subr.bf16.mxu0 %v9839_v25  ;;  %v9889_v58 = vld [vmem:[%s11755_s23 + $0xc0] ss:$8 sps:$4 sm:$0xff]   ;;  %v9891_v60 = vld [vmem:[%s11755_s23 + $0xd4] ss:$8 sps:$4 sm:$0xff]   ;;  %v9895_v62 = vld [vmem:[%s11755_s23 + $0xd0] ss:$8 sps:$4 sm:$0xff]  }
 0x12e   : > { %v9890_v59 = vld [vmem:[%s11755_s23 + $0x8c0] ss:$8 sps:$4 sm:$0xff]   ;;  %v9893_v61 = vld [vmem:[%s11755_s23 + $0x8d4] ss:$8 sps:$4 sm:$0xff]   ;;  %v9896_v63 = vld [vmem:[%s11755_s23 + $0x8d0] ss:$8 sps:$4 sm:$0xff]  }
 0x12f   : > { %v9897_v4 = vld [vmem:[%s11755_s23 + $0xe4] ss:$8 sps:$4 sm:$0xff]   ;;  %v9901_v8 = vld [vmem:[%s11755_s23 + $0xe0] ss:$8 sps:$4 sm:$0xff]   ;;  %v9903_v10 = vld [vmem:[%s11755_s23 + $0xf4] ss:$8 sps:$4 sm:$0xff]  }
 0x130   : > { %7952 = vmatpush1.bf16.msra.mxu1 %v9841_v26  ;;  %8376 = vmatpush1.bf16.msra.mxu0 %v9842_v27  ;;  %v9899_v7 = vld [vmem:[%s11755_s23 + $0x8e4] ss:$8 sps:$4 sm:$0xff]   ;;  %v9902_v9 = vld [vmem:[%s11755_s23 + $0x8e0] ss:$8 sps:$4 sm:$0xff]   ;;  %v9905_v11 = vld [vmem:[%s11755_s23 + $0x8f4] ss:$8 sps:$4 sm:$0xff]  }
 0x131   : > { %7953 = vmatprep.subr.bf16.mxu1 %v9843_v28  ;;  %8377 = vmatprep.subr.bf16.mxu0 %v9845_v29  ;;  %v9907_v12 = vld [vmem:[%s11755_s23 + $0xf0] ss:$8 sps:$4 sm:$0xff]   ;;  %v9911_v14 = vld [vmem:[%s11755_s23 + $0x104] ss:$8 sps:$4 sm:$0xff]   ;;  %v9909_v20 = vld [vmem:[%s11755_s23 + $0x100] ss:$8 sps:$4 sm:$0xff]  }
 0x132   : > { %v9908_v13 = vld [vmem:[%s11755_s23 + $0x8f0] ss:$8 sps:$4 sm:$0xff]   ;;  %v9914_v15 = vld [vmem:[%s11755_s23 + $0x904] ss:$8 sps:$4 sm:$0xff]   ;;  %v9912_v21 = vld [vmem:[%s11755_s23 + $0x900] ss:$8 sps:$4 sm:$0xff]  }
 0x133   : > { %v4519_v16 = vld [vmem:[%s12615_s0 + $0x100] sm:$0xff]  ;;  %v9917_v22 = vld [vmem:[%s11755_s23 + $0x114] ss:$8 sps:$4 sm:$0xff]   ;;  %v9915_v26 = vld [vmem:[%s11755_s23 + $0x110] ss:$8 sps:$4 sm:$0xff]   ;;  %s9651_s7 = sshll.u32 (%p10681_p6), %s10611_s17, 4 }
 0x134   : > { %7954 = vmatpush1.bf16.msra.mxu1 %v9847_v30  ;;  %8378 = vmatpush1.bf16.msra.mxu0 %v9848_v31  ;;  %v4535_v17 = vld [vmem:[%s12615_s0 + $0x180] sm:$0xff]  ;;  %v9920_v23 = vld [vmem:[%s11755_s23 + $0x914] ss:$8 sps:$4 sm:$0xff]   ;;  %v9918_v27 = vld [vmem:[%s11755_s23 + $0x910] ss:$8 sps:$4 sm:$0xff]   ;;  %s8902_s27 = scalar_lea.vmem (%p10681_p6), %s12619_s4, %s9651_s7 }
 0x135   : > { %7955 = vmatprep.subr.bf16.mxu1 %v9849_v32  ;;  %8379 = vmatprep.subr.bf16.mxu0 %v9851_v33  ;;  %v4527_v18 = vld [vmem:[%s12615_s0 + $0x140] sm:$0xff]  ;;  %v9102_v24 = vcombine.high %v4519_v16, %v4535_v17  ;;  %v9929_v5 = vld [vmem:[%s11755_s23 + $0x134] ss:$8 sps:$4 sm:$0xff]   ;;  %v9927_v30 = vld [vmem:[%s11755_s23 + $0x130] ss:$8 sps:$4 sm:$0xff]  }
 0x136   : > { %v4543_v19 = vld [vmem:[%s12615_s0 + $0x1c0] sm:$0xff]  ;;  %v9930_v31 = vld [vmem:[%s11755_s23 + $0x930] ss:$8 sps:$4 sm:$0xff]  }
 0x137   : > { %v9118_v25 = vcombine.high %v4527_v18, %v4543_v19  ;;  %v9923_v28 = vld [vmem:[%s11755_s23 + $0x124] ss:$8 sps:$4 sm:$0xff]   ;;  %v9921_v0 = vld [vmem:[%s11755_s23 + $0x120] ss:$8 sps:$4 sm:$0xff]   ;;  %v9117_v2 = vcombine.low %v4527_v18, %v4543_v19  ;;  %v9987_v18 = vld [vmem:[%s11755_s23 + $0x1d0] ss:$8 sps:$4 sm:$0xff]  }
 0x138   : > { %7956 = vmatpush1.bf16.msra.mxu1 %v9853_v34  ;;  %8380 = vmatpush1.bf16.msra.mxu0 %v9854_v35  ;;  %v9926_v29 = vld [vmem:[%s11755_s23 + $0x924] ss:$8 sps:$4 sm:$0xff]   ;;  %v9924_v1 = vld [vmem:[%s11755_s23 + $0x920] ss:$8 sps:$4 sm:$0xff]   ;;  %v9990_v19 = vld [vmem:[%s11755_s23 + $0x9d0] ss:$8 sps:$4 sm:$0xff]  }
 0x139   : > { %7957 = vmatprep.subr.bf16.mxu1 %v9855_v36  ;;  %8381 = vmatprep.subr.bf16.mxu0 %v9857_v37  ;;  %v9935_v32 = vld [vmem:[%s11755_s23 + $0x144] ss:$8 sps:$4 sm:$0xff]   ;;  %v9933_v34 = vld [vmem:[%s11755_s23 + $0x140] ss:$8 sps:$4 sm:$0xff]   ;;  %v9941_v36 = vld [vmem:[%s11755_s23 + $0x154] ss:$8 sps:$4 sm:$0xff]  }
 0x13a   : > { %v9938_v33 = vld [vmem:[%s11755_s23 + $0x944] ss:$8 sps:$4 sm:$0xff]   ;;  %v9936_v35 = vld [vmem:[%s11755_s23 + $0x940] ss:$8 sps:$4 sm:$0xff]   ;;  %v9944_v37 = vld [vmem:[%s11755_s23 + $0x954] ss:$8 sps:$4 sm:$0xff]  }
 0x13c   : > { %7958 = vmatpush1.bf16.msra.mxu1 %v9859_v38  ;;  %8382 = vmatpush1.bf16.msra.mxu0 %v9860_v39  ;;  %v9939_v38 = vld [vmem:[%s11755_s23 + $0x150] ss:$8 sps:$4 sm:$0xff]  }
 0x13d   : > { %7959 = vmatprep.subr.bf16.mxu1 %v9861_v40  ;;  %8383 = vmatprep.subr.bf16.mxu0 %v9863_v41  ;;  %v9942_v39 = vld [vmem:[%s11755_s23 + $0x950] ss:$8 sps:$4 sm:$0xff]   ;;  %v9947_v40 = vld [vmem:[%s11755_s23 + $0x164] ss:$8 sps:$4 sm:$0xff]  }
 0x13e   : > { %v9950_v41 = vld [vmem:[%s11755_s23 + $0x964] ss:$8 sps:$4 sm:$0xff]  }
 0x140   : > { %7960 = vmatpush1.bf16.msra.mxu1 %v9865_v42  ;;  %8384 = vmatpush1.bf16.msra.mxu0 %v9866_v43  ;;  %v11868_v42 = vld [vmem:[%s12615_s0 + $0x8] sm:$0xff] }
 0x141   : > { %7961 = vmatprep.subr.bf16.mxu1 %v9867_v44  ;;  %8385 = vmatprep.subr.bf16.mxu0 %v9869_v45  ;;  %v11873_v43 = vld [vmem:[%s12615_s0 + $0x88] sm:$0xff] }
 0x142   : > { %v9945_v44 = vld [vmem:[%s11755_s23 + $0x160] ss:$8 sps:$4 sm:$0xff]   ;;  %v9072_v45 = vcombine.high %v11868_v42, %v11873_v43 }
 0x144   : > { %7962 = vmatpush1.bf16.msra.mxu1 %v9871_v46  ;;  %8386 = vmatpush1.bf16.msra.mxu0 %v9872_v47  ;;  %v9948_v46 = vld [vmem:[%s11755_s23 + $0x960] ss:$8 sps:$4 sm:$0xff]  }
 0x145   : > { %7963 = vmatprep.subr.bf16.mxu1 %v9873_v48  ;;  %8387 = vmatprep.subr.bf16.mxu0 %v9875_v49  ;;  %v11882_v47 = vld [vmem:[%s12615_s0 + $0x48] sm:$0xff]  ;;  %v9953_v49 = vld [vmem:[%s11755_s23 + $0x174] ss:$8 sps:$4 sm:$0xff]  }
 0x146   : > { %v11887_v48 = vld [vmem:[%s12615_s0 + $0xc8] sm:$0xff] }
 0x148   : > { %7964 = vmatpush1.bf16.msra.mxu1 %v9877_v50  ;;  %8388 = vmatpush1.bf16.msra.mxu0 %v9878_v51  ;;  %v9088_v50 = vcombine.high %v11882_v47, %v11887_v48  ;;  %v9956_v51 = vld [vmem:[%s11755_s23 + $0x974] ss:$8 sps:$4 sm:$0xff]  }
 0x149   : > { %7965 = vmatprep.subr.bf16.mxu1 %v9879_v52  ;;  %8389 = vmatprep.subr.bf16.mxu0 %v9881_v53  ;;  %v9951_v52 = vld [vmem:[%s11755_s23 + $0x170] ss:$8 sps:$4 sm:$0xff]  }
 0x14a   : > { %v9954_v53 = vld [vmem:[%s11755_s23 + $0x970] ss:$8 sps:$4 sm:$0xff]  }
 0x14c   : > { %7966 = vmatpush1.bf16.msra.mxu1 %v9883_v54  ;;  %8390 = vmatpush1.bf16.msra.mxu0 %v9884_v55  ;;  %v9959_v54 = vld [vmem:[%s11755_s23 + $0x184] ss:$8 sps:$4 sm:$0xff]  }
 0x14d   : > { %7967 = vmatprep.subr.bf16.mxu1 %v9885_v56  ;;  %8391 = vmatprep.subr.bf16.mxu0 %v9887_v57  ;;  %v9962_v55 = vld [vmem:[%s11755_s23 + $0x984] ss:$8 sps:$4 sm:$0xff]   ;;  %v9957_v56 = vld [vmem:[%s11755_s23 + $0x180] ss:$8 sps:$4 sm:$0xff]  }
 0x14e   : > { %v9960_v57 = vld [vmem:[%s11755_s23 + $0x980] ss:$8 sps:$4 sm:$0xff]  }
 0x150   : > { %7968 = vmatpush1.bf16.msra.mxu1 %v9889_v58  ;;  %8392 = vmatpush1.bf16.msra.mxu0 %v9890_v59  ;;  %v9965_v58 = vld [vmem:[%s11755_s23 + $0x194] ss:$8 sps:$4 sm:$0xff]  }
 0x151   : > { %7969 = vmatprep.subr.bf16.mxu1 %v9891_v60  ;;  %8393 = vmatprep.subr.bf16.mxu0 %v9893_v61  ;;  %v9968_v59 = vld [vmem:[%s11755_s23 + $0x994] ss:$8 sps:$4 sm:$0xff]   ;;  %v9963_v60 = vld [vmem:[%s11755_s23 + $0x190] ss:$8 sps:$4 sm:$0xff]  }
 0x152   : > { %v9966_v61 = vld [vmem:[%s11755_s23 + $0x990] ss:$8 sps:$4 sm:$0xff]  }
 0x154   : > { %7970 = vmatpush1.bf16.msra.mxu1 %v9895_v62  ;;  %8394 = vmatpush1.bf16.msra.mxu0 %v9896_v63  ;;  %v9971_v62 = vld [vmem:[%s11755_s23 + $0x1a4] ss:$8 sps:$4 sm:$0xff]  }
 0x155   : > { %7971 = vmatprep.subr.bf16.mxu1 %v9897_v4  ;;  %8395 = vmatprep.subr.bf16.mxu0 %v9899_v7  ;;  %v9974_v63 = vld [vmem:[%s11755_s23 + $0x9a4] ss:$8 sps:$4 sm:$0xff]   ;;  %v9969_v4 = vld [vmem:[%s11755_s23 + $0x1a0] ss:$8 sps:$4 sm:$0xff]  }
 0x156   : > { %v9972_v7 = vld [vmem:[%s11755_s23 + $0x9a0] ss:$8 sps:$4 sm:$0xff]  }
 0x158   : > { %7972 = vmatpush1.bf16.msra.mxu1 %v9901_v8  ;;  %8396 = vmatpush1.bf16.msra.mxu0 %v9902_v9  ;;  %v9977_v8 = vld [vmem:[%s11755_s23 + $0x1b4] ss:$8 sps:$4 sm:$0xff]  }
 0x159   : > { %7973 = vmatprep.subr.bf16.mxu1 %v9903_v10  ;;  %8397 = vmatprep.subr.bf16.mxu0 %v9905_v11  ;;  %v9980_v9 = vld [vmem:[%s11755_s23 + $0x9b4] ss:$8 sps:$4 sm:$0xff]   ;;  %v9975_v10 = vld [vmem:[%s11755_s23 + $0x1b0] ss:$8 sps:$4 sm:$0xff]  }
 0x15a   : > { %v9978_v11 = vld [vmem:[%s11755_s23 + $0x9b0] ss:$8 sps:$4 sm:$0xff]  }
 0x15c   : > { %7974 = vmatpush1.bf16.msra.mxu1 %v9907_v12  ;;  %8398 = vmatpush1.bf16.msra.mxu0 %v9908_v13  ;;  %v9983_v12 = vld [vmem:[%s11755_s23 + $0x1c4] ss:$8 sps:$4 sm:$0xff]  }
 0x15d   : > { %7996 = vmatprep.subr.bf16.mxu1 %v9911_v14  ;;  %8420 = vmatprep.subr.bf16.mxu0 %v9914_v15  ;;  %v9986_v13 = vld [vmem:[%s11755_s23 + $0x9c4] ss:$8 sps:$4 sm:$0xff]   ;;  %v9981_v14 = vld [vmem:[%s11755_s23 + $0x1c0] ss:$8 sps:$4 sm:$0xff]  }
 0x15e   : > { %v9984_v15 = vld [vmem:[%s11755_s23 + $0x9c0] ss:$8 sps:$4 sm:$0xff]  }
 0x15f   : > { %7976 = vmatmul.mubr.bf16.vlgmr.msra.gmra.mrb[0].mxu1 %v9069_v3  ;;  %8400 = vmatmul.mubr.bf16.vlgmr.msra.gmra.mrb[0].mxu0 %v9085_v6  ;;  %v9101_v3 = vcombine.low %v4519_v16, %v4535_v17  ;;  %v9932_v6 = vld [vmem:[%s11755_s23 + $0x934] ss:$8 sps:$4 sm:$0xff]  }
 0x160   : > { %7997 = vmatpush1.bf16.msra.mxu1 %v9909_v20  ;;  %8421 = vmatpush1.bf16.msra.mxu0 %v9912_v21  ;;  %v9989_v16 = vld [vmem:[%s11755_s23 + $0x1d4] ss:$8 sps:$4 sm:$0xff]   ;;  %v9995_v20 = vld [vmem:[%s11755_s23 + $0x1e4] ss:$8 sps:$4 sm:$0xff]  }
 0x161   : > { %7998 = vmatprep.subr.bf16.mxu1 %v9917_v22  ;;  %8422 = vmatprep.subr.bf16.mxu0 %v9920_v23  ;;  %v9992_v17 = vld [vmem:[%s11755_s23 + $0x9d4] ss:$8 sps:$4 sm:$0xff]   ;;  %v9998_v21 = vld [vmem:[%s11755_s23 + $0x9e4] ss:$8 sps:$4 sm:$0xff]   ;;  %v9993_v22 = vld [vmem:[%s11755_s23 + $0x1e0] ss:$8 sps:$4 sm:$0xff]  }
 0x162   : > { %7985 = vmatprep.mubr.bf16.mxu1 %v9102_v24  ;;  %8409 = vmatprep.mubr.bf16.mxu0 %v9118_v25  ;;  %v9996_v23 = vld [vmem:[%s11755_s23 + $0x9e0] ss:$8 sps:$4 sm:$0xff]   ;;  %v10001_v24 = vld [vmem:[%s11755_s23 + $0x1f4] ss:$8 sps:$4 sm:$0xff]  }
 0x163   : > { %v10004_v25 = vld [vmem:[%s11755_s23 + $0x9f4] ss:$8 sps:$4 sm:$0xff]  }
 0x164   : > { %7999 = vmatpush1.bf16.msra.mxu1 %v9915_v26  ;;  %8423 = vmatpush1.bf16.msra.mxu0 %v9918_v27  ;;  %v9999_v26 = vld [vmem:[%s11755_s23 + $0x1f0] ss:$8 sps:$4 sm:$0xff]  }
 0x165   : > { %8000 = vmatprep.subr.bf16.mxu1 %v9923_v28  ;;  %8424 = vmatprep.subr.bf16.mxu0 %v9926_v29  ;;  %v10002_v27 = vld [vmem:[%s11755_s23 + $0x9f0] ss:$8 sps:$4 sm:$0xff]   ;;  %v10007_v28 = vld [vmem:[%s11755_s23 + $0x204] ss:$8 sps:$4 sm:$0xff]  }
 0x166   : > { %v10010_v29 = vld [vmem:[%s11755_s23 + $0xa04] ss:$8 sps:$4 sm:$0xff]  }
 0x167   : > { %7986 = vmatmul.mubr.bf16.gmra.mrb[4].mxu1 %v9101_v3  ;;  %8410 = vmatmul.mubr.bf16.gmra.mrb[4].mxu0 %v9117_v2  ;;  %v4520_v3 = vld [vmem:[%s12615_s0 + $0x108] sm:$0xff] }
 0x168   : > { %8001 = vmatpush1.bf16.msra.mxu1 %v9921_v0  ;;  %8425 = vmatpush1.bf16.msra.mxu0 %v9924_v1  ;;  %v10005_v0 = vld [vmem:[%s11755_s23 + $0x200] ss:$8 sps:$4 sm:$0xff]  }
 0x169   : > { %8002 = vmatprep.subr.bf16.mxu1 %v9929_v5  ;;  %8426 = vmatprep.subr.bf16.mxu0 %v9932_v6  ;;  %v10008_v1 = vld [vmem:[%s11755_s23 + $0xa00] ss:$8 sps:$4 sm:$0xff]   ;;  %v9071_v5 = vcombine.low %v11868_v42, %v11873_v43  ;;  %v9087_v6 = vcombine.low %v11882_v47, %v11887_v48  ;;  %v11958_v42 = vld [vmem:[%s12615_s0 + $0x10] sm:$0xff] }
 0x16a   : > { %8028 = vmatprep.mubr.bf16.mxu1 %v9072_v45  ;;  %8452 = vmatprep.mubr.bf16.mxu0 %v9088_v50  ;;  %v4536_v2 = vld [vmem:[%s12615_s0 + $0x188] sm:$0xff]  ;;  %v11963_v43 = vld [vmem:[%s12615_s0 + $0x90] sm:$0xff] }
 0x16b   : > { %v11973_v47 = vld [vmem:[%s12615_s0 + $0xd0] sm:$0xff]  ;;  %v9074_v50 = vcombine.high %v11958_v42, %v11963_v43 }
 0x16c   : > { %8003 = vmatpush1.bf16.msra.mxu1 %v9927_v30  ;;  %8427 = vmatpush1.bf16.msra.mxu0 %v9930_v31  ;;  %v4528_v30 = vld [vmem:[%s12615_s0 + $0x148] sm:$0xff]  ;;  %v10025_v48 = vld [vmem:[%s11755_s23 + $0x234] ss:$8 sps:$4 sm:$0xff]  }
 0x16d   : > { %8004 = vmatprep.subr.bf16.mxu1 %v9935_v32  ;;  %8428 = vmatprep.subr.bf16.mxu0 %v9938_v33  ;;  %v4544_v31 = vld [vmem:[%s12615_s0 + $0x1c8] sm:$0xff]  ;;  %v10013_v32 = vld [vmem:[%s11755_s23 + $0x214] ss:$8 sps:$4 sm:$0xff]  }
 0x16e   : > { %v10016_v33 = vld [vmem:[%s11755_s23 + $0xa14] ss:$8 sps:$4 sm:$0xff]   ;;  %v9119_v45 = vcombine.low %v4528_v30, %v4544_v31 }
 0x170   : > { %8005 = vmatpush1.bf16.msra.mxu1 %v9933_v34  ;;  %8429 = vmatpush1.bf16.msra.mxu0 %v9936_v35  ;;  %v9104_v34 = vcombine.high %v4520_v3, %v4536_v2  ;;  %v9120_v35 = vcombine.high %v4528_v30, %v4544_v31  ;;  %v10091_v30 = vld [vmem:[%s11755_s23 + $0x2e4] ss:$8 sps:$4 sm:$0xff]  }
 0x171   : > { %8006 = vmatprep.subr.bf16.mxu1 %v9941_v36  ;;  %8430 = vmatprep.subr.bf16.mxu0 %v9944_v37  ;;  %v10011_v36 = vld [vmem:[%s11755_s23 + $0x210] ss:$8 sps:$4 sm:$0xff]   ;;  %v10094_v31 = vld [vmem:[%s11755_s23 + $0xae4] ss:$8 sps:$4 sm:$0xff]  }
 0x172   : > { %v10014_v37 = vld [vmem:[%s11755_s23 + $0xa10] ss:$8 sps:$4 sm:$0xff]  }
 0x174   : > { %8007 = vmatpush1.bf16.msra.mxu1 %v9939_v38  ;;  %8431 = vmatpush1.bf16.msra.mxu0 %v9942_v39  ;;  %v10019_v38 = vld [vmem:[%s11755_s23 + $0x224] ss:$8 sps:$4 sm:$0xff]  }
 0x175   : > { %8008 = vmatprep.subr.bf16.mxu1 %v9947_v40  ;;  %8432 = vmatprep.subr.bf16.mxu0 %v9950_v41  ;;  %v10022_v39 = vld [vmem:[%s11755_s23 + $0xa24] ss:$8 sps:$4 sm:$0xff]   ;;  %v10017_v40 = vld [vmem:[%s11755_s23 + $0x220] ss:$8 sps:$4 sm:$0xff]  }
 0x176   : > { %v10020_v41 = vld [vmem:[%s11755_s23 + $0xa20] ss:$8 sps:$4 sm:$0xff]  }
 0x178   : > { %8009 = vmatpush1.bf16.msra.mxu1 %v9945_v44  ;;  %8433 = vmatpush1.bf16.msra.mxu0 %v9948_v46  ;;  %v9103_v44 = vcombine.low %v4520_v3, %v4536_v2  ;;  %v11968_v46 = vld [vmem:[%s12615_s0 + $0x50] sm:$0xff] }
 0x179   : > { %8010 = vmatprep.subr.bf16.mxu1 %v9953_v49  ;;  %8434 = vmatprep.subr.bf16.mxu0 %v9956_v51  ;;  %v10028_v49 = vld [vmem:[%s11755_s23 + $0xa34] ss:$8 sps:$4 sm:$0xff]   ;;  %v9090_v51 = vcombine.high %v11968_v46, %v11973_v47 }
 0x17a   : > { %v10085_v3 = vld [vmem:[%s11755_s23 + $0x2d4] ss:$8 sps:$4 sm:$0xff]  }
 0x17b   : > { %v10088_v2 = vld [vmem:[%s11755_s23 + $0xad4] ss:$8 sps:$4 sm:$0xff]  }
 0x17c   : > { %8011 = vmatpush1.bf16.msra.mxu1 %v9951_v52  ;;  %8435 = vmatpush1.bf16.msra.mxu0 %v9954_v53  ;;  %v10023_v52 = vld [vmem:[%s11755_s23 + $0x230] ss:$8 sps:$4 sm:$0xff]  }
 0x17d   : > { %8012 = vmatprep.subr.bf16.mxu1 %v9959_v54  ;;  %8436 = vmatprep.subr.bf16.mxu0 %v9962_v55  ;;  %v10026_v53 = vld [vmem:[%s11755_s23 + $0xa30] ss:$8 sps:$4 sm:$0xff]   ;;  %v10031_v54 = vld [vmem:[%s11755_s23 + $0x244] ss:$8 sps:$4 sm:$0xff]  }
 0x17e   : > { %v10034_v55 = vld [vmem:[%s11755_s23 + $0xa44] ss:$8 sps:$4 sm:$0xff]  }
 0x180   : > { %8013 = vmatpush1.bf16.msra.mxu1 %v9957_v56  ;;  %8437 = vmatpush1.bf16.msra.mxu0 %v9960_v57  ;;  %v10029_v56 = vld [vmem:[%s11755_s23 + $0x240] ss:$8 sps:$4 sm:$0xff]  }
 0x181   : > { %8014 = vmatprep.subr.bf16.mxu1 %v9965_v58  ;;  %8438 = vmatprep.subr.bf16.mxu0 %v9968_v59  ;;  %v10032_v57 = vld [vmem:[%s11755_s23 + $0xa40] ss:$8 sps:$4 sm:$0xff]   ;;  %v10037_v58 = vld [vmem:[%s11755_s23 + $0x254] ss:$8 sps:$4 sm:$0xff]  }
 0x182   : > { %v10040_v59 = vld [vmem:[%s11755_s23 + $0xa54] ss:$8 sps:$4 sm:$0xff]  }
 0x184   : > { %8015 = vmatpush1.bf16.msra.mxu1 %v9963_v60  ;;  %8439 = vmatpush1.bf16.msra.mxu0 %v9966_v61  ;;  %v10035_v60 = vld [vmem:[%s11755_s23 + $0x250] ss:$8 sps:$4 sm:$0xff]  }
 0x185   : > { %8016 = vmatprep.subr.bf16.mxu1 %v9971_v62  ;;  %8440 = vmatprep.subr.bf16.mxu0 %v9974_v63  ;;  %v10038_v61 = vld [vmem:[%s11755_s23 + $0xa50] ss:$8 sps:$4 sm:$0xff]   ;;  %v10043_v62 = vld [vmem:[%s11755_s23 + $0x264] ss:$8 sps:$4 sm:$0xff]  }
 0x186   : > { %v10046_v63 = vld [vmem:[%s11755_s23 + $0xa64] ss:$8 sps:$4 sm:$0xff]  }
 0x188   : > { %8017 = vmatpush1.bf16.msra.mxu1 %v9969_v4  ;;  %8441 = vmatpush1.bf16.msra.mxu0 %v9972_v7  ;;  %v10041_v4 = vld [vmem:[%s11755_s23 + $0x260] ss:$8 sps:$4 sm:$0xff]  }
 0x189   : > { %8018 = vmatprep.subr.bf16.mxu1 %v9977_v8  ;;  %8442 = vmatprep.subr.bf16.mxu0 %v9980_v9  ;;  %v10044_v7 = vld [vmem:[%s11755_s23 + $0xa60] ss:$8 sps:$4 sm:$0xff]   ;;  %v10049_v8 = vld [vmem:[%s11755_s23 + $0x274] ss:$8 sps:$4 sm:$0xff]  }
 0x18a   : > { %v10052_v9 = vld [vmem:[%s11755_s23 + $0xa74] ss:$8 sps:$4 sm:$0xff]  }
 0x18c   : > { %8019 = vmatpush1.bf16.msra.mxu1 %v9975_v10  ;;  %8443 = vmatpush1.bf16.msra.mxu0 %v9978_v11  ;;  %v10047_v10 = vld [vmem:[%s11755_s23 + $0x270] ss:$8 sps:$4 sm:$0xff]  }
 0x18d   : > { %8020 = vmatprep.subr.bf16.mxu1 %v9983_v12  ;;  %8444 = vmatprep.subr.bf16.mxu0 %v9986_v13  ;;  %v10050_v11 = vld [vmem:[%s11755_s23 + $0xa70] ss:$8 sps:$4 sm:$0xff]   ;;  %v10055_v12 = vld [vmem:[%s11755_s23 + $0x284] ss:$8 sps:$4 sm:$0xff]  }
 0x18e   : > { %v10058_v13 = vld [vmem:[%s11755_s23 + $0xa84] ss:$8 sps:$4 sm:$0xff]  }
 0x190   : > { %8021 = vmatpush1.bf16.msra.mxu1 %v9981_v14  ;;  %8445 = vmatpush1.bf16.msra.mxu0 %v9984_v15  ;;  %v10053_v14 = vld [vmem:[%s11755_s23 + $0x280] ss:$8 sps:$4 sm:$0xff]  }
 0x191   : > { %8022 = vmatprep.subr.bf16.mxu1 %v9989_v16  ;;  %8446 = vmatprep.subr.bf16.mxu0 %v9992_v17  ;;  %v10056_v15 = vld [vmem:[%s11755_s23 + $0xa80] ss:$8 sps:$4 sm:$0xff]   ;;  %v10061_v16 = vld [vmem:[%s11755_s23 + $0x294] ss:$8 sps:$4 sm:$0xff]  }
 0x192   : > { %v10064_v17 = vld [vmem:[%s11755_s23 + $0xa94] ss:$8 sps:$4 sm:$0xff]  }
 0x194   : > { %8023 = vmatpush1.bf16.msra.mxu1 %v9987_v18  ;;  %8447 = vmatpush1.bf16.msra.mxu0 %v9990_v19  ;;  %v10059_v18 = vld [vmem:[%s11755_s23 + $0x290] ss:$8 sps:$4 sm:$0xff]  }
 0x195   : > { %8024 = vmatprep.subr.bf16.mxu1 %v9995_v20  ;;  %8448 = vmatprep.subr.bf16.mxu0 %v9998_v21  ;;  %v10062_v19 = vld [vmem:[%s11755_s23 + $0xa90] ss:$8 sps:$4 sm:$0xff]   ;;  %v10067_v20 = vld [vmem:[%s11755_s23 + $0x2a4] ss:$8 sps:$4 sm:$0xff]  }
 0x196   : > { %v10070_v21 = vld [vmem:[%s11755_s23 + $0xaa4] ss:$8 sps:$4 sm:$0xff]  }
 0x198   : > { %8025 = vmatpush1.bf16.msra.mxu1 %v9993_v22  ;;  %8449 = vmatpush1.bf16.msra.mxu0 %v9996_v23  ;;  %v10065_v22 = vld [vmem:[%s11755_s23 + $0x2a0] ss:$8 sps:$4 sm:$0xff]  }
 0x199   : > { %8026 = vmatprep.subr.bf16.mxu1 %v10001_v24  ;;  %8450 = vmatprep.subr.bf16.mxu0 %v10004_v25  ;;  %v10068_v23 = vld [vmem:[%s11755_s23 + $0xaa0] ss:$8 sps:$4 sm:$0xff]   ;;  %v10073_v24 = vld [vmem:[%s11755_s23 + $0x2b4] ss:$8 sps:$4 sm:$0xff]  }
 0x19a   : > { %v10076_v25 = vld [vmem:[%s11755_s23 + $0xab4] ss:$8 sps:$4 sm:$0xff]  }
 0x19c   : > { %8027 = vmatpush1.bf16.msra.mxu1 %v9999_v26  ;;  %8451 = vmatpush1.bf16.msra.mxu0 %v10002_v27  ;;  %v10071_v26 = vld [vmem:[%s11755_s23 + $0x2b0] ss:$8 sps:$4 sm:$0xff]  }
 0x19d   : > { %8049 = vmatprep.subr.bf16.mxu1 %v10007_v28  ;;  %8473 = vmatprep.subr.bf16.mxu0 %v10010_v29  ;;  %v10074_v27 = vld [vmem:[%s11755_s23 + $0xab0] ss:$8 sps:$4 sm:$0xff]   ;;  %v10079_v28 = vld [vmem:[%s11755_s23 + $0x2c4] ss:$8 sps:$4 sm:$0xff]  }
 0x19e   : > { %v10082_v29 = vld [vmem:[%s11755_s23 + $0xac4] ss:$8 sps:$4 sm:$0xff]  }
 0x19f   : > { %8029 = vmatmul.mubr.bf16.vlgmr.msra.gmra.mrb[0].mxu1 %v9071_v5  ;;  %8453 = vmatmul.mubr.bf16.vlgmr.msra.gmra.mrb[0].mxu0 %v9087_v6  ;;  %v10083_v5 = vld [vmem:[%s11755_s23 + $0x2d0] ss:$8 sps:$4 sm:$0xff]  }
 0x1a0   : > { %8050 = vmatpush1.bf16.msra.mxu1 %v10005_v0  ;;  %8474 = vmatpush1.bf16.msra.mxu0 %v10008_v1  ;;  %v10077_v0 = vld [vmem:[%s11755_s23 + $0x2c0] ss:$8 sps:$4 sm:$0xff]   ;;  %v10086_v6 = vld [vmem:[%s11755_s23 + $0xad0] ss:$8 sps:$4 sm:$0xff]  }
 0x1a1   : > { %8051 = vmatprep.subr.bf16.mxu1 %v10013_v32  ;;  %8475 = vmatprep.subr.bf16.mxu0 %v10016_v33  ;;  %v10080_v1 = vld [vmem:[%s11755_s23 + $0xac0] ss:$8 sps:$4 sm:$0xff]  }
 0x1a2   : > { %8038 = vmatprep.mubr.bf16.mxu1 %v9104_v34  ;;  %8462 = vmatprep.mubr.bf16.mxu0 %v9120_v35  ;;  %v10089_v32 = vld [vmem:[%s11755_s23 + $0x2e0] ss:$8 sps:$4 sm:$0xff]   ;;  %v10097_v34 = vld [vmem:[%s11755_s23 + $0x2f4] ss:$8 sps:$4 sm:$0xff]  }
 0x1a3   : > { %v10092_v33 = vld [vmem:[%s11755_s23 + $0xae0] ss:$8 sps:$4 sm:$0xff]   ;;  %v10100_v35 = vld [vmem:[%s11755_s23 + $0xaf4] ss:$8 sps:$4 sm:$0xff]  }
 0x1a4   : > { %8052 = vmatpush1.bf16.msra.mxu1 %v10011_v36  ;;  %8476 = vmatpush1.bf16.msra.mxu0 %v10014_v37  ;;  %v10095_v36 = vld [vmem:[%s11755_s23 + $0x2f0] ss:$8 sps:$4 sm:$0xff]  }
 0x1a5   : > { %8053 = vmatprep.subr.bf16.mxu1 %v10019_v38  ;;  %8477 = vmatprep.subr.bf16.mxu0 %v10022_v39  ;;  %v10098_v37 = vld [vmem:[%s11755_s23 + $0xaf0] ss:$8 sps:$4 sm:$0xff]   ;;  %v10103_v38 = vld [vmem:[%s11755_s23 + $0x304] ss:$8 sps:$4 sm:$0xff]  }
 0x1a6   : > { %v10106_v39 = vld [vmem:[%s11755_s23 + $0xb04] ss:$8 sps:$4 sm:$0xff]  }
 0x1a7   : > { %8039 = vmatmul.mubr.bf16.gmra.mrb[4].mxu1 %v9103_v44  ;;  %8463 = vmatmul.mubr.bf16.gmra.mrb[4].mxu0 %v9119_v45  ;;  %v4521_v44 = vld [vmem:[%s12615_s0 + $0x110] sm:$0xff] }
 0x1a8   : > { %8054 = vmatpush1.bf16.msra.mxu1 %v10017_v40  ;;  %8478 = vmatpush1.bf16.msra.mxu0 %v10020_v41  ;;  %v10101_v40 = vld [vmem:[%s11755_s23 + $0x300] ss:$8 sps:$4 sm:$0xff]   ;;  %v4537_v45 = vld [vmem:[%s12615_s0 + $0x190] sm:$0xff] }
 0x1a9   : > { %8055 = vmatprep.subr.bf16.mxu1 %v10025_v48  ;;  %8479 = vmatprep.subr.bf16.mxu0 %v10028_v49  ;;  %v10104_v41 = vld [vmem:[%s11755_s23 + $0xb00] ss:$8 sps:$4 sm:$0xff]   ;;  %v9073_v48 = vcombine.low %v11958_v42, %v11963_v43  ;;  %v9089_v49 = vcombine.low %v11968_v46, %v11973_v47  ;;  %v10112_v42 = vld [vmem:[%s11755_s23 + $0xb14] ss:$8 sps:$4 sm:$0xff]   ;;  %v9106_v43 = vcombine.high %v4521_v44, %v4537_v45  ;;  %v10107_v47 = vld [vmem:[%s11755_s23 + $0x310] ss:$8 sps:$4 sm:$0xff]  }
 0x1aa   : > { %8081 = vmatprep.mubr.bf16.mxu1 %v9074_v50  ;;  %8505 = vmatprep.mubr.bf16.mxu0 %v9090_v51  ;;  %v4529_v50 = vld [vmem:[%s12615_s0 + $0x150] sm:$0xff] }
 0x1ab   : > { %v4545_v51 = vld [vmem:[%s12615_s0 + $0x1d0] sm:$0xff] }
 0x1ac   : > { %8056 = vmatpush1.bf16.msra.mxu1 %v10023_v52  ;;  %8480 = vmatpush1.bf16.msra.mxu0 %v10026_v53  ;;  %v10109_v52 = vld [vmem:[%s11755_s23 + $0x314] ss:$8 sps:$4 sm:$0xff]   ;;  %v9122_v46 = vcombine.high %v4529_v50, %v4545_v51  ;;  %v10110_v53 = vld [vmem:[%s11755_s23 + $0xb10] ss:$8 sps:$4 sm:$0xff]  }
 0x1ad   : > { %8057 = vmatprep.subr.bf16.mxu1 %v10031_v54  ;;  %8481 = vmatprep.subr.bf16.mxu0 %v10034_v55  ;;  %v10115_v54 = vld [vmem:[%s11755_s23 + $0x324] ss:$8 sps:$4 sm:$0xff]  }
 0x1ae   : > { %v10118_v55 = vld [vmem:[%s11755_s23 + $0xb24] ss:$8 sps:$4 sm:$0xff]  }
 0x1b0   : > { %8058 = vmatpush1.bf16.msra.mxu1 %v10029_v56  ;;  %8482 = vmatpush1.bf16.msra.mxu0 %v10032_v57  ;;  %v10113_v56 = vld [vmem:[%s11755_s23 + $0x320] ss:$8 sps:$4 sm:$0xff]  }
 0x1b1   : > { %8059 = vmatprep.subr.bf16.mxu1 %v10037_v58  ;;  %8483 = vmatprep.subr.bf16.mxu0 %v10040_v59  ;;  %v10116_v57 = vld [vmem:[%s11755_s23 + $0xb20] ss:$8 sps:$4 sm:$0xff]   ;;  %v12062_v58 = vld [vmem:[%s12615_s0 + $0x18] sm:$0xff] }
 0x1b2   : > { %v12067_v59 = vld [vmem:[%s12615_s0 + $0x98] sm:$0xff] }
 0x1b4   : > { %8060 = vmatpush1.bf16.msra.mxu1 %v10035_v60  ;;  %8484 = vmatpush1.bf16.msra.mxu0 %v10038_v61  ;;  %v9105_v60 = vcombine.low %v4521_v44, %v4537_v45  ;;  %v9121_v61 = vcombine.low %v4529_v50, %v4545_v51  ;;  %v10181_v44 = vld [vmem:[%s11755_s23 + $0x3d4] ss:$8 sps:$4 sm:$0xff]   ;;  %v10187_v50 = vld [vmem:[%s11755_s23 + $0x3e4] ss:$8 sps:$4 sm:$0xff]  }
 0x1b5   : > { %8061 = vmatprep.subr.bf16.mxu1 %v10043_v62  ;;  %8485 = vmatprep.subr.bf16.mxu0 %v10046_v63  ;;  %v12072_v62 = vld [vmem:[%s12615_s0 + $0x58] sm:$0xff]  ;;  %v10190_v51 = vld [vmem:[%s11755_s23 + $0xbe4] ss:$8 sps:$4 sm:$0xff]  }
 0x1b6   : > { %v12077_v63 = vld [vmem:[%s12615_s0 + $0xd8] sm:$0xff] }
 0x1b7   : > { %v10184_v45 = vld [vmem:[%s11755_s23 + $0xbd4] ss:$8 sps:$4 sm:$0xff]  }
 0x1b8   : > { %8062 = vmatpush1.bf16.msra.mxu1 %v10041_v4  ;;  %8486 = vmatpush1.bf16.msra.mxu0 %v10044_v7  ;;  %v10121_v4 = vld [vmem:[%s11755_s23 + $0x334] ss:$8 sps:$4 sm:$0xff]  }
 0x1b9   : > { %8063 = vmatprep.subr.bf16.mxu1 %v10049_v8  ;;  %8487 = vmatprep.subr.bf16.mxu0 %v10052_v9  ;;  %v10124_v7 = vld [vmem:[%s11755_s23 + $0xb34] ss:$8 sps:$4 sm:$0xff]   ;;  %v9076_v8 = vcombine.high %v12062_v58, %v12067_v59  ;;  %v9092_v9 = vcombine.high %v12072_v62, %v12077_v63 }
 0x1bc   : > { %8064 = vmatpush1.bf16.msra.mxu1 %v10047_v10  ;;  %8488 = vmatpush1.bf16.msra.mxu0 %v10050_v11  ;;  %v10119_v10 = vld [vmem:[%s11755_s23 + $0x330] ss:$8 sps:$4 sm:$0xff]  }
 0x1bd   : > { %8065 = vmatprep.subr.bf16.mxu1 %v10055_v12  ;;  %8489 = vmatprep.subr.bf16.mxu0 %v10058_v13  ;;  %v10122_v11 = vld [vmem:[%s11755_s23 + $0xb30] ss:$8 sps:$4 sm:$0xff]   ;;  %v10127_v12 = vld [vmem:[%s11755_s23 + $0x344] ss:$8 sps:$4 sm:$0xff]  }
 0x1be   : > { %v10130_v13 = vld [vmem:[%s11755_s23 + $0xb44] ss:$8 sps:$4 sm:$0xff]  }
 0x1c0   : > { %8066 = vmatpush1.bf16.msra.mxu1 %v10053_v14  ;;  %8490 = vmatpush1.bf16.msra.mxu0 %v10056_v15  ;;  %v10125_v14 = vld [vmem:[%s11755_s23 + $0x340] ss:$8 sps:$4 sm:$0xff]  }
 0x1c1   : > { %8067 = vmatprep.subr.bf16.mxu1 %v10061_v16  ;;  %8491 = vmatprep.subr.bf16.mxu0 %v10064_v17  ;;  %v10128_v15 = vld [vmem:[%s11755_s23 + $0xb40] ss:$8 sps:$4 sm:$0xff]   ;;  %v10133_v16 = vld [vmem:[%s11755_s23 + $0x354] ss:$8 sps:$4 sm:$0xff]  }
 0x1c2   : > { %v10136_v17 = vld [vmem:[%s11755_s23 + $0xb54] ss:$8 sps:$4 sm:$0xff]  }
 0x1c4   : > { %8068 = vmatpush1.bf16.msra.mxu1 %v10059_v18  ;;  %8492 = vmatpush1.bf16.msra.mxu0 %v10062_v19  ;;  %v10131_v18 = vld [vmem:[%s11755_s23 + $0x350] ss:$8 sps:$4 sm:$0xff]  }
 0x1c5   : > { %8069 = vmatprep.subr.bf16.mxu1 %v10067_v20  ;;  %8493 = vmatprep.subr.bf16.mxu0 %v10070_v21  ;;  %v10134_v19 = vld [vmem:[%s11755_s23 + $0xb50] ss:$8 sps:$4 sm:$0xff]   ;;  %v10139_v20 = vld [vmem:[%s11755_s23 + $0x364] ss:$8 sps:$4 sm:$0xff]  }
 0x1c6   : > { %v10142_v21 = vld [vmem:[%s11755_s23 + $0xb64] ss:$8 sps:$4 sm:$0xff]  }
 0x1c8   : > { %8070 = vmatpush1.bf16.msra.mxu1 %v10065_v22  ;;  %8494 = vmatpush1.bf16.msra.mxu0 %v10068_v23  ;;  %v10137_v22 = vld [vmem:[%s11755_s23 + $0x360] ss:$8 sps:$4 sm:$0xff]  }
 0x1c9   : > { %8071 = vmatprep.subr.bf16.mxu1 %v10073_v24  ;;  %8495 = vmatprep.subr.bf16.mxu0 %v10076_v25  ;;  %v10140_v23 = vld [vmem:[%s11755_s23 + $0xb60] ss:$8 sps:$4 sm:$0xff]   ;;  %v10145_v24 = vld [vmem:[%s11755_s23 + $0x374] ss:$8 sps:$4 sm:$0xff]  }
 0x1ca   : > { %v10148_v25 = vld [vmem:[%s11755_s23 + $0xb74] ss:$8 sps:$4 sm:$0xff]  }
 0x1cc   : > { %8072 = vmatpush1.bf16.msra.mxu1 %v10071_v26  ;;  %8496 = vmatpush1.bf16.msra.mxu0 %v10074_v27  ;;  %v10143_v26 = vld [vmem:[%s11755_s23 + $0x370] ss:$8 sps:$4 sm:$0xff]  }
 0x1cd   : > { %8073 = vmatprep.subr.bf16.mxu1 %v10079_v28  ;;  %8497 = vmatprep.subr.bf16.mxu0 %v10082_v29  ;;  %v10146_v27 = vld [vmem:[%s11755_s23 + $0xb70] ss:$8 sps:$4 sm:$0xff]   ;;  %v10151_v28 = vld [vmem:[%s11755_s23 + $0x384] ss:$8 sps:$4 sm:$0xff]  }
 0x1ce   : > { %v10154_v29 = vld [vmem:[%s11755_s23 + $0xb84] ss:$8 sps:$4 sm:$0xff]  }
 0x1d0   : > { %8074 = vmatpush1.bf16.msra.mxu1 %v10077_v0  ;;  %8498 = vmatpush1.bf16.msra.mxu0 %v10080_v1  ;;  %v10149_v0 = vld [vmem:[%s11755_s23 + $0x380] ss:$8 sps:$4 sm:$0xff]  }
 0x1d1   : > { %8075 = vmatprep.subr.bf16.mxu1 %v10085_v3  ;;  %8499 = vmatprep.subr.bf16.mxu0 %v10088_v2  ;;  %v10152_v1 = vld [vmem:[%s11755_s23 + $0xb80] ss:$8 sps:$4 sm:$0xff]   ;;  %v10157_v3 = vld [vmem:[%s11755_s23 + $0x394] ss:$8 sps:$4 sm:$0xff]  }
 0x1d2   : > { %v10160_v2 = vld [vmem:[%s11755_s23 + $0xb94] ss:$8 sps:$4 sm:$0xff]  }
 0x1d4   : > { %8076 = vmatpush1.bf16.msra.mxu1 %v10083_v5  ;;  %8500 = vmatpush1.bf16.msra.mxu0 %v10086_v6  ;;  %v10155_v5 = vld [vmem:[%s11755_s23 + $0x390] ss:$8 sps:$4 sm:$0xff]  }
 0x1d5   : > { %8077 = vmatprep.subr.bf16.mxu1 %v10091_v30  ;;  %8501 = vmatprep.subr.bf16.mxu0 %v10094_v31  ;;  %v10158_v6 = vld [vmem:[%s11755_s23 + $0xb90] ss:$8 sps:$4 sm:$0xff]   ;;  %v10163_v30 = vld [vmem:[%s11755_s23 + $0x3a4] ss:$8 sps:$4 sm:$0xff]  }
 0x1d6   : > { %v10166_v31 = vld [vmem:[%s11755_s23 + $0xba4] ss:$8 sps:$4 sm:$0xff]  }
 0x1d8   : > { %8078 = vmatpush1.bf16.msra.mxu1 %v10089_v32  ;;  %8502 = vmatpush1.bf16.msra.mxu0 %v10092_v33  ;;  %v10161_v32 = vld [vmem:[%s11755_s23 + $0x3a0] ss:$8 sps:$4 sm:$0xff]  }
 0x1d9   : > { %8079 = vmatprep.subr.bf16.mxu1 %v10097_v34  ;;  %8503 = vmatprep.subr.bf16.mxu0 %v10100_v35  ;;  %v10164_v33 = vld [vmem:[%s11755_s23 + $0xba0] ss:$8 sps:$4 sm:$0xff]   ;;  %v10169_v34 = vld [vmem:[%s11755_s23 + $0x3b4] ss:$8 sps:$4 sm:$0xff]  }
 0x1da   : > { %v10172_v35 = vld [vmem:[%s11755_s23 + $0xbb4] ss:$8 sps:$4 sm:$0xff]  }
 0x1dc   : > { %8080 = vmatpush1.bf16.msra.mxu1 %v10095_v36  ;;  %8504 = vmatpush1.bf16.msra.mxu0 %v10098_v37  ;;  %v10167_v36 = vld [vmem:[%s11755_s23 + $0x3b0] ss:$8 sps:$4 sm:$0xff]  }
 0x1dd   : > { %8102 = vmatprep.subr.bf16.mxu1 %v10103_v38  ;;  %8526 = vmatprep.subr.bf16.mxu0 %v10106_v39  ;;  %v10170_v37 = vld [vmem:[%s11755_s23 + $0xbb0] ss:$8 sps:$4 sm:$0xff]   ;;  %v10175_v38 = vld [vmem:[%s11755_s23 + $0x3c4] ss:$8 sps:$4 sm:$0xff]  }
 0x1de   : > { %v10178_v39 = vld [vmem:[%s11755_s23 + $0xbc4] ss:$8 sps:$4 sm:$0xff]  }
 0x1df   : > { %8082 = vmatmul.mubr.bf16.vlgmr.msra.gmra.mrb[0].mxu1 %v9073_v48  ;;  %8506 = vmatmul.mubr.bf16.vlgmr.msra.gmra.mrb[0].mxu0 %v9089_v49  ;;  %v10179_v48 = vld [vmem:[%s11755_s23 + $0x3d0] ss:$8 sps:$4 sm:$0xff]  }
 0x1e0   : > { %8103 = vmatpush1.bf16.msra.mxu1 %v10101_v40  ;;  %8527 = vmatpush1.bf16.msra.mxu0 %v10104_v41  ;;  %v10173_v40 = vld [vmem:[%s11755_s23 + $0x3c0] ss:$8 sps:$4 sm:$0xff]   ;;  %v10182_v49 = vld [vmem:[%s11755_s23 + $0xbd0] ss:$8 sps:$4 sm:$0xff]  }
 0x1e1   : > { %8104 = vmatprep.subr.bf16.mxu1 %v10109_v52  ;;  %8528 = vmatprep.subr.bf16.mxu0 %v10112_v42  ;;  %v10176_v41 = vld [vmem:[%s11755_s23 + $0xbc0] ss:$8 sps:$4 sm:$0xff]  }
 0x1e2   : > { %8091 = vmatprep.mubr.bf16.mxu1 %v9106_v43  ;;  %8515 = vmatprep.mubr.bf16.mxu0 %v9122_v46  ;;  %v10185_v52 = vld [vmem:[%s11755_s23 + $0x3e0] ss:$8 sps:$4 sm:$0xff]   ;;  %v10193_v43 = vld [vmem:[%s11755_s23 + $0x3f4] ss:$8 sps:$4 sm:$0xff]  }
 0x1e3   : > { %v10188_v42 = vld [vmem:[%s11755_s23 + $0xbe0] ss:$8 sps:$4 sm:$0xff]   ;;  %v10196_v46 = vld [vmem:[%s11755_s23 + $0xbf4] ss:$8 sps:$4 sm:$0xff]  }
 0x1e4   : > { %8105 = vmatpush1.bf16.msra.mxu1 %v10107_v47  ;;  %8529 = vmatpush1.bf16.msra.mxu0 %v10110_v53  ;;  %v10191_v47 = vld [vmem:[%s11755_s23 + $0x3f0] ss:$8 sps:$4 sm:$0xff]  }
 0x1e5   : > { %8106 = vmatprep.subr.bf16.mxu1 %v10115_v54  ;;  %8530 = vmatprep.subr.bf16.mxu0 %v10118_v55  ;;  %v10194_v53 = vld [vmem:[%s11755_s23 + $0xbf0] ss:$8 sps:$4 sm:$0xff]   ;;  %v10199_v54 = vld [vmem:[%s11755_s23 + $0x404] ss:$8 sps:$4 sm:$0xff]  }
 0x1e6   : > { %v10202_v55 = vld [vmem:[%s11755_s23 + $0xc04] ss:$8 sps:$4 sm:$0xff]  }
 0x1e7   : > { %8092 = vmatmul.mubr.bf16.gmra.mrb[4].mxu1 %v9105_v60  ;;  %8516 = vmatmul.mubr.bf16.gmra.mrb[4].mxu0 %v9121_v61  ;;  %v4522_v60 = vld [vmem:[%s12615_s0 + $0x118] sm:$0xff] }
 0x1e8   : > { %8107 = vmatpush1.bf16.msra.mxu1 %v10113_v56  ;;  %8531 = vmatpush1.bf16.msra.mxu0 %v10116_v57  ;;  %v10197_v56 = vld [vmem:[%s11755_s23 + $0x400] ss:$8 sps:$4 sm:$0xff]   ;;  %v4538_v61 = vld [vmem:[%s12615_s0 + $0x198] sm:$0xff] }
 0x1e9   : > { %8108 = vmatprep.subr.bf16.mxu1 %v10121_v4  ;;  %8532 = vmatprep.subr.bf16.mxu0 %v10124_v7  ;;  %v10200_v57 = vld [vmem:[%s11755_s23 + $0xc00] ss:$8 sps:$4 sm:$0xff]   ;;  %v9075_v4 = vcombine.low %v12062_v58, %v12067_v59  ;;  %v9091_v7 = vcombine.low %v12072_v62, %v12077_v63  ;;  %v10208_v58 = vld [vmem:[%s11755_s23 + $0xc14] ss:$8 sps:$4 sm:$0xff]   ;;  %v9108_v59 = vcombine.high %v4522_v60, %v4538_v61  ;;  %v10203_v63 = vld [vmem:[%s11755_s23 + $0x410] ss:$8 sps:$4 sm:$0xff]  }
 0x1ea   : > { %8134 = vmatprep.mubr.bf16.mxu1 %v9076_v8  ;;  %8558 = vmatprep.mubr.bf16.mxu0 %v9092_v9  ;;  %v4530_v8 = vld [vmem:[%s12615_s0 + $0x158] sm:$0xff] }
 0x1eb   : > { %v4546_v9 = vld [vmem:[%s12615_s0 + $0x1d8] sm:$0xff] }
 0x1ec   : > { %8109 = vmatpush1.bf16.msra.mxu1 %v10119_v10  ;;  %8533 = vmatpush1.bf16.msra.mxu0 %v10122_v11  ;;  %v10205_v10 = vld [vmem:[%s11755_s23 + $0x414] ss:$8 sps:$4 sm:$0xff]   ;;  %v9124_v62 = vcombine.high %v4530_v8, %v4546_v9  ;;  %v10206_v11 = vld [vmem:[%s11755_s23 + $0xc10] ss:$8 sps:$4 sm:$0xff]  }
 0x1ed   : > { %8110 = vmatprep.subr.bf16.mxu1 %v10127_v12  ;;  %8534 = vmatprep.subr.bf16.mxu0 %v10130_v13  ;;  %v10211_v12 = vld [vmem:[%s11755_s23 + $0x424] ss:$8 sps:$4 sm:$0xff]  }
 0x1ee   : > { %v10214_v13 = vld [vmem:[%s11755_s23 + $0xc24] ss:$8 sps:$4 sm:$0xff]  }
 0x1f0   : > { %8111 = vmatpush1.bf16.msra.mxu1 %v10125_v14  ;;  %8535 = vmatpush1.bf16.msra.mxu0 %v10128_v15  ;;  %v10209_v14 = vld [vmem:[%s11755_s23 + $0x420] ss:$8 sps:$4 sm:$0xff]  }
 0x1f1   : > { %8112 = vmatprep.subr.bf16.mxu1 %v10133_v16  ;;  %8536 = vmatprep.subr.bf16.mxu0 %v10136_v17  ;;  %v10212_v15 = vld [vmem:[%s11755_s23 + $0xc20] ss:$8 sps:$4 sm:$0xff]  }
 0x1f2   : > { %v12166_v16 = vld [vmem:[%s12615_s0 + $0x20] sm:$0xff] }
 0x1f3   : > { %v12171_v17 = vld [vmem:[%s12615_s0 + $0xa0] sm:$0xff] }
 0x1f4   : > { %8113 = vmatpush1.bf16.msra.mxu1 %v10131_v18  ;;  %8537 = vmatpush1.bf16.msra.mxu0 %v10134_v19  ;;  %v9107_v18 = vcombine.low %v4522_v60, %v4538_v61  ;;  %v9123_v19 = vcombine.low %v4530_v8, %v4546_v9  ;;  %v10277_v60 = vld [vmem:[%s11755_s23 + $0x4d4] ss:$8 sps:$4 sm:$0xff]   ;;  %v10283_v8 = vld [vmem:[%s11755_s23 + $0x4e4] ss:$8 sps:$4 sm:$0xff]  }
 0x1f5   : > { %8114 = vmatprep.subr.bf16.mxu1 %v10139_v20  ;;  %8538 = vmatprep.subr.bf16.mxu0 %v10142_v21  ;;  %v12176_v20 = vld [vmem:[%s12615_s0 + $0x60] sm:$0xff]  ;;  %v10280_v61 = vld [vmem:[%s11755_s23 + $0xcd4] ss:$8 sps:$4 sm:$0xff]  }
 0x1f6   : > { %v12181_v21 = vld [vmem:[%s12615_s0 + $0xe0] sm:$0xff] }
 0x1f7   : > { %v10286_v9 = vld [vmem:[%s11755_s23 + $0xce4] ss:$8 sps:$4 sm:$0xff]  }
 0x1f8   : > { %8115 = vmatpush1.bf16.msra.mxu1 %v10137_v22  ;;  %8539 = vmatpush1.bf16.msra.mxu0 %v10140_v23  ;;  %v10217_v22 = vld [vmem:[%s11755_s23 + $0x434] ss:$8 sps:$4 sm:$0xff]  }
 0x1f9   : > { %8116 = vmatprep.subr.bf16.mxu1 %v10145_v24  ;;  %8540 = vmatprep.subr.bf16.mxu0 %v10148_v25  ;;  %v10220_v23 = vld [vmem:[%s11755_s23 + $0xc34] ss:$8 sps:$4 sm:$0xff]   ;;  %v9078_v24 = vcombine.high %v12166_v16, %v12171_v17  ;;  %v9094_v25 = vcombine.high %v12176_v20, %v12181_v21 }
 0x1fc   : > { %8117 = vmatpush1.bf16.msra.mxu1 %v10143_v26  ;;  %8541 = vmatpush1.bf16.msra.mxu0 %v10146_v27  ;;  %v10215_v26 = vld [vmem:[%s11755_s23 + $0x430] ss:$8 sps:$4 sm:$0xff]  }
 0x1fd   : > { %8118 = vmatprep.subr.bf16.mxu1 %v10151_v28  ;;  %8542 = vmatprep.subr.bf16.mxu0 %v10154_v29  ;;  %v10218_v27 = vld [vmem:[%s11755_s23 + $0xc30] ss:$8 sps:$4 sm:$0xff]   ;;  %v10223_v28 = vld [vmem:[%s11755_s23 + $0x444] ss:$8 sps:$4 sm:$0xff]  }
 0x1fe   : > { %v10226_v29 = vld [vmem:[%s11755_s23 + $0xc44] ss:$8 sps:$4 sm:$0xff]  }
 0x200   : > { %8119 = vmatpush1.bf16.msra.mxu1 %v10149_v0  ;;  %8543 = vmatpush1.bf16.msra.mxu0 %v10152_v1  ;;  %v10221_v0 = vld [vmem:[%s11755_s23 + $0x440] ss:$8 sps:$4 sm:$0xff]  }
 0x201   : > { %8120 = vmatprep.subr.bf16.mxu1 %v10157_v3  ;;  %8544 = vmatprep.subr.bf16.mxu0 %v10160_v2  ;;  %v10224_v1 = vld [vmem:[%s11755_s23 + $0xc40] ss:$8 sps:$4 sm:$0xff]   ;;  %v10229_v3 = vld [vmem:[%s11755_s23 + $0x454] ss:$8 sps:$4 sm:$0xff]  }
 0x202   : > { %v10232_v2 = vld [vmem:[%s11755_s23 + $0xc54] ss:$8 sps:$4 sm:$0xff]  }
 0x204   : > { %8121 = vmatpush1.bf16.msra.mxu1 %v10155_v5  ;;  %8545 = vmatpush1.bf16.msra.mxu0 %v10158_v6  ;;  %v10227_v5 = vld [vmem:[%s11755_s23 + $0x450] ss:$8 sps:$4 sm:$0xff]  }
 0x205   : > { %8122 = vmatprep.subr.bf16.mxu1 %v10163_v30  ;;  %8546 = vmatprep.subr.bf16.mxu0 %v10166_v31  ;;  %v10230_v6 = vld [vmem:[%s11755_s23 + $0xc50] ss:$8 sps:$4 sm:$0xff]   ;;  %v10235_v30 = vld [vmem:[%s11755_s23 + $0x464] ss:$8 sps:$4 sm:$0xff]  }
 0x206   : > { %v10238_v31 = vld [vmem:[%s11755_s23 + $0xc64] ss:$8 sps:$4 sm:$0xff]  }
 0x208   : > { %8123 = vmatpush1.bf16.msra.mxu1 %v10161_v32  ;;  %8547 = vmatpush1.bf16.msra.mxu0 %v10164_v33  ;;  %v10233_v32 = vld [vmem:[%s11755_s23 + $0x460] ss:$8 sps:$4 sm:$0xff]  }
 0x209   : > { %8124 = vmatprep.subr.bf16.mxu1 %v10169_v34  ;;  %8548 = vmatprep.subr.bf16.mxu0 %v10172_v35  ;;  %v10236_v33 = vld [vmem:[%s11755_s23 + $0xc60] ss:$8 sps:$4 sm:$0xff]   ;;  %v10241_v34 = vld [vmem:[%s11755_s23 + $0x474] ss:$8 sps:$4 sm:$0xff]  }
 0x20a   : > { %v10244_v35 = vld [vmem:[%s11755_s23 + $0xc74] ss:$8 sps:$4 sm:$0xff]  }
 0x20c   : > { %8125 = vmatpush1.bf16.msra.mxu1 %v10167_v36  ;;  %8549 = vmatpush1.bf16.msra.mxu0 %v10170_v37  ;;  %v10239_v36 = vld [vmem:[%s11755_s23 + $0x470] ss:$8 sps:$4 sm:$0xff]  }
 0x20d   : > { %8126 = vmatprep.subr.bf16.mxu1 %v10175_v38  ;;  %8550 = vmatprep.subr.bf16.mxu0 %v10178_v39  ;;  %v10242_v37 = vld [vmem:[%s11755_s23 + $0xc70] ss:$8 sps:$4 sm:$0xff]   ;;  %v10247_v38 = vld [vmem:[%s11755_s23 + $0x484] ss:$8 sps:$4 sm:$0xff]  }
 0x20e   : > { %v10250_v39 = vld [vmem:[%s11755_s23 + $0xc84] ss:$8 sps:$4 sm:$0xff]  }
 0x210   : > { %8127 = vmatpush1.bf16.msra.mxu1 %v10173_v40  ;;  %8551 = vmatpush1.bf16.msra.mxu0 %v10176_v41  ;;  %v10245_v40 = vld [vmem:[%s11755_s23 + $0x480] ss:$8 sps:$4 sm:$0xff]  }
 0x211   : > { %8128 = vmatprep.subr.bf16.mxu1 %v10181_v44  ;;  %8552 = vmatprep.subr.bf16.mxu0 %v10184_v45  ;;  %v10248_v41 = vld [vmem:[%s11755_s23 + $0xc80] ss:$8 sps:$4 sm:$0xff]   ;;  %v10253_v44 = vld [vmem:[%s11755_s23 + $0x494] ss:$8 sps:$4 sm:$0xff]  }
 0x212   : > { %v10256_v45 = vld [vmem:[%s11755_s23 + $0xc94] ss:$8 sps:$4 sm:$0xff]  }
 0x214   : > { %8129 = vmatpush1.bf16.msra.mxu1 %v10179_v48  ;;  %8553 = vmatpush1.bf16.msra.mxu0 %v10182_v49  ;;  %v10251_v48 = vld [vmem:[%s11755_s23 + $0x490] ss:$8 sps:$4 sm:$0xff]  }
 0x215   : > { %8130 = vmatprep.subr.bf16.mxu1 %v10187_v50  ;;  %8554 = vmatprep.subr.bf16.mxu0 %v10190_v51  ;;  %v10254_v49 = vld [vmem:[%s11755_s23 + $0xc90] ss:$8 sps:$4 sm:$0xff]   ;;  %v10259_v50 = vld [vmem:[%s11755_s23 + $0x4a4] ss:$8 sps:$4 sm:$0xff]  }
 0x216   : > { %v10262_v51 = vld [vmem:[%s11755_s23 + $0xca4] ss:$8 sps:$4 sm:$0xff]  }
 0x218   : > { %8131 = vmatpush1.bf16.msra.mxu1 %v10185_v52  ;;  %8555 = vmatpush1.bf16.msra.mxu0 %v10188_v42  ;;  %v10257_v52 = vld [vmem:[%s11755_s23 + $0x4a0] ss:$8 sps:$4 sm:$0xff]  }
 0x219   : > { %8132 = vmatprep.subr.bf16.mxu1 %v10193_v43  ;;  %8556 = vmatprep.subr.bf16.mxu0 %v10196_v46  ;;  %v10260_v42 = vld [vmem:[%s11755_s23 + $0xca0] ss:$8 sps:$4 sm:$0xff]   ;;  %v10265_v43 = vld [vmem:[%s11755_s23 + $0x4b4] ss:$8 sps:$4 sm:$0xff]  }
 0x21a   : > { %v10268_v46 = vld [vmem:[%s11755_s23 + $0xcb4] ss:$8 sps:$4 sm:$0xff]  }
 0x21c   : > { %8133 = vmatpush1.bf16.msra.mxu1 %v10191_v47  ;;  %8557 = vmatpush1.bf16.msra.mxu0 %v10194_v53  ;;  %v10263_v47 = vld [vmem:[%s11755_s23 + $0x4b0] ss:$8 sps:$4 sm:$0xff]  }
 0x21d   : > { %8155 = vmatprep.subr.bf16.mxu1 %v10199_v54  ;;  %8579 = vmatprep.subr.bf16.mxu0 %v10202_v55  ;;  %v10266_v53 = vld [vmem:[%s11755_s23 + $0xcb0] ss:$8 sps:$4 sm:$0xff]   ;;  %v10271_v54 = vld [vmem:[%s11755_s23 + $0x4c4] ss:$8 sps:$4 sm:$0xff]  }
 0x21e   : > { %v10274_v55 = vld [vmem:[%s11755_s23 + $0xcc4] ss:$8 sps:$4 sm:$0xff]  }
 0x21f   : > { %8135 = vmatmul.mubr.bf16.vlgmr.msra.gmra.mrb[0].mxu1 %v9075_v4  ;;  %8559 = vmatmul.mubr.bf16.vlgmr.msra.gmra.mrb[0].mxu0 %v9091_v7  ;;  %v10275_v4 = vld [vmem:[%s11755_s23 + $0x4d0] ss:$8 sps:$4 sm:$0xff]  }
 0x220   : > { %8156 = vmatpush1.bf16.msra.mxu1 %v10197_v56  ;;  %8580 = vmatpush1.bf16.msra.mxu0 %v10200_v57  ;;  %v10269_v56 = vld [vmem:[%s11755_s23 + $0x4c0] ss:$8 sps:$4 sm:$0xff]   ;;  %v10278_v7 = vld [vmem:[%s11755_s23 + $0xcd0] ss:$8 sps:$4 sm:$0xff]  }
 0x221   : > { %8157 = vmatprep.subr.bf16.mxu1 %v10205_v10  ;;  %8581 = vmatprep.subr.bf16.mxu0 %v10208_v58  ;;  %v10272_v57 = vld [vmem:[%s11755_s23 + $0xcc0] ss:$8 sps:$4 sm:$0xff]  }
 0x222   : > { %8144 = vmatprep.mubr.bf16.mxu1 %v9108_v59  ;;  %8568 = vmatprep.mubr.bf16.mxu0 %v9124_v62  ;;  %v10281_v10 = vld [vmem:[%s11755_s23 + $0x4e0] ss:$8 sps:$4 sm:$0xff]   ;;  %v10289_v59 = vld [vmem:[%s11755_s23 + $0x4f4] ss:$8 sps:$4 sm:$0xff]  }
 0x223   : > { %v10284_v58 = vld [vmem:[%s11755_s23 + $0xce0] ss:$8 sps:$4 sm:$0xff]   ;;  %v10292_v62 = vld [vmem:[%s11755_s23 + $0xcf4] ss:$8 sps:$4 sm:$0xff]  }
 0x224   : > { %8158 = vmatpush1.bf16.msra.mxu1 %v10203_v63  ;;  %8582 = vmatpush1.bf16.msra.mxu0 %v10206_v11  ;;  %v10287_v63 = vld [vmem:[%s11755_s23 + $0x4f0] ss:$8 sps:$4 sm:$0xff]  }
 0x225   : > { %8159 = vmatprep.subr.bf16.mxu1 %v10211_v12  ;;  %8583 = vmatprep.subr.bf16.mxu0 %v10214_v13  ;;  %v10290_v11 = vld [vmem:[%s11755_s23 + $0xcf0] ss:$8 sps:$4 sm:$0xff]   ;;  %v10295_v12 = vld [vmem:[%s11755_s23 + $0x504] ss:$8 sps:$4 sm:$0xff]  }
 0x226   : > { %v10298_v13 = vld [vmem:[%s11755_s23 + $0xd04] ss:$8 sps:$4 sm:$0xff]  }
 0x227   : > { %8145 = vmatmul.mubr.bf16.gmra.mrb[4].mxu1 %v9107_v18  ;;  %8569 = vmatmul.mubr.bf16.gmra.mrb[4].mxu0 %v9123_v19  ;;  %v4531_v18 = vld [vmem:[%s12615_s0 + $0x160] sm:$0xff] }
 0x228   : > { %8160 = vmatpush1.bf16.msra.mxu1 %v10209_v14  ;;  %8584 = vmatpush1.bf16.msra.mxu0 %v10212_v15  ;;  %v4523_v14 = vld [vmem:[%s12615_s0 + $0x120] sm:$0xff] }
 0x229   : > { %8161 = vmatprep.subr.bf16.mxu1 %v10217_v22  ;;  %8585 = vmatprep.subr.bf16.mxu0 %v10220_v23  ;;  %v4539_v15 = vld [vmem:[%s12615_s0 + $0x1a0] sm:$0xff]  ;;  %v9077_v22 = vcombine.low %v12166_v16, %v12171_v17  ;;  %v9093_v23 = vcombine.low %v12176_v20, %v12181_v21  ;;  %v12268_v20 = vld [vmem:[%s12615_s0 + $0x28] sm:$0xff] }
 0x22a   : > { %8187 = vmatprep.mubr.bf16.mxu1 %v9078_v24  ;;  %8611 = vmatprep.mubr.bf16.mxu0 %v9094_v25  ;;  %v4547_v19 = vld [vmem:[%s12615_s0 + $0x1e0] sm:$0xff]  ;;  %v12273_v21 = vld [vmem:[%s12615_s0 + $0xa8] sm:$0xff] }
 0x22b   : > { %v10293_v24 = vld [vmem:[%s11755_s23 + $0x500] ss:$8 sps:$4 sm:$0xff]   ;;  %v10307_v16 = vld [vmem:[%s11755_s23 + $0x524] ss:$8 sps:$4 sm:$0xff]  }
 0x22c   : > { %8162 = vmatpush1.bf16.msra.mxu1 %v10215_v26  ;;  %8586 = vmatpush1.bf16.msra.mxu0 %v10218_v27  ;;  %v10296_v25 = vld [vmem:[%s11755_s23 + $0xd00] ss:$8 sps:$4 sm:$0xff]   ;;  %v10301_v26 = vld [vmem:[%s11755_s23 + $0x514] ss:$8 sps:$4 sm:$0xff]   ;;  %v10310_v17 = vld [vmem:[%s11755_s23 + $0xd24] ss:$8 sps:$4 sm:$0xff]  }
 0x22d   : > { %8163 = vmatprep.subr.bf16.mxu1 %v10223_v28  ;;  %8587 = vmatprep.subr.bf16.mxu0 %v10226_v29  ;;  %v10304_v27 = vld [vmem:[%s11755_s23 + $0xd14] ss:$8 sps:$4 sm:$0xff]   ;;  %v10299_v28 = vld [vmem:[%s11755_s23 + $0x510] ss:$8 sps:$4 sm:$0xff]  }
 0x22e   : > { %v10302_v29 = vld [vmem:[%s11755_s23 + $0xd10] ss:$8 sps:$4 sm:$0xff]  }
 0x230   : > { %8164 = vmatpush1.bf16.msra.mxu1 %v10221_v0  ;;  %8588 = vmatpush1.bf16.msra.mxu0 %v10224_v1  ;;  %v9110_v0 = vcombine.high %v4523_v14, %v4539_v15  ;;  %v9126_v1 = vcombine.high %v4531_v18, %v4547_v19 }
 0x231   : > { %8165 = vmatprep.subr.bf16.mxu1 %v10229_v3  ;;  %8589 = vmatprep.subr.bf16.mxu0 %v10232_v2  ;;  %v12278_v3 = vld [vmem:[%s12615_s0 + $0x68] sm:$0xff] }
 0x232   : > { %v12283_v2 = vld [vmem:[%s12615_s0 + $0xe8] sm:$0xff] }
 0x234   : > { %8166 = vmatpush1.bf16.msra.mxu1 %v10227_v5  ;;  %8590 = vmatpush1.bf16.msra.mxu0 %v10230_v6  ;;  %v9109_v5 = vcombine.low %v4523_v14, %v4539_v15  ;;  %v9125_v6 = vcombine.low %v4531_v18, %v4547_v19  ;;  %v10365_v14 = vld [vmem:[%s11755_s23 + $0x5c0] ss:$8 sps:$4 sm:$0xff]   ;;  %v10373_v18 = vld [vmem:[%s11755_s23 + $0x5d4] ss:$8 sps:$4 sm:$0xff]  }
 0x235   : > { %8167 = vmatprep.subr.bf16.mxu1 %v10235_v30  ;;  %8591 = vmatprep.subr.bf16.mxu0 %v10238_v31  ;;  %v10305_v30 = vld [vmem:[%s11755_s23 + $0x520] ss:$8 sps:$4 sm:$0xff]   ;;  %v10376_v19 = vld [vmem:[%s11755_s23 + $0xdd4] ss:$8 sps:$4 sm:$0xff]  }
 0x236   : > { %v10308_v31 = vld [vmem:[%s11755_s23 + $0xd20] ss:$8 sps:$4 sm:$0xff]  }
 0x237   : > { %v10368_v15 = vld [vmem:[%s11755_s23 + $0xdc0] ss:$8 sps:$4 sm:$0xff]  }
 0x238   : > { %8168 = vmatpush1.bf16.msra.mxu1 %v10233_v32  ;;  %8592 = vmatpush1.bf16.msra.mxu0 %v10236_v33  ;;  %v10313_v32 = vld [vmem:[%s11755_s23 + $0x534] ss:$8 sps:$4 sm:$0xff]  }
 0x239   : > { %8169 = vmatprep.subr.bf16.mxu1 %v10241_v34  ;;  %8593 = vmatprep.subr.bf16.mxu0 %v10244_v35  ;;  %v10316_v33 = vld [vmem:[%s11755_s23 + $0xd34] ss:$8 sps:$4 sm:$0xff]   ;;  %v9080_v34 = vcombine.high %v12268_v20, %v12273_v21  ;;  %v9096_v35 = vcombine.high %v12278_v3, %v12283_v2 }
 0x23c   : > { %8170 = vmatpush1.bf16.msra.mxu1 %v10239_v36  ;;  %8594 = vmatpush1.bf16.msra.mxu0 %v10242_v37  ;;  %v10311_v36 = vld [vmem:[%s11755_s23 + $0x530] ss:$8 sps:$4 sm:$0xff]  }
 0x23d   : > { %8171 = vmatprep.subr.bf16.mxu1 %v10247_v38  ;;  %8595 = vmatprep.subr.bf16.mxu0 %v10250_v39  ;;  %v10314_v37 = vld [vmem:[%s11755_s23 + $0xd30] ss:$8 sps:$4 sm:$0xff]   ;;  %v10319_v38 = vld [vmem:[%s11755_s23 + $0x544] ss:$8 sps:$4 sm:$0xff]  }
 0x23e   : > { %v10322_v39 = vld [vmem:[%s11755_s23 + $0xd44] ss:$8 sps:$4 sm:$0xff]  }
 0x240   : > { %8172 = vmatpush1.bf16.msra.mxu1 %v10245_v40  ;;  %8596 = vmatpush1.bf16.msra.mxu0 %v10248_v41  ;;  %v10317_v40 = vld [vmem:[%s11755_s23 + $0x540] ss:$8 sps:$4 sm:$0xff]  }
 0x241   : > { %8173 = vmatprep.subr.bf16.mxu1 %v10253_v44  ;;  %8597 = vmatprep.subr.bf16.mxu0 %v10256_v45  ;;  %v10320_v41 = vld [vmem:[%s11755_s23 + $0xd40] ss:$8 sps:$4 sm:$0xff]   ;;  %v10325_v44 = vld [vmem:[%s11755_s23 + $0x554] ss:$8 sps:$4 sm:$0xff]  }
 0x242   : > { %v10328_v45 = vld [vmem:[%s11755_s23 + $0xd54] ss:$8 sps:$4 sm:$0xff]  }
 0x244   : > { %8174 = vmatpush1.bf16.msra.mxu1 %v10251_v48  ;;  %8598 = vmatpush1.bf16.msra.mxu0 %v10254_v49  ;;  %v10323_v48 = vld [vmem:[%s11755_s23 + $0x550] ss:$8 sps:$4 sm:$0xff]  }
 0x245   : > { %8175 = vmatprep.subr.bf16.mxu1 %v10259_v50  ;;  %8599 = vmatprep.subr.bf16.mxu0 %v10262_v51  ;;  %v10326_v49 = vld [vmem:[%s11755_s23 + $0xd50] ss:$8 sps:$4 sm:$0xff]   ;;  %v10331_v50 = vld [vmem:[%s11755_s23 + $0x564] ss:$8 sps:$4 sm:$0xff]  }
 0x246   : > { %v10334_v51 = vld [vmem:[%s11755_s23 + $0xd64] ss:$8 sps:$4 sm:$0xff]  }
 0x248   : > { %8176 = vmatpush1.bf16.msra.mxu1 %v10257_v52  ;;  %8600 = vmatpush1.bf16.msra.mxu0 %v10260_v42  ;;  %v10329_v52 = vld [vmem:[%s11755_s23 + $0x560] ss:$8 sps:$4 sm:$0xff]  }
 0x249   : > { %8177 = vmatprep.subr.bf16.mxu1 %v10265_v43  ;;  %8601 = vmatprep.subr.bf16.mxu0 %v10268_v46  ;;  %v10332_v42 = vld [vmem:[%s11755_s23 + $0xd60] ss:$8 sps:$4 sm:$0xff]   ;;  %v10337_v43 = vld [vmem:[%s11755_s23 + $0x574] ss:$8 sps:$4 sm:$0xff]  }
 0x24a   : > { %v10340_v46 = vld [vmem:[%s11755_s23 + $0xd74] ss:$8 sps:$4 sm:$0xff]  }
 0x24c   : > { %8178 = vmatpush1.bf16.msra.mxu1 %v10263_v47  ;;  %8602 = vmatpush1.bf16.msra.mxu0 %v10266_v53  ;;  %v10335_v47 = vld [vmem:[%s11755_s23 + $0x570] ss:$8 sps:$4 sm:$0xff]  }
 0x24d   : > { %8179 = vmatprep.subr.bf16.mxu1 %v10271_v54  ;;  %8603 = vmatprep.subr.bf16.mxu0 %v10274_v55  ;;  %v10338_v53 = vld [vmem:[%s11755_s23 + $0xd70] ss:$8 sps:$4 sm:$0xff]   ;;  %v10343_v54 = vld [vmem:[%s11755_s23 + $0x584] ss:$8 sps:$4 sm:$0xff]  }
 0x24e   : > { %v10346_v55 = vld [vmem:[%s11755_s23 + $0xd84] ss:$8 sps:$4 sm:$0xff]  }
 0x250   : > { %8180 = vmatpush1.bf16.msra.mxu1 %v10269_v56  ;;  %8604 = vmatpush1.bf16.msra.mxu0 %v10272_v57  ;;  %v10341_v56 = vld [vmem:[%s11755_s23 + $0x580] ss:$8 sps:$4 sm:$0xff]  }
 0x251   : > { %8181 = vmatprep.subr.bf16.mxu1 %v10277_v60  ;;  %8605 = vmatprep.subr.bf16.mxu0 %v10280_v61  ;;  %v10344_v57 = vld [vmem:[%s11755_s23 + $0xd80] ss:$8 sps:$4 sm:$0xff]   ;;  %v10349_v60 = vld [vmem:[%s11755_s23 + $0x594] ss:$8 sps:$4 sm:$0xff]  }
 0x252   : > { %v10352_v61 = vld [vmem:[%s11755_s23 + $0xd94] ss:$8 sps:$4 sm:$0xff]  }
 0x254   : > { %8182 = vmatpush1.bf16.msra.mxu1 %v10275_v4  ;;  %8606 = vmatpush1.bf16.msra.mxu0 %v10278_v7  ;;  %v10347_v4 = vld [vmem:[%s11755_s23 + $0x590] ss:$8 sps:$4 sm:$0xff]  }
 0x255   : > { %8183 = vmatprep.subr.bf16.mxu1 %v10283_v8  ;;  %8607 = vmatprep.subr.bf16.mxu0 %v10286_v9  ;;  %v10350_v7 = vld [vmem:[%s11755_s23 + $0xd90] ss:$8 sps:$4 sm:$0xff]   ;;  %v10355_v8 = vld [vmem:[%s11755_s23 + $0x5a4] ss:$8 sps:$4 sm:$0xff]  }
 0x256   : > { %v10358_v9 = vld [vmem:[%s11755_s23 + $0xda4] ss:$8 sps:$4 sm:$0xff]  }
 0x258   : > { %8184 = vmatpush1.bf16.msra.mxu1 %v10281_v10  ;;  %8608 = vmatpush1.bf16.msra.mxu0 %v10284_v58  ;;  %v10353_v10 = vld [vmem:[%s11755_s23 + $0x5a0] ss:$8 sps:$4 sm:$0xff]  }
 0x259   : > { %8185 = vmatprep.subr.bf16.mxu1 %v10289_v59  ;;  %8609 = vmatprep.subr.bf16.mxu0 %v10292_v62  ;;  %v10356_v58 = vld [vmem:[%s11755_s23 + $0xda0] ss:$8 sps:$4 sm:$0xff]   ;;  %v10361_v59 = vld [vmem:[%s11755_s23 + $0x5b4] ss:$8 sps:$4 sm:$0xff]  }
 0x25a   : > { %v10364_v62 = vld [vmem:[%s11755_s23 + $0xdb4] ss:$8 sps:$4 sm:$0xff]  }
 0x25c   : > { %8186 = vmatpush1.bf16.msra.mxu1 %v10287_v63  ;;  %8610 = vmatpush1.bf16.msra.mxu0 %v10290_v11  ;;  %v10359_v63 = vld [vmem:[%s11755_s23 + $0x5b0] ss:$8 sps:$4 sm:$0xff]  }
 0x25d   : > { %8208 = vmatprep.subr.bf16.mxu1 %v10295_v12  ;;  %8632 = vmatprep.subr.bf16.mxu0 %v10298_v13  ;;  %v10362_v11 = vld [vmem:[%s11755_s23 + $0xdb0] ss:$8 sps:$4 sm:$0xff]   ;;  %v10367_v12 = vld [vmem:[%s11755_s23 + $0x5c4] ss:$8 sps:$4 sm:$0xff]  }
 0x25e   : > { %v10370_v13 = vld [vmem:[%s11755_s23 + $0xdc4] ss:$8 sps:$4 sm:$0xff]  }
 0x25f   : > { %8188 = vmatmul.mubr.bf16.vlgmr.msra.gmra.mrb[0].mxu1 %v9077_v22  ;;  %8612 = vmatmul.mubr.bf16.vlgmr.msra.gmra.mrb[0].mxu0 %v9093_v23  ;;  %v10371_v22 = vld [vmem:[%s11755_s23 + $0x5d0] ss:$8 sps:$4 sm:$0xff]  }
 0x260   : > { %8209 = vmatpush1.bf16.msra.mxu1 %v10293_v24  ;;  %8633 = vmatpush1.bf16.msra.mxu0 %v10296_v25  ;;  %v10374_v23 = vld [vmem:[%s11755_s23 + $0xdd0] ss:$8 sps:$4 sm:$0xff]   ;;  %v10379_v24 = vld [vmem:[%s11755_s23 + $0x5e4] ss:$8 sps:$4 sm:$0xff]  }
 0x261   : > { %8210 = vmatprep.subr.bf16.mxu1 %v10301_v26  ;;  %8634 = vmatprep.subr.bf16.mxu0 %v10304_v27  ;;  %v10382_v25 = vld [vmem:[%s11755_s23 + $0xde4] ss:$8 sps:$4 sm:$0xff]   ;;  %v10377_v26 = vld [vmem:[%s11755_s23 + $0x5e0] ss:$8 sps:$4 sm:$0xff]  }
 0x262   : > { %8197 = vmatprep.mubr.bf16.mxu1 %v9110_v0  ;;  %8621 = vmatprep.mubr.bf16.mxu0 %v9126_v1  ;;  %v10380_v27 = vld [vmem:[%s11755_s23 + $0xde0] ss:$8 sps:$4 sm:$0xff]   ;;  %v10383_v0 = vld [vmem:[%s11755_s23 + $0x5f0] ss:$8 sps:$4 sm:$0xff]  }
 0x263   : > { %v10386_v1 = vld [vmem:[%s11755_s23 + $0xdf0] ss:$8 sps:$4 sm:$0xff]  }
 0x264   : > { %8211 = vmatpush1.bf16.msra.mxu1 %v10299_v28  ;;  %8635 = vmatpush1.bf16.msra.mxu0 %v10302_v29  ;;  %v10385_v28 = vld [vmem:[%s11755_s23 + $0x5f4] ss:$8 sps:$4 sm:$0xff]  }
 0x265   : > { %8212 = vmatprep.subr.bf16.mxu1 %v10307_v16  ;;  %8636 = vmatprep.subr.bf16.mxu0 %v10310_v17  ;;  %v10388_v29 = vld [vmem:[%s11755_s23 + $0xdf4] ss:$8 sps:$4 sm:$0xff]   ;;  %v10391_v16 = vld [vmem:[%s11755_s23 + $0x604] ss:$8 sps:$4 sm:$0xff]  }
 0x266   : > { %v10394_v17 = vld [vmem:[%s11755_s23 + $0xe04] ss:$8 sps:$4 sm:$0xff]  }
 0x267   : > { %8198 = vmatmul.mubr.bf16.gmra.mrb[4].mxu1 %v9109_v5  ;;  %8622 = vmatmul.mubr.bf16.gmra.mrb[4].mxu0 %v9125_v6  ;;  %v4524_v5 = vld [vmem:[%s12615_s0 + $0x128] sm:$0xff]  ;;  %v9079_v6 = vcombine.low %v12268_v20, %v12273_v21 }
 0x268   : > { %8213 = vmatpush1.bf16.msra.mxu1 %v10305_v30  ;;  %8637 = vmatpush1.bf16.msra.mxu0 %v10308_v31  ;;  %v9095_v30 = vcombine.low %v12278_v3, %v12283_v2  ;;  %v4540_v31 = vld [vmem:[%s12615_s0 + $0x1a8] sm:$0xff]  ;;  %v10397_v3 = vld [vmem:[%s11755_s23 + $0x614] ss:$8 sps:$4 sm:$0xff]  }
 0x269   : > { %8214 = vmatprep.subr.bf16.mxu1 %v10313_v32  ;;  %8638 = vmatprep.subr.bf16.mxu0 %v10316_v33  ;;  %v4532_v32 = vld [vmem:[%s12615_s0 + $0x168] sm:$0xff]  ;;  %v10400_v2 = vld [vmem:[%s11755_s23 + $0xe14] ss:$8 sps:$4 sm:$0xff]  }
 0x26a   : > { %8240 = vmatprep.mubr.bf16.mxu1 %v9080_v34  ;;  %8664 = vmatprep.mubr.bf16.mxu0 %v9096_v35  ;;  %v4548_v33 = vld [vmem:[%s12615_s0 + $0x1e8] sm:$0xff]  ;;  %v9112_v34 = vcombine.high %v4524_v5, %v4540_v31 }
 0x26b   : > { %v10389_v20 = vld [vmem:[%s11755_s23 + $0x600] ss:$8 sps:$4 sm:$0xff]   ;;  %v9128_v35 = vcombine.high %v4532_v32, %v4548_v33 }
 0x26c   : > { %8215 = vmatpush1.bf16.msra.mxu1 %v10311_v36  ;;  %8639 = vmatpush1.bf16.msra.mxu0 %v10314_v37  ;;  %v10392_v21 = vld [vmem:[%s11755_s23 + $0xe00] ss:$8 sps:$4 sm:$0xff]   ;;  %v10395_v36 = vld [vmem:[%s11755_s23 + $0x610] ss:$8 sps:$4 sm:$0xff]  }
 0x26d   : > { %8216 = vmatprep.subr.bf16.mxu1 %v10319_v38  ;;  %8640 = vmatprep.subr.bf16.mxu0 %v10322_v39  ;;  %v10398_v37 = vld [vmem:[%s11755_s23 + $0xe10] ss:$8 sps:$4 sm:$0xff]   ;;  %v10403_v38 = vld [vmem:[%s11755_s23 + $0x624] ss:$8 sps:$4 sm:$0xff]  }
 0x26e   : > { %v10406_v39 = vld [vmem:[%s11755_s23 + $0xe24] ss:$8 sps:$4 sm:$0xff]  }
 0x270   : > { %8217 = vmatpush1.bf16.msra.mxu1 %v10317_v40  ;;  %8641 = vmatpush1.bf16.msra.mxu0 %v10320_v41  ;;  %v12372_v40 = vld [vmem:[%s12615_s0 + $0x30] sm:$0xff]  ;;  %v9111_v41 = vcombine.low %v4524_v5, %v4540_v31  ;;  %v10461_v5 = vld [vmem:[%s11755_s23 + $0x6c0] ss:$8 sps:$4 sm:$0xff]  }
 0x271   : > { %8218 = vmatprep.subr.bf16.mxu1 %v10325_v44  ;;  %8642 = vmatprep.subr.bf16.mxu0 %v10328_v45  ;;  %v9127_v44 = vcombine.low %v4532_v32, %v4548_v33  ;;  %v12377_v45 = vld [vmem:[%s12615_s0 + $0xb0] sm:$0xff] }
 0x272   : > { %v10472_v31 = vld [vmem:[%s11755_s23 + $0xed4] ss:$8 sps:$4 sm:$0xff]   ;;  %v10467_v32 = vld [vmem:[%s11755_s23 + $0x6d0] ss:$8 sps:$4 sm:$0xff]  }
 0x273   : > { %v10470_v33 = vld [vmem:[%s11755_s23 + $0xed0] ss:$8 sps:$4 sm:$0xff]  }
 0x274   : > { %8219 = vmatpush1.bf16.msra.mxu1 %v10323_v48  ;;  %8643 = vmatpush1.bf16.msra.mxu0 %v10326_v49  ;;  %v12382_v48 = vld [vmem:[%s12615_s0 + $0x70] sm:$0xff] }
 0x275   : > { %8220 = vmatprep.subr.bf16.mxu1 %v10331_v50  ;;  %8644 = vmatprep.subr.bf16.mxu0 %v10334_v51  ;;  %v12387_v49 = vld [vmem:[%s12615_s0 + $0xf0] sm:$0xff]  ;;  %v10401_v50 = vld [vmem:[%s11755_s23 + $0x620] ss:$8 sps:$4 sm:$0xff]  }
 0x276   : > { %v10404_v51 = vld [vmem:[%s11755_s23 + $0xe20] ss:$8 sps:$4 sm:$0xff]  }
 0x278   : > { %8221 = vmatpush1.bf16.msra.mxu1 %v10329_v52  ;;  %8645 = vmatpush1.bf16.msra.mxu0 %v10332_v42  ;;  %v10409_v52 = vld [vmem:[%s11755_s23 + $0x634] ss:$8 sps:$4 sm:$0xff]  }
 0x279   : > { %8222 = vmatprep.subr.bf16.mxu1 %v10337_v43  ;;  %8646 = vmatprep.subr.bf16.mxu0 %v10340_v46  ;;  %v10412_v42 = vld [vmem:[%s11755_s23 + $0xe34] ss:$8 sps:$4 sm:$0xff]   ;;  %v9082_v43 = vcombine.high %v12372_v40, %v12377_v45  ;;  %v9098_v46 = vcombine.high %v12382_v48, %v12387_v49 }
 0x27c   : > { %8223 = vmatpush1.bf16.msra.mxu1 %v10335_v47  ;;  %8647 = vmatpush1.bf16.msra.mxu0 %v10338_v53  ;;  %v10407_v47 = vld [vmem:[%s11755_s23 + $0x630] ss:$8 sps:$4 sm:$0xff]  }
 0x27d   : > { %8224 = vmatprep.subr.bf16.mxu1 %v10343_v54  ;;  %8648 = vmatprep.subr.bf16.mxu0 %v10346_v55  ;;  %v10410_v53 = vld [vmem:[%s11755_s23 + $0xe30] ss:$8 sps:$4 sm:$0xff]   ;;  %v10415_v54 = vld [vmem:[%s11755_s23 + $0x644] ss:$8 sps:$4 sm:$0xff]  }
 0x27e   : > { %v10418_v55 = vld [vmem:[%s11755_s23 + $0xe44] ss:$8 sps:$4 sm:$0xff]  }
 0x280   : > { %8225 = vmatpush1.bf16.msra.mxu1 %v10341_v56  ;;  %8649 = vmatpush1.bf16.msra.mxu0 %v10344_v57  ;;  %v10413_v56 = vld [vmem:[%s11755_s23 + $0x640] ss:$8 sps:$4 sm:$0xff]  }
 0x281   : > { %8226 = vmatprep.subr.bf16.mxu1 %v10349_v60  ;;  %8650 = vmatprep.subr.bf16.mxu0 %v10352_v61  ;;  %v10416_v57 = vld [vmem:[%s11755_s23 + $0xe40] ss:$8 sps:$4 sm:$0xff]   ;;  %v10421_v60 = vld [vmem:[%s11755_s23 + $0x654] ss:$8 sps:$4 sm:$0xff]  }
 0x282   : > { %v10424_v61 = vld [vmem:[%s11755_s23 + $0xe54] ss:$8 sps:$4 sm:$0xff]  }
 0x284   : > { %8227 = vmatpush1.bf16.msra.mxu1 %v10347_v4  ;;  %8651 = vmatpush1.bf16.msra.mxu0 %v10350_v7  ;;  %v10419_v4 = vld [vmem:[%s11755_s23 + $0x650] ss:$8 sps:$4 sm:$0xff]  }
 0x285   : > { %8228 = vmatprep.subr.bf16.mxu1 %v10355_v8  ;;  %8652 = vmatprep.subr.bf16.mxu0 %v10358_v9  ;;  %v10422_v7 = vld [vmem:[%s11755_s23 + $0xe50] ss:$8 sps:$4 sm:$0xff]   ;;  %v10427_v8 = vld [vmem:[%s11755_s23 + $0x664] ss:$8 sps:$4 sm:$0xff]  }
 0x286   : > { %v10430_v9 = vld [vmem:[%s11755_s23 + $0xe64] ss:$8 sps:$4 sm:$0xff]  }
 0x288   : > { %8229 = vmatpush1.bf16.msra.mxu1 %v10353_v10  ;;  %8653 = vmatpush1.bf16.msra.mxu0 %v10356_v58  ;;  %v10425_v10 = vld [vmem:[%s11755_s23 + $0x660] ss:$8 sps:$4 sm:$0xff]  }
 0x289   : > { %8230 = vmatprep.subr.bf16.mxu1 %v10361_v59  ;;  %8654 = vmatprep.subr.bf16.mxu0 %v10364_v62  ;;  %v10428_v58 = vld [vmem:[%s11755_s23 + $0xe60] ss:$8 sps:$4 sm:$0xff]   ;;  %v10433_v59 = vld [vmem:[%s11755_s23 + $0x674] ss:$8 sps:$4 sm:$0xff]  }
 0x28a   : > { %v10436_v62 = vld [vmem:[%s11755_s23 + $0xe74] ss:$8 sps:$4 sm:$0xff]  }
 0x28c   : > { %8231 = vmatpush1.bf16.msra.mxu1 %v10359_v63  ;;  %8655 = vmatpush1.bf16.msra.mxu0 %v10362_v11  ;;  %v10431_v63 = vld [vmem:[%s11755_s23 + $0x670] ss:$8 sps:$4 sm:$0xff]  }
 0x28d   : > { %8232 = vmatprep.subr.bf16.mxu1 %v10367_v12  ;;  %8656 = vmatprep.subr.bf16.mxu0 %v10370_v13  ;;  %v10434_v11 = vld [vmem:[%s11755_s23 + $0xe70] ss:$8 sps:$4 sm:$0xff]   ;;  %v10439_v12 = vld [vmem:[%s11755_s23 + $0x684] ss:$8 sps:$4 sm:$0xff]  }
 0x28e   : > { %v10442_v13 = vld [vmem:[%s11755_s23 + $0xe84] ss:$8 sps:$4 sm:$0xff]  }
 0x290   : > { %8233 = vmatpush1.bf16.msra.mxu1 %v10365_v14  ;;  %8657 = vmatpush1.bf16.msra.mxu0 %v10368_v15  ;;  %v10437_v14 = vld [vmem:[%s11755_s23 + $0x680] ss:$8 sps:$4 sm:$0xff]  }
 0x291   : > { %8234 = vmatprep.subr.bf16.mxu1 %v10373_v18  ;;  %8658 = vmatprep.subr.bf16.mxu0 %v10376_v19  ;;  %v10440_v15 = vld [vmem:[%s11755_s23 + $0xe80] ss:$8 sps:$4 sm:$0xff]   ;;  %v10445_v18 = vld [vmem:[%s11755_s23 + $0x694] ss:$8 sps:$4 sm:$0xff]  }
 0x292   : > { %v10448_v19 = vld [vmem:[%s11755_s23 + $0xe94] ss:$8 sps:$4 sm:$0xff]  }
 0x294   : > { %8235 = vmatpush1.bf16.msra.mxu1 %v10371_v22  ;;  %8659 = vmatpush1.bf16.msra.mxu0 %v10374_v23  ;;  %v10443_v22 = vld [vmem:[%s11755_s23 + $0x690] ss:$8 sps:$4 sm:$0xff]  }
 0x295   : > { %8236 = vmatprep.subr.bf16.mxu1 %v10379_v24  ;;  %8660 = vmatprep.subr.bf16.mxu0 %v10382_v25  ;;  %v10446_v23 = vld [vmem:[%s11755_s23 + $0xe90] ss:$8 sps:$4 sm:$0xff]   ;;  %v10451_v24 = vld [vmem:[%s11755_s23 + $0x6a4] ss:$8 sps:$4 sm:$0xff]  }
 0x296   : > { %v10454_v25 = vld [vmem:[%s11755_s23 + $0xea4] ss:$8 sps:$4 sm:$0xff]  }
 0x298   : > { %8237 = vmatpush1.bf16.msra.mxu1 %v10377_v26  ;;  %8661 = vmatpush1.bf16.msra.mxu0 %v10380_v27  ;;  %v10449_v26 = vld [vmem:[%s11755_s23 + $0x6a0] ss:$8 sps:$4 sm:$0xff]  }
 0x299   : > { %8238 = vmatprep.subr.bf16.mxu1 %v10385_v28  ;;  %8662 = vmatprep.subr.bf16.mxu0 %v10388_v29  ;;  %v10452_v27 = vld [vmem:[%s11755_s23 + $0xea0] ss:$8 sps:$4 sm:$0xff]   ;;  %v10457_v28 = vld [vmem:[%s11755_s23 + $0x6b4] ss:$8 sps:$4 sm:$0xff]  }
 0x29a   : > { %v10460_v29 = vld [vmem:[%s11755_s23 + $0xeb4] ss:$8 sps:$4 sm:$0xff]  }
 0x29c   : > { %8239 = vmatpush1.bf16.msra.mxu1 %v10383_v0  ;;  %8663 = vmatpush1.bf16.msra.mxu0 %v10386_v1  ;;  %v10455_v0 = vld [vmem:[%s11755_s23 + $0x6b0] ss:$8 sps:$4 sm:$0xff]  }
 0x29d   : > { %8261 = vmatprep.subr.bf16.mxu1 %v10391_v16  ;;  %8685 = vmatprep.subr.bf16.mxu0 %v10394_v17  ;;  %v10458_v1 = vld [vmem:[%s11755_s23 + $0xeb0] ss:$8 sps:$4 sm:$0xff]   ;;  %v10463_v16 = vld [vmem:[%s11755_s23 + $0x6c4] ss:$8 sps:$4 sm:$0xff]  }
 0x29e   : > { %v10466_v17 = vld [vmem:[%s11755_s23 + $0xec4] ss:$8 sps:$4 sm:$0xff]  }
 0x29f   : > { %8241 = vmatmul.mubr.bf16.vlgmr.msra.gmra.mrb[0].mxu1 %v9079_v6  ;;  %8665 = vmatmul.mubr.bf16.vlgmr.msra.gmra.mrb[0].mxu0 %v9095_v30  ;;  %v10464_v6 = vld [vmem:[%s11755_s23 + $0xec0] ss:$8 sps:$4 sm:$0xff]   ;;  %v10469_v30 = vld [vmem:[%s11755_s23 + $0x6d4] ss:$8 sps:$4 sm:$0xff]  }
 0x2a0   : > { %8262 = vmatpush1.bf16.msra.mxu1 %v10389_v20  ;;  %8686 = vmatpush1.bf16.msra.mxu0 %v10392_v21  ;;  %v10475_v20 = vld [vmem:[%s11755_s23 + $0x6e4] ss:$8 sps:$4 sm:$0xff]  }
 0x2a1   : > { %8263 = vmatprep.subr.bf16.mxu1 %v10397_v3  ;;  %8687 = vmatprep.subr.bf16.mxu0 %v10400_v2  ;;  %v10478_v21 = vld [vmem:[%s11755_s23 + $0xee4] ss:$8 sps:$4 sm:$0xff]   ;;  %v10473_v3 = vld [vmem:[%s11755_s23 + $0x6e0] ss:$8 sps:$4 sm:$0xff]  }
 0x2a2   : > { %8250 = vmatprep.mubr.bf16.mxu1 %v9112_v34  ;;  %8674 = vmatprep.mubr.bf16.mxu0 %v9128_v35  ;;  %v10476_v2 = vld [vmem:[%s11755_s23 + $0xee0] ss:$8 sps:$4 sm:$0xff]   ;;  %v10481_v34 = vld [vmem:[%s11755_s23 + $0x6f4] ss:$8 sps:$4 sm:$0xff]  }
 0x2a3   : > { %v10484_v35 = vld [vmem:[%s11755_s23 + $0xef4] ss:$8 sps:$4 sm:$0xff]  }
 0x2a4   : > { %8264 = vmatpush1.bf16.msra.mxu1 %v10395_v36  ;;  %8688 = vmatpush1.bf16.msra.mxu0 %v10398_v37  ;;  %v10479_v36 = vld [vmem:[%s11755_s23 + $0x6f0] ss:$8 sps:$4 sm:$0xff]  }
 0x2a5   : > { %8265 = vmatprep.subr.bf16.mxu1 %v10403_v38  ;;  %8689 = vmatprep.subr.bf16.mxu0 %v10406_v39  ;;  %v10482_v37 = vld [vmem:[%s11755_s23 + $0xef0] ss:$8 sps:$4 sm:$0xff]   ;;  %v10487_v38 = vld [vmem:[%s11755_s23 + $0x704] ss:$8 sps:$4 sm:$0xff]  }
 0x2a6   : > { %v10490_v39 = vld [vmem:[%s11755_s23 + $0xf04] ss:$8 sps:$4 sm:$0xff]  }
 0x2a7   : > { %8251 = vmatmul.mubr.bf16.gmra.mrb[4].mxu1 %v9111_v41  ;;  %8675 = vmatmul.mubr.bf16.gmra.mrb[4].mxu0 %v9127_v44  ;;  %v4525_v41 = vld [vmem:[%s12615_s0 + $0x130] sm:$0xff]  ;;  %v9081_v44 = vcombine.low %v12372_v40, %v12377_v45  ;;  %v10485_v40 = vld [vmem:[%s11755_s23 + $0x700] ss:$8 sps:$4 sm:$0xff]  }
 0x2a8   : > { %8266 = vmatpush1.bf16.msra.mxu1 %v10401_v50  ;;  %8690 = vmatpush1.bf16.msra.mxu0 %v10404_v51  ;;  %v9097_v50 = vcombine.low %v12382_v48, %v12387_v49  ;;  %v4541_v51 = vld [vmem:[%s12615_s0 + $0x1b0] sm:$0xff]  ;;  %v10488_v45 = vld [vmem:[%s11755_s23 + $0xf00] ss:$8 sps:$4 sm:$0xff]  }
 0x2a9   : > { %8267 = vmatprep.subr.bf16.mxu1 %v10409_v52  ;;  %8691 = vmatprep.subr.bf16.mxu0 %v10412_v42  ;;  %v4533_v52 = vld [vmem:[%s12615_s0 + $0x170] sm:$0xff] }
 0x2aa   : > { %8293 = vmatprep.mubr.bf16.mxu1 %v9082_v43  ;;  %8717 = vmatprep.mubr.bf16.mxu0 %v9098_v46  ;;  %v4549_v42 = vld [vmem:[%s12615_s0 + $0x1f0] sm:$0xff]  ;;  %v9114_v43 = vcombine.high %v4525_v41, %v4541_v51 }
 0x2ab   : > { %v10493_v48 = vld [vmem:[%s11755_s23 + $0x714] ss:$8 sps:$4 sm:$0xff]   ;;  %v9130_v46 = vcombine.high %v4533_v52, %v4549_v42 }
 0x2ac   : > { %8268 = vmatpush1.bf16.msra.mxu1 %v10407_v47  ;;  %8692 = vmatpush1.bf16.msra.mxu0 %v10410_v53  ;;  %v10496_v49 = vld [vmem:[%s11755_s23 + $0xf14] ss:$8 sps:$4 sm:$0xff]   ;;  %v10491_v47 = vld [vmem:[%s11755_s23 + $0x710] ss:$8 sps:$4 sm:$0xff]  }
 0x2ad   : > { %8269 = vmatprep.subr.bf16.mxu1 %v10415_v54  ;;  %8693 = vmatprep.subr.bf16.mxu0 %v10418_v55  ;;  %v10494_v53 = vld [vmem:[%s11755_s23 + $0xf10] ss:$8 sps:$4 sm:$0xff]   ;;  %v10499_v54 = vld [vmem:[%s11755_s23 + $0x724] ss:$8 sps:$4 sm:$0xff]  }
 0x2ae   : > { %v10502_v55 = vld [vmem:[%s11755_s23 + $0xf24] ss:$8 sps:$4 sm:$0xff]  }
 0x2b0   : > { %8270 = vmatpush1.bf16.msra.mxu1 %v10413_v56  ;;  %8694 = vmatpush1.bf16.msra.mxu0 %v10416_v57  ;;  %v12476_v56 = vld [vmem:[%s12615_s0 + $0x38] sm:$0xff]  ;;  %v9113_v57 = vcombine.low %v4525_v41, %v4541_v51  ;;  %v10557_v41 = vld [vmem:[%s11755_s23 + $0x7c0] ss:$8 sps:$4 sm:$0xff]  }
 0x2b1   : > { %8271 = vmatprep.subr.bf16.mxu1 %v10421_v60  ;;  %8695 = vmatprep.subr.bf16.mxu0 %v10424_v61  ;;  %v9129_v60 = vcombine.low %v4533_v52, %v4549_v42  ;;  %v12481_v61 = vld [vmem:[%s12615_s0 + $0xb8] sm:$0xff] }
 0x2b2   : > { %v10568_v51 = vld [vmem:[%s11755_s23 + $0xfd4] ss:$8 sps:$4 sm:$0xff]   ;;  %v10563_v52 = vld [vmem:[%s11755_s23 + $0x7d0] ss:$8 sps:$4 sm:$0xff]  }
 0x2b3   : > { %v10566_v42 = vld [vmem:[%s11755_s23 + $0xfd0] ss:$8 sps:$4 sm:$0xff]  }
 0x2b4   : > { %8272 = vmatpush1.bf16.msra.mxu1 %v10419_v4  ;;  %8696 = vmatpush1.bf16.msra.mxu0 %v10422_v7  ;;  %v12486_v4 = vld [vmem:[%s12615_s0 + $0x78] sm:$0xff] }
 0x2b5   : > { %8273 = vmatprep.subr.bf16.mxu1 %v10427_v8  ;;  %8697 = vmatprep.subr.bf16.mxu0 %v10430_v9  ;;  %v12491_v7 = vld [vmem:[%s12615_s0 + $0xf8] sm:$0xff]  ;;  %v10497_v8 = vld [vmem:[%s11755_s23 + $0x720] ss:$8 sps:$4 sm:$0xff]  }
 0x2b6   : > { %v10500_v9 = vld [vmem:[%s11755_s23 + $0xf20] ss:$8 sps:$4 sm:$0xff]  }
 0x2b8   : > { %8274 = vmatpush1.bf16.msra.mxu1 %v10425_v10  ;;  %8698 = vmatpush1.bf16.msra.mxu0 %v10428_v58  ;;  %v10505_v10 = vld [vmem:[%s11755_s23 + $0x734] ss:$8 sps:$4 sm:$0xff]  }
 0x2b9   : > { %8275 = vmatprep.subr.bf16.mxu1 %v10433_v59  ;;  %8699 = vmatprep.subr.bf16.mxu0 %v10436_v62  ;;  %v10508_v58 = vld [vmem:[%s11755_s23 + $0xf34] ss:$8 sps:$4 sm:$0xff]   ;;  %v9084_v59 = vcombine.high %v12476_v56, %v12481_v61  ;;  %v9100_v62 = vcombine.high %v12486_v4, %v12491_v7 }
 0x2bc   : > { %8276 = vmatpush1.bf16.msra.mxu1 %v10431_v63  ;;  %8700 = vmatpush1.bf16.msra.mxu0 %v10434_v11  ;;  %v10503_v63 = vld [vmem:[%s11755_s23 + $0x730] ss:$8 sps:$4 sm:$0xff]  }
 0x2bd   : > { %8277 = vmatprep.subr.bf16.mxu1 %v10439_v12  ;;  %8701 = vmatprep.subr.bf16.mxu0 %v10442_v13  ;;  %v10506_v11 = vld [vmem:[%s11755_s23 + $0xf30] ss:$8 sps:$4 sm:$0xff]   ;;  %v10511_v12 = vld [vmem:[%s11755_s23 + $0x744] ss:$8 sps:$4 sm:$0xff]  }
 0x2be   : > { %v10514_v13 = vld [vmem:[%s11755_s23 + $0xf44] ss:$8 sps:$4 sm:$0xff]  }
 0x2c0   : > { %8278 = vmatpush1.bf16.msra.mxu1 %v10437_v14  ;;  %8702 = vmatpush1.bf16.msra.mxu0 %v10440_v15  ;;  %v10509_v14 = vld [vmem:[%s11755_s23 + $0x740] ss:$8 sps:$4 sm:$0xff]  }
 0x2c1   : > { %8279 = vmatprep.subr.bf16.mxu1 %v10445_v18  ;;  %8703 = vmatprep.subr.bf16.mxu0 %v10448_v19  ;;  %v10512_v15 = vld [vmem:[%s11755_s23 + $0xf40] ss:$8 sps:$4 sm:$0xff]   ;;  %v10517_v18 = vld [vmem:[%s11755_s23 + $0x754] ss:$8 sps:$4 sm:$0xff]  }
 0x2c2   : > { %v10520_v19 = vld [vmem:[%s11755_s23 + $0xf54] ss:$8 sps:$4 sm:$0xff]  }
 0x2c4   : > { %8280 = vmatpush1.bf16.msra.mxu1 %v10443_v22  ;;  %8704 = vmatpush1.bf16.msra.mxu0 %v10446_v23  ;;  %v10515_v22 = vld [vmem:[%s11755_s23 + $0x750] ss:$8 sps:$4 sm:$0xff]  }
 0x2c5   : > { %8281 = vmatprep.subr.bf16.mxu1 %v10451_v24  ;;  %8705 = vmatprep.subr.bf16.mxu0 %v10454_v25  ;;  %v10518_v23 = vld [vmem:[%s11755_s23 + $0xf50] ss:$8 sps:$4 sm:$0xff]   ;;  %v10523_v24 = vld [vmem:[%s11755_s23 + $0x764] ss:$8 sps:$4 sm:$0xff]  }
 0x2c6   : > { %v10526_v25 = vld [vmem:[%s11755_s23 + $0xf64] ss:$8 sps:$4 sm:$0xff]  }
 0x2c8   : > { %8282 = vmatpush1.bf16.msra.mxu1 %v10449_v26  ;;  %8706 = vmatpush1.bf16.msra.mxu0 %v10452_v27  ;;  %v10521_v26 = vld [vmem:[%s11755_s23 + $0x760] ss:$8 sps:$4 sm:$0xff]  }
 0x2c9   : > { %8283 = vmatprep.subr.bf16.mxu1 %v10457_v28  ;;  %8707 = vmatprep.subr.bf16.mxu0 %v10460_v29  ;;  %v10524_v27 = vld [vmem:[%s11755_s23 + $0xf60] ss:$8 sps:$4 sm:$0xff]   ;;  %v10529_v28 = vld [vmem:[%s11755_s23 + $0x774] ss:$8 sps:$4 sm:$0xff]  }
 0x2ca   : > { %v10532_v29 = vld [vmem:[%s11755_s23 + $0xf74] ss:$8 sps:$4 sm:$0xff]  }
 0x2cc   : > { %8284 = vmatpush1.bf16.msra.mxu1 %v10455_v0  ;;  %8708 = vmatpush1.bf16.msra.mxu0 %v10458_v1  ;;  %v10527_v0 = vld [vmem:[%s11755_s23 + $0x770] ss:$8 sps:$4 sm:$0xff]  }
 0x2cd   : > { %8285 = vmatprep.subr.bf16.mxu1 %v10463_v16  ;;  %8709 = vmatprep.subr.bf16.mxu0 %v10466_v17  ;;  %v10530_v1 = vld [vmem:[%s11755_s23 + $0xf70] ss:$8 sps:$4 sm:$0xff]   ;;  %v10535_v16 = vld [vmem:[%s11755_s23 + $0x784] ss:$8 sps:$4 sm:$0xff]  }
 0x2ce   : > { %v10538_v17 = vld [vmem:[%s11755_s23 + $0xf84] ss:$8 sps:$4 sm:$0xff]  }
 0x2d0   : > { %8286 = vmatpush1.bf16.msra.mxu1 %v10461_v5  ;;  %8710 = vmatpush1.bf16.msra.mxu0 %v10464_v6  ;;  %v10533_v5 = vld [vmem:[%s11755_s23 + $0x780] ss:$8 sps:$4 sm:$0xff]  }
 0x2d1   : > { %8287 = vmatprep.subr.bf16.mxu1 %v10469_v30  ;;  %8711 = vmatprep.subr.bf16.mxu0 %v10472_v31  ;;  %v10536_v6 = vld [vmem:[%s11755_s23 + $0xf80] ss:$8 sps:$4 sm:$0xff]   ;;  %v10541_v30 = vld [vmem:[%s11755_s23 + $0x794] ss:$8 sps:$4 sm:$0xff]  }
 0x2d2   : > { %v10544_v31 = vld [vmem:[%s11755_s23 + $0xf94] ss:$8 sps:$4 sm:$0xff]  }
 0x2d4   : > { %8288 = vmatpush1.bf16.msra.mxu1 %v10467_v32  ;;  %8712 = vmatpush1.bf16.msra.mxu0 %v10470_v33  ;;  %v10539_v32 = vld [vmem:[%s11755_s23 + $0x790] ss:$8 sps:$4 sm:$0xff]  }
 0x2d5   : > { %8289 = vmatprep.subr.bf16.mxu1 %v10475_v20  ;;  %8713 = vmatprep.subr.bf16.mxu0 %v10478_v21  ;;  %v10542_v33 = vld [vmem:[%s11755_s23 + $0xf90] ss:$8 sps:$4 sm:$0xff]   ;;  %v10547_v20 = vld [vmem:[%s11755_s23 + $0x7a4] ss:$8 sps:$4 sm:$0xff]  }
 0x2d6   : > { %v10550_v21 = vld [vmem:[%s11755_s23 + $0xfa4] ss:$8 sps:$4 sm:$0xff]  }
 0x2d8   : > { %8290 = vmatpush1.bf16.msra.mxu1 %v10473_v3  ;;  %8714 = vmatpush1.bf16.msra.mxu0 %v10476_v2  ;;  %v10545_v3 = vld [vmem:[%s11755_s23 + $0x7a0] ss:$8 sps:$4 sm:$0xff]  }
 0x2d9   : > { %8291 = vmatprep.subr.bf16.mxu1 %v10481_v34  ;;  %8715 = vmatprep.subr.bf16.mxu0 %v10484_v35  ;;  %v10548_v2 = vld [vmem:[%s11755_s23 + $0xfa0] ss:$8 sps:$4 sm:$0xff]   ;;  %v10553_v34 = vld [vmem:[%s11755_s23 + $0x7b4] ss:$8 sps:$4 sm:$0xff]  }
 0x2da   : > { %v10556_v35 = vld [vmem:[%s11755_s23 + $0xfb4] ss:$8 sps:$4 sm:$0xff]  }
 0x2dc   : > { %8292 = vmatpush1.bf16.msra.mxu1 %v10479_v36  ;;  %8716 = vmatpush1.bf16.msra.mxu0 %v10482_v37  ;;  %v10551_v36 = vld [vmem:[%s11755_s23 + $0x7b0] ss:$8 sps:$4 sm:$0xff]  }
 0x2dd   : > { %8314 = vmatprep.subr.bf16.mxu1 %v10487_v38  ;;  %8738 = vmatprep.subr.bf16.mxu0 %v10490_v39  ;;  %v10554_v37 = vld [vmem:[%s11755_s23 + $0xfb0] ss:$8 sps:$4 sm:$0xff]   ;;  %v10559_v38 = vld [vmem:[%s11755_s23 + $0x7c4] ss:$8 sps:$4 sm:$0xff]  }
 0x2de   : > { %v10562_v39 = vld [vmem:[%s11755_s23 + $0xfc4] ss:$8 sps:$4 sm:$0xff]  }
 0x2df   : > { %8294 = vmatmul.mubr.bf16.vlgmr.msra.gmra.mrb[0].mxu1 %v9081_v44  ;;  %8718 = vmatmul.mubr.bf16.vlgmr.msra.gmra.mrb[0].mxu0 %v9097_v50  ;;  %v10560_v44 = vld [vmem:[%s11755_s23 + $0xfc0] ss:$8 sps:$4 sm:$0xff]   ;;  %v10565_v50 = vld [vmem:[%s11755_s23 + $0x7d4] ss:$8 sps:$4 sm:$0xff]  }
 0x2e0   : > { %8315 = vmatpush1.bf16.msra.mxu1 %v10485_v40  ;;  %8739 = vmatpush1.bf16.msra.mxu0 %v10488_v45  ;;  %v10571_v40 = vld [vmem:[%s11755_s23 + $0x7e4] ss:$8 sps:$4 sm:$0xff]  }
 0x2e1   : > { %8316 = vmatprep.subr.bf16.mxu1 %v10493_v48  ;;  %8740 = vmatprep.subr.bf16.mxu0 %v10496_v49  ;;  %v10574_v45 = vld [vmem:[%s11755_s23 + $0xfe4] ss:$8 sps:$4 sm:$0xff]   ;;  %v10569_v48 = vld [vmem:[%s11755_s23 + $0x7e0] ss:$8 sps:$4 sm:$0xff]  }
 0x2e2   : > { %8303 = vmatprep.mubr.bf16.mxu1 %v9114_v43  ;;  %8727 = vmatprep.mubr.bf16.mxu0 %v9130_v46  ;;  %v10572_v49 = vld [vmem:[%s11755_s23 + $0xfe0] ss:$8 sps:$4 sm:$0xff]   ;;  %v10577_v43 = vld [vmem:[%s11755_s23 + $0x7f4] ss:$8 sps:$4 sm:$0xff]  }
 0x2e3   : > { %v10580_v46 = vld [vmem:[%s11755_s23 + $0xff4] ss:$8 sps:$4 sm:$0xff]  }
 0x2e4   : > { %8317 = vmatpush1.bf16.msra.mxu1 %v10491_v47  ;;  %8741 = vmatpush1.bf16.msra.mxu0 %v10494_v53  ;;  %v10575_v47 = vld [vmem:[%s11755_s23 + $0x7f0] ss:$8 sps:$4 sm:$0xff]  }
 0x2e5   : > { %8318 = vmatprep.subr.bf16.mxu1 %v10499_v54  ;;  %8742 = vmatprep.subr.bf16.mxu0 %v10502_v55  ;;  %v10578_v53 = vld [vmem:[%s11755_s23 + $0xff0] ss:$8 sps:$4 sm:$0xff]   ;;  %s9067_s23 = sshll.u32 %s10611_s17, 1 }
 0x2e6   : > { %v4526_v54 = vld [vmem:[%s12615_s0 + $0x138] sm:$0xff]  ;;  %p4456_p11 = scmp.lt.s32.totalorder %s9067_s23, 3 }
 0x2e7   : > { %8304 = vmatmul.mubr.bf16.gmra.mrb[4].mxu1 %v9113_v57  ;;  %8728 = vmatmul.mubr.bf16.gmra.mrb[4].mxu0 %v9129_v60  ;;  %v4542_v55 = vld [vmem:[%s12615_s0 + $0x1b8] sm:$0xff] }
 0x2e8   : > { %8319 = vmatpush1.bf16.msra.mxu1 %v10497_v8  ;;  %8743 = vmatpush1.bf16.msra.mxu0 %v10500_v9  ;;  %v4534_v57 = vld [vmem:[%s12615_s0 + $0x178] sm:$0xff]  ;;  %v9083_v8 = vcombine.low %v12476_v56, %v12481_v61  ;;  %v9099_v9 = vcombine.low %v12486_v4, %v12491_v7  ;;  %s12628_s23 = smov (!%p4456_p11, %s9067_s23), 3 }
 0x2e9   : > { %8320 = vmatprep.subr.bf16.mxu1 %v10505_v10  ;;  %8744 = vmatprep.subr.bf16.mxu0 %v10508_v58  ;;  %v4550_v60 = vld [vmem:[%s12615_s0 + $0x1f8] sm:$0xff]  ;;  %v9116_v10 = vcombine.high %v4526_v54, %v4542_v55  ;;  %s4458_s11 = scalar_lea.vmem %s12617_s2, %s12628_s23  ;;  %s4463_s14 = scalar_lea.vmem %s12618_s3, %s12628_s23 }
 0x2ea   : > { %8346 = vmatprep.mubr.bf16.mxu1 %v9084_v59  ;;  %8770 = vmatprep.mubr.bf16.mxu0 %v9100_v62  ;;  %v9132_v58 = vcombine.high %v4534_v57, %v4550_v60  ;;  %v9115_v59 = vcombine.low %v4526_v54, %v4542_v55  ;;  %v9131_v62 = vcombine.low %v4534_v57, %v4550_v60  ;;  %v8818_v4 = vld [vmem:[%s4458_s11] sm:$0x3] }
 0x2ec   : > { %8321 = vmatpush1.bf16.msra.mxu1 %v10503_v63  ;;  %8745 = vmatpush1.bf16.msra.mxu0 %v10506_v11  ;;  %v8820_v63 = vlaneseq }
 0x2ed   : > { %8322 = vmatprep.subr.bf16.mxu1 %v10511_v12  ;;  %8746 = vmatprep.subr.bf16.mxu0 %v10514_v13  ;;  %v8838_v13 = vld [vmem:[%s4463_s14] sm:$0x3] }
 0x2ee   : > { %v8821_v56 = vshrl.u32 %v8820_v63, 7 }
 0x2f0   : > { %8323 = vmatpush1.bf16.msra.mxu1 %v10509_v14  ;;  %8747 = vmatpush1.bf16.msra.mxu0 %v10512_v15  ;;  %v8822_v61 = vsub.s32 0, %v8821_v56  ;;  %v8826_v7 = vsub.s32 1, %v8821_v56 }
 0x2f1   : > { %8324 = vmatprep.subr.bf16.mxu1 %v10517_v18  ;;  %8748 = vmatprep.subr.bf16.mxu0 %v10520_v19 }
 0x2f2   : > { %v8823_v15 = vrot.slane %v8818_v4, %v8822_v61 }
 0x2f4   : > { %8325 = vmatpush1.bf16.msra.mxu1 %v10515_v22  ;;  %8749 = vmatpush1.bf16.msra.mxu0 %v10518_v23  ;;  %v8827_v23 = vrot.slane %v8818_v4, %v8826_v7 }
 0x2f5   : > { %8326 = vmatprep.subr.bf16.mxu1 %v10523_v24  ;;  %8750 = vmatprep.subr.bf16.mxu0 %v10526_v25 }
 0x2f8   : > { %8327 = vmatpush1.bf16.msra.mxu1 %v10521_v26  ;;  %8751 = vmatpush1.bf16.msra.mxu0 %v10524_v27  ;;  %v8843_v26 = vrot.slane %v8838_v13, %v8822_v61 }
 0x2f9   : > { %8328 = vmatprep.subr.bf16.mxu1 %v10529_v28  ;;  %8752 = vmatprep.subr.bf16.mxu0 %v10532_v29 }
 0x2fc   : > { %8329 = vmatpush1.bf16.msra.mxu1 %v10527_v0  ;;  %8753 = vmatpush1.bf16.msra.mxu0 %v10530_v1  ;;  %v8847_v0 = vrot.slane %v8838_v13, %v8826_v7 }
 0x2fd   : > { %8330 = vmatprep.subr.bf16.mxu1 %v10535_v16  ;;  %8754 = vmatprep.subr.bf16.mxu0 %v10538_v17 }
 0x300   : > { %8331 = vmatpush1.bf16.msra.mxu1 %v10533_v5  ;;  %8755 = vmatpush1.bf16.msra.mxu0 %v10536_v6 }
 0x301   : > { %8332 = vmatprep.subr.bf16.mxu1 %v10541_v30  ;;  %8756 = vmatprep.subr.bf16.mxu0 %v10544_v31 }
 0x304   : > { %8333 = vmatpush1.bf16.msra.mxu1 %v10539_v32  ;;  %8757 = vmatpush1.bf16.msra.mxu0 %v10542_v33 }
 0x305   : > { %8334 = vmatprep.subr.bf16.mxu1 %v10547_v20  ;;  %8758 = vmatprep.subr.bf16.mxu0 %v10550_v21 }
 0x308   : > { %8335 = vmatpush1.bf16.msra.mxu1 %v10545_v3  ;;  %8759 = vmatpush1.bf16.msra.mxu0 %v10548_v2 }
 0x309   : > { %8336 = vmatprep.subr.bf16.mxu1 %v10553_v34  ;;  %8760 = vmatprep.subr.bf16.mxu0 %v10556_v35 }
 0x30c   : > { %8337 = vmatpush1.bf16.msra.mxu1 %v10551_v36  ;;  %8761 = vmatpush1.bf16.msra.mxu0 %v10554_v37 }
 0x30d   : > { %8338 = vmatprep.subr.bf16.mxu1 %v10559_v38  ;;  %8762 = vmatprep.subr.bf16.mxu0 %v10562_v39 }
 0x310   : > { %8339 = vmatpush1.bf16.msra.mxu1 %v10557_v41  ;;  %8763 = vmatpush1.bf16.msra.mxu0 %v10560_v44 }
 0x311   : > { %8340 = vmatprep.subr.bf16.mxu1 %v10565_v50  ;;  %8764 = vmatprep.subr.bf16.mxu0 %v10568_v51 }
 0x314   : > { %8341 = vmatpush1.bf16.msra.mxu1 %v10563_v52  ;;  %8765 = vmatpush1.bf16.msra.mxu0 %v10566_v42 }
 0x315   : > { %8342 = vmatprep.subr.bf16.mxu1 %v10571_v40  ;;  %8766 = vmatprep.subr.bf16.mxu0 %v10574_v45 }
 0x318   : > { %8343 = vmatpush1.bf16.msra.mxu1 %v10569_v48  ;;  %8767 = vmatpush1.bf16.msra.mxu0 %v10572_v49 }
 0x319   : > { %8344 = vmatprep.subr.bf16.mxu1 %v10577_v43  ;;  %8768 = vmatprep.subr.bf16.mxu0 %v10580_v46 }
 0x31c   : > { %8345 = vmatpush1.bf16.msra.mxu1 %v10575_v47  ;;  %8769 = vmatpush1.bf16.msra.mxu0 %v10578_v53 }
 0x31f   : > { %8347 = vmatmul.mubr.bf16.vlgmr.msra.gmra.mrb[0].mxu1 %v9083_v8  ;;  %8771 = vmatmul.mubr.bf16.vlgmr.msra.gmra.mrb[0].mxu0 %v9099_v9 }
 0x320   : > { %8356 = vmatprep.mubr.bf16.mxu1 %v9116_v10  ;;  %8780 = vmatprep.mubr.bf16.mxu0 %v9132_v58 }
 0x327   : > { %8357 = vmatmul.mubr.bf16.gmra.mrb[4].mxu1 %v9115_v59  ;;  %8781 = vmatmul.mubr.bf16.gmra.mrb[4].mxu0 %v9131_v62 }
 0x3f2   : > { %v8348_v11 = vpop.f32.mrb[0].mxu1  ;;  %v8772_v12 = vpop.f32.mrb[0].mxu0 }
 0x3f3   : > { %v9652_v14 = vadd.f32 %v8772_v12, %v8348_v11  ;;  %v8350_v18 = vpop.f32.mrb[1].mxu1  ;;  %v8774_v19 = vpop.f32.mrb[1].mxu0 }
 0x3f4   : > { %v9653_v22 = vadd.f32 %v8774_v19, %v8350_v18  ;;  %v8352_v24 = vpop.f32.mrb[2].mxu1  ;;  %v8776_v25 = vpop.f32.mrb[2].mxu0 }
 0x3f5   : > { %v9654_v27 = vadd.f32 %v8776_v25, %v8352_v24  ;;  %v8354_v28 = vpop.f32.mrb[3].mxu1  ;;  %v8778_v29 = vpop.f32.mrb[3].mxu0  ;;  %v8830_v16 = vmul.f32 %v9652_v14, %v8823_v15 }
 0x3f6   : > { %v9655_v1 = vadd.f32 %v8778_v29, %v8354_v28  ;;  %v8831_v17 = vmul.f32 %v9653_v22, %v8827_v23 }
 0x3f7   : > { %v8850_v5 = vadd.f32 %v8843_v26, %v8830_v16  ;;  %v8832_v6 = vmul.f32 %v9654_v27, %v8823_v15 }
 0x3f8   : > { %v8851_v30 = vadd.f32 %v8847_v0, %v8831_v17  ;;  %v8833_v31 = vmul.f32 %v9655_v1, %v8827_v23 }
 0x3f9   : > { %vm8858_vm0 = vcmp.ge.f32.partialorder %v8850_v5, 0.0  ;;  %v8866_v20 = vmul.f32 0.2, %v8850_v5  ;;  %v8852_v21 = vadd.f32 %v8843_v26, %v8832_v6 }
 0x3fa   : > { %v8358_v32 = vpop.f32.mrb[4].mxu1  ;;  %v8782_v33 = vpop.f32.mrb[4].mxu0  ;;  %vm8859_vm1 = vcmp.ge.f32.partialorder %v8851_v30, 0.0  ;;  %v8867_v35 = vmul.f32 0.2, %v8851_v30  ;;  %v8853_v36 = vadd.f32 %v8847_v0, %v8833_v31 }
 0x3fb   : > { %v9656_v3 = vadd.f32 %v8782_v33, %v8358_v32  ;;  %v8360_v2 = vpop.f32.mrb[5].mxu1  ;;  %v8784_v34 = vpop.f32.mrb[5].mxu0  ;;  %v8874_v41 = vsel %vm8858_vm0, %v8850_v5, %v8866_v20  ;;  %vm8860_vm2 = vcmp.ge.f32.partialorder %v8852_v21, 0.0  ;;  %v8868_v44 = vmul.f32 0.2, %v8852_v21 }
 0x3fc   : > { %v9657_v37 = vadd.f32 %v8784_v34, %v8360_v2  ;;  %v8362_v38 = vpop.f32.mrb[6].mxu1  ;;  %v8786_v39 = vpop.f32.mrb[6].mxu0  ;;  %8882 = vst [vmem:[%s12576_s15] sm:$0xff] %v8874_v41  ;;  %v8875_v52 = vsel %vm8859_vm1, %v8851_v30, %v8867_v35  ;;  %vm8861_vm3 = vcmp.ge.f32.partialorder %v8853_v36, 0.0  ;;  %v8869_v42 = vmul.f32 0.2, %v8853_v36 }
 0x3fd   : > { %v8364_v50 = vpop.f32.mrb[7].mxu1  ;;  %v8788_v51 = vpop.f32.mrb[7].mxu0  ;;  %8883 = vst [vmem:[%s12576_s15 + $0x8] sm:$0xff] %v8875_v52  ;;  %v8876_v40 = vsel %vm8860_vm2, %v8852_v21, %v8868_v44  ;;  %v8834_v45 = vmul.f32 %v9656_v3, %v8823_v15  ;;  %v9658_v48 = vadd.f32 %v8786_v39, %v8362_v38 }
 0x3fe   : > { %v9659_v49 = vadd.f32 %v8788_v51, %v8364_v50  ;;  %8884 = vst [vmem:[%s12576_s15 + $0x10] sm:$0xff] %v8876_v40  ;;  %v8877_v43 = vsel %vm8861_vm3, %v8853_v36, %v8869_v42  ;;  %v8835_v46 = vmul.f32 %v9657_v37, %v8827_v23 }
 0x3ff   : > { %8885 = vst [vmem:[%s12576_s15 + $0x18] sm:$0xff] %v8877_v43  ;;  %v8854_v47 = vadd.f32 %v8843_v26, %v8834_v45  ;;  %v8836_v55 = vmul.f32 %v9658_v48, %v8823_v15 }
 0x400   : > { %v8855_v53 = vadd.f32 %v8847_v0, %v8835_v46  ;;  %v8837_v57 = vmul.f32 %v9659_v49, %v8827_v23 }
 0x401   : > { %vm8862_vm4 = vcmp.ge.f32.partialorder %v8854_v47, 0.0  ;;  %v8870_v54 = vmul.f32 0.2, %v8854_v47  ;;  %v8856_v9 = vadd.f32 %v8843_v26, %v8836_v55  ;;  %8896 = sbr.rel (!%p10681_p6) target bundleno = 1040 (0x410), region = 100 }
 0x402   : > { %vm8863_vm5 = vcmp.ge.f32.partialorder %v8855_v53, 0.0  ;;  %v8871_v60 = vmul.f32 0.2, %v8855_v53  ;;  %v8857_v10 = vadd.f32 %v8847_v0, %v8837_v57 }
 0x403   : > { %v8878_v8 = vsel %vm8862_vm4, %v8854_v47, %v8870_v54  ;;  %vm8864_vm6 = vcmp.ge.f32.partialorder %v8856_v9, 0.0  ;;  %v8872_v59 = vmul.f32 0.2, %v8856_v9  ;;  %v8915_v61 = vld [vmem:[%s12576_s15] sm:$0xff] (%p10681_p6) }
 0x404   : > { %8886 = vst [vmem:[%s12576_s15 + $0x20] sm:$0xff] %v8878_v8  ;;  %v8879_v58 = vsel %vm8863_vm5, %v8855_v53, %v8871_v60  ;;  %vm8865_vm7 = vcmp.ge.f32.partialorder %v8857_v10, 0.0  ;;  %v8873_v62 = vmul.f32 0.2, %v8857_v10  ;;  %v8917_v4 = vld [vmem:[%s12576_s15 + $0x8] sm:$0xff] (%p10681_p6)  ;;  %8916 = vst [vmem:[%s8902_s27] sm:$0xff] (%p10681_p6), %v8915_v61 }
 0x405   : > { %8887 = vst [vmem:[%s12576_s15 + $0x28] sm:$0xff] %v8879_v58  ;;  %v8880_v63 = vsel %vm8864_vm6, %v8856_v9, %v8872_v59  ;;  %v8919_v7 = vld [vmem:[%s12576_s15 + $0x10] sm:$0xff] (%p10681_p6)  ;;  %8918 = vst [vmem:[%s8902_s27 + $0x8] sm:$0xff] (%p10681_p6), %v8917_v4 }
 0x406   : > { %v8881_v56 = vsel %vm8865_vm7, %v8857_v10, %v8873_v62  ;;  %8888 = vst [vmem:[%s12576_s15 + $0x30] sm:$0xff] %v8880_v63  ;;  %v8921_v11 = vld [vmem:[%s12576_s15 + $0x18] sm:$0xff] (%p10681_p6)  ;;  %8920 = vst [vmem:[%s8902_s27 + $0x20] sm:$0xff] (%p10681_p6), %v8919_v7 }
 0x407   : > { %8889 = vst [vmem:[%s12576_s15 + $0x38] sm:$0xff] %v8881_v56  ;;  %8922 = vst [vmem:[%s8902_s27 + $0x28] sm:$0xff] (%p10681_p6), %v8921_v11 }
 0x40b   : > { %v8923_v12 = vld [vmem:[%s12576_s15 + $0x20] sm:$0xff] }
 0x40c   : > { %v8925_v13 = vld [vmem:[%s12576_s15 + $0x28] sm:$0xff]  ;;  %8924 = vst [vmem:[%s8902_s27 + $0x40] sm:$0xff] %v8923_v12 }
 0x40d   : > { %8926 = vst [vmem:[%s8902_s27 + $0x48] sm:$0xff] %v8925_v13  ;;  %v8927_v14 = vld [vmem:[%s12576_s15 + $0x30] sm:$0xff] }
 0x40e   : > { %v8929_v15 = vld [vmem:[%s12576_s15 + $0x38] sm:$0xff]  ;;  %8928 = vst [vmem:[%s8902_s27 + $0x60] sm:$0xff] %v8927_v14 }
 0x40f   : > { %8930 = vst [vmem:[%s8902_s27 + $0x68] sm:$0xff] %v8929_v15 }
 0x410 PF: > { %s14_s19 = sadd.s32 1, %s10619_s19   ;;  %s12621_s15 = smov %s10607_s16 }
 0x411   : > { %p11_p12 = scmp.ge.s32.totalorder %s14_s19, 4   ;;  %s12622_s16 = smov %s10686_s25 }
 0x412   : > { %s12623_s17 = smov %s10615_s18  ;;  %s12624_s18 = smov %s12626_s20 }
 0x413   :  { %13 = sbr.rel (!%p11_p12) target bundleno = 3 (0x3), region = 169 }

// kernel: patchgan_forward.9
= control target key start
LH: loop header
LB: loop body
LE: loop exit
PB: predicated region body
PF: predicated region fallthrough
CT: control target
= control target key end

     0   :  { %s9481_s1 = inlined_call_operand.vmem [shape: bf16[8192,128], index: 1, kind: input, shape index: {}]   ;;  %s9482_s0 = inlined_call_operand.vmem [shape: bf16[16,8192], index: 0, kind: input, shape index: {}]   ;;  %s9483_s2 = inlined_call_operand.vmem [shape: f32[1,128], index: 2, kind: input, shape index: {}]   ;;  %s9484_s3 = inlined_call_operand.vmem [shape: f32[1,128], index: 3, kind: input, shape index: {}]   ;;  %s9485_s4 = inlined_call_operand.vmem [shape: f32[16,128], index: 4, kind: output, shape index: {}]  }
   0x1   :  { %v7148_v0 = vld [vmem:[%s9481_s1 + $0x40] sm:$0xff]   ;;  %v7152_v4 = vld [vmem:[%s9481_s1 + $0x48] sm:$0xff]   ;;  %v7156_v8 = vld [vmem:[%s9481_s1 + $0x50] sm:$0xff]  }
   0x2   :  { %v7149_v1 = vld [vmem:[%s9481_s1 + $0xc0] sm:$0xff]   ;;  %6443 = vmatprep.subr.bf16.mxu0 %v7148_v0  ;;  %v7153_v5 = vld [vmem:[%s9481_s1 + $0xc8] sm:$0xff]   ;;  %v7157_v9 = vld [vmem:[%s9481_s1 + $0xd0] sm:$0xff]  }
   0x3   :  { %v7150_v2 = vld [vmem:[%s9481_s1] sm:$0xff]   ;;  %6465 = vmatprep.subr.bf16.mxu1 %v7149_v1  ;;  %v7154_v6 = vld [vmem:[%s9481_s1 + $0x8] sm:$0xff]   ;;  %v7158_v10 = vld [vmem:[%s9481_s1 + $0x10] sm:$0xff]  }
   0x4   :  { %v7151_v3 = vld [vmem:[%s9481_s1 + $0x80] sm:$0xff]   ;;  %6444 = vmatpush3.bf16.msra.mxu0 %v7150_v2  ;;  %v7155_v7 = vld [vmem:[%s9481_s1 + $0x88] sm:$0xff]   ;;  %v7159_v11 = vld [vmem:[%s9481_s1 + $0x90] sm:$0xff]  }
   0x5   :  { %6466 = vmatpush3.bf16.msra.mxu1 %v7151_v3  ;;  %6445 = vmatprep.subr.bf16.mxu0 %v7152_v4  ;;  %v7160_v12 = vld [vmem:[%s9481_s1 + $0x58] sm:$0xff]   ;;  %v7164_v16 = vld [vmem:[%s9481_s1 + $0x60] sm:$0xff]   ;;  %v7168_v20 = vld [vmem:[%s9481_s1 + $0x68] sm:$0xff]  }
   0x6   :  { %6467 = vmatprep.subr.bf16.mxu1 %v7153_v5  ;;  %v7161_v13 = vld [vmem:[%s9481_s1 + $0xd8] sm:$0xff]   ;;  %v7165_v17 = vld [vmem:[%s9481_s1 + $0xe0] sm:$0xff]   ;;  %v7169_v21 = vld [vmem:[%s9481_s1 + $0xe8] sm:$0xff]  }
   0x7   :  { %v7162_v14 = vld [vmem:[%s9481_s1 + $0x18] sm:$0xff]   ;;  %v7166_v18 = vld [vmem:[%s9481_s1 + $0x20] sm:$0xff]   ;;  %v7170_v22 = vld [vmem:[%s9481_s1 + $0x28] sm:$0xff]  }
   0x8   :  { %6446 = vmatpush3.bf16.msra.mxu0 %v7154_v6  ;;  %v7163_v15 = vld [vmem:[%s9481_s1 + $0x98] sm:$0xff]   ;;  %v7167_v19 = vld [vmem:[%s9481_s1 + $0xa0] sm:$0xff]   ;;  %v7171_v23 = vld [vmem:[%s9481_s1 + $0xa8] sm:$0xff]  }
   0x9   :  { %6468 = vmatpush3.bf16.msra.mxu1 %v7155_v7  ;;  %6447 = vmatprep.subr.bf16.mxu0 %v7156_v8  ;;  %v7172_v24 = vld [vmem:[%s9481_s1 + $0x70] sm:$0xff]   ;;  %v7176_v28 = vld [vmem:[%s9481_s1 + $0x78] sm:$0xff]   ;;  %v26_v32 = vld [vmem:[%s9482_s0] sm:$0xff] }
   0xa   :  { %6469 = vmatprep.subr.bf16.mxu1 %v7157_v9  ;;  %v7173_v25 = vld [vmem:[%s9481_s1 + $0xf0] sm:$0xff]   ;;  %v7177_v29 = vld [vmem:[%s9481_s1 + $0xf8] sm:$0xff]   ;;  %v58_v33 = vld [vmem:[%s9482_s0 + $0x100] sm:$0xff] }
   0xb   :  { %v7174_v26 = vld [vmem:[%s9481_s1 + $0x30] sm:$0xff]   ;;  %v7178_v30 = vld [vmem:[%s9481_s1 + $0x38] sm:$0xff]   ;;  %v27_v34 = vld [vmem:[%s9482_s0 + $0x8] sm:$0xff]  ;;  %v5863_v35 = vcombine.low %v26_v32, %v58_v33  ;;  %v5864_v36 = vcombine.high %v26_v32, %v58_v33 }
   0xc   :  { %6448 = vmatpush3.bf16.msra.mxu0 %v7158_v10  ;;  %v7175_v27 = vld [vmem:[%s9481_s1 + $0xb0] sm:$0xff]   ;;  %v7179_v31 = vld [vmem:[%s9481_s1 + $0xb8] sm:$0xff]   ;;  %v59_v37 = vld [vmem:[%s9482_s0 + $0x108] sm:$0xff] }
   0xd   :  { %6470 = vmatpush3.bf16.msra.mxu1 %v7159_v11  ;;  %6449 = vmatprep.subr.bf16.mxu0 %v7160_v12  ;;  %v5865_v38 = vcombine.low %v27_v34, %v59_v37  ;;  %v5866_v39 = vcombine.high %v27_v34, %v59_v37  ;;  %v7180_v40 = vld [vmem:[%s9481_s1 + $0x140] sm:$0xff]   ;;  %v7184_v44 = vld [vmem:[%s9481_s1 + $0x148] sm:$0xff]   ;;  %v7188_v48 = vld [vmem:[%s9481_s1 + $0x150] sm:$0xff]  }
   0xe   :  { %6471 = vmatprep.subr.bf16.mxu1 %v7161_v13  ;;  %4538 = vmatprep.mubr.bf16.mxu0 %v5864_v36  ;;  %v7181_v41 = vld [vmem:[%s9481_s1 + $0x1c0] sm:$0xff]   ;;  %v7185_v45 = vld [vmem:[%s9481_s1 + $0x1c8] sm:$0xff]   ;;  %v7189_v49 = vld [vmem:[%s9481_s1 + $0x1d0] sm:$0xff]  }
   0xf   :  { %4579 = vmatprep.mubr.bf16.mxu1 %v5866_v39  ;;  %v7182_v42 = vld [vmem:[%s9481_s1 + $0x100] sm:$0xff]   ;;  %v7186_v46 = vld [vmem:[%s9481_s1 + $0x108] sm:$0xff]   ;;  %v7190_v50 = vld [vmem:[%s9481_s1 + $0x110] sm:$0xff]  }
  0x10   :  { %6450 = vmatpush3.bf16.msra.mxu0 %v7162_v14  ;;  %v7183_v43 = vld [vmem:[%s9481_s1 + $0x180] sm:$0xff]   ;;  %v7187_v47 = vld [vmem:[%s9481_s1 + $0x188] sm:$0xff]   ;;  %v7191_v51 = vld [vmem:[%s9481_s1 + $0x190] sm:$0xff]  }
  0x11   :  { %6472 = vmatpush3.bf16.msra.mxu1 %v7163_v15  ;;  %6451 = vmatprep.subr.bf16.mxu0 %v7164_v16  ;;  %v7192_v52 = vld [vmem:[%s9481_s1 + $0x158] sm:$0xff]   ;;  %v7196_v56 = vld [vmem:[%s9481_s1 + $0x160] sm:$0xff]   ;;  %v7200_v60 = vld [vmem:[%s9481_s1 + $0x168] sm:$0xff]  }
  0x12   :  { %6473 = vmatprep.subr.bf16.mxu1 %v7165_v17  ;;  %v7193_v53 = vld [vmem:[%s9481_s1 + $0x1d8] sm:$0xff]   ;;  %v7197_v57 = vld [vmem:[%s9481_s1 + $0x1e0] sm:$0xff]   ;;  %v7201_v61 = vld [vmem:[%s9481_s1 + $0x1e8] sm:$0xff]  }
  0x13   :  { %v7194_v54 = vld [vmem:[%s9481_s1 + $0x118] sm:$0xff]   ;;  %v7198_v58 = vld [vmem:[%s9481_s1 + $0x120] sm:$0xff]   ;;  %v7202_v62 = vld [vmem:[%s9481_s1 + $0x128] sm:$0xff]  }
  0x14   :  { %6452 = vmatpush3.bf16.msra.mxu0 %v7166_v18  ;;  %v7195_v55 = vld [vmem:[%s9481_s1 + $0x198] sm:$0xff]   ;;  %v7199_v59 = vld [vmem:[%s9481_s1 + $0x1a0] sm:$0xff]   ;;  %v7203_v63 = vld [vmem:[%s9481_s1 + $0x1a8] sm:$0xff]  }
  0x15   :  { %6474 = vmatpush3.bf16.msra.mxu1 %v7167_v19  ;;  %6453 = vmatprep.subr.bf16.mxu0 %v7168_v20  ;;  %v7204_v0 = vld [vmem:[%s9481_s1 + $0x170] sm:$0xff]   ;;  %v7208_v4 = vld [vmem:[%s9481_s1 + $0x178] sm:$0xff]   ;;  %v7212_v16 = vld [vmem:[%s9481_s1 + $0x240] sm:$0xff]  }
  0x16   :  { %6475 = vmatprep.subr.bf16.mxu1 %v7169_v21  ;;  %v7205_v1 = vld [vmem:[%s9481_s1 + $0x1f0] sm:$0xff]   ;;  %v7209_v5 = vld [vmem:[%s9481_s1 + $0x1f8] sm:$0xff]   ;;  %v7213_v17 = vld [vmem:[%s9481_s1 + $0x2c0] sm:$0xff]  }
  0x17   :  { %v7206_v2 = vld [vmem:[%s9481_s1 + $0x130] sm:$0xff]   ;;  %v7210_v6 = vld [vmem:[%s9481_s1 + $0x138] sm:$0xff]   ;;  %v7214_v18 = vld [vmem:[%s9481_s1 + $0x200] sm:$0xff]  }
  0x18   :  { %6454 = vmatpush3.bf16.msra.mxu0 %v7170_v22  ;;  %v7207_v3 = vld [vmem:[%s9481_s1 + $0x1b0] sm:$0xff]   ;;  %v7211_v7 = vld [vmem:[%s9481_s1 + $0x1b8] sm:$0xff]   ;;  %v7215_v19 = vld [vmem:[%s9481_s1 + $0x280] sm:$0xff]  }
  0x19   :  { %6476 = vmatpush3.bf16.msra.mxu1 %v7171_v23  ;;  %6455 = vmatprep.subr.bf16.mxu0 %v7172_v24  ;;  %v28_v8 = vld [vmem:[%s9482_s0 + $0x10] sm:$0xff]  ;;  %v29_v12 = vld [vmem:[%s9482_s0 + $0x18] sm:$0xff]  ;;  %v7216_v20 = vld [vmem:[%s9481_s1 + $0x248] sm:$0xff]  }
  0x1a   :  { %6477 = vmatprep.subr.bf16.mxu1 %v7173_v25  ;;  %v60_v9 = vld [vmem:[%s9482_s0 + $0x110] sm:$0xff]  ;;  %v61_v13 = vld [vmem:[%s9482_s0 + $0x118] sm:$0xff]  ;;  %v7217_v21 = vld [vmem:[%s9481_s1 + $0x2c8] sm:$0xff]  }
  0x1b   :  { %v5867_v10 = vcombine.low %v28_v8, %v60_v9  ;;  %v5868_v11 = vcombine.high %v28_v8, %v60_v9  ;;  %v5869_v14 = vcombine.low %v29_v12, %v61_v13  ;;  %v5870_v15 = vcombine.high %v29_v12, %v61_v13  ;;  %v7218_v22 = vld [vmem:[%s9481_s1 + $0x208] sm:$0xff]   ;;  %v7220_v24 = vld [vmem:[%s9481_s1 + $0x250] sm:$0xff]   ;;  %v7228_v32 = vld [vmem:[%s9481_s1 + $0x260] sm:$0xff]  }
  0x1c   :  { %6456 = vmatpush3.bf16.msra.mxu0 %v7174_v26  ;;  %v7219_v23 = vld [vmem:[%s9481_s1 + $0x288] sm:$0xff]   ;;  %v7221_v25 = vld [vmem:[%s9481_s1 + $0x2d0] sm:$0xff]   ;;  %v7229_v33 = vld [vmem:[%s9481_s1 + $0x2e0] sm:$0xff]  }
  0x1d   :  { %6478 = vmatpush3.bf16.msra.mxu1 %v7175_v27  ;;  %6457 = vmatprep.subr.bf16.mxu0 %v7176_v28  ;;  %v7222_v26 = vld [vmem:[%s9481_s1 + $0x210] sm:$0xff]   ;;  %v7224_v28 = vld [vmem:[%s9481_s1 + $0x258] sm:$0xff]   ;;  %v7230_v34 = vld [vmem:[%s9481_s1 + $0x220] sm:$0xff]  }
  0x1e   :  { %6479 = vmatprep.subr.bf16.mxu1 %v7177_v29  ;;  %v7223_v27 = vld [vmem:[%s9481_s1 + $0x290] sm:$0xff]   ;;  %v7225_v29 = vld [vmem:[%s9481_s1 + $0x2d8] sm:$0xff]   ;;  %v7232_v36 = vld [vmem:[%s9481_s1 + $0x268] sm:$0xff]  }
  0x1f   :  { %v7233_v37 = vld [vmem:[%s9481_s1 + $0x2e8] sm:$0xff]   ;;  %v7260_v8 = vld [vmem:[%s9481_s1 + $0x360] sm:$0xff]  }
  0x20   :  { %6458 = vmatpush3.bf16.msra.mxu0 %v7178_v30  ;;  %v7226_v30 = vld [vmem:[%s9481_s1 + $0x218] sm:$0xff]   ;;  %v7235_v39 = vld [vmem:[%s9481_s1 + $0x2a8] sm:$0xff]   ;;  %v7261_v9 = vld [vmem:[%s9481_s1 + $0x3e0] sm:$0xff]  }
  0x21   :  { %6480 = vmatpush3.bf16.msra.mxu1 %v7179_v31  ;;  %6487 = vmatprep.subr.bf16.mxu0 %v7180_v40  ;;  %v7227_v31 = vld [vmem:[%s9481_s1 + $0x298] sm:$0xff]   ;;  %v7236_v40 = vld [vmem:[%s9481_s1 + $0x270] sm:$0xff]   ;;  %v7264_v12 = vld [vmem:[%s9481_s1 + $0x368] sm:$0xff]  }
  0x22   :  { %6509 = vmatprep.subr.bf16.mxu1 %v7181_v41  ;;  %v7237_v41 = vld [vmem:[%s9481_s1 + $0x2f0] sm:$0xff]   ;;  %v7265_v13 = vld [vmem:[%s9481_s1 + $0x3e8] sm:$0xff]  }
  0x23   :  { %4539 = vmatmul.mubr.bf16.vlgmr.msra.gmra.mrb[0].mxu0 %v5863_v35  ;;  %v7231_v35 = vld [vmem:[%s9481_s1 + $0x2a0] sm:$0xff]  }
  0x24   :  { %4580 = vmatmul.mubr.bf16.vlgmr.msra.gmra.mrb[0].mxu1 %v5865_v38  ;;  %6488 = vmatpush3.bf16.msra.mxu0 %v7182_v42  ;;  %v7234_v38 = vld [vmem:[%s9481_s1 + $0x228] sm:$0xff]   ;;  %v7238_v42 = vld [vmem:[%s9481_s1 + $0x230] sm:$0xff]  }
  0x25   :  { %6510 = vmatpush3.bf16.msra.mxu1 %v7183_v43  ;;  %6489 = vmatprep.subr.bf16.mxu0 %v7184_v44  ;;  %v7239_v43 = vld [vmem:[%s9481_s1 + $0x2b0] sm:$0xff]   ;;  %v7240_v44 = vld [vmem:[%s9481_s1 + $0x278] sm:$0xff]  }
  0x26   :  { %6511 = vmatprep.subr.bf16.mxu1 %v7185_v45  ;;  %4620 = vmatprep.mubr.bf16.mxu0 %v5868_v11  ;;  %v7241_v45 = vld [vmem:[%s9481_s1 + $0x2f8] sm:$0xff]   ;;  %v7263_v11 = vld [vmem:[%s9481_s1 + $0x3a0] sm:$0xff]  }
  0x27   :  { %4661 = vmatprep.mubr.bf16.mxu1 %v5870_v15  ;;  %v7267_v15 = vld [vmem:[%s9481_s1 + $0x3a8] sm:$0xff]  }
  0x28   :  { %6490 = vmatpush3.bf16.msra.mxu0 %v7186_v46  ;;  %v7242_v46 = vld [vmem:[%s9481_s1 + $0x238] sm:$0xff]  }
  0x29   :  { %6512 = vmatpush3.bf16.msra.mxu1 %v7187_v47  ;;  %6491 = vmatprep.subr.bf16.mxu0 %v7188_v48  ;;  %v7243_v47 = vld [vmem:[%s9481_s1 + $0x2b8] sm:$0xff]   ;;  %v30_v48 = vld [vmem:[%s9482_s0 + $0x20] sm:$0xff] }
  0x2a   :  { %6513 = vmatprep.subr.bf16.mxu1 %v7189_v49  ;;  %v62_v49 = vld [vmem:[%s9482_s0 + $0x120] sm:$0xff] }
  0x2c   :  { %6492 = vmatpush3.bf16.msra.mxu0 %v7190_v50  ;;  %v31_v50 = vld [vmem:[%s9482_s0 + $0x28] sm:$0xff] }
  0x2d   :  { %6514 = vmatpush3.bf16.msra.mxu1 %v7191_v51  ;;  %6493 = vmatprep.subr.bf16.mxu0 %v7192_v52  ;;  %v63_v51 = vld [vmem:[%s9482_s0 + $0x128] sm:$0xff]  ;;  %v5871_v52 = vcombine.low %v30_v48, %v62_v49 }
  0x2e   :  { %6515 = vmatprep.subr.bf16.mxu1 %v7193_v53  ;;  %v5872_v53 = vcombine.high %v30_v48, %v62_v49  ;;  %v7292_v48 = vld [vmem:[%s9481_s1 + $0x460] sm:$0xff]  }
  0x2f   :  { %v7293_v49 = vld [vmem:[%s9481_s1 + $0x4e0] sm:$0xff]  }
  0x30   :  { %6494 = vmatpush3.bf16.msra.mxu0 %v7194_v54  ;;  %v5873_v54 = vcombine.low %v31_v50, %v63_v51 }
  0x31   :  { %6516 = vmatpush3.bf16.msra.mxu1 %v7195_v55  ;;  %6495 = vmatprep.subr.bf16.mxu0 %v7196_v56  ;;  %v5874_v55 = vcombine.high %v31_v50, %v63_v51  ;;  %v7244_v56 = vld [vmem:[%s9481_s1 + $0x340] sm:$0xff]  }
  0x32   :  { %6517 = vmatprep.subr.bf16.mxu1 %v7197_v57  ;;  %v7245_v57 = vld [vmem:[%s9481_s1 + $0x3c0] sm:$0xff]  }
  0x33   :  { %v7294_v50 = vld [vmem:[%s9481_s1 + $0x420] sm:$0xff]  }
  0x34   :  { %6496 = vmatpush3.bf16.msra.mxu0 %v7198_v58  ;;  %v7246_v58 = vld [vmem:[%s9481_s1 + $0x300] sm:$0xff]  }
  0x35   :  { %6518 = vmatpush3.bf16.msra.mxu1 %v7199_v59  ;;  %6497 = vmatprep.subr.bf16.mxu0 %v7200_v60  ;;  %v7247_v59 = vld [vmem:[%s9481_s1 + $0x380] sm:$0xff]   ;;  %v7248_v60 = vld [vmem:[%s9481_s1 + $0x348] sm:$0xff]  }
  0x36   :  { %6519 = vmatprep.subr.bf16.mxu1 %v7201_v61  ;;  %v7249_v61 = vld [vmem:[%s9481_s1 + $0x3c8] sm:$0xff]   ;;  %v7295_v51 = vld [vmem:[%s9481_s1 + $0x4a0] sm:$0xff]  }
  0x38   :  { %6498 = vmatpush3.bf16.msra.mxu0 %v7202_v62  ;;  %v7250_v62 = vld [vmem:[%s9481_s1 + $0x308] sm:$0xff]  }
  0x39   :  { %6520 = vmatpush3.bf16.msra.mxu1 %v7203_v63  ;;  %6499 = vmatprep.subr.bf16.mxu0 %v7204_v0  ;;  %v7251_v63 = vld [vmem:[%s9481_s1 + $0x388] sm:$0xff]   ;;  %v7252_v0 = vld [vmem:[%s9481_s1 + $0x350] sm:$0xff]  }
  0x3a   :  { %6521 = vmatprep.subr.bf16.mxu1 %v7205_v1  ;;  %v7253_v1 = vld [vmem:[%s9481_s1 + $0x3d0] sm:$0xff]  }
  0x3c   :  { %6500 = vmatpush3.bf16.msra.mxu0 %v7206_v2  ;;  %v7254_v2 = vld [vmem:[%s9481_s1 + $0x310] sm:$0xff]  }
  0x3d   :  { %6522 = vmatpush3.bf16.msra.mxu1 %v7207_v3  ;;  %6501 = vmatprep.subr.bf16.mxu0 %v7208_v4  ;;  %v7255_v3 = vld [vmem:[%s9481_s1 + $0x390] sm:$0xff]   ;;  %v7256_v4 = vld [vmem:[%s9481_s1 + $0x358] sm:$0xff]  }
  0x3e   :  { %6523 = vmatprep.subr.bf16.mxu1 %v7209_v5  ;;  %v7257_v5 = vld [vmem:[%s9481_s1 + $0x3d8] sm:$0xff]  }
  0x40   :  { %6502 = vmatpush3.bf16.msra.mxu0 %v7210_v6  ;;  %v7258_v6 = vld [vmem:[%s9481_s1 + $0x318] sm:$0xff]  }
  0x41   :  { %6524 = vmatpush3.bf16.msra.mxu1 %v7211_v7  ;;  %6531 = vmatprep.subr.bf16.mxu0 %v7212_v16  ;;  %v7259_v7 = vld [vmem:[%s9481_s1 + $0x398] sm:$0xff]   ;;  %v7268_v16 = vld [vmem:[%s9481_s1 + $0x370] sm:$0xff]  }
  0x42   :  { %6553 = vmatprep.subr.bf16.mxu1 %v7213_v17  ;;  %v7269_v17 = vld [vmem:[%s9481_s1 + $0x3f0] sm:$0xff]  }
  0x43   :  { %4621 = vmatmul.mubr.bf16.vlgmr.msra.gmra.mrb[4].mxu0 %v5867_v10  ;;  %v7262_v10 = vld [vmem:[%s9481_s1 + $0x320] sm:$0xff]  }
  0x44   :  { %4662 = vmatmul.mubr.bf16.vlgmr.msra.gmra.mrb[4].mxu1 %v5869_v14  ;;  %6532 = vmatpush3.bf16.msra.mxu0 %v7214_v18  ;;  %v7266_v14 = vld [vmem:[%s9481_s1 + $0x328] sm:$0xff]   ;;  %v7270_v18 = vld [vmem:[%s9481_s1 + $0x330] sm:$0xff]  }
  0x45   :  { %6554 = vmatpush3.bf16.msra.mxu1 %v7215_v19  ;;  %6533 = vmatprep.subr.bf16.mxu0 %v7216_v20  ;;  %v7271_v19 = vld [vmem:[%s9481_s1 + $0x3b0] sm:$0xff]   ;;  %v7272_v20 = vld [vmem:[%s9481_s1 + $0x378] sm:$0xff]  }
  0x46   :  { %6555 = vmatprep.subr.bf16.mxu1 %v7217_v21  ;;  %4702 = vmatprep.mubr.bf16.mxu0 %v5872_v53  ;;  %v7273_v21 = vld [vmem:[%s9481_s1 + $0x3f8] sm:$0xff]   ;;  %v7297_v53 = vld [vmem:[%s9481_s1 + $0x4e8] sm:$0xff]  }
  0x47   :  { %4743 = vmatprep.mubr.bf16.mxu1 %v5874_v55  ;;  %v7299_v55 = vld [vmem:[%s9481_s1 + $0x4a8] sm:$0xff]  }
  0x48   :  { %6534 = vmatpush3.bf16.msra.mxu0 %v7218_v22  ;;  %v7274_v22 = vld [vmem:[%s9481_s1 + $0x338] sm:$0xff]  }
  0x49   :  { %6556 = vmatpush3.bf16.msra.mxu1 %v7219_v23  ;;  %6535 = vmatprep.subr.bf16.mxu0 %v7220_v24  ;;  %v7275_v23 = vld [vmem:[%s9481_s1 + $0x3b8] sm:$0xff]   ;;  %v32_v24 = vld [vmem:[%s9482_s0 + $0x30] sm:$0xff] }
  0x4a   :  { %6557 = vmatprep.subr.bf16.mxu1 %v7221_v25  ;;  %v64_v25 = vld [vmem:[%s9482_s0 + $0x130] sm:$0xff] }
  0x4c   :  { %6536 = vmatpush3.bf16.msra.mxu0 %v7222_v26  ;;  %v33_v26 = vld [vmem:[%s9482_s0 + $0x38] sm:$0xff] }
  0x4d   :  { %6558 = vmatpush3.bf16.msra.mxu1 %v7223_v27  ;;  %6537 = vmatprep.subr.bf16.mxu0 %v7224_v28  ;;  %v5875_v27 = vcombine.low %v32_v24, %v64_v25  ;;  %v5876_v28 = vcombine.high %v32_v24, %v64_v25  ;;  %v7324_v24 = vld [vmem:[%s9481_s1 + $0x560] sm:$0xff]  }
  0x4e   :  { %6559 = vmatprep.subr.bf16.mxu1 %v7225_v29  ;;  %v65_v29 = vld [vmem:[%s9482_s0 + $0x138] sm:$0xff]  ;;  %v7325_v25 = vld [vmem:[%s9481_s1 + $0x5e0] sm:$0xff]  }
  0x50   :  { %6538 = vmatpush3.bf16.msra.mxu0 %v7226_v30  ;;  %v5877_v30 = vcombine.low %v33_v26, %v65_v29 }
  0x51   :  { %6560 = vmatpush3.bf16.msra.mxu1 %v7227_v31  ;;  %6539 = vmatprep.subr.bf16.mxu0 %v7228_v32  ;;  %v5878_v31 = vcombine.high %v33_v26, %v65_v29  ;;  %v7276_v32 = vld [vmem:[%s9481_s1 + $0x440] sm:$0xff]   ;;  %v7329_v29 = vld [vmem:[%s9481_s1 + $0x5e8] sm:$0xff]  }
  0x52   :  { %6561 = vmatprep.subr.bf16.mxu1 %v7229_v33  ;;  %v7277_v33 = vld [vmem:[%s9481_s1 + $0x4c0] sm:$0xff]  }
  0x53   :  { %v7326_v26 = vld [vmem:[%s9481_s1 + $0x520] sm:$0xff]  }
  0x54   :  { %6540 = vmatpush3.bf16.msra.mxu0 %v7230_v34  ;;  %v7278_v34 = vld [vmem:[%s9481_s1 + $0x400] sm:$0xff]  }
  0x55   :  { %6562 = vmatpush3.bf16.msra.mxu1 %v7231_v35  ;;  %6541 = vmatprep.subr.bf16.mxu0 %v7232_v36  ;;  %v7279_v35 = vld [vmem:[%s9481_s1 + $0x480] sm:$0xff]   ;;  %v7280_v36 = vld [vmem:[%s9481_s1 + $0x448] sm:$0xff]  }
  0x56   :  { %6563 = vmatprep.subr.bf16.mxu1 %v7233_v37  ;;  %v7281_v37 = vld [vmem:[%s9481_s1 + $0x4c8] sm:$0xff]  }
  0x58   :  { %6542 = vmatpush3.bf16.msra.mxu0 %v7234_v38  ;;  %v7282_v38 = vld [vmem:[%s9481_s1 + $0x408] sm:$0xff]  }
  0x59   :  { %6564 = vmatpush3.bf16.msra.mxu1 %v7235_v39  ;;  %6543 = vmatprep.subr.bf16.mxu0 %v7236_v40  ;;  %v7283_v39 = vld [vmem:[%s9481_s1 + $0x488] sm:$0xff]   ;;  %v7284_v40 = vld [vmem:[%s9481_s1 + $0x450] sm:$0xff]  }
  0x5a   :  { %6565 = vmatprep.subr.bf16.mxu1 %v7237_v41  ;;  %v7285_v41 = vld [vmem:[%s9481_s1 + $0x4d0] sm:$0xff]  }
  0x5c   :  { %6544 = vmatpush3.bf16.msra.mxu0 %v7238_v42  ;;  %v7286_v42 = vld [vmem:[%s9481_s1 + $0x410] sm:$0xff]  }
  0x5d   :  { %6566 = vmatpush3.bf16.msra.mxu1 %v7239_v43  ;;  %6545 = vmatprep.subr.bf16.mxu0 %v7240_v44  ;;  %v7287_v43 = vld [vmem:[%s9481_s1 + $0x490] sm:$0xff]   ;;  %v7288_v44 = vld [vmem:[%s9481_s1 + $0x458] sm:$0xff]  }
  0x5e   :  { %6567 = vmatprep.subr.bf16.mxu1 %v7241_v45  ;;  %v7289_v45 = vld [vmem:[%s9481_s1 + $0x4d8] sm:$0xff]  }
  0x60   :  { %6546 = vmatpush3.bf16.msra.mxu0 %v7242_v46  ;;  %v7290_v46 = vld [vmem:[%s9481_s1 + $0x418] sm:$0xff]  }
  0x61   :  { %6568 = vmatpush3.bf16.msra.mxu1 %v7243_v47  ;;  %6575 = vmatprep.subr.bf16.mxu0 %v7244_v56  ;;  %v7291_v47 = vld [vmem:[%s9481_s1 + $0x498] sm:$0xff]   ;;  %v7300_v56 = vld [vmem:[%s9481_s1 + $0x470] sm:$0xff]  }
  0x62   :  { %6597 = vmatprep.subr.bf16.mxu1 %v7245_v57  ;;  %v7301_v57 = vld [vmem:[%s9481_s1 + $0x4f0] sm:$0xff]  }
  0x63   :  { %4703 = vmatmul.mubr.bf16.vlgmr.msra.gmra.mrb[8].mxu0 %v5871_v52  ;;  %v7296_v52 = vld [vmem:[%s9481_s1 + $0x468] sm:$0xff]  }
  0x64   :  { %4744 = vmatmul.mubr.bf16.vlgmr.msra.gmra.mrb[8].mxu1 %v5873_v54  ;;  %6576 = vmatpush3.bf16.msra.mxu0 %v7246_v58  ;;  %v7298_v54 = vld [vmem:[%s9481_s1 + $0x428] sm:$0xff]   ;;  %v7302_v58 = vld [vmem:[%s9481_s1 + $0x430] sm:$0xff]  }
  0x65   :  { %6598 = vmatpush3.bf16.msra.mxu1 %v7247_v59  ;;  %6577 = vmatprep.subr.bf16.mxu0 %v7248_v60  ;;  %v7303_v59 = vld [vmem:[%s9481_s1 + $0x4b0] sm:$0xff]   ;;  %v7304_v60 = vld [vmem:[%s9481_s1 + $0x478] sm:$0xff]  }
  0x66   :  { %6599 = vmatprep.subr.bf16.mxu1 %v7249_v61  ;;  %4784 = vmatprep.mubr.bf16.mxu0 %v5876_v28  ;;  %v7305_v61 = vld [vmem:[%s9481_s1 + $0x4f8] sm:$0xff]   ;;  %v7328_v28 = vld [vmem:[%s9481_s1 + $0x568] sm:$0xff]  }
  0x67   :  { %4825 = vmatprep.mubr.bf16.mxu1 %v5878_v31  ;;  %v7331_v31 = vld [vmem:[%s9481_s1 + $0x5a8] sm:$0xff]  }
  0x68   :  { %6578 = vmatpush3.bf16.msra.mxu0 %v7250_v62  ;;  %v7306_v62 = vld [vmem:[%s9481_s1 + $0x438] sm:$0xff]  }
  0x69   :  { %6600 = vmatpush3.bf16.msra.mxu1 %v7251_v63  ;;  %6579 = vmatprep.subr.bf16.mxu0 %v7252_v0  ;;  %v7307_v63 = vld [vmem:[%s9481_s1 + $0x4b8] sm:$0xff]   ;;  %v34_v0 = vld [vmem:[%s9482_s0 + $0x40] sm:$0xff] }
  0x6a   :  { %6601 = vmatprep.subr.bf16.mxu1 %v7253_v1  ;;  %v66_v1 = vld [vmem:[%s9482_s0 + $0x140] sm:$0xff] }
  0x6c   :  { %6580 = vmatpush3.bf16.msra.mxu0 %v7254_v2  ;;  %v5879_v2 = vcombine.low %v34_v0, %v66_v1 }
  0x6d   :  { %6602 = vmatpush3.bf16.msra.mxu1 %v7255_v3  ;;  %6581 = vmatprep.subr.bf16.mxu0 %v7256_v4  ;;  %v5880_v3 = vcombine.high %v34_v0, %v66_v1  ;;  %v35_v4 = vld [vmem:[%s9482_s0 + $0x48] sm:$0xff]  ;;  %v7356_v0 = vld [vmem:[%s9481_s1 + $0x660] sm:$0xff]  }
  0x6e   :  { %6603 = vmatprep.subr.bf16.mxu1 %v7257_v5  ;;  %v67_v5 = vld [vmem:[%s9482_s0 + $0x148] sm:$0xff]  ;;  %v7357_v1 = vld [vmem:[%s9481_s1 + $0x6e0] sm:$0xff]  }
  0x70   :  { %6582 = vmatpush3.bf16.msra.mxu0 %v7258_v6  ;;  %v5881_v6 = vcombine.low %v35_v4, %v67_v5 }
  0x71   :  { %6604 = vmatpush3.bf16.msra.mxu1 %v7259_v7  ;;  %6583 = vmatprep.subr.bf16.mxu0 %v7260_v8  ;;  %v5882_v7 = vcombine.high %v35_v4, %v67_v5  ;;  %v7308_v8 = vld [vmem:[%s9481_s1 + $0x540] sm:$0xff]   ;;  %v7360_v4 = vld [vmem:[%s9481_s1 + $0x668] sm:$0xff]  }
  0x72   :  { %6605 = vmatprep.subr.bf16.mxu1 %v7261_v9  ;;  %v7309_v9 = vld [vmem:[%s9481_s1 + $0x5c0] sm:$0xff]   ;;  %v7361_v5 = vld [vmem:[%s9481_s1 + $0x6e8] sm:$0xff]  }
  0x74   :  { %6584 = vmatpush3.bf16.msra.mxu0 %v7262_v10  ;;  %v7310_v10 = vld [vmem:[%s9481_s1 + $0x500] sm:$0xff]  }
  0x75   :  { %6606 = vmatpush3.bf16.msra.mxu1 %v7263_v11  ;;  %6585 = vmatprep.subr.bf16.mxu0 %v7264_v12  ;;  %v7311_v11 = vld [vmem:[%s9481_s1 + $0x580] sm:$0xff]   ;;  %v7312_v12 = vld [vmem:[%s9481_s1 + $0x548] sm:$0xff]  }
  0x76   :  { %6607 = vmatprep.subr.bf16.mxu1 %v7265_v13  ;;  %v7313_v13 = vld [vmem:[%s9481_s1 + $0x5c8] sm:$0xff]  }
  0x78   :  { %6586 = vmatpush3.bf16.msra.mxu0 %v7266_v14  ;;  %v7314_v14 = vld [vmem:[%s9481_s1 + $0x508] sm:$0xff]  }
  0x79   :  { %6608 = vmatpush3.bf16.msra.mxu1 %v7267_v15  ;;  %6587 = vmatprep.subr.bf16.mxu0 %v7268_v16  ;;  %v7315_v15 = vld [vmem:[%s9481_s1 + $0x588] sm:$0xff]   ;;  %v7316_v16 = vld [vmem:[%s9481_s1 + $0x550] sm:$0xff]  }
  0x7a   :  { %6609 = vmatprep.subr.bf16.mxu1 %v7269_v17  ;;  %v7317_v17 = vld [vmem:[%s9481_s1 + $0x5d0] sm:$0xff]  }
  0x7c   :  { %6588 = vmatpush3.bf16.msra.mxu0 %v7270_v18  ;;  %v7318_v18 = vld [vmem:[%s9481_s1 + $0x510] sm:$0xff]  }
  0x7d   :  { %6610 = vmatpush3.bf16.msra.mxu1 %v7271_v19  ;;  %6589 = vmatprep.subr.bf16.mxu0 %v7272_v20  ;;  %v7319_v19 = vld [vmem:[%s9481_s1 + $0x590] sm:$0xff]   ;;  %v7320_v20 = vld [vmem:[%s9481_s1 + $0x558] sm:$0xff]  }
  0x7e   :  { %6611 = vmatprep.subr.bf16.mxu1 %v7273_v21  ;;  %v7321_v21 = vld [vmem:[%s9481_s1 + $0x5d8] sm:$0xff]  }
  0x80   :  { %6590 = vmatpush3.bf16.msra.mxu0 %v7274_v22  ;;  %v7322_v22 = vld [vmem:[%s9481_s1 + $0x518] sm:$0xff]  }
  0x81   :  { %6612 = vmatpush3.bf16.msra.mxu1 %v7275_v23  ;;  %6619 = vmatprep.subr.bf16.mxu0 %v7276_v32  ;;  %v7323_v23 = vld [vmem:[%s9481_s1 + $0x598] sm:$0xff]   ;;  %v7332_v32 = vld [vmem:[%s9481_s1 + $0x570] sm:$0xff]  }
  0x82   :  { %6641 = vmatprep.subr.bf16.mxu1 %v7277_v33  ;;  %v7333_v33 = vld [vmem:[%s9481_s1 + $0x5f0] sm:$0xff]  }
  0x83   :  { %4785 = vmatmul.mubr.bf16.vlgmr.msra.gmra.mrb[12].mxu0 %v5875_v27  ;;  %v7327_v27 = vld [vmem:[%s9481_s1 + $0x5a0] sm:$0xff]  }
  0x84   :  { %4826 = vmatmul.mubr.bf16.vlgmr.msra.gmra.mrb[12].mxu1 %v5877_v30  ;;  %6620 = vmatpush3.bf16.msra.mxu0 %v7278_v34  ;;  %v7330_v30 = vld [vmem:[%s9481_s1 + $0x528] sm:$0xff]   ;;  %v7334_v34 = vld [vmem:[%s9481_s1 + $0x530] sm:$0xff]  }
  0x85   :  { %6642 = vmatpush3.bf16.msra.mxu1 %v7279_v35  ;;  %6621 = vmatprep.subr.bf16.mxu0 %v7280_v36  ;;  %v7335_v35 = vld [vmem:[%s9481_s1 + $0x5b0] sm:$0xff]   ;;  %v7336_v36 = vld [vmem:[%s9481_s1 + $0x578] sm:$0xff]  }
  0x86   :  { %6643 = vmatprep.subr.bf16.mxu1 %v7281_v37  ;;  %4866 = vmatprep.mubr.bf16.mxu0 %v5880_v3  ;;  %v7337_v37 = vld [vmem:[%s9481_s1 + $0x5f8] sm:$0xff]   ;;  %v7359_v3 = vld [vmem:[%s9481_s1 + $0x6a0] sm:$0xff]  }
  0x87   :  { %4907 = vmatprep.mubr.bf16.mxu1 %v5882_v7  ;;  %v7363_v7 = vld [vmem:[%s9481_s1 + $0x6a8] sm:$0xff]  }
  0x88   :  { %6622 = vmatpush3.bf16.msra.mxu0 %v7282_v38  ;;  %v7338_v38 = vld [vmem:[%s9481_s1 + $0x538] sm:$0xff]  }
  0x89   :  { %6644 = vmatpush3.bf16.msra.mxu1 %v7283_v39  ;;  %6623 = vmatprep.subr.bf16.mxu0 %v7284_v40  ;;  %v7339_v39 = vld [vmem:[%s9481_s1 + $0x5b8] sm:$0xff]   ;;  %v36_v40 = vld [vmem:[%s9482_s0 + $0x50] sm:$0xff] }
  0x8a   :  { %6645 = vmatprep.subr.bf16.mxu1 %v7285_v41  ;;  %v68_v41 = vld [vmem:[%s9482_s0 + $0x150] sm:$0xff] }
  0x8c   :  { %6624 = vmatpush3.bf16.msra.mxu0 %v7286_v42  ;;  %v37_v42 = vld [vmem:[%s9482_s0 + $0x58] sm:$0xff] }
  0x8d   :  { %6646 = vmatpush3.bf16.msra.mxu1 %v7287_v43  ;;  %6625 = vmatprep.subr.bf16.mxu0 %v7288_v44  ;;  %v69_v43 = vld [vmem:[%s9482_s0 + $0x158] sm:$0xff]  ;;  %v5883_v44 = vcombine.low %v36_v40, %v68_v41 }
  0x8e   :  { %6647 = vmatprep.subr.bf16.mxu1 %v7289_v45  ;;  %v5884_v45 = vcombine.high %v36_v40, %v68_v41  ;;  %v7387_v41 = vld [vmem:[%s9481_s1 + $0x798] sm:$0xff]  }
  0x90   :  { %6626 = vmatpush3.bf16.msra.mxu0 %v7290_v46  ;;  %v5885_v46 = vcombine.low %v37_v42, %v69_v43 }
  0x91   :  { %6648 = vmatpush3.bf16.msra.mxu1 %v7291_v47  ;;  %6627 = vmatprep.subr.bf16.mxu0 %v7292_v48  ;;  %v5886_v47 = vcombine.high %v37_v42, %v69_v43  ;;  %v7340_v48 = vld [vmem:[%s9481_s1 + $0x640] sm:$0xff]  }
  0x92   :  { %6649 = vmatprep.subr.bf16.mxu1 %v7293_v49  ;;  %v7341_v49 = vld [vmem:[%s9481_s1 + $0x6c0] sm:$0xff]  }
  0x93   :  { %v7388_v43 = vld [vmem:[%s9481_s1 + $0x760] sm:$0xff]  }
  0x94   :  { %6628 = vmatpush3.bf16.msra.mxu0 %v7294_v50  ;;  %v7342_v50 = vld [vmem:[%s9481_s1 + $0x600] sm:$0xff]  }
  0x95   :  { %6650 = vmatpush3.bf16.msra.mxu1 %v7295_v51  ;;  %6629 = vmatprep.subr.bf16.mxu0 %v7296_v52  ;;  %v7343_v51 = vld [vmem:[%s9481_s1 + $0x680] sm:$0xff]   ;;  %v7344_v52 = vld [vmem:[%s9481_s1 + $0x648] sm:$0xff]  }
  0x96   :  { %6651 = vmatprep.subr.bf16.mxu1 %v7297_v53  ;;  %v7345_v53 = vld [vmem:[%s9481_s1 + $0x6c8] sm:$0xff]  }
  0x98   :  { %6630 = vmatpush3.bf16.msra.mxu0 %v7298_v54  ;;  %v7346_v54 = vld [vmem:[%s9481_s1 + $0x608] sm:$0xff]  }
  0x99   :  { %6652 = vmatpush3.bf16.msra.mxu1 %v7299_v55  ;;  %6631 = vmatprep.subr.bf16.mxu0 %v7300_v56  ;;  %v7347_v55 = vld [vmem:[%s9481_s1 + $0x688] sm:$0xff]   ;;  %v7348_v56 = vld [vmem:[%s9481_s1 + $0x650] sm:$0xff]  }
  0x9a   :  { %6653 = vmatprep.subr.bf16.mxu1 %v7301_v57  ;;  %v7349_v57 = vld [vmem:[%s9481_s1 + $0x6d0] sm:$0xff]  }
  0x9c   :  { %6632 = vmatpush3.bf16.msra.mxu0 %v7302_v58  ;;  %v7350_v58 = vld [vmem:[%s9481_s1 + $0x610] sm:$0xff]  }
  0x9d   :  { %6654 = vmatpush3.bf16.msra.mxu1 %v7303_v59  ;;  %6633 = vmatprep.subr.bf16.mxu0 %v7304_v60  ;;  %v7351_v59 = vld [vmem:[%s9481_s1 + $0x690] sm:$0xff]   ;;  %v7352_v60 = vld [vmem:[%s9481_s1 + $0x658] sm:$0xff]  }
  0x9e   :  { %6655 = vmatprep.subr.bf16.mxu1 %v7305_v61  ;;  %v7353_v61 = vld [vmem:[%s9481_s1 + $0x6d8] sm:$0xff]  }
  0xa0   :  { %6634 = vmatpush3.bf16.msra.mxu0 %v7306_v62  ;;  %v7354_v62 = vld [vmem:[%s9481_s1 + $0x618] sm:$0xff]  }
  0xa1   :  { %6656 = vmatpush3.bf16.msra.mxu1 %v7307_v63  ;;  %6663 = vmatprep.subr.bf16.mxu0 %v7308_v8  ;;  %v7355_v63 = vld [vmem:[%s9481_s1 + $0x698] sm:$0xff]   ;;  %v7364_v8 = vld [vmem:[%s9481_s1 + $0x670] sm:$0xff]  }
  0xa2   :  { %6685 = vmatprep.subr.bf16.mxu1 %v7309_v9  ;;  %v7365_v9 = vld [vmem:[%s9481_s1 + $0x6f0] sm:$0xff]  }
  0xa3   :  { %4867 = vmatmul.mubr.bf16.vlgmr.msra.gmra.mrb[16].mxu0 %v5879_v2  ;;  %v7358_v2 = vld [vmem:[%s9481_s1 + $0x620] sm:$0xff]  }
  0xa4   :  { %4908 = vmatmul.mubr.bf16.vlgmr.msra.gmra.mrb[16].mxu1 %v5881_v6  ;;  %6664 = vmatpush3.bf16.msra.mxu0 %v7310_v10  ;;  %v7362_v6 = vld [vmem:[%s9481_s1 + $0x628] sm:$0xff]   ;;  %v7366_v10 = vld [vmem:[%s9481_s1 + $0x630] sm:$0xff]  }
  0xa5   :  { %6686 = vmatpush3.bf16.msra.mxu1 %v7311_v11  ;;  %6665 = vmatprep.subr.bf16.mxu0 %v7312_v12  ;;  %v7367_v11 = vld [vmem:[%s9481_s1 + $0x6b0] sm:$0xff]   ;;  %v7368_v12 = vld [vmem:[%s9481_s1 + $0x678] sm:$0xff]  }
  0xa6   :  { %6687 = vmatprep.subr.bf16.mxu1 %v7313_v13  ;;  %4948 = vmatprep.mubr.bf16.mxu0 %v5884_v45  ;;  %v7369_v13 = vld [vmem:[%s9481_s1 + $0x6f8] sm:$0xff]  }
  0xa7   :  { %4989 = vmatprep.mubr.bf16.mxu1 %v5886_v47 }
  0xa8   :  { %6666 = vmatpush3.bf16.msra.mxu0 %v7314_v14  ;;  %v7370_v14 = vld [vmem:[%s9481_s1 + $0x638] sm:$0xff]  }
  0xa9   :  { %6688 = vmatpush3.bf16.msra.mxu1 %v7315_v15  ;;  %6667 = vmatprep.subr.bf16.mxu0 %v7316_v16  ;;  %v7371_v15 = vld [vmem:[%s9481_s1 + $0x6b8] sm:$0xff]   ;;  %v38_v16 = vld [vmem:[%s9482_s0 + $0x60] sm:$0xff] }
  0xaa   :  { %6689 = vmatprep.subr.bf16.mxu1 %v7317_v17  ;;  %v70_v17 = vld [vmem:[%s9482_s0 + $0x160] sm:$0xff] }
  0xac   :  { %6668 = vmatpush3.bf16.msra.mxu0 %v7318_v18  ;;  %v39_v18 = vld [vmem:[%s9482_s0 + $0x68] sm:$0xff] }
  0xad   :  { %6690 = vmatpush3.bf16.msra.mxu1 %v7319_v19  ;;  %6669 = vmatprep.subr.bf16.mxu0 %v7320_v20  ;;  %v5887_v19 = vcombine.low %v38_v16, %v70_v17  ;;  %v5888_v20 = vcombine.high %v38_v16, %v70_v17  ;;  %v7406_v16 = vld [vmem:[%s9481_s1 + $0x800] sm:$0xff]  }
  0xae   :  { %6691 = vmatprep.subr.bf16.mxu1 %v7321_v21  ;;  %v71_v21 = vld [vmem:[%s9482_s0 + $0x168] sm:$0xff]  ;;  %v7407_v17 = vld [vmem:[%s9481_s1 + $0x880] sm:$0xff]  }
  0xb0   :  { %6670 = vmatpush3.bf16.msra.mxu0 %v7322_v22  ;;  %v5889_v22 = vcombine.low %v39_v18, %v71_v21 }
  0xb1   :  { %6692 = vmatpush3.bf16.msra.mxu1 %v7323_v23  ;;  %6671 = vmatprep.subr.bf16.mxu0 %v7324_v24  ;;  %v5890_v23 = vcombine.high %v39_v18, %v71_v21  ;;  %v7372_v24 = vld [vmem:[%s9481_s1 + $0x740] sm:$0xff]   ;;  %v7408_v18 = vld [vmem:[%s9481_s1 + $0x848] sm:$0xff]  }
  0xb2   :  { %6693 = vmatprep.subr.bf16.mxu1 %v7325_v25  ;;  %v7373_v25 = vld [vmem:[%s9481_s1 + $0x7c0] sm:$0xff]   ;;  %v7411_v21 = vld [vmem:[%s9481_s1 + $0x888] sm:$0xff]  }
  0xb4   :  { %6672 = vmatpush3.bf16.msra.mxu0 %v7326_v26  ;;  %v7374_v26 = vld [vmem:[%s9481_s1 + $0x700] sm:$0xff]  }
  0xb5   :  { %6694 = vmatpush3.bf16.msra.mxu1 %v7327_v27  ;;  %6673 = vmatprep.subr.bf16.mxu0 %v7328_v28  ;;  %v7375_v27 = vld [vmem:[%s9481_s1 + $0x780] sm:$0xff]   ;;  %v7376_v28 = vld [vmem:[%s9481_s1 + $0x748] sm:$0xff]  }
  0xb6   :  { %6695 = vmatprep.subr.bf16.mxu1 %v7329_v29  ;;  %v7377_v29 = vld [vmem:[%s9481_s1 + $0x7c8] sm:$0xff]  }
  0xb8   :  { %6674 = vmatpush3.bf16.msra.mxu0 %v7330_v30  ;;  %v7378_v30 = vld [vmem:[%s9481_s1 + $0x708] sm:$0xff]  }
  0xb9   :  { %6696 = vmatpush3.bf16.msra.mxu1 %v7331_v31  ;;  %6675 = vmatprep.subr.bf16.mxu0 %v7332_v32  ;;  %v7379_v31 = vld [vmem:[%s9481_s1 + $0x788] sm:$0xff]   ;;  %v7380_v32 = vld [vmem:[%s9481_s1 + $0x750] sm:$0xff]  }
  0xba   :  { %6697 = vmatprep.subr.bf16.mxu1 %v7333_v33  ;;  %v7381_v33 = vld [vmem:[%s9481_s1 + $0x7d0] sm:$0xff]  }
  0xbc   :  { %6676 = vmatpush3.bf16.msra.mxu0 %v7334_v34  ;;  %v7382_v34 = vld [vmem:[%s9481_s1 + $0x710] sm:$0xff]  }
  0xbd   :  { %6698 = vmatpush3.bf16.msra.mxu1 %v7335_v35  ;;  %6677 = vmatprep.subr.bf16.mxu0 %v7336_v36  ;;  %v7383_v35 = vld [vmem:[%s9481_s1 + $0x790] sm:$0xff]   ;;  %v7384_v36 = vld [vmem:[%s9481_s1 + $0x758] sm:$0xff]  }
  0xbe   :  { %6699 = vmatprep.subr.bf16.mxu1 %v7337_v37  ;;  %v7385_v37 = vld [vmem:[%s9481_s1 + $0x7d8] sm:$0xff]  }
  0xc0   :  { %6678 = vmatpush3.bf16.msra.mxu0 %v7338_v38 }
  0xc1   :  { %6700 = vmatpush3.bf16.msra.mxu1 %v7339_v39  ;;  %6707 = vmatprep.subr.bf16.mxu0 %v7340_v48  ;;  %v7386_v39 = vld [vmem:[%s9481_s1 + $0x718] sm:$0xff]  }
  0xc2   :  { %6729 = vmatprep.subr.bf16.mxu1 %v7341_v49  ;;  %v7390_v49 = vld [vmem:[%s9481_s1 + $0x720] sm:$0xff]  }
  0xc3   :  { %4949 = vmatmul.mubr.bf16.vlgmr.msra.gmra.mrb[20].mxu0 %v5883_v44 }
  0xc4   :  { %4990 = vmatmul.mubr.bf16.vlgmr.msra.gmra.mrb[20].mxu1 %v5885_v46  ;;  %6708 = vmatpush3.bf16.msra.mxu0 %v7342_v50  ;;  %v7389_v46 = vld [vmem:[%s9481_s1 + $0x7e0] sm:$0xff]  }
  0xc5   :  { %6730 = vmatpush3.bf16.msra.mxu1 %v7343_v51  ;;  %6709 = vmatprep.subr.bf16.mxu0 %v7344_v52  ;;  %v7391_v51 = vld [vmem:[%s9481_s1 + $0x7a0] sm:$0xff]  }
  0xc6   :  { %6731 = vmatprep.subr.bf16.mxu1 %v7345_v53  ;;  %5030 = vmatprep.mubr.bf16.mxu0 %v5888_v20  ;;  %v7410_v20 = vld [vmem:[%s9481_s1 + $0x808] sm:$0xff]  }
  0xc7   :  { %5071 = vmatprep.mubr.bf16.mxu1 %v5890_v23  ;;  %v7413_v23 = vld [vmem:[%s9481_s1 + $0x8d0] sm:$0xff]  }
  0xc8   :  { %6710 = vmatpush3.bf16.msra.mxu0 %v7346_v54  ;;  %v7392_v54 = vld [vmem:[%s9481_s1 + $0x768] sm:$0xff]  }
  0xc9   :  { %6732 = vmatpush3.bf16.msra.mxu1 %v7347_v55  ;;  %6711 = vmatprep.subr.bf16.mxu0 %v7348_v56 }
  0xca   :  { %6733 = vmatprep.subr.bf16.mxu1 %v7349_v57  ;;  %v7393_v57 = vld [vmem:[%s9481_s1 + $0x7e8] sm:$0xff]  }
  0xcc   :  { %6712 = vmatpush3.bf16.msra.mxu0 %v7350_v58 }
  0xcd   :  { %6734 = vmatpush3.bf16.msra.mxu1 %v7351_v59  ;;  %6713 = vmatprep.subr.bf16.mxu0 %v7352_v60  ;;  %v7394_v59 = vld [vmem:[%s9481_s1 + $0x728] sm:$0xff]  }
  0xce   :  { %6735 = vmatprep.subr.bf16.mxu1 %v7353_v61  ;;  %v7395_v60 = vld [vmem:[%s9481_s1 + $0x7a8] sm:$0xff]  }
  0xd0   :  { %6714 = vmatpush3.bf16.msra.mxu0 %v7354_v62  ;;  %v7396_v62 = vld [vmem:[%s9481_s1 + $0x770] sm:$0xff]  }
  0xd1   :  { %6736 = vmatpush3.bf16.msra.mxu1 %v7355_v63  ;;  %6715 = vmatprep.subr.bf16.mxu0 %v7356_v0  ;;  %v7397_v63 = vld [vmem:[%s9481_s1 + $0x7f0] sm:$0xff]  }
  0xd2   :  { %6737 = vmatprep.subr.bf16.mxu1 %v7357_v1  ;;  %v7398_v0 = vld [vmem:[%s9481_s1 + $0x730] sm:$0xff]  }
  0xd3   :  { %v7399_v1 = vld [vmem:[%s9481_s1 + $0x7b0] sm:$0xff]  }
  0xd4   :  { %6716 = vmatpush3.bf16.msra.mxu0 %v7358_v2  ;;  %v7400_v2 = vld [vmem:[%s9481_s1 + $0x778] sm:$0xff]  }
  0xd5   :  { %6738 = vmatpush3.bf16.msra.mxu1 %v7359_v3  ;;  %6717 = vmatprep.subr.bf16.mxu0 %v7360_v4  ;;  %v7401_v3 = vld [vmem:[%s9481_s1 + $0x7f8] sm:$0xff]  }
  0xd6   :  { %6739 = vmatprep.subr.bf16.mxu1 %v7361_v5  ;;  %v7402_v4 = vld [vmem:[%s9481_s1 + $0x738] sm:$0xff]  }
  0xd7   :  { %v7403_v5 = vld [vmem:[%s9481_s1 + $0x7b8] sm:$0xff]  }
  0xd8   :  { %6718 = vmatpush3.bf16.msra.mxu0 %v7362_v6  ;;  %v40_v6 = vld [vmem:[%s9482_s0 + $0x70] sm:$0xff] }
  0xd9   :  { %6740 = vmatpush3.bf16.msra.mxu1 %v7363_v7  ;;  %6719 = vmatprep.subr.bf16.mxu0 %v7364_v8  ;;  %v72_v7 = vld [vmem:[%s9482_s0 + $0x170] sm:$0xff] }
  0xda   :  { %6741 = vmatprep.subr.bf16.mxu1 %v7365_v9  ;;  %v5891_v8 = vcombine.low %v40_v6, %v72_v7  ;;  %v5892_v9 = vcombine.high %v40_v6, %v72_v7  ;;  %v7436_v6 = vld [vmem:[%s9481_s1 + $0x940] sm:$0xff]  }
  0xdb   :  { %v7437_v7 = vld [vmem:[%s9481_s1 + $0x9c0] sm:$0xff]  }
  0xdc   :  { %6720 = vmatpush3.bf16.msra.mxu0 %v7366_v10  ;;  %v41_v10 = vld [vmem:[%s9482_s0 + $0x78] sm:$0xff] }
  0xdd   :  { %6742 = vmatpush3.bf16.msra.mxu1 %v7367_v11  ;;  %6721 = vmatprep.subr.bf16.mxu0 %v7368_v12  ;;  %v73_v11 = vld [vmem:[%s9482_s0 + $0x178] sm:$0xff] }
  0xde   :  { %6743 = vmatprep.subr.bf16.mxu1 %v7369_v13  ;;  %v5893_v12 = vcombine.low %v41_v10, %v73_v11  ;;  %v5894_v13 = vcombine.high %v41_v10, %v73_v11  ;;  %v7440_v10 = vld [vmem:[%s9481_s1 + $0x948] sm:$0xff]  }
  0xdf   :  { %v7441_v11 = vld [vmem:[%s9481_s1 + $0x9c8] sm:$0xff]  }
  0xe0   :  { %6722 = vmatpush3.bf16.msra.mxu0 %v7370_v14  ;;  %v7404_v14 = vld [vmem:[%s9481_s1 + $0x840] sm:$0xff]  }
  0xe1   :  { %6744 = vmatpush3.bf16.msra.mxu1 %v7371_v15  ;;  %6751 = vmatprep.subr.bf16.mxu0 %v7372_v24  ;;  %v7405_v15 = vld [vmem:[%s9481_s1 + $0x8c0] sm:$0xff]   ;;  %v7414_v24 = vld [vmem:[%s9481_s1 + $0x810] sm:$0xff]  }
  0xe2   :  { %6773 = vmatprep.subr.bf16.mxu1 %v7373_v25  ;;  %v7415_v25 = vld [vmem:[%s9481_s1 + $0x890] sm:$0xff]  }
  0xe3   :  { %5031 = vmatmul.mubr.bf16.vlgmr.msra.gmra.mrb[24].mxu0 %v5887_v19  ;;  %v7409_v19 = vld [vmem:[%s9481_s1 + $0x8c8] sm:$0xff]  }
  0xe4   :  { %5072 = vmatmul.mubr.bf16.vlgmr.msra.gmra.mrb[24].mxu1 %v5889_v22  ;;  %6752 = vmatpush3.bf16.msra.mxu0 %v7374_v26  ;;  %v7412_v22 = vld [vmem:[%s9481_s1 + $0x850] sm:$0xff]   ;;  %v7416_v26 = vld [vmem:[%s9481_s1 + $0x858] sm:$0xff]  }
  0xe5   :  { %6774 = vmatpush3.bf16.msra.mxu1 %v7375_v27  ;;  %6753 = vmatprep.subr.bf16.mxu0 %v7376_v28  ;;  %v7417_v27 = vld [vmem:[%s9481_s1 + $0x8d8] sm:$0xff]  }
  0xe6   :  { %6775 = vmatprep.subr.bf16.mxu1 %v7377_v29  ;;  %5112 = vmatprep.mubr.bf16.mxu0 %v5892_v9  ;;  %v7418_v29 = vld [vmem:[%s9481_s1 + $0x818] sm:$0xff]   ;;  %v7439_v9 = vld [vmem:[%s9481_s1 + $0x980] sm:$0xff]  }
  0xe7   :  { %5153 = vmatprep.mubr.bf16.mxu1 %v5894_v13  ;;  %v7443_v13 = vld [vmem:[%s9481_s1 + $0x988] sm:$0xff]  }
  0xe8   :  { %6754 = vmatpush3.bf16.msra.mxu0 %v7378_v30 }
  0xe9   :  { %6776 = vmatpush3.bf16.msra.mxu1 %v7379_v31  ;;  %6755 = vmatprep.subr.bf16.mxu0 %v7380_v32  ;;  %v7419_v31 = vld [vmem:[%s9481_s1 + $0x898] sm:$0xff]  }
  0xea   :  { %6777 = vmatprep.subr.bf16.mxu1 %v7381_v33  ;;  %v7420_v33 = vld [vmem:[%s9481_s1 + $0x860] sm:$0xff]  }
  0xec   :  { %6756 = vmatpush3.bf16.msra.mxu0 %v7382_v34 }
  0xed   :  { %6778 = vmatpush3.bf16.msra.mxu1 %v7383_v35  ;;  %6757 = vmatprep.subr.bf16.mxu0 %v7384_v36  ;;  %v7421_v36 = vld [vmem:[%s9481_s1 + $0x8e0] sm:$0xff]  }
  0xee   :  { %6779 = vmatprep.subr.bf16.mxu1 %v7385_v37 }
  0xf0   :  { %6758 = vmatpush3.bf16.msra.mxu0 %v7386_v39  ;;  %v7422_v39 = vld [vmem:[%s9481_s1 + $0x820] sm:$0xff]  }
  0xf1   :  { %6780 = vmatpush3.bf16.msra.mxu1 %v7387_v41  ;;  %6759 = vmatprep.subr.bf16.mxu0 %v7388_v43 }
  0xf2   :  { %6781 = vmatprep.subr.bf16.mxu1 %v7389_v46 }
  0xf4   :  { %6760 = vmatpush3.bf16.msra.mxu0 %v7390_v49 }
  0xf5   :  { %6782 = vmatpush3.bf16.msra.mxu1 %v7391_v51  ;;  %6761 = vmatprep.subr.bf16.mxu0 %v7392_v54  ;;  %v7428_v54 = vld [vmem:[%s9481_s1 + $0x870] sm:$0xff]  }
  0xf6   :  { %v6459_v38 = vpop.f32.mrb[0].mxu0  ;;  %6783 = vmatprep.subr.bf16.mxu1 %v7393_v57  ;;  %v7431_v57 = vld [vmem:[%s9481_s1 + $0x8b0] sm:$0xff]  }
  0xf7   :  { %v6481_v40 = vpop.f32.mrb[0].mxu1  ;;  %v6460_v42 = vpop.f32.mrb[1].mxu0 }
  0xf8   :  { %v6461_v44 = vadd.f32 %v6460_v42, %v6459_v38  ;;  %v6482_v45 = vpop.f32.mrb[1].mxu1  ;;  %v6462_v48 = vpop.f32.mrb[2].mxu0  ;;  %6762 = vmatpush3.bf16.msra.mxu0 %v7394_v59  ;;  %v7423_v42 = vld [vmem:[%s9481_s1 + $0x8a0] sm:$0xff]   ;;  %v7433_v59 = vld [vmem:[%s9481_s1 + $0x8f8] sm:$0xff]  }
  0xf9   :  { %v6483_v47 = vadd.f32 %v6482_v45, %v6481_v40  ;;  %v6484_v50 = vpop.f32.mrb[2].mxu1  ;;  %v6463_v53 = vpop.f32.mrb[3].mxu0  ;;  %6784 = vmatpush3.bf16.msra.mxu1 %v7395_v60  ;;  %6763 = vmatprep.subr.bf16.mxu0 %v7396_v62  ;;  %v7424_v45 = vld [vmem:[%s9481_s1 + $0x868] sm:$0xff]   ;;  %v7434_v60 = vld [vmem:[%s9481_s1 + $0x838] sm:$0xff]   ;;  %v42_v62 = vld [vmem:[%s9482_s0 + $0x80] sm:$0xff] }
  0xfa   :  { %v6464_v55 = vadd.f32 %v6463_v53, %v6462_v48  ;;  %v6485_v56 = vpop.f32.mrb[3].mxu1  ;;  %6785 = vmatprep.subr.bf16.mxu1 %v7397_v63  ;;  %v7425_v48 = vld [vmem:[%s9481_s1 + $0x8e8] sm:$0xff]   ;;  %v74_v63 = vld [vmem:[%s9482_s0 + $0x180] sm:$0xff] }
  0xfb   :  { %v8509_v52 = vadd.f32 %v6483_v47, %v6461_v44  ;;  %v6486_v58 = vadd.f32 %v6485_v56, %v6484_v50  ;;  %v7426_v50 = vld [vmem:[%s9481_s1 + $0x828] sm:$0xff]   ;;  %v7430_v56 = vld [vmem:[%s9481_s1 + $0x830] sm:$0xff]  }
  0xfc   :  { %6764 = vmatpush3.bf16.msra.mxu0 %v7398_v0  ;;  %v43_v0 = vld [vmem:[%s9482_s0 + $0x88] sm:$0xff] }
  0xfd   :  { %v8523_v61 = vadd.f32 %v6486_v58, %v6464_v55  ;;  %6786 = vmatpush3.bf16.msra.mxu1 %v7399_v1  ;;  %6765 = vmatprep.subr.bf16.mxu0 %v7400_v2  ;;  %v7429_v55 = vld [vmem:[%s9481_s1 + $0x8f0] sm:$0xff]   ;;  %v7432_v58 = vld [vmem:[%s9481_s1 + $0x878] sm:$0xff]   ;;  %v75_v1 = vld [vmem:[%s9482_s0 + $0x188] sm:$0xff]  ;;  %v5895_v2 = vcombine.low %v42_v62, %v74_v63 }
  0xfe   :  { %6787 = vmatprep.subr.bf16.mxu1 %v7401_v3  ;;  %v5896_v3 = vcombine.high %v42_v62, %v74_v63  ;;  %v7468_v62 = vld [vmem:[%s9481_s1 + $0xa40] sm:$0xff]  }
  0xff   :  { %v7469_v63 = vld [vmem:[%s9481_s1 + $0xac0] sm:$0xff]  }
 0x100   :  { %6766 = vmatpush3.bf16.msra.mxu0 %v7402_v4  ;;  %v5897_v4 = vcombine.low %v43_v0, %v75_v1 }
 0x101   :  { %6788 = vmatpush3.bf16.msra.mxu1 %v7403_v5  ;;  %6795 = vmatprep.subr.bf16.mxu0 %v7404_v14  ;;  %v5898_v5 = vcombine.high %v43_v0, %v75_v1  ;;  %v7444_v14 = vld [vmem:[%s9481_s1 + $0x950] sm:$0xff]   ;;  %v7470_v0 = vld [vmem:[%s9481_s1 + $0xa00] sm:$0xff]  }
 0x102   :  { %6817 = vmatprep.subr.bf16.mxu1 %v7405_v15  ;;  %v7445_v15 = vld [vmem:[%s9481_s1 + $0x9d0] sm:$0xff]   ;;  %v7471_v1 = vld [vmem:[%s9481_s1 + $0xa80] sm:$0xff]  }
 0x103   :  { %5113 = vmatmul.mubr.bf16.vlgmr.msra.gmra.mrb[28].mxu0 %v5891_v8  ;;  %v7438_v8 = vld [vmem:[%s9481_s1 + $0x900] sm:$0xff]  }
 0x104   :  { %5154 = vmatmul.mubr.bf16.vlgmr.msra.gmra.mrb[28].mxu1 %v5893_v12  ;;  %6796 = vmatpush3.bf16.msra.mxu0 %v7406_v16  ;;  %v7442_v12 = vld [vmem:[%s9481_s1 + $0x908] sm:$0xff]   ;;  %v7446_v16 = vld [vmem:[%s9481_s1 + $0x910] sm:$0xff]  }
 0x105   :  { %6818 = vmatpush3.bf16.msra.mxu1 %v7407_v17  ;;  %6797 = vmatprep.subr.bf16.mxu0 %v7408_v18  ;;  %v7447_v17 = vld [vmem:[%s9481_s1 + $0x990] sm:$0xff]   ;;  %v7448_v18 = vld [vmem:[%s9481_s1 + $0x958] sm:$0xff]  }
 0x106   :  { %6819 = vmatprep.subr.bf16.mxu1 %v7409_v19  ;;  %5194 = vmatprep.mubr.bf16.mxu0 %v5896_v3  ;;  %v7449_v19 = vld [vmem:[%s9481_s1 + $0x9d8] sm:$0xff]   ;;  %v7473_v3 = vld [vmem:[%s9481_s1 + $0xac8] sm:$0xff]  }
 0x107   :  { %5235 = vmatprep.mubr.bf16.mxu1 %v5898_v5  ;;  %v7475_v5 = vld [vmem:[%s9481_s1 + $0xa88] sm:$0xff]  }
 0x108   :  { %6798 = vmatpush3.bf16.msra.mxu0 %v7410_v20  ;;  %v7450_v20 = vld [vmem:[%s9481_s1 + $0x918] sm:$0xff]  }
 0x109   :  { %6820 = vmatpush3.bf16.msra.mxu1 %v7411_v21  ;;  %6799 = vmatprep.subr.bf16.mxu0 %v7412_v22  ;;  %v7451_v22 = vld [vmem:[%s9481_s1 + $0x998] sm:$0xff]  }
 0x10a   :  { %6821 = vmatprep.subr.bf16.mxu1 %v7413_v23 }
 0x10c   :  { %6800 = vmatpush3.bf16.msra.mxu0 %v7414_v24  ;;  %v7452_v24 = vld [vmem:[%s9481_s1 + $0x960] sm:$0xff]  }
 0x10d   :  { %6822 = vmatpush3.bf16.msra.mxu1 %v7415_v25  ;;  %6801 = vmatprep.subr.bf16.mxu0 %v7416_v26  ;;  %v7453_v26 = vld [vmem:[%s9481_s1 + $0x9e0] sm:$0xff]  }
 0x10e   :  { %6823 = vmatprep.subr.bf16.mxu1 %v7417_v27 }
 0x110   :  { %6802 = vmatpush3.bf16.msra.mxu0 %v7418_v29  ;;  %v7454_v29 = vld [vmem:[%s9481_s1 + $0x920] sm:$0xff]  }
 0x111   :  { %6824 = vmatpush3.bf16.msra.mxu1 %v7419_v31  ;;  %6803 = vmatprep.subr.bf16.mxu0 %v7420_v33 }
 0x112   :  { %6825 = vmatprep.subr.bf16.mxu1 %v7421_v36 }
 0x114   :  { %6804 = vmatpush3.bf16.msra.mxu0 %v7422_v39 }
 0x115   :  { %6826 = vmatpush3.bf16.msra.mxu1 %v7423_v42  ;;  %6805 = vmatprep.subr.bf16.mxu0 %v7424_v45  ;;  %v7460_v45 = vld [vmem:[%s9481_s1 + $0x970] sm:$0xff]  }
 0x116   :  { %v6503_v28 = vpop.f32.mrb[4].mxu0  ;;  %6827 = vmatprep.subr.bf16.mxu1 %v7425_v48  ;;  %v7462_v48 = vld [vmem:[%s9481_s1 + $0x930] sm:$0xff]  }
 0x117   :  { %v6525_v30 = vpop.f32.mrb[4].mxu1  ;;  %v6504_v32 = vpop.f32.mrb[5].mxu0 }
 0x118   :  { %v6505_v34 = vadd.f32 %v6504_v32, %v6503_v28  ;;  %v6526_v35 = vpop.f32.mrb[5].mxu1  ;;  %v6506_v38 = vpop.f32.mrb[6].mxu0  ;;  %6806 = vmatpush3.bf16.msra.mxu0 %v7426_v50  ;;  %v7455_v32 = vld [vmem:[%s9481_s1 + $0x9a0] sm:$0xff]   ;;  %v7464_v50 = vld [vmem:[%s9481_s1 + $0x978] sm:$0xff]  }
 0x119   :  { %v6527_v37 = vadd.f32 %v6526_v35, %v6525_v30  ;;  %v6528_v41 = vpop.f32.mrb[6].mxu1  ;;  %v6507_v43 = vpop.f32.mrb[7].mxu0  ;;  %6807 = vmatprep.subr.bf16.mxu0 %v7428_v54  ;;  %v7456_v35 = vld [vmem:[%s9481_s1 + $0x968] sm:$0xff]   ;;  %v44_v54 = vld [vmem:[%s9482_s0 + $0x90] sm:$0xff] }
 0x11a   :  { %v4623_v40 = vadd.f32 %v6505_v34, %v8509_v52  ;;  %v6508_v46 = vadd.f32 %v6507_v43, %v6506_v38  ;;  %v6529_v47 = vpop.f32.mrb[7].mxu1  ;;  %v7427_v52 = vld [vmem:[%s9481_s1 + $0x8a8] sm:$0xff]  }
 0x11b   :  { %v6530_v49 = vadd.f32 %v6529_v47, %v6528_v41  ;;  %6828 = vmatpush3.bf16.msra.mxu1 %v7427_v52  ;;  %v7457_v38 = vld [vmem:[%s9481_s1 + $0x9e8] sm:$0xff]   ;;  %v7461_v47 = vld [vmem:[%s9481_s1 + $0x9f0] sm:$0xff]   ;;  %v7466_v52 = vld [vmem:[%s9481_s1 + $0x938] sm:$0xff]  }
 0x11c   :  { %v8622_v44 = vadd.f32 %v6527_v37, %v4623_v40  ;;  %v4626_v51 = vadd.f32 %v6508_v46, %v8523_v61  ;;  %6829 = vmatprep.subr.bf16.mxu1 %v7429_v55  ;;  %6808 = vmatpush3.bf16.msra.mxu0 %v7430_v56  ;;  %v7435_v61 = vld [vmem:[%s9481_s1 + $0x8b8] sm:$0xff]   ;;  %v7458_v41 = vld [vmem:[%s9481_s1 + $0x928] sm:$0xff]   ;;  %v76_v55 = vld [vmem:[%s9482_s0 + $0x190] sm:$0xff] }
 0x11d   :  { %6809 = vmatprep.subr.bf16.mxu0 %v7432_v58  ;;  %v7459_v43 = vld [vmem:[%s9481_s1 + $0x9a8] sm:$0xff]   ;;  %v45_v56 = vld [vmem:[%s9482_s0 + $0x98] sm:$0xff]  ;;  %v5900_v58 = vcombine.high %v44_v54, %v76_v55 }
 0x11e   :  { %v8637_v53 = vadd.f32 %v6530_v49, %v4626_v51  ;;  %v7463_v49 = vld [vmem:[%s9481_s1 + $0x9b0] sm:$0xff]   ;;  %v7465_v51 = vld [vmem:[%s9481_s1 + $0x9f8] sm:$0xff]  }
 0x11f   :  { %6830 = vmatpush3.bf16.msra.mxu1 %v7431_v57  ;;  %v5899_v57 = vcombine.low %v44_v54, %v76_v55  ;;  %v7500_v54 = vld [vmem:[%s9481_s1 + $0xb40] sm:$0xff]  }
 0x120   :  { %6831 = vmatprep.subr.bf16.mxu1 %v7433_v59  ;;  %6810 = vmatpush3.bf16.msra.mxu0 %v7434_v60  ;;  %v77_v59 = vld [vmem:[%s9482_s0 + $0x198] sm:$0xff]  ;;  %v7501_v55 = vld [vmem:[%s9481_s1 + $0xbc0] sm:$0xff]  }
 0x121   :  { %6839 = vmatprep.subr.bf16.mxu0 %v7436_v6  ;;  %v5901_v60 = vcombine.low %v45_v56, %v77_v59  ;;  %v7476_v6 = vld [vmem:[%s9481_s1 + $0xa50] sm:$0xff]  }
 0x123   :  { %6832 = vmatpush3.bf16.msra.mxu1 %v7435_v61  ;;  %5195 = vmatmul.mubr.bf16.vlgmr.msra.gmra.mrb[32].mxu0 %v5895_v2  ;;  %v5902_v61 = vcombine.high %v45_v56, %v77_v59  ;;  %v7472_v2 = vld [vmem:[%s9481_s1 + $0xa48] sm:$0xff]   ;;  %v7502_v56 = vld [vmem:[%s9481_s1 + $0xb00] sm:$0xff]  }
 0x124   :  { %6861 = vmatprep.subr.bf16.mxu1 %v7437_v7  ;;  %6840 = vmatpush3.bf16.msra.mxu0 %v7438_v8  ;;  %v7477_v7 = vld [vmem:[%s9481_s1 + $0xad0] sm:$0xff]   ;;  %v7505_v59 = vld [vmem:[%s9481_s1 + $0xbc8] sm:$0xff]  }
 0x125   :  { %6841 = vmatprep.subr.bf16.mxu0 %v7440_v10  ;;  %5276 = vmatprep.mubr.bf16.mxu0 %v5900_v58  ;;  %v7478_v8 = vld [vmem:[%s9481_s1 + $0xa10] sm:$0xff]   ;;  %v7480_v10 = vld [vmem:[%s9481_s1 + $0xa58] sm:$0xff]   ;;  %v7504_v58 = vld [vmem:[%s9481_s1 + $0xb48] sm:$0xff]  }
 0x126   :  { %5236 = vmatmul.mubr.bf16.vlgmr.msra.gmra.mrb[32].mxu1 %v5897_v4  ;;  %v7474_v4 = vld [vmem:[%s9481_s1 + $0xa08] sm:$0xff]  }
 0x127   :  { %6862 = vmatpush3.bf16.msra.mxu1 %v7439_v9  ;;  %5317 = vmatprep.mubr.bf16.mxu1 %v5902_v61  ;;  %v7479_v9 = vld [vmem:[%s9481_s1 + $0xa90] sm:$0xff]   ;;  %v7507_v61 = vld [vmem:[%s9481_s1 + $0xb88] sm:$0xff]  }
 0x128   :  { %6863 = vmatprep.subr.bf16.mxu1 %v7441_v11  ;;  %6842 = vmatpush3.bf16.msra.mxu0 %v7442_v12  ;;  %v7481_v11 = vld [vmem:[%s9481_s1 + $0xad8] sm:$0xff]  }
 0x129   :  { %6843 = vmatprep.subr.bf16.mxu0 %v7444_v14 }
 0x12b   :  { %6864 = vmatpush3.bf16.msra.mxu1 %v7443_v13  ;;  %v7482_v13 = vld [vmem:[%s9481_s1 + $0xa18] sm:$0xff]  }
 0x12c   :  { %6865 = vmatprep.subr.bf16.mxu1 %v7445_v15  ;;  %6844 = vmatpush3.bf16.msra.mxu0 %v7446_v16  ;;  %v7483_v15 = vld [vmem:[%s9481_s1 + $0xa98] sm:$0xff]  }
 0x12d   :  { %6845 = vmatprep.subr.bf16.mxu0 %v7448_v18 }
 0x12f   :  { %6866 = vmatpush3.bf16.msra.mxu1 %v7447_v17  ;;  %v7484_v17 = vld [vmem:[%s9481_s1 + $0xa60] sm:$0xff]  }
 0x130   :  { %6867 = vmatprep.subr.bf16.mxu1 %v7449_v19  ;;  %6846 = vmatpush3.bf16.msra.mxu0 %v7450_v20  ;;  %v7485_v20 = vld [vmem:[%s9481_s1 + $0xae0] sm:$0xff]  }
 0x131   :  { %6847 = vmatprep.subr.bf16.mxu0 %v7452_v24 }
 0x133   :  { %6868 = vmatpush3.bf16.msra.mxu1 %v7451_v22 }
 0x134   :  { %6869 = vmatprep.subr.bf16.mxu1 %v7453_v26  ;;  %6848 = vmatpush3.bf16.msra.mxu0 %v7454_v29  ;;  %v7487_v26 = vld [vmem:[%s9481_s1 + $0xaa0] sm:$0xff]   ;;  %v7488_v29 = vld [vmem:[%s9481_s1 + $0xa68] sm:$0xff]  }
 0x135   :  { %6849 = vmatprep.subr.bf16.mxu0 %v7456_v35 }
 0x136   :  { %v6547_v21 = vpop.f32.mrb[8].mxu0 }
 0x137   :  { %v6569_v23 = vpop.f32.mrb[8].mxu1  ;;  %v6548_v25 = vpop.f32.mrb[9].mxu0  ;;  %6870 = vmatpush3.bf16.msra.mxu1 %v7455_v32  ;;  %v7489_v32 = vld [vmem:[%s9481_s1 + $0xae8] sm:$0xff]  }
 0x138   :  { %v6549_v27 = vadd.f32 %v6548_v25, %v6547_v21  ;;  %v6570_v28 = vpop.f32.mrb[9].mxu1  ;;  %v6550_v31 = vpop.f32.mrb[10].mxu0  ;;  %6871 = vmatprep.subr.bf16.mxu1 %v7457_v38  ;;  %6850 = vmatpush3.bf16.msra.mxu0 %v7458_v41  ;;  %v7492_v38 = vld [vmem:[%s9481_s1 + $0xa70] sm:$0xff]  }
 0x139   :  { %v6571_v30 = vadd.f32 %v6570_v28, %v6569_v23  ;;  %v6572_v34 = vpop.f32.mrb[10].mxu1  ;;  %v6551_v36 = vpop.f32.mrb[11].mxu0  ;;  %6851 = vmatprep.subr.bf16.mxu0 %v7460_v45  ;;  %v7486_v23 = vld [vmem:[%s9481_s1 + $0xa20] sm:$0xff]   ;;  %v7495_v41 = vld [vmem:[%s9481_s1 + $0xab0] sm:$0xff]   ;;  %v7499_v45 = vld [vmem:[%s9481_s1 + $0xab8] sm:$0xff]  }
 0x13a   :  { %v4705_v33 = vadd.f32 %v6549_v27, %v8622_v44  ;;  %v6552_v39 = vadd.f32 %v6551_v36, %v6550_v31  ;;  %v6573_v40 = vpop.f32.mrb[11].mxu1  ;;  %v7491_v36 = vld [vmem:[%s9481_s1 + $0xaa8] sm:$0xff]  }
 0x13b   :  { %v6574_v42 = vadd.f32 %v6573_v40, %v6572_v34  ;;  %6872 = vmatpush3.bf16.msra.mxu1 %v7459_v43  ;;  %v7490_v34 = vld [vmem:[%s9481_s1 + $0xa28] sm:$0xff]   ;;  %v7494_v40 = vld [vmem:[%s9481_s1 + $0xa30] sm:$0xff]   ;;  %v7497_v43 = vld [vmem:[%s9481_s1 + $0xaf8] sm:$0xff]  }
 0x13c   :  { %v8739_v37 = vadd.f32 %v6571_v30, %v4705_v33  ;;  %v4708_v44 = vadd.f32 %v6552_v39, %v8637_v53  ;;  %6873 = vmatprep.subr.bf16.mxu1 %v7461_v47  ;;  %6852 = vmatpush3.bf16.msra.mxu0 %v7462_v48  ;;  %v7467_v53 = vld [vmem:[%s9481_s1 + $0x9b8] sm:$0xff]   ;;  %v7493_v39 = vld [vmem:[%s9481_s1 + $0xaf0] sm:$0xff]   ;;  %v78_v47 = vld [vmem:[%s9482_s0 + $0x1a0] sm:$0xff] }
 0x13d   :  { %6853 = vmatprep.subr.bf16.mxu0 %v7464_v50  ;;  %v47_v50 = vld [vmem:[%s9482_s0 + $0xa8] sm:$0xff] }
 0x13e   :  { %v8754_v46 = vadd.f32 %v6574_v42, %v4708_v44  ;;  %v7496_v42 = vld [vmem:[%s9481_s1 + $0xa78] sm:$0xff]  }
 0x13f   :  { %6874 = vmatpush3.bf16.msra.mxu1 %v7463_v49  ;;  %v7498_v44 = vld [vmem:[%s9481_s1 + $0xa38] sm:$0xff]  }
 0x140   :  { %6875 = vmatprep.subr.bf16.mxu1 %v7465_v51  ;;  %6854 = vmatpush3.bf16.msra.mxu0 %v7466_v52  ;;  %v79_v51 = vld [vmem:[%s9482_s0 + $0x1a8] sm:$0xff] }
 0x141   :  { %6883 = vmatprep.subr.bf16.mxu0 %v7468_v62  ;;  %v5905_v52 = vcombine.low %v47_v50, %v79_v51  ;;  %v7508_v62 = vld [vmem:[%s9481_s1 + $0xb50] sm:$0xff]  }
 0x143   :  { %6876 = vmatpush3.bf16.msra.mxu1 %v7467_v53  ;;  %5277 = vmatmul.mubr.bf16.vlgmr.msra.gmra.mrb[36].mxu0 %v5899_v57  ;;  %v5906_v53 = vcombine.high %v47_v50, %v79_v51  ;;  %v7503_v57 = vld [vmem:[%s9481_s1 + $0xb80] sm:$0xff]   ;;  %v7536_v50 = vld [vmem:[%s9481_s1 + $0xc48] sm:$0xff]  }
 0x144   :  { %6905 = vmatprep.subr.bf16.mxu1 %v7469_v63  ;;  %6884 = vmatpush3.bf16.msra.mxu0 %v7470_v0  ;;  %v7509_v63 = vld [vmem:[%s9481_s1 + $0xbd0] sm:$0xff]   ;;  %v7537_v51 = vld [vmem:[%s9481_s1 + $0xcc8] sm:$0xff]  }
 0x145   :  { %6885 = vmatprep.subr.bf16.mxu0 %v7472_v2  ;;  %v7510_v0 = vld [vmem:[%s9481_s1 + $0xb10] sm:$0xff]   ;;  %v7512_v2 = vld [vmem:[%s9481_s1 + $0xb58] sm:$0xff]  }
 0x146   :  { %5318 = vmatmul.mubr.bf16.vlgmr.msra.gmra.mrb[36].mxu1 %v5901_v60  ;;  %v7506_v60 = vld [vmem:[%s9481_s1 + $0xb08] sm:$0xff]  }
 0x147   :  { %6906 = vmatpush3.bf16.msra.mxu1 %v7471_v1  ;;  %5399 = vmatprep.mubr.bf16.mxu1 %v5906_v53  ;;  %v7511_v1 = vld [vmem:[%s9481_s1 + $0xb90] sm:$0xff]   ;;  %v7539_v53 = vld [vmem:[%s9481_s1 + $0xc88] sm:$0xff]  }
 0x148   :  { %6907 = vmatprep.subr.bf16.mxu1 %v7473_v3  ;;  %6886 = vmatpush3.bf16.msra.mxu0 %v7474_v4  ;;  %v7513_v3 = vld [vmem:[%s9481_s1 + $0xbd8] sm:$0xff]  }
 0x149   :  { %6887 = vmatprep.subr.bf16.mxu0 %v7476_v6 }
 0x14b   :  { %6908 = vmatpush3.bf16.msra.mxu1 %v7475_v5  ;;  %v7514_v5 = vld [vmem:[%s9481_s1 + $0xb18] sm:$0xff]  }
 0x14c   :  { %6909 = vmatprep.subr.bf16.mxu1 %v7477_v7  ;;  %6888 = vmatpush3.bf16.msra.mxu0 %v7478_v8  ;;  %v7515_v7 = vld [vmem:[%s9481_s1 + $0xb98] sm:$0xff]  }
 0x14d   :  { %6889 = vmatprep.subr.bf16.mxu0 %v7480_v10 }
 0x14f   :  { %6910 = vmatpush3.bf16.msra.mxu1 %v7479_v9  ;;  %v7516_v9 = vld [vmem:[%s9481_s1 + $0xb60] sm:$0xff]  }
 0x150   :  { %6911 = vmatprep.subr.bf16.mxu1 %v7481_v11  ;;  %6890 = vmatpush3.bf16.msra.mxu0 %v7482_v13 }
 0x151   :  { %6891 = vmatprep.subr.bf16.mxu0 %v7484_v17 }
 0x153   :  { %6912 = vmatpush3.bf16.msra.mxu1 %v7483_v15  ;;  %v7518_v15 = vld [vmem:[%s9481_s1 + $0xb20] sm:$0xff]  }
 0x154   :  { %6913 = vmatprep.subr.bf16.mxu1 %v7485_v20  ;;  %6892 = vmatpush3.bf16.msra.mxu0 %v7486_v23 }
 0x155   :  { %6893 = vmatprep.subr.bf16.mxu0 %v7488_v29 }
 0x156   :  { %v6591_v12 = vpop.f32.mrb[12].mxu0 }
 0x157   :  { %v6613_v14 = vpop.f32.mrb[12].mxu1  ;;  %v6592_v16 = vpop.f32.mrb[13].mxu0  ;;  %6914 = vmatpush3.bf16.msra.mxu1 %v7487_v26  ;;  %v7522_v26 = vld [vmem:[%s9481_s1 + $0xb28] sm:$0xff]  }
 0x158   :  { %v6593_v18 = vadd.f32 %v6592_v16, %v6591_v12  ;;  %v6614_v19 = vpop.f32.mrb[13].mxu1  ;;  %v6594_v22 = vpop.f32.mrb[14].mxu0  ;;  %6915 = vmatprep.subr.bf16.mxu1 %v7489_v32  ;;  %6894 = vmatpush3.bf16.msra.mxu0 %v7490_v34  ;;  %v7517_v12 = vld [vmem:[%s9481_s1 + $0xbe0] sm:$0xff]   ;;  %v7526_v32 = vld [vmem:[%s9481_s1 + $0xb30] sm:$0xff]   ;;  %v7528_v34 = vld [vmem:[%s9481_s1 + $0xb78] sm:$0xff]  }
 0x159   :  { %v6615_v21 = vadd.f32 %v6614_v19, %v6613_v14  ;;  %v6616_v25 = vpop.f32.mrb[14].mxu1  ;;  %v6595_v27 = vpop.f32.mrb[15].mxu0  ;;  %6895 = vmatprep.subr.bf16.mxu0 %v7492_v38  ;;  %v48_v38 = vld [vmem:[%s9482_s0 + $0xb0] sm:$0xff] }
 0x15a   :  { %v4787_v24 = vadd.f32 %v6593_v18, %v8739_v37  ;;  %v6596_v30 = vadd.f32 %v6595_v27, %v6594_v22  ;;  %v6617_v31 = vpop.f32.mrb[15].mxu1  ;;  %v7519_v18 = vld [vmem:[%s9481_s1 + $0xba0] sm:$0xff]  }
 0x15b   :  { %v6618_v33 = vadd.f32 %v6617_v31, %v6616_v25  ;;  %6916 = vmatpush3.bf16.msra.mxu1 %v7491_v36  ;;  %v7525_v31 = vld [vmem:[%s9481_s1 + $0xbf0] sm:$0xff]   ;;  %v7530_v36 = vld [vmem:[%s9481_s1 + $0xb38] sm:$0xff]  }
 0x15c   :  { %v8850_v28 = vadd.f32 %v6615_v21, %v4787_v24  ;;  %v4790_v35 = vadd.f32 %v6596_v30, %v8754_v46  ;;  %6917 = vmatprep.subr.bf16.mxu1 %v7493_v39  ;;  %6896 = vmatpush3.bf16.msra.mxu0 %v7494_v40  ;;  %v46_v46 = vld [vmem:[%s9482_s0 + $0xa0] sm:$0xff]  ;;  %v7520_v21 = vld [vmem:[%s9481_s1 + $0xb68] sm:$0xff]   ;;  %v7524_v30 = vld [vmem:[%s9481_s1 + $0xb70] sm:$0xff]  }
 0x15d   :  { %6897 = vmatprep.subr.bf16.mxu0 %v7496_v42  ;;  %v5903_v48 = vcombine.low %v46_v46, %v78_v47  ;;  %v5904_v49 = vcombine.high %v46_v46, %v78_v47  ;;  %v7521_v24 = vld [vmem:[%s9481_s1 + $0xbe8] sm:$0xff]   ;;  %v80_v39 = vld [vmem:[%s9482_s0 + $0x1b0] sm:$0xff]  ;;  %v49_v40 = vld [vmem:[%s9482_s0 + $0xb8] sm:$0xff] }
 0x15e   :  { %v8865_v37 = vadd.f32 %v6618_v33, %v4790_v35  ;;  %v7527_v33 = vld [vmem:[%s9481_s1 + $0xbb0] sm:$0xff]   ;;  %v7529_v35 = vld [vmem:[%s9481_s1 + $0xbf8] sm:$0xff]   ;;  %v5907_v42 = vcombine.low %v48_v38, %v80_v39  ;;  %v7532_v46 = vld [vmem:[%s9481_s1 + $0xc40] sm:$0xff]  }
 0x15f   :  { %6918 = vmatpush3.bf16.msra.mxu1 %v7495_v41  ;;  %5358 = vmatprep.mubr.bf16.mxu0 %v5904_v49  ;;  %v81_v41 = vld [vmem:[%s9482_s0 + $0x1b8] sm:$0xff]  ;;  %v7533_v47 = vld [vmem:[%s9481_s1 + $0xcc0] sm:$0xff]  }
 0x160   :  { %6919 = vmatprep.subr.bf16.mxu1 %v7497_v43  ;;  %6898 = vmatpush3.bf16.msra.mxu0 %v7498_v44  ;;  %v5908_v43 = vcombine.high %v48_v38, %v80_v39  ;;  %v5909_v44 = vcombine.low %v49_v40, %v81_v41  ;;  %v7535_v49 = vld [vmem:[%s9481_s1 + $0xc80] sm:$0xff]  }
 0x161   :  { %6927 = vmatprep.subr.bf16.mxu0 %v7500_v54  ;;  %v7540_v54 = vld [vmem:[%s9481_s1 + $0xc50] sm:$0xff]   ;;  %v7564_v38 = vld [vmem:[%s9481_s1 + $0xd40] sm:$0xff]  }
 0x162   :  { %v7565_v39 = vld [vmem:[%s9481_s1 + $0xdc0] sm:$0xff]  }
 0x163   :  { %6920 = vmatpush3.bf16.msra.mxu1 %v7499_v45  ;;  %5359 = vmatmul.mubr.bf16.vlgmr.msra.gmra.mrb[40].mxu0 %v5903_v48  ;;  %v5910_v45 = vcombine.high %v49_v40, %v81_v41  ;;  %v7534_v48 = vld [vmem:[%s9481_s1 + $0xc00] sm:$0xff]  }
 0x164   :  { %6949 = vmatprep.subr.bf16.mxu1 %v7501_v55  ;;  %6928 = vmatpush3.bf16.msra.mxu0 %v7502_v56  ;;  %v7541_v55 = vld [vmem:[%s9481_s1 + $0xcd0] sm:$0xff]   ;;  %v7566_v40 = vld [vmem:[%s9481_s1 + $0xd00] sm:$0xff]  }
 0x165   :  { %6929 = vmatprep.subr.bf16.mxu0 %v7504_v58  ;;  %5440 = vmatprep.mubr.bf16.mxu0 %v5908_v43  ;;  %v7542_v56 = vld [vmem:[%s9481_s1 + $0xc10] sm:$0xff]   ;;  %v7544_v58 = vld [vmem:[%s9481_s1 + $0xc58] sm:$0xff]   ;;  %v7567_v41 = vld [vmem:[%s9481_s1 + $0xd80] sm:$0xff]  }
 0x166   :  { %5400 = vmatmul.mubr.bf16.vlgmr.msra.gmra.mrb[40].mxu1 %v5905_v52  ;;  %v7538_v52 = vld [vmem:[%s9481_s1 + $0xc08] sm:$0xff]  }
 0x167   :  { %6950 = vmatpush3.bf16.msra.mxu1 %v7503_v57  ;;  %5481 = vmatprep.mubr.bf16.mxu1 %v5910_v45  ;;  %v7543_v57 = vld [vmem:[%s9481_s1 + $0xc90] sm:$0xff]   ;;  %v7569_v43 = vld [vmem:[%s9481_s1 + $0xdc8] sm:$0xff]  }
 0x168   :  { %6951 = vmatprep.subr.bf16.mxu1 %v7505_v59  ;;  %6930 = vmatpush3.bf16.msra.mxu0 %v7506_v60  ;;  %v7545_v59 = vld [vmem:[%s9481_s1 + $0xcd8] sm:$0xff]   ;;  %v7571_v45 = vld [vmem:[%s9481_s1 + $0xd88] sm:$0xff]  }
 0x169   :  { %6931 = vmatprep.subr.bf16.mxu0 %v7508_v62  ;;  %v7546_v60 = vld [vmem:[%s9481_s1 + $0xc18] sm:$0xff]  }
 0x16a   :  { %v7547_v62 = vld [vmem:[%s9481_s1 + $0xc98] sm:$0xff]  }
 0x16b   :  { %6952 = vmatpush3.bf16.msra.mxu1 %v7507_v61 }
 0x16c   :  { %6953 = vmatprep.subr.bf16.mxu1 %v7509_v63  ;;  %6932 = vmatpush3.bf16.msra.mxu0 %v7510_v0  ;;  %v7548_v0 = vld [vmem:[%s9481_s1 + $0xc60] sm:$0xff]  }
 0x16d   :  { %6933 = vmatprep.subr.bf16.mxu0 %v7512_v2  ;;  %v7549_v2 = vld [vmem:[%s9481_s1 + $0xce0] sm:$0xff]  }
 0x16f   :  { %6954 = vmatpush3.bf16.msra.mxu1 %v7511_v1 }
 0x170   :  { %6955 = vmatprep.subr.bf16.mxu1 %v7513_v3  ;;  %6934 = vmatpush3.bf16.msra.mxu0 %v7514_v5  ;;  %v7550_v5 = vld [vmem:[%s9481_s1 + $0xc20] sm:$0xff]  }
 0x171   :  { %6935 = vmatprep.subr.bf16.mxu0 %v7516_v9 }
 0x173   :  { %6956 = vmatpush3.bf16.msra.mxu1 %v7515_v7 }
 0x174   :  { %6957 = vmatprep.subr.bf16.mxu1 %v7517_v12  ;;  %6936 = vmatpush3.bf16.msra.mxu0 %v7518_v15 }
 0x175   :  { %6937 = vmatprep.subr.bf16.mxu0 %v7520_v21  ;;  %v7556_v21 = vld [vmem:[%s9481_s1 + $0xc70] sm:$0xff]  }
 0x176   :  { %v6635_v4 = vpop.f32.mrb[16].mxu0 }
 0x177   :  { %v6657_v6 = vpop.f32.mrb[16].mxu1  ;;  %v6636_v8 = vpop.f32.mrb[17].mxu0  ;;  %6958 = vmatpush3.bf16.msra.mxu1 %v7519_v18 }
 0x178   :  { %v6637_v10 = vadd.f32 %v6636_v8, %v6635_v4  ;;  %v6658_v11 = vpop.f32.mrb[17].mxu1  ;;  %v6638_v14 = vpop.f32.mrb[18].mxu0  ;;  %6959 = vmatprep.subr.bf16.mxu1 %v7521_v24  ;;  %6938 = vmatpush3.bf16.msra.mxu0 %v7522_v26  ;;  %v7551_v8 = vld [vmem:[%s9481_s1 + $0xca0] sm:$0xff]   ;;  %v7558_v24 = vld [vmem:[%s9481_s1 + $0xc30] sm:$0xff]   ;;  %v7560_v26 = vld [vmem:[%s9481_s1 + $0xc78] sm:$0xff]  }
 0x179   :  { %v6659_v13 = vadd.f32 %v6658_v11, %v6657_v6  ;;  %v6660_v17 = vpop.f32.mrb[18].mxu1  ;;  %v6639_v19 = vpop.f32.mrb[19].mxu0  ;;  %6939 = vmatprep.subr.bf16.mxu0 %v7524_v30  ;;  %v7552_v11 = vld [vmem:[%s9481_s1 + $0xc68] sm:$0xff]   ;;  %v50_v30 = vld [vmem:[%s9482_s0 + $0xc0] sm:$0xff] }
 0x17a   :  { %v4869_v16 = vadd.f32 %v6637_v10, %v8850_v28  ;;  %v6640_v22 = vadd.f32 %v6639_v19, %v6638_v14  ;;  %v6661_v23 = vpop.f32.mrb[19].mxu1  ;;  %v7523_v28 = vld [vmem:[%s9481_s1 + $0xba8] sm:$0xff]  }
 0x17b   :  { %v6662_v25 = vadd.f32 %v6661_v23, %v6660_v17  ;;  %6960 = vmatpush3.bf16.msra.mxu1 %v7523_v28  ;;  %v7553_v14 = vld [vmem:[%s9481_s1 + $0xce8] sm:$0xff]   ;;  %v7557_v23 = vld [vmem:[%s9481_s1 + $0xcf0] sm:$0xff]   ;;  %v7562_v28 = vld [vmem:[%s9481_s1 + $0xc38] sm:$0xff]  }
 0x17c   :  { %v8964_v20 = vadd.f32 %v6659_v13, %v4869_v16  ;;  %v4872_v27 = vadd.f32 %v6640_v22, %v8865_v37  ;;  %6961 = vmatprep.subr.bf16.mxu1 %v7525_v31  ;;  %6940 = vmatpush3.bf16.msra.mxu0 %v7526_v32  ;;  %v7531_v37 = vld [vmem:[%s9481_s1 + $0xbb8] sm:$0xff]   ;;  %v7554_v17 = vld [vmem:[%s9481_s1 + $0xc28] sm:$0xff]   ;;  %v82_v31 = vld [vmem:[%s9482_s0 + $0x1c0] sm:$0xff] }
 0x17d   :  { %6941 = vmatprep.subr.bf16.mxu0 %v7528_v34  ;;  %v7555_v19 = vld [vmem:[%s9481_s1 + $0xca8] sm:$0xff]   ;;  %v5912_v34 = vcombine.high %v50_v30, %v82_v31 }
 0x17e   :  { %v8979_v29 = vadd.f32 %v6662_v25, %v4872_v27  ;;  %v7559_v25 = vld [vmem:[%s9481_s1 + $0xcb0] sm:$0xff]   ;;  %v7561_v27 = vld [vmem:[%s9481_s1 + $0xcf8] sm:$0xff]   ;;  %v51_v32 = vld [vmem:[%s9482_s0 + $0xc8] sm:$0xff] }
 0x17f   :  { %6962 = vmatpush3.bf16.msra.mxu1 %v7527_v33  ;;  %v5911_v33 = vcombine.low %v50_v30, %v82_v31  ;;  %v7596_v30 = vld [vmem:[%s9481_s1 + $0xe40] sm:$0xff]  }
 0x180   :  { %6963 = vmatprep.subr.bf16.mxu1 %v7529_v35  ;;  %6942 = vmatpush3.bf16.msra.mxu0 %v7530_v36  ;;  %v83_v35 = vld [vmem:[%s9482_s0 + $0x1c8] sm:$0xff]  ;;  %v7597_v31 = vld [vmem:[%s9481_s1 + $0xec0] sm:$0xff]  }
 0x181   :  { %6971 = vmatprep.subr.bf16.mxu0 %v7532_v46  ;;  %v5913_v36 = vcombine.low %v51_v32, %v83_v35  ;;  %v7572_v46 = vld [vmem:[%s9481_s1 + $0xd50] sm:$0xff]  }
 0x183   :  { %6964 = vmatpush3.bf16.msra.mxu1 %v7531_v37  ;;  %5441 = vmatmul.mubr.bf16.vlgmr.msra.gmra.mrb[44].mxu0 %v5907_v42  ;;  %v5914_v37 = vcombine.high %v51_v32, %v83_v35  ;;  %v7568_v42 = vld [vmem:[%s9481_s1 + $0xd48] sm:$0xff]   ;;  %v7598_v32 = vld [vmem:[%s9481_s1 + $0xe00] sm:$0xff]  }
 0x184   :  { %6993 = vmatprep.subr.bf16.mxu1 %v7533_v47  ;;  %6972 = vmatpush3.bf16.msra.mxu0 %v7534_v48  ;;  %v7573_v47 = vld [vmem:[%s9481_s1 + $0xdd0] sm:$0xff]   ;;  %v7601_v35 = vld [vmem:[%s9481_s1 + $0xec8] sm:$0xff]  }
 0x185   :  { %6973 = vmatprep.subr.bf16.mxu0 %v7536_v50  ;;  %5522 = vmatprep.mubr.bf16.mxu0 %v5912_v34  ;;  %v7574_v48 = vld [vmem:[%s9481_s1 + $0xd10] sm:$0xff]   ;;  %v7576_v50 = vld [vmem:[%s9481_s1 + $0xd58] sm:$0xff]   ;;  %v7600_v34 = vld [vmem:[%s9481_s1 + $0xe48] sm:$0xff]  }
 0x186   :  { %5482 = vmatmul.mubr.bf16.vlgmr.msra.gmra.mrb[44].mxu1 %v5909_v44  ;;  %v7570_v44 = vld [vmem:[%s9481_s1 + $0xd08] sm:$0xff]  }
 0x187   :  { %6994 = vmatpush3.bf16.msra.mxu1 %v7535_v49  ;;  %5563 = vmatprep.mubr.bf16.mxu1 %v5914_v37  ;;  %v7575_v49 = vld [vmem:[%s9481_s1 + $0xd90] sm:$0xff]   ;;  %v7603_v37 = vld [vmem:[%s9481_s1 + $0xe88] sm:$0xff]  }
 0x188   :  { %6995 = vmatprep.subr.bf16.mxu1 %v7537_v51  ;;  %6974 = vmatpush3.bf16.msra.mxu0 %v7538_v52  ;;  %v7577_v51 = vld [vmem:[%s9481_s1 + $0xdd8] sm:$0xff]  }
 0x189   :  { %6975 = vmatprep.subr.bf16.mxu0 %v7540_v54 }
 0x18b   :  { %6996 = vmatpush3.bf16.msra.mxu1 %v7539_v53  ;;  %v7578_v53 = vld [vmem:[%s9481_s1 + $0xd18] sm:$0xff]  }
 0x18c   :  { %6997 = vmatprep.subr.bf16.mxu1 %v7541_v55  ;;  %6976 = vmatpush3.bf16.msra.mxu0 %v7542_v56  ;;  %v7579_v55 = vld [vmem:[%s9481_s1 + $0xd98] sm:$0xff]  }
 0x18d   :  { %6977 = vmatprep.subr.bf16.mxu0 %v7544_v58 }
 0x18f   :  { %6998 = vmatpush3.bf16.msra.mxu1 %v7543_v57  ;;  %v7580_v57 = vld [vmem:[%s9481_s1 + $0xd60] sm:$0xff]  }
 0x190   :  { %6999 = vmatprep.subr.bf16.mxu1 %v7545_v59  ;;  %6978 = vmatpush3.bf16.msra.mxu0 %v7546_v60  ;;  %v7581_v60 = vld [vmem:[%s9481_s1 + $0xde0] sm:$0xff]  }
 0x191   :  { %6979 = vmatprep.subr.bf16.mxu0 %v7548_v0 }
 0x193   :  { %7000 = vmatpush3.bf16.msra.mxu1 %v7547_v62 }
 0x194   :  { %7001 = vmatprep.subr.bf16.mxu1 %v7549_v2  ;;  %6980 = vmatpush3.bf16.msra.mxu0 %v7550_v5  ;;  %v7583_v2 = vld [vmem:[%s9481_s1 + $0xda0] sm:$0xff]   ;;  %v7584_v5 = vld [vmem:[%s9481_s1 + $0xd68] sm:$0xff]  }
 0x195   :  { %6981 = vmatprep.subr.bf16.mxu0 %v7552_v11 }
 0x196   :  { %v6679_v61 = vpop.f32.mrb[20].mxu0 }
 0x197   :  { %v6701_v63 = vpop.f32.mrb[20].mxu1  ;;  %v6680_v1 = vpop.f32.mrb[21].mxu0  ;;  %7002 = vmatpush3.bf16.msra.mxu1 %v7551_v8  ;;  %v7585_v8 = vld [vmem:[%s9481_s1 + $0xde8] sm:$0xff]  }
 0x198   :  { %v6681_v3 = vadd.f32 %v6680_v1, %v6679_v61  ;;  %v6702_v4 = vpop.f32.mrb[21].mxu1  ;;  %v6682_v7 = vpop.f32.mrb[22].mxu0  ;;  %7003 = vmatprep.subr.bf16.mxu1 %v7553_v14  ;;  %6982 = vmatpush3.bf16.msra.mxu0 %v7554_v17  ;;  %v7588_v14 = vld [vmem:[%s9481_s1 + $0xd70] sm:$0xff]  }
 0x199   :  { %v6703_v6 = vadd.f32 %v6702_v4, %v6701_v63  ;;  %v6704_v10 = vpop.f32.mrb[22].mxu1  ;;  %v6683_v12 = vpop.f32.mrb[23].mxu0  ;;  %6983 = vmatprep.subr.bf16.mxu0 %v7556_v21  ;;  %v7582_v63 = vld [vmem:[%s9481_s1 + $0xd20] sm:$0xff]   ;;  %v7591_v17 = vld [vmem:[%s9481_s1 + $0xdb0] sm:$0xff]   ;;  %v7595_v21 = vld [vmem:[%s9481_s1 + $0xdb8] sm:$0xff]  }
 0x19a   :  { %v4951_v9 = vadd.f32 %v6681_v3, %v8964_v20  ;;  %v6684_v15 = vadd.f32 %v6683_v12, %v6682_v7  ;;  %v6705_v16 = vpop.f32.mrb[23].mxu1  ;;  %v7587_v12 = vld [vmem:[%s9481_s1 + $0xda8] sm:$0xff]  }
 0x19b   :  { %v6706_v18 = vadd.f32 %v6705_v16, %v6704_v10  ;;  %7004 = vmatpush3.bf16.msra.mxu1 %v7555_v19  ;;  %v7586_v10 = vld [vmem:[%s9481_s1 + $0xd28] sm:$0xff]   ;;  %v7590_v16 = vld [vmem:[%s9481_s1 + $0xd30] sm:$0xff]   ;;  %v7593_v19 = vld [vmem:[%s9481_s1 + $0xdf8] sm:$0xff]  }
 0x19c   :  { %v9081_v13 = vadd.f32 %v6703_v6, %v4951_v9  ;;  %v4954_v20 = vadd.f32 %v6684_v15, %v8979_v29  ;;  %7005 = vmatprep.subr.bf16.mxu1 %v7557_v23  ;;  %6984 = vmatpush3.bf16.msra.mxu0 %v7558_v24  ;;  %v7563_v29 = vld [vmem:[%s9481_s1 + $0xcb8] sm:$0xff]   ;;  %v7589_v15 = vld [vmem:[%s9481_s1 + $0xdf0] sm:$0xff]  }
 0x19d   :  { %6985 = vmatprep.subr.bf16.mxu0 %v7560_v26  ;;  %v84_v23 = vld [vmem:[%s9482_s0 + $0x1d0] sm:$0xff]  ;;  %v53_v26 = vld [vmem:[%s9482_s0 + $0xd8] sm:$0xff] }
 0x19e   :  { %v9096_v22 = vadd.f32 %v6706_v18, %v4954_v20  ;;  %v7592_v18 = vld [vmem:[%s9481_s1 + $0xd78] sm:$0xff]  }
 0x19f   :  { %7006 = vmatpush3.bf16.msra.mxu1 %v7559_v25  ;;  %v7594_v20 = vld [vmem:[%s9481_s1 + $0xd38] sm:$0xff]  }
 0x1a0   :  { %7007 = vmatprep.subr.bf16.mxu1 %v7561_v27  ;;  %6986 = vmatpush3.bf16.msra.mxu0 %v7562_v28  ;;  %v85_v27 = vld [vmem:[%s9482_s0 + $0x1d8] sm:$0xff] }
 0x1a1   :  { %7015 = vmatprep.subr.bf16.mxu0 %v7564_v38  ;;  %v5917_v28 = vcombine.low %v53_v26, %v85_v27  ;;  %v7604_v38 = vld [vmem:[%s9481_s1 + $0xe50] sm:$0xff]  }
 0x1a3   :  { %7008 = vmatpush3.bf16.msra.mxu1 %v7563_v29  ;;  %5523 = vmatmul.mubr.bf16.vlgmr.msra.gmra.mrb[48].mxu0 %v5911_v33  ;;  %v5918_v29 = vcombine.high %v53_v26, %v85_v27  ;;  %v7599_v33 = vld [vmem:[%s9481_s1 + $0xe80] sm:$0xff]   ;;  %v7632_v26 = vld [vmem:[%s9481_s1 + $0xf48] sm:$0xff]  }
 0x1a4   :  { %7037 = vmatprep.subr.bf16.mxu1 %v7565_v39  ;;  %7016 = vmatpush3.bf16.msra.mxu0 %v7566_v40  ;;  %v7605_v39 = vld [vmem:[%s9481_s1 + $0xed0] sm:$0xff]   ;;  %v7633_v27 = vld [vmem:[%s9481_s1 + $0xfc8] sm:$0xff]  }
 0x1a5   :  { %7017 = vmatprep.subr.bf16.mxu0 %v7568_v42  ;;  %v7606_v40 = vld [vmem:[%s9481_s1 + $0xe10] sm:$0xff]   ;;  %v7608_v42 = vld [vmem:[%s9481_s1 + $0xe58] sm:$0xff]  }
 0x1a6   :  { %5564 = vmatmul.mubr.bf16.vlgmr.msra.gmra.mrb[48].mxu1 %v5913_v36  ;;  %v7602_v36 = vld [vmem:[%s9481_s1 + $0xe08] sm:$0xff]  }
 0x1a7   :  { %7038 = vmatpush3.bf16.msra.mxu1 %v7567_v41  ;;  %5645 = vmatprep.mubr.bf16.mxu1 %v5918_v29  ;;  %v7607_v41 = vld [vmem:[%s9481_s1 + $0xe90] sm:$0xff]   ;;  %v7635_v29 = vld [vmem:[%s9481_s1 + $0xf88] sm:$0xff]  }
 0x1a8   :  { %7039 = vmatprep.subr.bf16.mxu1 %v7569_v43  ;;  %7018 = vmatpush3.bf16.msra.mxu0 %v7570_v44  ;;  %v7609_v43 = vld [vmem:[%s9481_s1 + $0xed8] sm:$0xff]  }
 0x1a9   :  { %7019 = vmatprep.subr.bf16.mxu0 %v7572_v46 }
 0x1ab   :  { %7040 = vmatpush3.bf16.msra.mxu1 %v7571_v45  ;;  %v7610_v45 = vld [vmem:[%s9481_s1 + $0xe18] sm:$0xff]  }
 0x1ac   :  { %7041 = vmatprep.subr.bf16.mxu1 %v7573_v47  ;;  %7020 = vmatpush3.bf16.msra.mxu0 %v7574_v48  ;;  %v7611_v47 = vld [vmem:[%s9481_s1 + $0xe98] sm:$0xff]  }
 0x1ad   :  { %7021 = vmatprep.subr.bf16.mxu0 %v7576_v50 }
 0x1af   :  { %7042 = vmatpush3.bf16.msra.mxu1 %v7575_v49  ;;  %v7612_v49 = vld [vmem:[%s9481_s1 + $0xe60] sm:$0xff]  }
 0x1b0   :  { %7043 = vmatprep.subr.bf16.mxu1 %v7577_v51  ;;  %7022 = vmatpush3.bf16.msra.mxu0 %v7578_v53 }
 0x1b1   :  { %7023 = vmatprep.subr.bf16.mxu0 %v7580_v57 }
 0x1b3   :  { %7044 = vmatpush3.bf16.msra.mxu1 %v7579_v55  ;;  %v7614_v55 = vld [vmem:[%s9481_s1 + $0xe20] sm:$0xff]  }
 0x1b4   :  { %7045 = vmatprep.subr.bf16.mxu1 %v7581_v60  ;;  %7024 = vmatpush3.bf16.msra.mxu0 %v7582_v63 }
 0x1b5   :  { %7025 = vmatprep.subr.bf16.mxu0 %v7584_v5 }
 0x1b6   :  { %v6723_v52 = vpop.f32.mrb[24].mxu0 }
 0x1b7   :  { %v6745_v54 = vpop.f32.mrb[24].mxu1  ;;  %v6724_v56 = vpop.f32.mrb[25].mxu0  ;;  %7046 = vmatpush3.bf16.msra.mxu1 %v7583_v2  ;;  %v7618_v2 = vld [vmem:[%s9481_s1 + $0xe28] sm:$0xff]  }
 0x1b8   :  { %v6725_v58 = vadd.f32 %v6724_v56, %v6723_v52  ;;  %v6746_v59 = vpop.f32.mrb[25].mxu1  ;;  %v6726_v62 = vpop.f32.mrb[26].mxu0  ;;  %7047 = vmatprep.subr.bf16.mxu1 %v7585_v8  ;;  %7026 = vmatpush3.bf16.msra.mxu0 %v7586_v10  ;;  %v7613_v52 = vld [vmem:[%s9481_s1 + $0xee0] sm:$0xff]   ;;  %v7622_v8 = vld [vmem:[%s9481_s1 + $0xe30] sm:$0xff]   ;;  %v7624_v10 = vld [vmem:[%s9481_s1 + $0xe78] sm:$0xff]  }
 0x1b9   :  { %v6747_v61 = vadd.f32 %v6746_v59, %v6745_v54  ;;  %v6748_v1 = vpop.f32.mrb[26].mxu1  ;;  %v6727_v3 = vpop.f32.mrb[27].mxu0  ;;  %7027 = vmatprep.subr.bf16.mxu0 %v7588_v14  ;;  %v54_v14 = vld [vmem:[%s9482_s0 + $0xe0] sm:$0xff] }
 0x1ba   :  { %v5033_v0 = vadd.f32 %v6725_v58, %v9081_v13  ;;  %v6728_v6 = vadd.f32 %v6727_v3, %v6726_v62  ;;  %v6749_v7 = vpop.f32.mrb[27].mxu1  ;;  %v7615_v58 = vld [vmem:[%s9481_s1 + $0xea0] sm:$0xff]  }
 0x1bb   :  { %v6750_v9 = vadd.f32 %v6749_v7, %v6748_v1  ;;  %7048 = vmatpush3.bf16.msra.mxu1 %v7587_v12  ;;  %v7621_v7 = vld [vmem:[%s9481_s1 + $0xef0] sm:$0xff]   ;;  %v7626_v12 = vld [vmem:[%s9481_s1 + $0xe38] sm:$0xff]  }
 0x1bc   :  { %v9192_v4 = vadd.f32 %v6747_v61, %v5033_v0  ;;  %v5036_v11 = vadd.f32 %v6728_v6, %v9096_v22  ;;  %7049 = vmatprep.subr.bf16.mxu1 %v7589_v15  ;;  %7028 = vmatpush3.bf16.msra.mxu0 %v7590_v16  ;;  %v52_v22 = vld [vmem:[%s9482_s0 + $0xd0] sm:$0xff]  ;;  %v7616_v61 = vld [vmem:[%s9481_s1 + $0xe68] sm:$0xff]   ;;  %v86_v15 = vld [vmem:[%s9482_s0 + $0x1e0] sm:$0xff] }
 0x1bd   :  { %7029 = vmatprep.subr.bf16.mxu0 %v7592_v18  ;;  %v5915_v24 = vcombine.low %v52_v22, %v84_v23  ;;  %v5916_v25 = vcombine.high %v52_v22, %v84_v23  ;;  %v7617_v0 = vld [vmem:[%s9481_s1 + $0xee8] sm:$0xff]   ;;  %v7620_v6 = vld [vmem:[%s9481_s1 + $0xe70] sm:$0xff]   ;;  %v5919_v18 = vcombine.low %v54_v14, %v86_v15  ;;  %v7628_v22 = vld [vmem:[%s9481_s1 + $0xf40] sm:$0xff]  }
 0x1be   :  { %v9207_v13 = vadd.f32 %v6750_v9, %v5036_v11  ;;  %v7623_v9 = vld [vmem:[%s9481_s1 + $0xeb0] sm:$0xff]   ;;  %v7625_v11 = vld [vmem:[%s9481_s1 + $0xef8] sm:$0xff]   ;;  %v55_v16 = vld [vmem:[%s9482_s0 + $0xe8] sm:$0xff] }
 0x1bf   :  { %7050 = vmatpush3.bf16.msra.mxu1 %v7591_v17  ;;  %5604 = vmatprep.mubr.bf16.mxu0 %v5916_v25  ;;  %v87_v17 = vld [vmem:[%s9482_s0 + $0x1e8] sm:$0xff]  ;;  %v7629_v23 = vld [vmem:[%s9481_s1 + $0xfc0] sm:$0xff]  }
 0x1c0   :  { %7051 = vmatprep.subr.bf16.mxu1 %v7593_v19  ;;  %7030 = vmatpush3.bf16.msra.mxu0 %v7594_v20  ;;  %v5920_v19 = vcombine.high %v54_v14, %v86_v15  ;;  %v5921_v20 = vcombine.low %v55_v16, %v87_v17  ;;  %v7631_v25 = vld [vmem:[%s9481_s1 + $0xf80] sm:$0xff]  }
 0x1c1   :  { %7059 = vmatprep.subr.bf16.mxu0 %v7596_v30  ;;  %v7636_v30 = vld [vmem:[%s9481_s1 + $0xf50] sm:$0xff]  }
 0x1c3   :  { %7052 = vmatpush3.bf16.msra.mxu1 %v7595_v21  ;;  %5605 = vmatmul.mubr.bf16.vlgmr.msra.gmra.mrb[52].mxu0 %v5915_v24  ;;  %v5922_v21 = vcombine.high %v55_v16, %v87_v17  ;;  %v7630_v24 = vld [vmem:[%s9481_s1 + $0xf00] sm:$0xff]  }
 0x1c4   :  { %7081 = vmatprep.subr.bf16.mxu1 %v7597_v31  ;;  %7060 = vmatpush3.bf16.msra.mxu0 %v7598_v32  ;;  %v7637_v31 = vld [vmem:[%s9481_s1 + $0xfd0] sm:$0xff]  }
 0x1c5   :  { %7061 = vmatprep.subr.bf16.mxu0 %v7600_v34  ;;  %5686 = vmatprep.mubr.bf16.mxu0 %v5920_v19  ;;  %v7638_v32 = vld [vmem:[%s9481_s1 + $0xf10] sm:$0xff]   ;;  %v7640_v34 = vld [vmem:[%s9481_s1 + $0xf58] sm:$0xff]  }
 0x1c6   :  { %5646 = vmatmul.mubr.bf16.vlgmr.msra.gmra.mrb[52].mxu1 %v5917_v28  ;;  %v7634_v28 = vld [vmem:[%s9481_s1 + $0xf08] sm:$0xff]  }
 0x1c7   :  { %7082 = vmatpush3.bf16.msra.mxu1 %v7599_v33  ;;  %5727 = vmatprep.mubr.bf16.mxu1 %v5922_v21  ;;  %v7639_v33 = vld [vmem:[%s9481_s1 + $0xf90] sm:$0xff]  }
 0x1c8   :  { %7083 = vmatprep.subr.bf16.mxu1 %v7601_v35  ;;  %7062 = vmatpush3.bf16.msra.mxu0 %v7602_v36  ;;  %v7641_v35 = vld [vmem:[%s9481_s1 + $0xfd8] sm:$0xff]  }
 0x1c9   :  { %7063 = vmatprep.subr.bf16.mxu0 %v7604_v38  ;;  %v7642_v36 = vld [vmem:[%s9481_s1 + $0xf18] sm:$0xff]  }
 0x1ca   :  { %v7643_v38 = vld [vmem:[%s9481_s1 + $0xf98] sm:$0xff]  }
 0x1cb   :  { %7084 = vmatpush3.bf16.msra.mxu1 %v7603_v37 }
 0x1cc   :  { %7085 = vmatprep.subr.bf16.mxu1 %v7605_v39  ;;  %7064 = vmatpush3.bf16.msra.mxu0 %v7606_v40  ;;  %v7644_v40 = vld [vmem:[%s9481_s1 + $0xf60] sm:$0xff]  }
 0x1cd   :  { %7065 = vmatprep.subr.bf16.mxu0 %v7608_v42  ;;  %v7645_v42 = vld [vmem:[%s9481_s1 + $0xfe0] sm:$0xff]  }
 0x1cf   :  { %7086 = vmatpush3.bf16.msra.mxu1 %v7607_v41 }
 0x1d0   :  { %7087 = vmatprep.subr.bf16.mxu1 %v7609_v43  ;;  %7066 = vmatpush3.bf16.msra.mxu0 %v7610_v45  ;;  %v7646_v45 = vld [vmem:[%s9481_s1 + $0xf20] sm:$0xff]  }
 0x1d1   :  { %7067 = vmatprep.subr.bf16.mxu0 %v7612_v49 }
 0x1d3   :  { %7088 = vmatpush3.bf16.msra.mxu1 %v7611_v47 }
 0x1d4   :  { %7089 = vmatprep.subr.bf16.mxu1 %v7613_v52  ;;  %7068 = vmatpush3.bf16.msra.mxu0 %v7614_v55 }
 0x1d5   :  { %7069 = vmatprep.subr.bf16.mxu0 %v7616_v61  ;;  %v7652_v61 = vld [vmem:[%s9481_s1 + $0xf70] sm:$0xff]  }
 0x1d6   :  { %v6767_v44 = vpop.f32.mrb[28].mxu0 }
 0x1d7   :  { %v6789_v46 = vpop.f32.mrb[28].mxu1  ;;  %v6768_v48 = vpop.f32.mrb[29].mxu0  ;;  %7090 = vmatpush3.bf16.msra.mxu1 %v7615_v58 }
 0x1d8   :  { %v6769_v50 = vadd.f32 %v6768_v48, %v6767_v44  ;;  %v6790_v51 = vpop.f32.mrb[29].mxu1  ;;  %v6770_v54 = vpop.f32.mrb[30].mxu0  ;;  %7091 = vmatprep.subr.bf16.mxu1 %v7617_v0  ;;  %7070 = vmatpush3.bf16.msra.mxu0 %v7618_v2  ;;  %v7647_v48 = vld [vmem:[%s9481_s1 + $0xfa0] sm:$0xff]   ;;  %v7654_v0 = vld [vmem:[%s9481_s1 + $0xf30] sm:$0xff]   ;;  %v7656_v2 = vld [vmem:[%s9481_s1 + $0xf78] sm:$0xff]  }
 0x1d9   :  { %v6791_v53 = vadd.f32 %v6790_v51, %v6789_v46  ;;  %v6792_v57 = vpop.f32.mrb[30].mxu1  ;;  %v6771_v59 = vpop.f32.mrb[31].mxu0  ;;  %7071 = vmatprep.subr.bf16.mxu0 %v7620_v6  ;;  %v7648_v51 = vld [vmem:[%s9481_s1 + $0xf68] sm:$0xff]   ;;  %v56_v6 = vld [vmem:[%s9482_s0 + $0xf0] sm:$0xff] }
 0x1da   :  { %v5115_v56 = vadd.f32 %v6769_v50, %v9192_v4  ;;  %v6772_v62 = vadd.f32 %v6771_v59, %v6770_v54  ;;  %v6793_v63 = vpop.f32.mrb[31].mxu1  ;;  %v7619_v4 = vld [vmem:[%s9481_s1 + $0xea8] sm:$0xff]  }
 0x1db   :  { %v6794_v1 = vadd.f32 %v6793_v63, %v6792_v57  ;;  %7092 = vmatpush3.bf16.msra.mxu1 %v7619_v4  ;;  %v7649_v54 = vld [vmem:[%s9481_s1 + $0xfe8] sm:$0xff]   ;;  %v7653_v63 = vld [vmem:[%s9481_s1 + $0xff0] sm:$0xff]   ;;  %v7658_v4 = vld [vmem:[%s9481_s1 + $0xf38] sm:$0xff]  }
 0x1dc   :  { %v9306_v60 = vadd.f32 %v6791_v53, %v5115_v56  ;;  %v5118_v3 = vadd.f32 %v6772_v62, %v9207_v13  ;;  %7093 = vmatprep.subr.bf16.mxu1 %v7621_v7  ;;  %7072 = vmatpush3.bf16.msra.mxu0 %v7622_v8  ;;  %v7627_v13 = vld [vmem:[%s9481_s1 + $0xeb8] sm:$0xff]   ;;  %v7650_v57 = vld [vmem:[%s9481_s1 + $0xf28] sm:$0xff]   ;;  %v88_v7 = vld [vmem:[%s9482_s0 + $0x1f0] sm:$0xff] }
 0x1dd   :  { %7073 = vmatprep.subr.bf16.mxu0 %v7624_v10  ;;  %v7651_v59 = vld [vmem:[%s9481_s1 + $0xfa8] sm:$0xff]   ;;  %v57_v8 = vld [vmem:[%s9482_s0 + $0xf8] sm:$0xff]  ;;  %v5924_v10 = vcombine.high %v56_v6, %v88_v7 }
 0x1de   :  { %v9321_v5 = vadd.f32 %v6794_v1, %v5118_v3  ;;  %v7655_v1 = vld [vmem:[%s9481_s1 + $0xfb0] sm:$0xff]   ;;  %v7657_v3 = vld [vmem:[%s9481_s1 + $0xff8] sm:$0xff]  }
 0x1df   :  { %7094 = vmatpush3.bf16.msra.mxu1 %v7623_v9  ;;  %v5923_v9 = vcombine.low %v56_v6, %v88_v7 }
 0x1e0   :  { %7095 = vmatprep.subr.bf16.mxu1 %v7625_v11  ;;  %7074 = vmatpush3.bf16.msra.mxu0 %v7626_v12  ;;  %v89_v11 = vld [vmem:[%s9482_s0 + $0x1f8] sm:$0xff] }
 0x1e1   :  { %7103 = vmatprep.subr.bf16.mxu0 %v7628_v22  ;;  %v5925_v12 = vcombine.low %v57_v8, %v89_v11 }
 0x1e3   :  { %7096 = vmatpush3.bf16.msra.mxu1 %v7627_v13  ;;  %5687 = vmatmul.mubr.bf16.vlgmr.msra.gmra.mrb[56].mxu0 %v5919_v18  ;;  %v5926_v13 = vcombine.high %v57_v8, %v89_v11 }
 0x1e4   :  { %7125 = vmatprep.subr.bf16.mxu1 %v7629_v23  ;;  %7104 = vmatpush3.bf16.msra.mxu0 %v7630_v24 }
 0x1e5   :  { %7105 = vmatprep.subr.bf16.mxu0 %v7632_v26  ;;  %5768 = vmatprep.mubr.bf16.mxu0 %v5924_v10 }
 0x1e6   :  { %5728 = vmatmul.mubr.bf16.vlgmr.msra.gmra.mrb[56].mxu1 %v5921_v20 }
 0x1e7   :  { %7126 = vmatpush3.bf16.msra.mxu1 %v7631_v25  ;;  %5809 = vmatprep.mubr.bf16.mxu1 %v5926_v13 }
 0x1e8   :  { %7127 = vmatprep.subr.bf16.mxu1 %v7633_v27  ;;  %7106 = vmatpush3.bf16.msra.mxu0 %v7634_v28 }
 0x1e9   :  { %7107 = vmatprep.subr.bf16.mxu0 %v7636_v30 }
 0x1eb   :  { %7128 = vmatpush3.bf16.msra.mxu1 %v7635_v29 }
 0x1ec   :  { %7129 = vmatprep.subr.bf16.mxu1 %v7637_v31  ;;  %7108 = vmatpush3.bf16.msra.mxu0 %v7638_v32 }
 0x1ed   :  { %7109 = vmatprep.subr.bf16.mxu0 %v7640_v34 }
 0x1ef   :  { %7130 = vmatpush3.bf16.msra.mxu1 %v7639_v33 }
 0x1f0   :  { %7131 = vmatprep.subr.bf16.mxu1 %v7641_v35  ;;  %7110 = vmatpush3.bf16.msra.mxu0 %v7642_v36 }
 0x1f1   :  { %7111 = vmatprep.subr.bf16.mxu0 %v7644_v40 }
 0x1f3   :  { %7132 = vmatpush3.bf16.msra.mxu1 %v7643_v38 }
 0x1f4   :  { %7133 = vmatprep.subr.bf16.mxu1 %v7645_v42  ;;  %7112 = vmatpush3.bf16.msra.mxu0 %v7646_v45 }
 0x1f5   :  { %7113 = vmatprep.subr.bf16.mxu0 %v7648_v51 }
 0x1f6   :  { %v6811_v37 = vpop.f32.mrb[32].mxu0 }
 0x1f7   :  { %v6812_v41 = vpop.f32.mrb[33].mxu0  ;;  %7134 = vmatpush3.bf16.msra.mxu1 %v7647_v48 }
 0x1f8   :  { %v6813_v43 = vadd.f32 %v6812_v41, %v6811_v37  ;;  %v6814_v47 = vpop.f32.mrb[34].mxu0  ;;  %7135 = vmatprep.subr.bf16.mxu1 %v7649_v54  ;;  %7114 = vmatpush3.bf16.msra.mxu0 %v7650_v57 }
 0x1f9   :  { %v6833_v39 = vpop.f32.mrb[32].mxu1  ;;  %v6815_v52 = vpop.f32.mrb[35].mxu0  ;;  %7115 = vmatprep.subr.bf16.mxu0 %v7652_v61 }
 0x1fa   :  { %v6834_v44 = vpop.f32.mrb[33].mxu1  ;;  %v5197_v49 = vadd.f32 %v6813_v43, %v9306_v60  ;;  %v6816_v55 = vadd.f32 %v6815_v52, %v6814_v47 }
 0x1fb   :  { %v6835_v46 = vadd.f32 %v6834_v44, %v6833_v39  ;;  %v6836_v50 = vpop.f32.mrb[34].mxu1  ;;  %7136 = vmatpush3.bf16.msra.mxu1 %v7651_v59 }
 0x1fc   :  { %v6837_v56 = vpop.f32.mrb[35].mxu1  ;;  %v5200_v60 = vadd.f32 %v6816_v55, %v9321_v5  ;;  %7137 = vmatprep.subr.bf16.mxu1 %v7653_v63  ;;  %7116 = vmatpush3.bf16.msra.mxu0 %v7654_v0  ;;  %v7659_v5 = vld [vmem:[%s9481_s1 + $0xfb8] sm:$0xff]  }
 0x1fd   :  { %v5238_v53 = vadd.f32 %v6835_v46, %v5197_v49  ;;  %v6838_v58 = vadd.f32 %v6837_v56, %v6836_v50  ;;  %7117 = vmatprep.subr.bf16.mxu0 %v7656_v2 }
 0x1ff   :  { %v5241_v62 = vadd.f32 %v6838_v58, %v5200_v60  ;;  %7138 = vmatpush3.bf16.msra.mxu1 %v7655_v1 }
 0x200   :  { %7139 = vmatprep.subr.bf16.mxu1 %v7657_v3  ;;  %7118 = vmatpush3.bf16.msra.mxu0 %v7658_v4 }
 0x203   :  { %7140 = vmatpush3.bf16.msra.mxu1 %v7659_v5  ;;  %5769 = vmatmul.mubr.bf16.vlgmr.msra.gmra.mrb[60].mxu0 %v5923_v9 }
 0x206   :  { %5810 = vmatmul.mubr.bf16.vlgmr.msra.gmra.mrb[60].mxu1 %v5925_v12 }
 0x216   :  { %v6855_v14 = vpop.f32.mrb[36].mxu0 }
 0x217   :  { %v6856_v16 = vpop.f32.mrb[37].mxu0 }
 0x218   :  { %v6857_v17 = vadd.f32 %v6856_v16, %v6855_v14  ;;  %v6858_v19 = vpop.f32.mrb[38].mxu0 }
 0x219   :  { %v6877_v15 = vpop.f32.mrb[36].mxu1  ;;  %v6859_v22 = vpop.f32.mrb[39].mxu0 }
 0x21a   :  { %v6878_v18 = vpop.f32.mrb[37].mxu1  ;;  %v5279_v23 = vadd.f32 %v6857_v17, %v5238_v53  ;;  %v6860_v24 = vadd.f32 %v6859_v22, %v6858_v19 }
 0x21b   :  { %v6879_v20 = vadd.f32 %v6878_v18, %v6877_v15  ;;  %v6880_v21 = vpop.f32.mrb[38].mxu1 }
 0x21c   :  { %v6881_v25 = vpop.f32.mrb[39].mxu1  ;;  %v5282_v28 = vadd.f32 %v6860_v24, %v5241_v62 }
 0x21d   :  { %v6882_v26 = vadd.f32 %v6881_v25, %v6880_v21  ;;  %v5320_v27 = vadd.f32 %v6879_v20, %v5279_v23 }
 0x21f   :  { %v5323_v29 = vadd.f32 %v6882_v26, %v5282_v28 }
 0x236   :  { %v6899_v30 = vpop.f32.mrb[40].mxu0 }
 0x237   :  { %v6900_v32 = vpop.f32.mrb[41].mxu0 }
 0x238   :  { %v6901_v33 = vadd.f32 %v6900_v32, %v6899_v30  ;;  %v6902_v35 = vpop.f32.mrb[42].mxu0 }
 0x239   :  { %v6921_v31 = vpop.f32.mrb[40].mxu1  ;;  %v6903_v38 = vpop.f32.mrb[43].mxu0 }
 0x23a   :  { %v6922_v34 = vpop.f32.mrb[41].mxu1  ;;  %v5361_v39 = vadd.f32 %v6901_v33, %v5320_v27  ;;  %v6904_v40 = vadd.f32 %v6903_v38, %v6902_v35 }
 0x23b   :  { %v6923_v36 = vadd.f32 %v6922_v34, %v6921_v31  ;;  %v6924_v37 = vpop.f32.mrb[42].mxu1 }
 0x23c   :  { %v6925_v41 = vpop.f32.mrb[43].mxu1  ;;  %v5364_v44 = vadd.f32 %v6904_v40, %v5323_v29 }
 0x23d   :  { %v6926_v42 = vadd.f32 %v6925_v41, %v6924_v37  ;;  %v5402_v43 = vadd.f32 %v6923_v36, %v5361_v39 }
 0x23f   :  { %v5405_v45 = vadd.f32 %v6926_v42, %v5364_v44 }
 0x256   :  { %v6943_v46 = vpop.f32.mrb[44].mxu0 }
 0x257   :  { %v6944_v48 = vpop.f32.mrb[45].mxu0 }
 0x258   :  { %v6945_v50 = vadd.f32 %v6944_v48, %v6943_v46  ;;  %v6946_v52 = vpop.f32.mrb[46].mxu0 }
 0x259   :  { %v6965_v47 = vpop.f32.mrb[44].mxu1  ;;  %v6947_v54 = vpop.f32.mrb[47].mxu0 }
 0x25a   :  { %v6966_v49 = vpop.f32.mrb[45].mxu1  ;;  %v5443_v56 = vadd.f32 %v6945_v50, %v5402_v43  ;;  %v6948_v57 = vadd.f32 %v6947_v54, %v6946_v52 }
 0x25b   :  { %v6967_v51 = vadd.f32 %v6966_v49, %v6965_v47  ;;  %v6968_v53 = vpop.f32.mrb[46].mxu1 }
 0x25c   :  { %v6969_v55 = vpop.f32.mrb[47].mxu1  ;;  %v5446_v60 = vadd.f32 %v6948_v57, %v5405_v45 }
 0x25d   :  { %v6970_v58 = vadd.f32 %v6969_v55, %v6968_v53  ;;  %v5484_v59 = vadd.f32 %v6967_v51, %v5443_v56 }
 0x25f   :  { %v5487_v61 = vadd.f32 %v6970_v58, %v5446_v60 }
 0x276   :  { %v6987_v62 = vpop.f32.mrb[48].mxu0 }
 0x277   :  { %v6988_v0 = vpop.f32.mrb[49].mxu0 }
 0x278   :  { %v6989_v1 = vadd.f32 %v6988_v0, %v6987_v62  ;;  %v6990_v3 = vpop.f32.mrb[50].mxu0 }
 0x279   :  { %v7009_v63 = vpop.f32.mrb[48].mxu1  ;;  %v6991_v6 = vpop.f32.mrb[51].mxu0 }
 0x27a   :  { %v7010_v2 = vpop.f32.mrb[49].mxu1  ;;  %v5525_v7 = vadd.f32 %v6989_v1, %v5484_v59  ;;  %v6992_v8 = vadd.f32 %v6991_v6, %v6990_v3 }
 0x27b   :  { %v7011_v4 = vadd.f32 %v7010_v2, %v7009_v63  ;;  %v7012_v5 = vpop.f32.mrb[50].mxu1  ;;  %v6440_v63 = vld [vmem:[%s9484_s3] ss:$0 sm:$0xff] }
 0x27c   :  { %v7013_v9 = vpop.f32.mrb[51].mxu1  ;;  %v5528_v12 = vadd.f32 %v6992_v8, %v5487_v61  ;;  %v6439_v61 = vld [vmem:[%s9483_s2] ss:$0 sm:$0xff] }
 0x27d   :  { %v7014_v10 = vadd.f32 %v7013_v9, %v7012_v5  ;;  %v5566_v11 = vadd.f32 %v7011_v4, %v5525_v7 }
 0x27f   :  { %v5569_v13 = vadd.f32 %v7014_v10, %v5528_v12 }
 0x296   :  { %v7031_v14 = vpop.f32.mrb[52].mxu0 }
 0x297   :  { %v7032_v16 = vpop.f32.mrb[53].mxu0 }
 0x298   :  { %v7033_v17 = vadd.f32 %v7032_v16, %v7031_v14  ;;  %v7034_v19 = vpop.f32.mrb[54].mxu0 }
 0x299   :  { %v7053_v15 = vpop.f32.mrb[52].mxu1  ;;  %v7035_v22 = vpop.f32.mrb[55].mxu0 }
 0x29a   :  { %v7054_v18 = vpop.f32.mrb[53].mxu1  ;;  %v5607_v23 = vadd.f32 %v7033_v17, %v5566_v11  ;;  %v7036_v24 = vadd.f32 %v7035_v22, %v7034_v19 }
 0x29b   :  { %v7055_v20 = vadd.f32 %v7054_v18, %v7053_v15  ;;  %v7056_v21 = vpop.f32.mrb[54].mxu1 }
 0x29c   :  { %v7057_v25 = vpop.f32.mrb[55].mxu1  ;;  %v5610_v28 = vadd.f32 %v7036_v24, %v5569_v13 }
 0x29d   :  { %v7058_v26 = vadd.f32 %v7057_v25, %v7056_v21  ;;  %v5648_v27 = vadd.f32 %v7055_v20, %v5607_v23 }
 0x29f   :  { %v5651_v29 = vadd.f32 %v7058_v26, %v5610_v28 }
 0x2b6   :  { %v7075_v30 = vpop.f32.mrb[56].mxu0 }
 0x2b7   :  { %v7076_v32 = vpop.f32.mrb[57].mxu0 }
 0x2b8   :  { %v7077_v34 = vadd.f32 %v7076_v32, %v7075_v30  ;;  %v7078_v36 = vpop.f32.mrb[58].mxu0 }
 0x2b9   :  { %v7097_v31 = vpop.f32.mrb[56].mxu1  ;;  %v7079_v38 = vpop.f32.mrb[59].mxu0 }
 0x2ba   :  { %v7098_v33 = vpop.f32.mrb[57].mxu1  ;;  %v5689_v40 = vadd.f32 %v7077_v34, %v5648_v27  ;;  %v7080_v41 = vadd.f32 %v7079_v38, %v7078_v36 }
 0x2bb   :  { %v7099_v35 = vadd.f32 %v7098_v33, %v7097_v31  ;;  %v7100_v37 = vpop.f32.mrb[58].mxu1 }
 0x2bc   :  { %v7101_v39 = vpop.f32.mrb[59].mxu1  ;;  %v5692_v44 = vadd.f32 %v7080_v41, %v5651_v29 }
 0x2bd   :  { %v7102_v42 = vadd.f32 %v7101_v39, %v7100_v37  ;;  %v5730_v43 = vadd.f32 %v7099_v35, %v5689_v40 }
 0x2bf   :  { %v5733_v45 = vadd.f32 %v7102_v42, %v5692_v44 }
 0x2d6   :  { %v7119_v46 = vpop.f32.mrb[60].mxu0 }
 0x2d7   :  { %v7120_v48 = vpop.f32.mrb[61].mxu0 }
 0x2d8   :  { %v7121_v49 = vadd.f32 %v7120_v48, %v7119_v46  ;;  %v7122_v51 = vpop.f32.mrb[62].mxu0 }
 0x2d9   :  { %v7141_v47 = vpop.f32.mrb[60].mxu1  ;;  %v7123_v54 = vpop.f32.mrb[63].mxu0 }
 0x2da   :  { %v7142_v50 = vpop.f32.mrb[61].mxu1  ;;  %v5771_v55 = vadd.f32 %v7121_v49, %v5730_v43  ;;  %v7124_v56 = vadd.f32 %v7123_v54, %v7122_v51 }
 0x2db   :  { %v7143_v52 = vadd.f32 %v7142_v50, %v7141_v47  ;;  %v7144_v53 = vpop.f32.mrb[62].mxu1 }
 0x2dc   :  { %v7145_v57 = vpop.f32.mrb[63].mxu1  ;;  %v5774_v60 = vadd.f32 %v7124_v56, %v5733_v45 }
 0x2dd   :  { %v7146_v58 = vadd.f32 %v7145_v57, %v7144_v53  ;;  %v5812_v59 = vadd.f32 %v7143_v52, %v5771_v55 }
 0x2df   :  { %v5815_v62 = vadd.f32 %v7146_v58, %v5774_v60  ;;  %v5834_v0 = vmul.f32 %v6439_v61, %v5812_v59 }
 0x2e1   :  { %v5843_v1 = vadd.f32 %v6440_v63, %v5834_v0  ;;  %v5835_v2 = vmul.f32 %v6439_v61, %v5815_v62 }
 0x2e3   :  { %v6441_v3 = vmul.f32 -1.442695, %v5843_v1  ;;  %v5844_v4 = vadd.f32 %v6440_v63, %v5835_v2 }
 0x2e5   :  { %7660 = vpow2.f32 %v6441_v3  ;;  %v6442_v5 = vmul.f32 -1.442695, %v5844_v4 }
 0x2e7   :  { %7662 = vpow2.f32 %v6442_v5 }
 0x2ef   :  { %v7661_v6 = vpop.eup %7660 }
 0x2f0   :  { %v5851_v7 = vadd.f32 1.0, %v7661_v6 }
 0x2f1   :  { %v7663_v8 = vpop.eup %7662 }
 0x2f2   :  { %7664 = vrcp.f32 %v5851_v7  ;;  %v5852_v9 = vadd.f32 1.0, %v7663_v8 }
 0x2f4   :  { %7666 = vrcp.f32 %v5852_v9 }
 0x2fc   :  { %v7665_v10 = vpop.eup %7664 }
 0x2fd   :  { %5857 = vst [vmem:[%s9485_s4] sm:$0xff] %v7665_v10 }
 0x2fe   :  { %v7667_v11 = vpop.eup %7666 }
 0x2ff   :  { %5858 = vst [vmem:[%s9485_s4 + $0x8] sm:$0xff] %v7667_v11 }

</bundles_post_ra>
